<compile_context>
chip_gen: v7x
topology: tpu7x:2x2x1
jax: 0.10.0
libtpu: 0.0.40
codegen_flags: <defaults>
</compile_context>

<pallas_src>
from typing import NamedTuple

import jax
import jax.numpy as jnp
from jax.experimental import pallas as pl
from jax.experimental.pallas import tpu as pltpu


def _round_up(n, m):
    return (n + m - 1) // m * m


def frontend_kernel(x_ref, w1_ref, b1_ref, w2_ref, b2_ref, o_ref):
    # fc1: (bm, D_in) @ (D_in, D_lat) with f32 accumulation on the MXU.
    h = jnp.dot(x_ref[...], w1_ref[...], preferred_element_type=jnp.float32)
    # Bias + ReLU in f32 on the VPU.
    h = jnp.maximum(h + b1_ref[...], 0.0)
    # dropout #1: identity in eval mode.
    # fc2: intentional downcast of the f32 intermediate to the compute dtype
    # (bf16 by default) for the second matmul; accumulation stays f32.
    y = jnp.dot(h.astype(w2_ref.dtype), w2_ref[...], preferred_element_type=jnp.float32)
    y = y + b2_ref[...]
    # dropout #2: identity in eval mode.
    o_ref[...] = y.astype(o_ref.dtype)


class FrontEndParams(NamedTuple):
    w1: jax.Array   # (D_in, D_lat), compute dtype
    b1: jax.Array   # (1, D_lat), f32
    w2: jax.Array   # (D_lat, D_out_p), compute dtype, padded to a lane multiple
    b2: jax.Array   # (1, D_out_p), f32, padded to a lane multiple
    d_out: int      # true (unpadded) output dim


def prepare_frontend_params(w1, b1, w2, b2, *, compute_dtype=jnp.bfloat16):
    """One-time conversion of weights into kernel layout (cast + lane-dense padding).

    Hoisted out of the per-call path so the cast/pad HBM traffic isn't paid per forward.
    """
    if b1.ndim == 1:
        b1 = b1[None, :]
    if b2.ndim == 1:
        b2 = b2[None, :]
    d_out = w2.shape[1]
    d_out_p = _round_up(d_out, 128)          # lane-dense output -> unmasked stores
    if d_out_p != d_out:
        w2 = jnp.pad(w2, ((0, 0), (0, d_out_p - d_out)))
        b2 = jnp.pad(b2, ((0, 0), (0, d_out_p - d_out)))
    return FrontEndParams(
        w1=w1.astype(compute_dtype),
        b1=b1.astype(jnp.float32),
        w2=w2.astype(compute_dtype),
        b2=b2.astype(jnp.float32),
        d_out=int(d_out),
    )


def _default_block_m():
    # v5e's MXU is ~4.7x slower, so bm=256 already hides the ~0.35us grid-step
    # overhead there; v6e/v7x want bigger row tiles (multiples of 256).
    try:
        kind = jax.devices()[0].device_kind.lower()
    except Exception:
        return 512
    if "v5" in kind and ("lite" in kind or "v5e" in kind):
        return 256
    return 512


def frontend_forward(x, params: FrontEndParams, *, block_m=None):
    """Computes ReLU(x @ W1 + b1) @ W2 + b2 (eval-mode dropout = identity)."""
    w1c, b1f, w2c, b2f, d_out = params
    B, D_in = x.shape
    D_lat = w1c.shape[1]
    D_out_p = w2c.shape[1]
    out_dtype = x.dtype
    compute_dtype = w1c.dtype
    c_bytes = jnp.dtype(compute_dtype).itemsize
    o_bytes = jnp.dtype(out_dtype).itemsize

    if block_m is None:
        block_m = _default_block_m()

    # ---- row-tile selection ----
    if B <= 128:
        # Don't pad tiny batches to 128 rows: min sublane tile is 16 (bf16) / 8 (f32).
        bm = _round_up(B, 16 if c_bytes == 2 else 8)
    else:
        bm = min(block_m, _round_up(B, 128))
        # Keep >=2 grid steps so v7x's two TensorCores both get work ("parallel" axis).
        if _round_up(B, bm) // bm < 2:
            bm = max(128, min(bm, _round_up((B + 1) // 2, 128)))

    # ---- VMEM accounting (incl. the fc1 intermediate) + auto-shrink of bm ----
    VMEM_BUDGET = 44 * 1024 * 1024   # leave headroom under v7x's 64 MiB per-core VMEM

    def vmem_bytes(bm_):
        return (2 * bm_ * D_in * c_bytes                        # x tiles (double buffered)
                + 2 * bm_ * D_out_p * o_bytes                   # out tiles (double buffered)
                + (D_in * D_lat + D_lat * D_out_p) * c_bytes    # resident weights (single)
                + (D_lat + D_out_p) * 4                         # resident biases
                + bm_ * D_lat * (4 + c_bytes))                  # f32 h + compute-dtype copy

    while bm > 128 and vmem_bytes(bm) > VMEM_BUDGET:
        bm = max(128, bm // 2)
    vmem_est = vmem_bytes(bm)
    vmem_limit = int(min(max(vmem_est + vmem_est // 2, 32 * 1024 * 1024),
                         56 * 1024 * 1024))

    B_p = _round_up(B, bm)
    if B_p != B:
        x = jnp.pad(x, ((0, B_p - B), (0, 0)))
    xc = x.astype(compute_dtype)
    grid = (B_p // bm,)

    flops = 2 * B_p * (D_in * D_lat + D_lat * D_out_p)
    bytes_accessed = (B_p * D_in * c_bytes
                      + (D_in * D_lat + D_lat * D_out_p) * c_bytes
                      + (D_lat + D_out_p) * 4
                      + B_p * D_out_p * o_bytes)

    def run(single_buffer_weights):
        if single_buffer_weights:
            # Constant index_map -> keep ONE VMEM copy of each weight, not two.
            def wspec(shape):
                return pl.BlockSpec(shape, lambda i: (0, 0),
                                    pipeline_mode=pl.Buffered(1))
        else:
            def wspec(shape):
                return pl.BlockSpec(shape, lambda i: (0, 0))
        return pl.pallas_call(
            frontend_kernel,
            out_shape=jax.ShapeDtypeStruct((B_p, D_out_p), out_dtype),
            grid_spec=pltpu.PrefetchScalarGridSpec(
                num_scalar_prefetch=0,
                grid=grid,
                in_specs=[
                    pl.BlockSpec((bm, D_in), lambda i: (i, 0)),  # x tile (streamed)
                    wspec((D_in, D_lat)),                        # W1 (VMEM resident)
                    wspec((1, D_lat)),                           # b1
                    wspec((D_lat, D_out_p)),                     # W2 (VMEM resident)
                    wspec((1, D_out_p)),                         # b2
                ],
                out_specs=pl.BlockSpec((bm, D_out_p), lambda i: (i, 0)),
            ),
            compiler_params=pltpu.CompilerParams(
                dimension_semantics=("parallel",),
                vmem_limit_bytes=vmem_limit,
            ),
            cost_estimate=pl.CostEstimate(
                flops=int(flops),
                transcendentals=0,
                bytes_accessed=int(bytes_accessed),
            ),
        )(xc, w1c, b1f, w2c, b2f)

    try:
        out = run(True)
    except Exception:
        # Fallback if this JAX build rejects single-buffered pipeline_mode.
        out = run(False)

    # Strip batch / output-lane padding.
    return out[:B, :d_out]


def init_frontend_params(key, inputdim, latent_dim, output_dim, dtype=jnp.float32):
    # Matches FrontEnd.init_weights(): weights ~ U(-0.1, 0.1), biases = 0.
    k1, k2 = jax.random.split(key)
    initrange = 0.1
    # Stored as (in, out) = PyTorch weight.T
    w1 = jax.random.uniform(k1, (inputdim, latent_dim), dtype, -initrange, initrange)
    b1 = jnp.zeros((latent_dim,), dtype)
    w2 = jax.random.uniform(k2, (latent_dim, output_dim), dtype, -initrange, initrange)
    b2 = jnp.zeros((output_dim,), dtype)
    return w1, b1, w2, b2


if __name__ == "__main__":
    # Module default dims (inputdim=400, latent_dim=2048, output_dim=64).
    inputdim, latent_dim, output_dim = 400, 2048, 64

    key = jax.random.PRNGKey(0)
    kx, kx2, kp = jax.random.split(key, 3)
    w1, b1, w2, b2 = init_frontend_params(kp, inputdim, latent_dim, output_dim)

    # One-time weight preparation (hoisted out of the per-call path).
    params_bf16 = prepare_frontend_params(w1, b1, w2, b2)  # bf16 MXU operands
    params_f32 = prepare_frontend_params(w1, b1, w2, b2, compute_dtype=jnp.float32)

    def ref_forward(xv):
        h = jnp.maximum(jnp.dot(xv, w1, precision="highest") + b1[None, :], 0.0)
        return jnp.dot(h, w2, precision="highest") + b2[None, :]

    # --- tiny batch (B=16): small row tile (bm=16), single grid step ---
    x_small = jax.random.normal(kx, (16, inputdim), jnp.float32)
    ref_small = ref_forward(x_small)

    out_f32 = jax.block_until_ready(frontend_forward(x_small, params_f32))
    assert out_f32.shape == (16, output_dim)
    assert jnp.allclose(out_f32, ref_small, atol=1e-2, rtol=1e-2)

    out_bf16 = jax.block_until_ready(frontend_forward(x_small, params_bf16))
    assert out_bf16.shape == (16, output_dim)
    assert jnp.allclose(out_bf16, ref_small, atol=1e-1, rtol=5e-2)

    # --- larger batch (B=384): exercises row padding + multi-step "parallel" grid ---
    x_big = jax.random.normal(kx2, (384, inputdim), jnp.float32)
    ref_big = ref_forward(x_big)
    out_big = jax.block_until_ready(frontend_forward(x_big, params_bf16))
    assert out_big.shape == (384, output_dim)
    assert jnp.allclose(out_big, ref_big, atol=1e-1, rtol=5e-2)

    print("KERNEL_OK")
</pallas_src>

<mosaic_0001>
module attributes {stable_mosaic.version = 11 : i64} {
  func.func @frontend_kernel(%arg0: i32, %arg1: memref<16x400xf32, #tpu.memory_space<vmem>>, %arg2: memref<400x2048xf32, #tpu.memory_space<vmem>>, %arg3: memref<1x2048xf32, #tpu.memory_space<vmem>>, %arg4: memref<2048x128xf32, #tpu.memory_space<vmem>>, %arg5: memref<1x128xf32, #tpu.memory_space<vmem>>, %arg6: memref<16x128xf32, #tpu.memory_space<vmem>>) attributes {dimension_semantics = [#tpu.dimension_semantics<parallel>], iteration_bounds = array<i64: 1>, scalar_prefetch = 0 : i64, scratch_operands = 0 : i64, tpu.core_type = #tpu.core_type<tc>, window_params = [{transform_indices = @transform_0, window_bounds = array<i64: 16, 400>}, {pipeline_mode = #tpu.pipeline_mode<synchronous>, transform_indices = @transform_1, window_bounds = array<i64: 400, 2048>}, {pipeline_mode = #tpu.pipeline_mode<synchronous>, transform_indices = @transform_2, window_bounds = array<i64: 1, 2048>}, {pipeline_mode = #tpu.pipeline_mode<synchronous>, transform_indices = @transform_3, window_bounds = array<i64: 2048, 128>}, {pipeline_mode = #tpu.pipeline_mode<synchronous>, transform_indices = @transform_4, window_bounds = array<i64: 1, 128>}, {transform_indices = @transform_5, window_bounds = array<i64: 16, 128>}]} {
    %c0 = arith.constant 0 : index
    %c0_0 = arith.constant 0 : index
    %0 = vector.load %arg1[%c0, %c0_0] : memref<16x400xf32, #tpu.memory_space<vmem>>, vector<16x400xf32>
    %c0_1 = arith.constant 0 : index
    %c0_2 = arith.constant 0 : index
    %1 = vector.load %arg2[%c0_1, %c0_2] : memref<400x2048xf32, #tpu.memory_space<vmem>>, vector<400x2048xf32>
    %cst = arith.constant dense<0.000000e+00> : vector<16x2048xf32>
    %2 = tpu.matmul %0, %1, %cst {dimension_numbers = #tpu.dot_dimension_numbers<[1], [0], [0], [1], [0, 0, 1, 1], [], []>} : vector<16x400xf32>, vector<400x2048xf32>, vector<16x2048xf32> -> vector<16x2048xf32>
    %c0_3 = arith.constant 0 : index
    %c0_4 = arith.constant 0 : index
    %3 = vector.load %arg3[%c0_3, %c0_4] : memref<1x2048xf32, #tpu.memory_space<vmem>>, vector<1x2048xf32>
    %4 = vector.broadcast %3 : vector<1x2048xf32> to vector<16x2048xf32>
    %5 = arith.addf %2, %4 : vector<16x2048xf32>
    %cst_5 = arith.constant 0.000000e+00 : f32
    %6 = vector.broadcast %cst_5 : f32 to vector<16x2048xf32>
    %7 = arith.maximumf %5, %6 : vector<16x2048xf32>
    %c0_6 = arith.constant 0 : index
    %c0_7 = arith.constant 0 : index
    %8 = vector.load %arg4[%c0_6, %c0_7] : memref<2048x128xf32, #tpu.memory_space<vmem>>, vector<2048x128xf32>
    %cst_8 = arith.constant dense<0.000000e+00> : vector<16x128xf32>
    %9 = tpu.matmul %7, %8, %cst_8 {dimension_numbers = #tpu.dot_dimension_numbers<[1], [0], [0], [1], [0, 0, 1, 1], [], []>} : vector<16x2048xf32>, vector<2048x128xf32>, vector<16x128xf32> -> vector<16x128xf32>
    %c0_9 = arith.constant 0 : index
    %c0_10 = arith.constant 0 : index
    %10 = vector.load %arg5[%c0_9, %c0_10] : memref<1x128xf32, #tpu.memory_space<vmem>>, vector<1x128xf32>
    %11 = vector.broadcast %10 : vector<1x128xf32> to vector<16x128xf32>
    %12 = arith.addf %9, %11 : vector<16x128xf32>
    %c0_11 = arith.constant 0 : index
    %c0_12 = arith.constant 0 : index
    %13 = vector.load %arg6[%c0_11, %c0_12] : memref<16x128xf32, #tpu.memory_space<vmem>>, vector<16x128xf32>
    tpu.vector_store %arg6[%c0_11, %c0_12], %12 {strides = array<i32>} : memref<16x128xf32, #tpu.memory_space<vmem>>, vector<16x128xf32>,
    return
  }
  func.func @transform_0(%arg0: i32) -> (i32, i32) {
    %c0_i32 = arith.constant 0 : i32
    %c0_i32_0 = arith.constant 0 : i32
    return %arg0, %c0_i32 : i32, i32
  }
  func.func @transform_1(%arg0: i32) -> (i32, i32) {
    %c0_i32 = arith.constant 0 : i32
    %c0_i32_0 = arith.constant 0 : i32
    %c0_i32_1 = arith.constant 0 : i32
    return %c0_i32, %c0_i32_0 : i32, i32
  }
  func.func @transform_2(%arg0: i32) -> (i32, i32) {
    %c0_i32 = arith.constant 0 : i32
    %c0_i32_0 = arith.constant 0 : i32
    %c0_i32_1 = arith.constant 0 : i32
    return %c0_i32, %c0_i32_0 : i32, i32
  }
  func.func @transform_3(%arg0: i32) -> (i32, i32) {
    %c0_i32 = arith.constant 0 : i32
    %c0_i32_0 = arith.constant 0 : i32
    %c0_i32_1 = arith.constant 0 : i32
    return %c0_i32, %c0_i32_0 : i32, i32
  }
  func.func @transform_4(%arg0: i32) -> (i32, i32) {
    %c0_i32 = arith.constant 0 : i32
    %c0_i32_0 = arith.constant 0 : i32
    %c0_i32_1 = arith.constant 0 : i32
    return %c0_i32, %c0_i32_0 : i32, i32
  }
  func.func @transform_5(%arg0: i32) -> (i32, i32) {
    %c0_i32 = arith.constant 0 : i32
    %c0_i32_0 = arith.constant 0 : i32
    return %arg0, %c0_i32 : i32, i32
  }
}

module attributes {stable_mosaic.version = 11 : i64} {
  func.func @frontend_kernel(%arg0: i32, %arg1: memref<16x400xf32, #tpu.memory_space<vmem>>, %arg2: memref<400x2048xf32, #tpu.memory_space<vmem>>, %arg3: memref<1x2048xf32, #tpu.memory_space<vmem>>, %arg4: memref<2048x128xf32, #tpu.memory_space<vmem>>, %arg5: memref<1x128xf32, #tpu.memory_space<vmem>>, %arg6: memref<16x128xf32, #tpu.memory_space<vmem>>) attributes {dimension_semantics = [#tpu.dimension_semantics<parallel>], iteration_bounds = array<i64: 1>, scalar_prefetch = 0 : i64, scratch_operands = 0 : i64, tpu.core_type = #tpu.core_type<tc>, window_params = [{transform_indices = @transform_0, window_bounds = array<i64: 16, 400>}, {pipeline_mode = #tpu.pipeline_mode<synchronous>, transform_indices = @transform_1, window_bounds = array<i64: 400, 2048>}, {pipeline_mode = #tpu.pipeline_mode<synchronous>, transform_indices = @transform_2, window_bounds = array<i64: 1, 2048>}, {pipeline_mode = #tpu.pipeline_mode<synchronous>, transform_indices = @transform_3, window_bounds = array<i64: 2048, 128>}, {pipeline_mode = #tpu.pipeline_mode<synchronous>, transform_indices = @transform_4, window_bounds = array<i64: 1, 128>}, {transform_indices = @transform_5, window_bounds = array<i64: 16, 128>}]} {
    %c0 = arith.constant 0 : index
    %c0_0 = arith.constant 0 : index
    %0 = vector.load %arg1[%c0, %c0_0] : memref<16x400xf32, #tpu.memory_space<vmem>>, vector<16x400xf32>
    %c0_1 = arith.constant 0 : index
    %c0_2 = arith.constant 0 : index
    %1 = vector.load %arg2[%c0_1, %c0_2] : memref<400x2048xf32, #tpu.memory_space<vmem>>, vector<400x2048xf32>
    %cst = arith.constant dense<0.000000e+00> : vector<16x2048xf32>
    %2 = tpu.matmul %0, %1, %cst {dimension_numbers = #tpu.dot_dimension_numbers<[1], [0], [0], [1], [0, 0, 1, 1], [], []>} : vector<16x400xf32>, vector<400x2048xf32>, vector<16x2048xf32> -> vector<16x2048xf32>
    %c0_3 = arith.constant 0 : index
    %c0_4 = arith.constant 0 : index
    %3 = vector.load %arg3[%c0_3, %c0_4] : memref<1x2048xf32, #tpu.memory_space<vmem>>, vector<1x2048xf32>
    %4 = vector.broadcast %3 : vector<1x2048xf32> to vector<16x2048xf32>
    %5 = arith.addf %2, %4 : vector<16x2048xf32>
    %cst_5 = arith.constant 0.000000e+00 : f32
    %6 = vector.broadcast %cst_5 : f32 to vector<16x2048xf32>
    %7 = arith.maximumf %5, %6 : vector<16x2048xf32>
    %c0_6 = arith.constant 0 : index
    %c0_7 = arith.constant 0 : index
    %8 = vector.load %arg4[%c0_6, %c0_7] : memref<2048x128xf32, #tpu.memory_space<vmem>>, vector<2048x128xf32>
    %cst_8 = arith.constant dense<0.000000e+00> : vector<16x128xf32>
    %9 = tpu.matmul %7, %8, %cst_8 {dimension_numbers = #tpu.dot_dimension_numbers<[1], [0], [0], [1], [0, 0, 1, 1], [], []>} : vector<16x2048xf32>, vector<2048x128xf32>, vector<16x128xf32> -> vector<16x128xf32>
    %c0_9 = arith.constant 0 : index
    %c0_10 = arith.constant 0 : index
    %10 = vector.load %arg5[%c0_9, %c0_10] : memref<1x128xf32, #tpu.memory_space<vmem>>, vector<1x128xf32>
    %11 = vector.broadcast %10 : vector<1x128xf32> to vector<16x128xf32>
    %12 = arith.addf %9, %11 : vector<16x128xf32>
    %c0_11 = arith.constant 0 : index
    %c0_12 = arith.constant 0 : index
    %13 = vector.load %arg6[%c0_11, %c0_12] : memref<16x128xf32, #tpu.memory_space<vmem>>, vector<16x128xf32>
    tpu.vector_store %arg6[%c0_11, %c0_12], %12 {strides = array<i32>} : memref<16x128xf32, #tpu.memory_space<vmem>>, vector<16x128xf32>,
    return
  }
  func.func @transform_0(%arg0: i32) -> (i32, i32) {
    %c0_i32 = arith.constant 0 : i32
    %c0_i32_0 = arith.constant 0 : i32
    return %arg0, %c0_i32 : i32, i32
  }
  func.func @transform_1(%arg0: i32) -> (i32, i32) {
    %c0_i32 = arith.constant 0 : i32
    %c0_i32_0 = arith.constant 0 : i32
    %c0_i32_1 = arith.constant 0 : i32
    return %c0_i32, %c0_i32_0 : i32, i32
  }
  func.func @transform_2(%arg0: i32) -> (i32, i32) {
    %c0_i32 = arith.constant 0 : i32
    %c0_i32_0 = arith.constant 0 : i32
    %c0_i32_1 = arith.constant 0 : i32
    return %c0_i32, %c0_i32_0 : i32, i32
  }
  func.func @transform_3(%arg0: i32) -> (i32, i32) {
    %c0_i32 = arith.constant 0 : i32
    %c0_i32_0 = arith.constant 0 : i32
    %c0_i32_1 = arith.constant 0 : i32
    return %c0_i32, %c0_i32_0 : i32, i32
  }
  func.func @transform_4(%arg0: i32) -> (i32, i32) {
    %c0_i32 = arith.constant 0 : i32
    %c0_i32_0 = arith.constant 0 : i32
    %c0_i32_1 = arith.constant 0 : i32
    return %c0_i32, %c0_i32_0 : i32, i32
  }
  func.func @transform_5(%arg0: i32) -> (i32, i32) {
    %c0_i32 = arith.constant 0 : i32
    %c0_i32_0 = arith.constant 0 : i32
    return %arg0, %c0_i32 : i32, i32
  }
}

</mosaic_0001>

<bundles_post_ra>
// kernel: tpu_custom_call.1
= control target key start
LH: loop header
LB: loop body
LE: loop exit
PB: predicated region body
PF: predicated region fallthrough
CT: control target
= control target key end

     0   :  { %10 = vsyncpa [#allocation3], 0  ;;  %s5090_s0 = inlined_call_operand.hbm [shape: f32[16,400], index: 0, kind: input, shape index: {}]   ;;  %s5091_s1 = inlined_call_operand.hbm [shape: f32[400,2048], index: 1, kind: input, shape index: {}]   ;;  %s5092_s2 = inlined_call_operand.hbm [shape: f32[1,2048], index: 2, kind: input, shape index: {}]   ;;  %s5093_s3 = inlined_call_operand.hbm [shape: f32[2048,128], index: 3, kind: input, shape index: {}]   ;;  %s5094_s4 = inlined_call_operand.hbm [shape: f32[1,128], index: 4, kind: input, shape index: {}]   ;;  %s5095_s5 = inlined_call_operand.hbm [shape: f32[16,128], index: 5, kind: output, shape index: {}]  }
   0x1   :  { %11 = vsyncpa [#allocation6], 0 }
   0x2   :  { %12 = vsyncpa [#allocation9], 0 }
   0x3   :  { %13 = vsyncpa [#allocation4], 0  ;;  %s4732_s18 = smov [#allocation5]   ;;  %s4592_s22 = scalar_lea.hbm %s5091_s1, 102400 }
   0x4   :  { %s31_s19 = sshll.u32 %s4732_s18, 4  ;;  %p4593_p0 = scmp.ne.s32.totalorder %s5091_s1, %s4592_s22  ;;  %s32_s19 = int_to_ptr.vmem [resolvable:$true] %s31_s19 }
   0x5   :  { %p4596_p1 = scmp.lt.u32.totalorder %s4592_s22, %s5091_s1 }
   0x7   :  { %p4598_p2 = pnand %p4596_p1, %p4593_p0 }
   0x9   :  { %4601 = shalt.err (!%p4598_p2)
}
   0xa   :  { %s4602_s27 = scalar_lea.vmem %s32_s19, 102400  ;;  %p4607_p4 = scmp.lt.s32.totalorder %s32_s19, %s32_s19 }
   0xb   :  { %p4603_p3 = scmp.ne.s32.totalorder %s32_s19, %s4602_s27  ;;  %p4608_p5 = scmp.lt.s32.totalorder %s4602_s27, %s4602_s27 }
   0xd   :  { %p4609_p6 = por %p4608_p5, %p4607_p4 }
   0xf   :  { %p4610_p7 = pnand %p4609_p6, %p4603_p3 }
  0x11   :  { %4613 = shalt.err (!%p4610_p7)
}
  0x12   :  { %s4733_s28 = smov 2048   ;;  %s4734_s29 = smov 128  }
  0x13   :  { %37 = dma.hbm_to_vmem [thread:$0]  %s5091_s1, 102400, %s32_s19, [#allocation6], %s4733_s28, %s4733_s28, %s4734_s29  }
  0x14   :  { %s4735_s7 = smov [#allocation8]   ;;  %s4614_s11 = scalar_lea.hbm %s5093_s3, 32768 }
  0x15   :  { %s53_s8 = sshll.u32 %s4735_s7, 4  ;;  %p4615_p8 = scmp.ne.s32.totalorder %s5093_s3, %s4614_s11  ;;  %s54_s8 = int_to_ptr.vmem [resolvable:$true] %s53_s8 }
  0x16   :  { %p4618_p9 = scmp.lt.u32.totalorder %s4614_s11, %s5093_s3 }
  0x18   :  { %p4620_p10 = pnand %p4618_p9, %p4615_p8 }
  0x1a   :  { %4623 = shalt.err (!%p4620_p10)
}
  0x1b   :  { %s4624_s16 = scalar_lea.vmem %s54_s8, 32768  ;;  %p4629_p12 = scmp.lt.s32.totalorder %s54_s8, %s54_s8 }
  0x1c   :  { %p4625_p11 = scmp.ne.s32.totalorder %s54_s8, %s4624_s16  ;;  %p4630_p13 = scmp.lt.s32.totalorder %s4624_s16, %s4624_s16 }
  0x1e   :  { %p4631_p0 = por %p4630_p13, %p4629_p12 }
  0x20   :  { %p4632_p1 = pnand %p4631_p0, %p4625_p11 }
  0x22   :  { %4635 = shalt.err (!%p4632_p1)
}
  0x23   :  { %s4736_s1 = smov 8   ;;  %s4737_s19 = smov [#allocation2]  }
  0x24   :  { %59 = dma.hbm_to_vmem [thread:$0]  %s5093_s3, 32768, %s54_s8, [#allocation9], %s4734_s29, %s4734_s29, %s4736_s1  }
  0x25   :  { %s19_s20 = sshll.u32 %s4737_s19, 4  ;;  %s4636_s23 = scalar_lea.hbm %s5090_s0, 1024  ;;  %s20_s20 = int_to_ptr.vmem [resolvable:$true] %s19_s20 }
  0x26   :  { %p4637_p2 = scmp.ne.s32.totalorder %s5090_s0, %s4636_s23  ;;  %p4640_p3 = scmp.lt.u32.totalorder %s4636_s23, %s5090_s0 }
  0x28   :  { %p4642_p4 = pnand %p4640_p3, %p4637_p2 }
  0x2a   :  { %4645 = shalt.err (!%p4642_p4)
}
  0x2b   :  { %s4646_s28 = scalar_lea.vmem %s20_s20, 1024  ;;  %p4651_p6 = scmp.lt.s32.totalorder %s20_s20, %s20_s20 }
  0x2c   :  { %p4647_p5 = scmp.ne.s32.totalorder %s20_s20, %s4646_s28  ;;  %p4652_p7 = scmp.lt.s32.totalorder %s4646_s28, %s4646_s28 }
  0x2e   :  { %p4653_p8 = por %p4652_p7, %p4651_p6 }
  0x30   :  { %p4654_p9 = pnand %p4653_p8, %p4647_p5 }
  0x32   :  { %4657 = shalt.err (!%p4654_p9)
}
  0x33   :  { %s4738_s3 = smov 512   ;;  %s4739_s30 = smov 32  }
  0x34   :  { %25 = dma.hbm_to_vmem [thread:$0]  %s5090_s0, 1024, %s20_s20, [#allocation3], %s4738_s3, %s4738_s3, %s4739_s30  }
  0x35   :  { %s4740_s8 = smov [#allocation7]   ;;  %s4741_s10 = smov [#allocation10]  }
  0x36   :  { %s44_s9 = sshll.u32 %s4740_s8, 4  ;;  %s66_s11 = sshll.u32 %s4741_s10, 4  ;;  %s45_s9 = int_to_ptr.vmem [resolvable:$true] %s44_s9  ;;  %s67_s11 = int_to_ptr.vmem [resolvable:$true] %s66_s11 }
  0x37   :  { %s4658_s14 = scalar_lea.hbm %s5092_s2, 256 }
  0x38   :  { %p4659_p10 = scmp.ne.s32.totalorder %s5092_s2, %s4658_s14  ;;  %p4662_p11 = scmp.lt.u32.totalorder %s4658_s14, %s5092_s2 }
  0x3a   :  { %p4664_p12 = pnand %p4662_p11, %p4659_p10 }
  0x3c   :  { %4667 = shalt.err (!%p4664_p12)
}
  0x3d   :  { %s4668_s0 = scalar_lea.vmem %s45_s9, 256  ;;  %p4673_p0 = scmp.lt.s32.totalorder %s45_s9, %s45_s9 }
  0x3e   :  { %p4669_p13 = scmp.ne.s32.totalorder %s45_s9, %s4668_s0  ;;  %p4674_p1 = scmp.lt.s32.totalorder %s4668_s0, %s4668_s0 }
  0x40   :  { %p4675_p2 = por %p4674_p1, %p4673_p0 }
  0x42   :  { %p4676_p3 = pnand %p4675_p2, %p4669_p13 }
  0x44   :  { %4679 = shalt.err (!%p4676_p3)
}
  0x45   :  { %47 = dma.hbm_to_vmem [thread:$0]  %s5092_s2, 256, %s45_s9, [#allocation6]  }
  0x46   :  { %s4680_s23 = scalar_lea.hbm %s5094_s4, 16 }
  0x47   :  { %p4681_p4 = scmp.ne.s32.totalorder %s5094_s4, %s4680_s23  ;;  %p4684_p5 = scmp.lt.u32.totalorder %s4680_s23, %s5094_s4 }
  0x49   :  { %p4686_p6 = pnand %p4684_p5, %p4681_p4 }
  0x4b   :  { %4689 = shalt.err (!%p4686_p6)
}
  0x4c   :  { %s4690_s28 = scalar_lea.vmem %s67_s11, 16  ;;  %s4694_s3 = scalar_lea.vmem %s67_s11, 32 }
  0x4d   :  { %p4691_p7 = scmp.ne.s32.totalorder %s67_s11, %s4690_s28  ;;  %p4695_p8 = scmp.lt.s32.totalorder %s67_s11, %s67_s11 }
  0x4e   :  { %p4696_p9 = scmp.lt.s32.totalorder %s4694_s3, %s4690_s28 }
  0x50   :  { %p4697_p10 = por %p4696_p9, %p4695_p8 }
  0x52   :  { %p4698_p11 = pnand %p4697_p10, %p4691_p7 }
  0x54   :  { %4701 = shalt.err (!%p4698_p11)
}
  0x55   :  { %69 = dma.hbm_to_vmem [thread:$0]  %s5094_s4, 16, %s67_s11, [#allocation9]  }
  0x56   :  { %4724 = dma.done.wait [#allocation3], 1024  }
  0x57   :  { %4725 = vsyncadd [#allocation3], 4294966272 }
  0x58   :  { %4726 = dma.done.wait [#allocation6], 102656  }
  0x59   :  { %4727 = vsyncadd [#allocation6], 4294864640 }
  0x5a   :  { %4728 = dma.done.wait [#allocation9], 32784  }
  0x5b   :  { %4729 = vsyncadd [#allocation9], 4294934512  ;;  %v94_v0 = vld [vmem:[#allocation5 + $0x8] sm:$0xff]  ;;  %v96_v2 = vld [vmem:[#allocation5 + $0x18] sm:$0xff]  ;;  %vm977_vm0 = vcmask 130048   ;;  %s4742_s4 = smov [#allocation11]  }
  0x5c   :  { %v110_v1 = vld [vmem:[#allocation5 + $0x88] sm:$0xff]  ;;  %v112_v4 = vld [vmem:[#allocation5 + $0x98] sm:$0xff]  ;;  %v93_v5 = vld [vmem:[#allocation5] sm:$0xff]  ;;  %s3118_s6 = sshll.u32 %s4742_s4, 4  ;;  %s3119_s6 = int_to_ptr.vmem [resolvable:$true] %s3118_s6 }
  0x5d   :  { %v3453_v3 = vpack.c.bf16 %v110_v1, %v94_v0  ;;  %v109_v6 = vld [vmem:[#allocation5 + $0x80] sm:$0xff]  ;;  %v3553_v7 = vpack.c.bf16 %v112_v4, %v96_v2  ;;  %v95_v9 = vld [vmem:[#allocation5 + $0x10] sm:$0xff]  ;;  %v126_v11 = vld [vmem:[#allocation5 + $0x108] sm:$0xff]  ;;  %s4702_s7 = scalar_lea.vmem %s3119_s6, 256  ;;  %p4707_p13 = scmp.lt.s32.totalorder %s3119_s6, %s3119_s6 }
  0x5e   :  { %v3455_v8 = vpack.c.bf16 %v109_v6, %v93_v5  ;;  %v111_v10 = vld [vmem:[#allocation5 + $0x90] sm:$0xff]  ;;  %v142_v13 = vld [vmem:[#allocation5 + $0x188] sm:$0xff]  ;;  %v128_v14 = vld [vmem:[#allocation5 + $0x118] sm:$0xff]  ;;  %p4703_p12 = scmp.ne.s32.totalorder %s3119_s6, %s4702_s7  ;;  %p4708_p0 = scmp.lt.s32.totalorder %s4702_s7, %s4702_s7 }
  0x5f   :  { %3454 = vmatprep.subr.bf16.mxu0 %v3453_v3  ;;  %v3555_v12 = vpack.c.bf16 %v111_v10, %v95_v9  ;;  %v144_v15 = vld [vmem:[#allocation5 + $0x198] sm:$0xff]  ;;  %3554 = vmatprep.subr.bf16.mxu1 %v3553_v7  ;;  %v3457_v16 = vpack.c.bf16 %v142_v13, %v126_v11  ;;  %v125_v18 = vld [vmem:[#allocation5 + $0x100] sm:$0xff]  ;;  %v127_v20 = vld [vmem:[#allocation5 + $0x110] sm:$0xff] }
  0x60   :  { %3456 = vmatpush1.bf16.msra.mxu0 %v3455_v8  ;;  %v3557_v17 = vpack.c.bf16 %v144_v15, %v128_v14  ;;  %v141_v19 = vld [vmem:[#allocation5 + $0x180] sm:$0xff]  ;;  %v143_v22 = vld [vmem:[#allocation5 + $0x190] sm:$0xff]  ;;  %v158_v23 = vld [vmem:[#allocation5 + $0x208] sm:$0xff]  ;;  %p4709_p1 = por %p4708_p0, %p4707_p13 }
  0x61   :  { %3556 = vmatpush1.bf16.msra.mxu1 %v3555_v12  ;;  %v3459_v21 = vpack.c.bf16 %v141_v19, %v125_v18  ;;  %v174_v24 = vld [vmem:[#allocation5 + $0x288] sm:$0xff]  ;;  %3458 = vmatprep.subr.bf16.mxu0 %v3457_v16  ;;  %v3559_v25 = vpack.c.bf16 %v143_v22, %v127_v20  ;;  %v160_v27 = vld [vmem:[#allocation5 + $0x218] sm:$0xff]  ;;  %v157_v29 = vld [vmem:[#allocation5 + $0x200] sm:$0xff] }
  0x62   :  { %3558 = vmatprep.subr.bf16.mxu1 %v3557_v17  ;;  %v3461_v26 = vpack.c.bf16 %v174_v24, %v158_v23  ;;  %v176_v28 = vld [vmem:[#allocation5 + $0x298] sm:$0xff]  ;;  %v173_v31 = vld [vmem:[#allocation5 + $0x280] sm:$0xff]  ;;  %v159_v32 = vld [vmem:[#allocation5 + $0x210] sm:$0xff]  ;;  %p4710_p2 = pnand %p4709_p1, %p4703_p12 }
  0x63   :  { %v3561_v30 = vpack.c.bf16 %v176_v28, %v160_v27  ;;  %v175_v33 = vld [vmem:[#allocation5 + $0x290] sm:$0xff]  ;;  %v3463_v34 = vpack.c.bf16 %v173_v31, %v157_v29  ;;  %v190_v35 = vld [vmem:[#allocation5 + $0x308] sm:$0xff]  ;;  %v192_v37 = vld [vmem:[#allocation5 + $0x318] sm:$0xff] }
  0x64   :  { %3460 = vmatpush1.bf16.msra.mxu0 %v3459_v21  ;;  %v206_v36 = vld [vmem:[#allocation5 + $0x388] sm:$0xff]  ;;  %v3563_v38 = vpack.c.bf16 %v175_v33, %v159_v32  ;;  %v208_v40 = vld [vmem:[#allocation5 + $0x398] sm:$0xff]  ;;  %v189_v41 = vld [vmem:[#allocation5 + $0x300] sm:$0xff] }
  0x65   :  { %3560 = vmatpush1.bf16.msra.mxu1 %v3559_v25  ;;  %3462 = vmatprep.subr.bf16.mxu0 %v3461_v26  ;;  %v3465_v39 = vpack.c.bf16 %v206_v36, %v190_v35  ;;  %v205_v42 = vld [vmem:[#allocation5 + $0x380] sm:$0xff]  ;;  %v3565_v43 = vpack.c.bf16 %v208_v40, %v192_v37  ;;  %v191_v44 = vld [vmem:[#allocation5 + $0x310] sm:$0xff]  ;;  %v222_v46 = vld [vmem:[#allocation5 + $0x408] sm:$0xff] }
  0x66   :  { %3562 = vmatprep.subr.bf16.mxu1 %v3561_v30  ;;  %v207_v45 = vld [vmem:[#allocation5 + $0x390] sm:$0xff]  ;;  %v238_v47 = vld [vmem:[#allocation5 + $0x488] sm:$0xff]  ;;  %v224_v48 = vld [vmem:[#allocation5 + $0x418] sm:$0xff]  ;;  %v3467_v50 = vpack.c.bf16 %v205_v42, %v189_v41 }
  0x67   :  { %v240_v49 = vld [vmem:[#allocation5 + $0x498] sm:$0xff]  ;;  %v3567_v51 = vpack.c.bf16 %v207_v45, %v191_v44  ;;  %v3469_v52 = vpack.c.bf16 %v238_v47, %v222_v46  ;;  %v221_v53 = vld [vmem:[#allocation5 + $0x400] sm:$0xff]  ;;  %v223_v55 = vld [vmem:[#allocation5 + $0x410] sm:$0xff] }
  0x68   :  { %3464 = vmatpush1.bf16.msra.mxu0 %v3463_v34  ;;  %v237_v54 = vld [vmem:[#allocation5 + $0x480] sm:$0xff]  ;;  %v3569_v56 = vpack.c.bf16 %v240_v49, %v224_v48  ;;  %v239_v57 = vld [vmem:[#allocation5 + $0x490] sm:$0xff]  ;;  %v254_v58 = vld [vmem:[#allocation5 + $0x508] sm:$0xff] }
  0x69   :  { %3564 = vmatpush1.bf16.msra.mxu1 %v3563_v38  ;;  %3466 = vmatprep.subr.bf16.mxu0 %v3465_v39  ;;  %v270_v59 = vld [vmem:[#allocation5 + $0x588] sm:$0xff]  ;;  %v256_v60 = vld [vmem:[#allocation5 + $0x518] sm:$0xff]  ;;  %v3471_v62 = vpack.c.bf16 %v237_v54, %v221_v53  ;;  %v3571_v63 = vpack.c.bf16 %v239_v57, %v223_v55  ;;  %v253_v1 = vld [vmem:[#allocation5 + $0x500] sm:$0xff] }
  0x6a   :  { %3566 = vmatprep.subr.bf16.mxu1 %v3565_v43  ;;  %v272_v61 = vld [vmem:[#allocation5 + $0x598] sm:$0xff]  ;;  %v3473_v0 = vpack.c.bf16 %v270_v59, %v254_v58  ;;  %v269_v2 = vld [vmem:[#allocation5 + $0x580] sm:$0xff]  ;;  %v255_v3 = vld [vmem:[#allocation5 + $0x510] sm:$0xff] }
  0x6b   :  { %v3573_v4 = vpack.c.bf16 %v272_v61, %v256_v60  ;;  %v271_v5 = vld [vmem:[#allocation5 + $0x590] sm:$0xff]  ;;  %v286_v6 = vld [vmem:[#allocation5 + $0x608] sm:$0xff]  ;;  %v288_v8 = vld [vmem:[#allocation5 + $0x618] sm:$0xff]  ;;  %v3475_v10 = vpack.c.bf16 %v269_v2, %v253_v1 }
  0x6c   :  { %3468 = vmatpush1.bf16.msra.mxu0 %v3467_v50  ;;  %v302_v7 = vld [vmem:[#allocation5 + $0x688] sm:$0xff]  ;;  %v304_v9 = vld [vmem:[#allocation5 + $0x698] sm:$0xff]  ;;  %v3575_v11 = vpack.c.bf16 %v271_v5, %v255_v3  ;;  %v285_v13 = vld [vmem:[#allocation5 + $0x600] sm:$0xff] }
  0x6d   :  { %3568 = vmatpush1.bf16.msra.mxu1 %v3567_v51  ;;  %3470 = vmatprep.subr.bf16.mxu0 %v3469_v52  ;;  %v3477_v12 = vpack.c.bf16 %v302_v7, %v286_v6  ;;  %v301_v14 = vld [vmem:[#allocation5 + $0x680] sm:$0xff]  ;;  %v287_v15 = vld [vmem:[#allocation5 + $0x610] sm:$0xff]  ;;  %v3577_v16 = vpack.c.bf16 %v304_v9, %v288_v8  ;;  %v318_v18 = vld [vmem:[#allocation5 + $0x708] sm:$0xff] }
  0x6e   :  { %3570 = vmatprep.subr.bf16.mxu1 %v3569_v56  ;;  %v303_v17 = vld [vmem:[#allocation5 + $0x690] sm:$0xff]  ;;  %v334_v19 = vld [vmem:[#allocation5 + $0x788] sm:$0xff]  ;;  %v320_v20 = vld [vmem:[#allocation5 + $0x718] sm:$0xff]  ;;  %v3479_v22 = vpack.c.bf16 %v301_v14, %v285_v13 }
  0x6f   :  { %v336_v21 = vld [vmem:[#allocation5 + $0x798] sm:$0xff]  ;;  %v3579_v23 = vpack.c.bf16 %v303_v17, %v287_v15  ;;  %v3481_v24 = vpack.c.bf16 %v334_v19, %v318_v18  ;;  %v317_v25 = vld [vmem:[#allocation5 + $0x700] sm:$0xff]  ;;  %v319_v27 = vld [vmem:[#allocation5 + $0x710] sm:$0xff] }
  0x70   :  { %3472 = vmatpush1.bf16.msra.mxu0 %v3471_v62  ;;  %v333_v26 = vld [vmem:[#allocation5 + $0x780] sm:$0xff]  ;;  %v3581_v28 = vpack.c.bf16 %v336_v21, %v320_v20  ;;  %v335_v29 = vld [vmem:[#allocation5 + $0x790] sm:$0xff]  ;;  %v350_v30 = vld [vmem:[#allocation5 + $0x808] sm:$0xff] }
  0x71   :  { %3572 = vmatpush1.bf16.msra.mxu1 %v3571_v63  ;;  %3474 = vmatprep.subr.bf16.mxu0 %v3473_v0  ;;  %v366_v31 = vld [vmem:[#allocation5 + $0x888] sm:$0xff]  ;;  %v352_v32 = vld [vmem:[#allocation5 + $0x818] sm:$0xff]  ;;  %v3483_v34 = vpack.c.bf16 %v333_v26, %v317_v25  ;;  %v3583_v35 = vpack.c.bf16 %v335_v29, %v319_v27  ;;  %v349_v37 = vld [vmem:[#allocation5 + $0x800] sm:$0xff] }
  0x72   :  { %3574 = vmatprep.subr.bf16.mxu1 %v3573_v4  ;;  %v368_v33 = vld [vmem:[#allocation5 + $0x898] sm:$0xff]  ;;  %v3485_v36 = vpack.c.bf16 %v366_v31, %v350_v30  ;;  %v365_v38 = vld [vmem:[#allocation5 + $0x880] sm:$0xff]  ;;  %v351_v39 = vld [vmem:[#allocation5 + $0x810] sm:$0xff] }
  0x73   :  { %v3585_v40 = vpack.c.bf16 %v368_v33, %v352_v32  ;;  %v367_v41 = vld [vmem:[#allocation5 + $0x890] sm:$0xff]  ;;  %v382_v42 = vld [vmem:[#allocation5 + $0x908] sm:$0xff]  ;;  %v384_v44 = vld [vmem:[#allocation5 + $0x918] sm:$0xff]  ;;  %v3487_v46 = vpack.c.bf16 %v365_v38, %v349_v37 }
  0x74   :  { %3476 = vmatpush1.bf16.msra.mxu0 %v3475_v10  ;;  %v398_v43 = vld [vmem:[#allocation5 + $0x988] sm:$0xff]  ;;  %v400_v45 = vld [vmem:[#allocation5 + $0x998] sm:$0xff]  ;;  %v3587_v47 = vpack.c.bf16 %v367_v41, %v351_v39  ;;  %v381_v49 = vld [vmem:[#allocation5 + $0x900] sm:$0xff] }
  0x75   :  { %3576 = vmatpush1.bf16.msra.mxu1 %v3575_v11  ;;  %3478 = vmatprep.subr.bf16.mxu0 %v3477_v12  ;;  %v3489_v48 = vpack.c.bf16 %v398_v43, %v382_v42  ;;  %v397_v50 = vld [vmem:[#allocation5 + $0x980] sm:$0xff]  ;;  %v383_v51 = vld [vmem:[#allocation5 + $0x910] sm:$0xff]  ;;  %v3589_v52 = vpack.c.bf16 %v400_v45, %v384_v44  ;;  %v414_v54 = vld [vmem:[#allocation5 + $0xa08] sm:$0xff] }
  0x76   :  { %3578 = vmatprep.subr.bf16.mxu1 %v3577_v16  ;;  %v399_v53 = vld [vmem:[#allocation5 + $0x990] sm:$0xff]  ;;  %v430_v55 = vld [vmem:[#allocation5 + $0xa88] sm:$0xff]  ;;  %v416_v56 = vld [vmem:[#allocation5 + $0xa18] sm:$0xff]  ;;  %v3491_v58 = vpack.c.bf16 %v397_v50, %v381_v49 }
  0x77   :  { %v432_v57 = vld [vmem:[#allocation5 + $0xa98] sm:$0xff]  ;;  %v3591_v59 = vpack.c.bf16 %v399_v53, %v383_v51  ;;  %v3493_v60 = vpack.c.bf16 %v430_v55, %v414_v54  ;;  %v413_v61 = vld [vmem:[#allocation5 + $0xa00] sm:$0xff]  ;;  %v415_v63 = vld [vmem:[#allocation5 + $0xa10] sm:$0xff] }
  0x78   :  { %3480 = vmatpush1.bf16.msra.mxu0 %v3479_v22  ;;  %v429_v62 = vld [vmem:[#allocation5 + $0xa80] sm:$0xff]  ;;  %v3593_v0 = vpack.c.bf16 %v432_v57, %v416_v56  ;;  %v431_v1 = vld [vmem:[#allocation5 + $0xa90] sm:$0xff]  ;;  %v446_v2 = vld [vmem:[#allocation5 + $0xb08] sm:$0xff] }
  0x79   :  { %3580 = vmatpush1.bf16.msra.mxu1 %v3579_v23  ;;  %3482 = vmatprep.subr.bf16.mxu0 %v3481_v24  ;;  %v462_v3 = vld [vmem:[#allocation5 + $0xb88] sm:$0xff]  ;;  %v448_v4 = vld [vmem:[#allocation5 + $0xb18] sm:$0xff]  ;;  %v3495_v6 = vpack.c.bf16 %v429_v62, %v413_v61  ;;  %v445_v7 = vld [vmem:[#allocation5 + $0xb00] sm:$0xff]  ;;  %v3595_v8 = vpack.c.bf16 %v431_v1, %v415_v63 }
  0x7a   :  { %3582 = vmatprep.subr.bf16.mxu1 %v3581_v28  ;;  %v464_v5 = vld [vmem:[#allocation5 + $0xb98] sm:$0xff]  ;;  %v3497_v9 = vpack.c.bf16 %v462_v3, %v446_v2  ;;  %v461_v10 = vld [vmem:[#allocation5 + $0xb80] sm:$0xff]  ;;  %v447_v11 = vld [vmem:[#allocation5 + $0xb10] sm:$0xff] }
  0x7b   :  { %v463_v12 = vld [vmem:[#allocation5 + $0xb90] sm:$0xff]  ;;  %v3597_v13 = vpack.c.bf16 %v464_v5, %v448_v4  ;;  %v478_v14 = vld [vmem:[#allocation5 + $0xc08] sm:$0xff]  ;;  %v480_v17 = vld [vmem:[#allocation5 + $0xc18] sm:$0xff]  ;;  %v3499_v19 = vpack.c.bf16 %v461_v10, %v445_v7 }
  0x7c   :  { %3484 = vmatpush1.bf16.msra.mxu0 %v3483_v34  ;;  %v494_v15 = vld [vmem:[#allocation5 + $0xc88] sm:$0xff]  ;;  %v496_v18 = vld [vmem:[#allocation5 + $0xc98] sm:$0xff]  ;;  %v3599_v20 = vpack.c.bf16 %v463_v12, %v447_v11  ;;  %v477_v22 = vld [vmem:[#allocation5 + $0xc00] sm:$0xff] }
  0x7d   :  { %3584 = vmatpush1.bf16.msra.mxu1 %v3583_v35  ;;  %3486 = vmatprep.subr.bf16.mxu0 %v3485_v36  ;;  %v4837_v16 = vld [vmem:[#allocation2 + $0x8] sm:$0xff]  ;;  %v3501_v21 = vpack.c.bf16 %v494_v15, %v478_v14  ;;  %v493_v23 = vld [vmem:[#allocation5 + $0xc80] sm:$0xff]  ;;  %v479_v24 = vld [vmem:[#allocation5 + $0xc10] sm:$0xff]  ;;  %v3601_v25 = vpack.c.bf16 %v496_v18, %v480_v17 }
  0x7e   :  { %3586 = vmatprep.subr.bf16.mxu1 %v3585_v40  ;;  %1048 = vmatprep.mubr.f32.mxu0 %v4837_v16  ;;  %v495_v26 = vld [vmem:[#allocation5 + $0xc90] sm:$0xff]  ;;  %v510_v27 = vld [vmem:[#allocation5 + $0xd08] sm:$0xff]  ;;  %v512_v29 = vld [vmem:[#allocation5 + $0xd18] sm:$0xff]  ;;  %v3503_v31 = vpack.c.bf16 %v493_v23, %v477_v22 }
  0x7f   :  { %1202 = vmatprep.mubr.f32.mxu1 %v4837_v16  ;;  %v526_v28 = vld [vmem:[#allocation5 + $0xd88] sm:$0xff]  ;;  %v528_v30 = vld [vmem:[#allocation5 + $0xd98] sm:$0xff]  ;;  %v3603_v32 = vpack.c.bf16 %v495_v26, %v479_v24  ;;  %v509_v34 = vld [vmem:[#allocation5 + $0xd00] sm:$0xff] }
  0x80   :  { %3488 = vmatpush1.bf16.msra.mxu0 %v3487_v46  ;;  %v3505_v33 = vpack.c.bf16 %v526_v28, %v510_v27  ;;  %v525_v35 = vld [vmem:[#allocation5 + $0xd80] sm:$0xff]  ;;  %v511_v36 = vld [vmem:[#allocation5 + $0xd10] sm:$0xff]  ;;  %v3605_v37 = vpack.c.bf16 %v528_v30, %v512_v29  ;;  %v542_v39 = vld [vmem:[#allocation5 + $0xe08] sm:$0xff] }
  0x81   :  { %3588 = vmatpush1.bf16.msra.mxu1 %v3587_v47  ;;  %3490 = vmatprep.subr.bf16.mxu0 %v3489_v48  ;;  %v527_v38 = vld [vmem:[#allocation5 + $0xd90] sm:$0xff]  ;;  %v558_v40 = vld [vmem:[#allocation5 + $0xe88] sm:$0xff]  ;;  %v544_v41 = vld [vmem:[#allocation5 + $0xe18] sm:$0xff]  ;;  %v3507_v43 = vpack.c.bf16 %v525_v35, %v509_v34 }
  0x82   :  { %3590 = vmatprep.subr.bf16.mxu1 %v3589_v52  ;;  %v560_v42 = vld [vmem:[#allocation5 + $0xe98] sm:$0xff]  ;;  %v3607_v44 = vpack.c.bf16 %v527_v38, %v511_v36  ;;  %v3509_v45 = vpack.c.bf16 %v558_v40, %v542_v39  ;;  %v541_v46 = vld [vmem:[#allocation5 + $0xe00] sm:$0xff]  ;;  %v543_v48 = vld [vmem:[#allocation5 + $0xe10] sm:$0xff] }
  0x83   :  { %v557_v47 = vld [vmem:[#allocation5 + $0xe80] sm:$0xff]  ;;  %v3609_v49 = vpack.c.bf16 %v560_v42, %v544_v41  ;;  %v559_v50 = vld [vmem:[#allocation5 + $0xe90] sm:$0xff]  ;;  %v574_v51 = vld [vmem:[#allocation5 + $0xf08] sm:$0xff] }
  0x84   :  { %3492 = vmatpush1.bf16.msra.mxu0 %v3491_v58  ;;  %v590_v52 = vld [vmem:[#allocation5 + $0xf88] sm:$0xff]  ;;  %v576_v53 = vld [vmem:[#allocation5 + $0xf18] sm:$0xff]  ;;  %v3511_v55 = vpack.c.bf16 %v557_v47, %v541_v46  ;;  %v3611_v56 = vpack.c.bf16 %v559_v50, %v543_v48  ;;  %v573_v58 = vld [vmem:[#allocation5 + $0xf00] sm:$0xff] }
  0x85   :  { %3592 = vmatpush1.bf16.msra.mxu1 %v3591_v59  ;;  %3494 = vmatprep.subr.bf16.mxu0 %v3493_v60  ;;  %v592_v54 = vld [vmem:[#allocation5 + $0xf98] sm:$0xff]  ;;  %v3513_v57 = vpack.c.bf16 %v590_v52, %v574_v51  ;;  %v589_v59 = vld [vmem:[#allocation5 + $0xf80] sm:$0xff]  ;;  %v575_v60 = vld [vmem:[#allocation5 + $0xf10] sm:$0xff] }
  0x86   :  { %3594 = vmatprep.subr.bf16.mxu1 %v3593_v0  ;;  %v3613_v61 = vpack.c.bf16 %v592_v54, %v576_v53  ;;  %v591_v62 = vld [vmem:[#allocation5 + $0xf90] sm:$0xff]  ;;  %v606_v63 = vld [vmem:[#allocation5 + $0x1008] sm:$0xff]  ;;  %v608_v1 = vld [vmem:[#allocation5 + $0x1018] sm:$0xff]  ;;  %v3515_v3 = vpack.c.bf16 %v589_v59, %v573_v58 }
  0x87   :  { %v622_v0 = vld [vmem:[#allocation5 + $0x1088] sm:$0xff]  ;;  %v624_v2 = vld [vmem:[#allocation5 + $0x1098] sm:$0xff]  ;;  %v3615_v4 = vpack.c.bf16 %v591_v62, %v575_v60  ;;  %v621_v7 = vld [vmem:[#allocation5 + $0x1080] sm:$0xff] }
  0x88   :  { %3496 = vmatpush1.bf16.msra.mxu0 %v3495_v6  ;;  %v3517_v5 = vpack.c.bf16 %v622_v0, %v606_v63  ;;  %v605_v6 = vld [vmem:[#allocation5 + $0x1000] sm:$0xff]  ;;  %v623_v10 = vld [vmem:[#allocation5 + $0x1090] sm:$0xff]  ;;  %v638_v11 = vld [vmem:[#allocation5 + $0x1108] sm:$0xff] }
  0x89   :  { %3596 = vmatpush1.bf16.msra.mxu1 %v3595_v8  ;;  %3498 = vmatprep.subr.bf16.mxu0 %v3497_v9  ;;  %v607_v8 = vld [vmem:[#allocation5 + $0x1010] sm:$0xff]  ;;  %v3617_v9 = vpack.c.bf16 %v624_v2, %v608_v1  ;;  %v654_v12 = vld [vmem:[#allocation5 + $0x1188] sm:$0xff]  ;;  %v656_v14 = vld [vmem:[#allocation5 + $0x1198] sm:$0xff]  ;;  %v3519_v17 = vpack.c.bf16 %v621_v7, %v605_v6 }
  0x8a   :  { %3598 = vmatprep.subr.bf16.mxu1 %v3597_v13  ;;  %v640_v13 = vld [vmem:[#allocation5 + $0x1118] sm:$0xff]  ;;  %v4841_v15 = vld [vmem:[#allocation2] sm:$0xff]  ;;  %v3619_v18 = vpack.c.bf16 %v623_v10, %v607_v8  ;;  %v639_v22 = vld [vmem:[#allocation5 + $0x1110] sm:$0xff] }
  0x8b   :  { %v3621_v23 = vpack.c.bf16 %v656_v14, %v640_v13  ;;  %v655_v24 = vld [vmem:[#allocation5 + $0x1190] sm:$0xff]  ;;  %v686_v26 = vld [vmem:[#allocation5 + $0x1288] sm:$0xff]  ;;  %v672_v27 = vld [vmem:[#allocation5 + $0x1218] sm:$0xff] }
  0x8c   :  { %3500 = vmatpush1.bf16.msra.mxu0 %v3499_v19  ;;  %v3521_v19 = vpack.c.bf16 %v654_v12, %v638_v11  ;;  %v688_v28 = vld [vmem:[#allocation5 + $0x1298] sm:$0xff]  ;;  %v4844_v29 = vld [vmem:[#allocation2 + $0x28] sm:$0xff]  ;;  %v669_v34 = vld [vmem:[#allocation5 + $0x1200] sm:$0xff] }
  0x8d   :  { %3600 = vmatpush1.bf16.msra.mxu1 %v3599_v20  ;;  %3502 = vmatprep.subr.bf16.mxu0 %v3501_v21  ;;  %v637_v20 = vld [vmem:[#allocation5 + $0x1100] sm:$0xff]  ;;  %v671_v36 = vld [vmem:[#allocation5 + $0x1210] sm:$0xff]  ;;  %v702_v39 = vld [vmem:[#allocation5 + $0x1308] sm:$0xff] }
  0x8e   :  { %3602 = vmatprep.subr.bf16.mxu1 %v3601_v25  ;;  %v653_v21 = vld [vmem:[#allocation5 + $0x1180] sm:$0xff]  ;;  %v670_v25 = vld [vmem:[#allocation5 + $0x1208] sm:$0xff]  ;;  %v687_v38 = vld [vmem:[#allocation5 + $0x1290] sm:$0xff] }
  0x8f   :  { %v3523_v30 = vpack.c.bf16 %v653_v21, %v637_v20  ;;  %v685_v35 = vld [vmem:[#allocation5 + $0x1280] sm:$0xff]  ;;  %v718_v40 = vld [vmem:[#allocation5 + $0x1388] sm:$0xff]  ;;  %v704_v41 = vld [vmem:[#allocation5 + $0x1318] sm:$0xff] }
  0x90   :  { %3504 = vmatpush1.bf16.msra.mxu0 %v3503_v31  ;;  %v4847_v31 = vld [vmem:[#allocation2 + $0x20] sm:$0xff]  ;;  %v720_v42 = vld [vmem:[#allocation5 + $0x1398] sm:$0xff]  ;;  %v3529_v46 = vpack.c.bf16 %v718_v40, %v702_v39  ;;  %v719_v51 = vld [vmem:[#allocation5 + $0x1390] sm:$0xff] }
  0x91   :  { %3604 = vmatpush1.bf16.msra.mxu1 %v3603_v32  ;;  %3506 = vmatprep.subr.bf16.mxu0 %v3505_v33  ;;  %v3623_v32 = vpack.c.bf16 %v655_v24, %v639_v22  ;;  %v3525_v33 = vpack.c.bf16 %v686_v26, %v670_v25  ;;  %v701_v47 = vld [vmem:[#allocation5 + $0x1300] sm:$0xff]  ;;  %v3629_v50 = vpack.c.bf16 %v720_v42, %v704_v41  ;;  %v734_v52 = vld [vmem:[#allocation5 + $0x1408] sm:$0xff]  ;;  %v736_v54 = vld [vmem:[#allocation5 + $0x1418] sm:$0xff] }
  0x92   :  { %3606 = vmatprep.subr.bf16.mxu1 %v3605_v37  ;;  %v3625_v37 = vpack.c.bf16 %v688_v28, %v672_v27  ;;  %v717_v48 = vld [vmem:[#allocation5 + $0x1380] sm:$0xff]  ;;  %v750_v53 = vld [vmem:[#allocation5 + $0x1488] sm:$0xff]  ;;  %v751_v63 = vld [vmem:[#allocation5 + $0x1490] sm:$0xff] }
  0x93   :  { %v3533_v58 = vpack.c.bf16 %v750_v53, %v734_v52  ;;  %v733_v59 = vld [vmem:[#allocation5 + $0x1400] sm:$0xff]  ;;  %v766_v0 = vld [vmem:[#allocation5 + $0x1508] sm:$0xff]  ;;  %v768_v2 = vld [vmem:[#allocation5 + $0x1518] sm:$0xff] }
  0x94   :  { %3508 = vmatpush1.bf16.msra.mxu0 %v3507_v43  ;;  %v4852_v43 = vld [vmem:[#allocation2 + $0x18] sm:$0xff]  ;;  %v749_v60 = vld [vmem:[#allocation5 + $0x1480] sm:$0xff]  ;;  %v782_v1 = vld [vmem:[#allocation5 + $0x1588] sm:$0xff] }
  0x95   :  { %3608 = vmatpush1.bf16.msra.mxu1 %v3607_v44  ;;  %3510 = vmatprep.subr.bf16.mxu0 %v3509_v45  ;;  %v3527_v44 = vpack.c.bf16 %v685_v35, %v669_v34  ;;  %v3627_v45 = vpack.c.bf16 %v687_v38, %v671_v36  ;;  %v3537_v6 = vpack.c.bf16 %v782_v1, %v766_v0  ;;  %v765_v7 = vld [vmem:[#allocation5 + $0x1500] sm:$0xff]  ;;  %v783_v11 = vld [vmem:[#allocation5 + $0x1590] sm:$0xff]  ;;  %v798_v12 = vld [vmem:[#allocation5 + $0x1608] sm:$0xff] }
  0x96   :  { %3610 = vmatprep.subr.bf16.mxu1 %v3609_v49  ;;  %v703_v49 = vld [vmem:[#allocation5 + $0x1310] sm:$0xff]  ;;  %v781_v8 = vld [vmem:[#allocation5 + $0x1580] sm:$0xff]  ;;  %v814_v13 = vld [vmem:[#allocation5 + $0x1688] sm:$0xff] }
  0x97   :  { %v800_v14 = vld [vmem:[#allocation5 + $0x1618] sm:$0xff]  ;;  %v3541_v20 = vpack.c.bf16 %v814_v13, %v798_v12  ;;  %v797_v21 = vld [vmem:[#allocation5 + $0x1600] sm:$0xff]  ;;  %v815_v25 = vld [vmem:[#allocation5 + $0x1690] sm:$0xff] }
  0x98   :  { %3512 = vmatpush1.bf16.msra.mxu0 %v3511_v55  ;;  %v752_v55 = vld [vmem:[#allocation5 + $0x1498] sm:$0xff]  ;;  %v813_v22 = vld [vmem:[#allocation5 + $0x1680] sm:$0xff]  ;;  %v830_v26 = vld [vmem:[#allocation5 + $0x1708] sm:$0xff] }
  0x99   :  { %3612 = vmatpush1.bf16.msra.mxu1 %v3611_v56  ;;  %3514 = vmatprep.subr.bf16.mxu0 %v3513_v57  ;;  %v3531_v56 = vpack.c.bf16 %v717_v48, %v701_v47  ;;  %v3631_v57 = vpack.c.bf16 %v719_v51, %v703_v49  ;;  %v3633_v62 = vpack.c.bf16 %v752_v55, %v736_v54  ;;  %v846_v27 = vld [vmem:[#allocation5 + $0x1788] sm:$0xff]  ;;  %v832_v28 = vld [vmem:[#allocation5 + $0x1718] sm:$0xff]  ;;  %v829_v35 = vld [vmem:[#allocation5 + $0x1700] sm:$0xff] }
  0x9a   :  { %3614 = vmatprep.subr.bf16.mxu1 %v3613_v61  ;;  %v735_v61 = vld [vmem:[#allocation5 + $0x1410] sm:$0xff]  ;;  %v3545_v34 = vpack.c.bf16 %v846_v27, %v830_v26  ;;  %v845_v36 = vld [vmem:[#allocation5 + $0x1780] sm:$0xff]  ;;  %v862_v40 = vld [vmem:[#allocation5 + $0x1808] sm:$0xff] }
  0x9b   :  { %v847_v39 = vld [vmem:[#allocation5 + $0x1790] sm:$0xff]  ;;  %v878_v41 = vld [vmem:[#allocation5 + $0x1888] sm:$0xff]  ;;  %v864_v42 = vld [vmem:[#allocation5 + $0x1818] sm:$0xff] }
  0x9c   :  { %3516 = vmatpush1.bf16.msra.mxu0 %v3515_v3  ;;  %v784_v3 = vld [vmem:[#allocation5 + $0x1598] sm:$0xff]  ;;  %v3549_v47 = vpack.c.bf16 %v878_v41, %v862_v40  ;;  %v861_v48 = vld [vmem:[#allocation5 + $0x1800] sm:$0xff]  ;;  %v879_v52 = vld [vmem:[#allocation5 + $0x1890] sm:$0xff] }
  0x9d   :  { %3616 = vmatpush1.bf16.msra.mxu1 %v3615_v4  ;;  %3518 = vmatprep.subr.bf16.mxu0 %v3517_v5  ;;  %v3535_v4 = vpack.c.bf16 %v749_v60, %v733_v59  ;;  %v3635_v5 = vpack.c.bf16 %v751_v63, %v735_v61  ;;  %v3637_v10 = vpack.c.bf16 %v784_v3, %v768_v2  ;;  %v877_v49 = vld [vmem:[#allocation5 + $0x1880] sm:$0xff]  ;;  %v98_v53 = vld [vmem:[#allocation5 + $0x28] sm:$0xff]  ;;  %v100_v55 = vld [vmem:[#allocation5 + $0x38] sm:$0xff] }
  0x9e   :  { %3618 = vmatprep.subr.bf16.mxu1 %v3617_v9  ;;  %v767_v9 = vld [vmem:[#allocation5 + $0x1510] sm:$0xff]  ;;  %v114_v54 = vld [vmem:[#allocation5 + $0xa8] sm:$0xff]  ;;  %v97_v60 = vld [vmem:[#allocation5 + $0x20] sm:$0xff] }
  0x9f   :  { %1049 = vmatmul.mubr.f32.vlgmr.msra.gmra.mrb[0].mxu0 %v4841_v15  ;;  %v3653_v59 = vpack.c.bf16 %v114_v54, %v98_v53  ;;  %v113_v61 = vld [vmem:[#allocation5 + $0xa0] sm:$0xff]  ;;  %v99_v63 = vld [vmem:[#allocation5 + $0x30] sm:$0xff]  ;;  %v130_v2 = vld [vmem:[#allocation5 + $0x128] sm:$0xff] }
  0xa0   :  { %3520 = vmatpush1.bf16.msra.mxu0 %v3519_v17  ;;  %1203 = vmatmul.mubr.f32.vlgmr.msra.gmra.mrb[0].mxu1 %v4841_v15  ;;  %v816_v17 = vld [vmem:[#allocation5 + $0x1698] sm:$0xff]  ;;  %v115_v0 = vld [vmem:[#allocation5 + $0xb0] sm:$0xff]  ;;  %v146_v3 = vld [vmem:[#allocation5 + $0x1a8] sm:$0xff] }
  0xa1   :  { %3620 = vmatpush1.bf16.msra.mxu1 %v3619_v18  ;;  %3522 = vmatprep.subr.bf16.mxu0 %v3521_v19  ;;  %v3539_v18 = vpack.c.bf16 %v781_v8, %v765_v7  ;;  %v3639_v19 = vpack.c.bf16 %v783_v11, %v767_v9  ;;  %v3641_v24 = vpack.c.bf16 %v816_v17, %v800_v14  ;;  %v4859_v1 = vld [vmem:[#allocation2 + $0x10] sm:$0xff]  ;;  %v148_v7 = vld [vmem:[#allocation5 + $0x1b8] sm:$0xff]  ;;  %v129_v9 = vld [vmem:[#allocation5 + $0x120] sm:$0xff] }
  0xa2   :  { %3622 = vmatprep.subr.bf16.mxu1 %v3621_v23  ;;  %1054 = vmatprep.mubr.f32.mxu0 %v4844_v29  ;;  %v799_v23 = vld [vmem:[#allocation5 + $0x1610] sm:$0xff]  ;;  %v3755_v8 = vpack.c.bf16 %v115_v0, %v99_v63  ;;  %v3657_v12 = vpack.c.bf16 %v146_v3, %v130_v2  ;;  %v162_v14 = vld [vmem:[#allocation5 + $0x228] sm:$0xff]  ;;  %v177_v26 = vld [vmem:[#allocation5 + $0x2a0] sm:$0xff] }
  0xa3   :  { %1208 = vmatprep.mubr.f32.mxu1 %v4844_v29  ;;  %1055 = vmatmul.mubr.f32.gmra.mrb[2].mxu0 %v4847_v31  ;;  %v131_v11 = vld [vmem:[#allocation5 + $0x130] sm:$0xff]  ;;  %v178_v17 = vld [vmem:[#allocation5 + $0x2a8] sm:$0xff]  ;;  %v209_v40 = vld [vmem:[#allocation5 + $0x3a0] sm:$0xff] }
  0xa4   :  { %3524 = vmatpush1.bf16.msra.mxu0 %v3523_v30  ;;  %1209 = vmatmul.mubr.f32.gmra.mrb[2].mxu1 %v4847_v31  ;;  %v848_v30 = vld [vmem:[#allocation5 + $0x1798] sm:$0xff]  ;;  %v147_v13 = vld [vmem:[#allocation5 + $0x1b0] sm:$0xff]  ;;  %v241_v53 = vld [vmem:[#allocation5 + $0x4a0] sm:$0xff] }
  0xa5   :  { %3624 = vmatpush1.bf16.msra.mxu1 %v3623_v32  ;;  %3526 = vmatprep.subr.bf16.mxu0 %v3525_v33  ;;  %v3543_v32 = vpack.c.bf16 %v813_v22, %v797_v21  ;;  %v3643_v33 = vpack.c.bf16 %v815_v25, %v799_v23  ;;  %v3645_v38 = vpack.c.bf16 %v848_v30, %v832_v28  ;;  %v4865_v21 = vld [vmem:[#allocation2 + $0x30] sm:$0xff]  ;;  %v161_v25 = vld [vmem:[#allocation5 + $0x220] sm:$0xff] }
  0xa6   :  { %3626 = vmatprep.subr.bf16.mxu1 %v3625_v37  ;;  %3132 = vmatprep.mubr.msk.f32.mxu0 %vm977_vm0, %v4852_v43  ;;  %v831_v37 = vld [vmem:[#allocation5 + $0x1710] sm:$0xff]  ;;  %v3759_v23 = vpack.c.bf16 %v147_v13, %v131_v11  ;;  %v257_v63 = vld [vmem:[#allocation5 + $0x520] sm:$0xff] }
  0xa7   :  { %3134 = vmatprep.mubr.msk.f32.mxu1 %vm977_vm0, %v4852_v43  ;;  %v163_v27 = vld [vmem:[#allocation5 + $0x230] sm:$0xff]  ;;  %v273_v0 = vld [vmem:[#allocation5 + $0x5a0] sm:$0xff] }
  0xa8   :  { %3528 = vmatpush1.bf16.msra.mxu0 %v3527_v44  ;;  %v880_v44 = vld [vmem:[#allocation5 + $0x1898] sm:$0xff]  ;;  %v179_v30 = vld [vmem:[#allocation5 + $0x2b0] sm:$0xff]  ;;  %v289_v13 = vld [vmem:[#allocation5 + $0x620] sm:$0xff] }
  0xa9   :  { %3628 = vmatpush1.bf16.msra.mxu1 %v3627_v45  ;;  %3530 = vmatprep.subr.bf16.mxu0 %v3529_v46  ;;  %v3547_v45 = vpack.c.bf16 %v845_v36, %v829_v35  ;;  %v3647_v46 = vpack.c.bf16 %v847_v39, %v831_v37  ;;  %v3649_v51 = vpack.c.bf16 %v880_v44, %v864_v42  ;;  %v212_v35 = vld [vmem:[#allocation5 + $0x3b8] sm:$0xff]  ;;  %v193_v39 = vld [vmem:[#allocation5 + $0x320] sm:$0xff]  ;;  %v195_v41 = vld [vmem:[#allocation5 + $0x330] sm:$0xff] }
  0xaa   :  { %3630 = vmatprep.subr.bf16.mxu1 %v3629_v50  ;;  %v863_v50 = vld [vmem:[#allocation5 + $0x1810] sm:$0xff]  ;;  %v3663_v36 = vpack.c.bf16 %v177_v26, %v161_v25  ;;  %v3763_v37 = vpack.c.bf16 %v179_v30, %v163_v27  ;;  %v337_v30 = vld [vmem:[#allocation5 + $0x7a0] sm:$0xff] }
  0xab   :  { %v211_v44 = vld [vmem:[#allocation5 + $0x3b0] sm:$0xff] }
  0xac   :  { %3532 = vmatpush1.bf16.msra.mxu0 %v3531_v56  ;;  %v116_v56 = vld [vmem:[#allocation5 + $0xb8] sm:$0xff]  ;;  %v227_v54 = vld [vmem:[#allocation5 + $0x430] sm:$0xff] }
  0xad   :  { %3632 = vmatpush1.bf16.msra.mxu1 %v3631_v57  ;;  %3534 = vmatprep.subr.bf16.mxu0 %v3533_v58  ;;  %v3551_v57 = vpack.c.bf16 %v877_v49, %v861_v48  ;;  %v3651_v58 = vpack.c.bf16 %v879_v52, %v863_v50  ;;  %v244_v48 = vld [vmem:[#allocation5 + $0x4b8] sm:$0xff]  ;;  %v3667_v49 = vpack.c.bf16 %v209_v40, %v193_v39  ;;  %v225_v52 = vld [vmem:[#allocation5 + $0x420] sm:$0xff]  ;;  %v259_v2 = vld [vmem:[#allocation5 + $0x530] sm:$0xff] }
  0xae   :  { %3634 = vmatprep.subr.bf16.mxu1 %v3633_v62  ;;  %v3753_v62 = vpack.c.bf16 %v116_v56, %v100_v55  ;;  %v3767_v50 = vpack.c.bf16 %v211_v44, %v195_v41  ;;  %v243_v56 = vld [vmem:[#allocation5 + $0x4b0] sm:$0xff]  ;;  %v369_v44 = vld [vmem:[#allocation5 + $0x8a0] sm:$0xff] }
  0xb0   :  { %3536 = vmatpush1.bf16.msra.mxu0 %v3535_v4  ;;  %v3655_v4 = vpack.c.bf16 %v113_v61, %v97_v60  ;;  %v276_v60 = vld [vmem:[#allocation5 + $0x5b8] sm:$0xff]  ;;  %v3671_v61 = vpack.c.bf16 %v241_v53, %v225_v52 }
  0xb1   :  { %3636 = vmatpush1.bf16.msra.mxu1 %v3635_v5  ;;  %3538 = vmatprep.subr.bf16.mxu0 %v3537_v6  ;;  %v4861_v5 = vld [vmem:[#allocation2 + $0x38] sm:$0xff] }
  0xb2   :  { %3638 = vmatprep.subr.bf16.mxu1 %v3637_v10  ;;  %v132_v6 = vld [vmem:[#allocation5 + $0x138] sm:$0xff]  ;;  %v145_v10 = vld [vmem:[#allocation5 + $0x1a0] sm:$0xff] }
  0xb3   :  { %v3659_v22 = vpack.c.bf16 %v145_v10, %v129_v9  ;;  %v308_v9 = vld [vmem:[#allocation5 + $0x6b8] sm:$0xff]  ;;  %v3675_v10 = vpack.c.bf16 %v273_v0, %v257_v63 }
  0xb4   :  { %3540 = vmatpush1.bf16.msra.mxu0 %v3539_v18  ;;  %v3757_v18 = vpack.c.bf16 %v148_v7, %v132_v6  ;;  %v290_v6 = vld [vmem:[#allocation5 + $0x628] sm:$0xff] }
  0xb5   :  { %3640 = vmatpush1.bf16.msra.mxu1 %v3639_v19  ;;  %3542 = vmatprep.subr.bf16.mxu0 %v3541_v20  ;;  %v164_v19 = vld [vmem:[#allocation5 + $0x238] sm:$0xff]  ;;  %v306_v7 = vld [vmem:[#allocation5 + $0x6a8] sm:$0xff] }
  0xb6   :  { %3642 = vmatprep.subr.bf16.mxu1 %v3641_v24  ;;  %v180_v20 = vld [vmem:[#allocation5 + $0x2b8] sm:$0xff]  ;;  %v3661_v24 = vpack.c.bf16 %v178_v17, %v162_v14  ;;  %v305_v14 = vld [vmem:[#allocation5 + $0x6a0] sm:$0xff]  ;;  %v291_v17 = vld [vmem:[#allocation5 + $0x630] sm:$0xff] }
  0xb7   :  { %v3761_v28 = vpack.c.bf16 %v180_v20, %v164_v19  ;;  %v307_v19 = vld [vmem:[#allocation5 + $0x6b0] sm:$0xff]  ;;  %v322_v20 = vld [vmem:[#allocation5 + $0x728] sm:$0xff]  ;;  %v3679_v25 = vpack.c.bf16 %v305_v14, %v289_v13 }
  0xb8   :  { %3544 = vmatpush1.bf16.msra.mxu0 %v3543_v32  ;;  %v194_v32 = vld [vmem:[#allocation5 + $0x328] sm:$0xff]  ;;  %v3779_v26 = vpack.c.bf16 %v307_v19, %v291_v17  ;;  %v465_v19 = vld [vmem:[#allocation5 + $0xba0] sm:$0xff] }
  0xb9   :  { %3644 = vmatpush1.bf16.msra.mxu1 %v3643_v33  ;;  %3546 = vmatprep.subr.bf16.mxu0 %v3545_v34  ;;  %v210_v33 = vld [vmem:[#allocation5 + $0x3a8] sm:$0xff]  ;;  %v196_v34 = vld [vmem:[#allocation5 + $0x338] sm:$0xff] }
  0xba   :  { %3646 = vmatprep.subr.bf16.mxu1 %v3645_v38  ;;  %v3665_v38 = vpack.c.bf16 %v210_v33, %v194_v32  ;;  %v3765_v42 = vpack.c.bf16 %v212_v35, %v196_v34  ;;  %v323_v32 = vld [vmem:[#allocation5 + $0x730] sm:$0xff]  ;;  %v354_v35 = vld [vmem:[#allocation5 + $0x828] sm:$0xff] }
  0xbb   :  { %v339_v34 = vld [vmem:[#allocation5 + $0x7b0] sm:$0xff] }
  0xbc   :  { %3548 = vmatpush1.bf16.msra.mxu0 %v3547_v45  ;;  %v226_v45 = vld [vmem:[#allocation5 + $0x428] sm:$0xff]  ;;  %v3783_v40 = vpack.c.bf16 %v339_v34, %v323_v32  ;;  %v497_v34 = vld [vmem:[#allocation5 + $0xca0] sm:$0xff] }
  0xbd   :  { %3648 = vmatpush1.bf16.msra.mxu1 %v3647_v46  ;;  %3550 = vmatprep.subr.bf16.mxu0 %v3549_v47  ;;  %v242_v46 = vld [vmem:[#allocation5 + $0x4a8] sm:$0xff]  ;;  %v228_v47 = vld [vmem:[#allocation5 + $0x438] sm:$0xff] }
  0xbe   :  { %3650 = vmatprep.subr.bf16.mxu1 %v3649_v51  ;;  %v3669_v51 = vpack.c.bf16 %v242_v46, %v226_v45  ;;  %v3769_v55 = vpack.c.bf16 %v244_v48, %v228_v47  ;;  %v355_v45 = vld [vmem:[#allocation5 + $0x830] sm:$0xff]  ;;  %v386_v48 = vld [vmem:[#allocation5 + $0x928] sm:$0xff] }
  0xbf   :  { %v371_v47 = vld [vmem:[#allocation5 + $0x8b0] sm:$0xff] }
  0xc0   :  { %3552 = vmatpush1.bf16.msra.mxu0 %v3551_v57  ;;  %v258_v57 = vld [vmem:[#allocation5 + $0x528] sm:$0xff]  ;;  %v3787_v53 = vpack.c.bf16 %v371_v47, %v355_v45  ;;  %v529_v47 = vld [vmem:[#allocation5 + $0xda0] sm:$0xff] }
  0xc1   :  { %3652 = vmatpush1.bf16.msra.mxu1 %v3651_v58  ;;  %3654 = vmatprep.subr.bf16.mxu0 %v3653_v59  ;;  %v274_v58 = vld [vmem:[#allocation5 + $0x5a8] sm:$0xff]  ;;  %v260_v59 = vld [vmem:[#allocation5 + $0x538] sm:$0xff] }
  0xc2   :  { %3754 = vmatprep.subr.bf16.mxu1 %v3753_v62  ;;  %v3673_v62 = vpack.c.bf16 %v274_v58, %v258_v57  ;;  %v3773_v3 = vpack.c.bf16 %v276_v60, %v260_v59  ;;  %v387_v57 = vld [vmem:[#allocation5 + $0x930] sm:$0xff]  ;;  %v418_v60 = vld [vmem:[#allocation5 + $0xa28] sm:$0xff] }
  0xc3   :  { %1126 = vmatmul.mubr.f32.vlgmr.msra.gmra.mrb[0].mxu0 %v4859_v1  ;;  %v403_v59 = vld [vmem:[#allocation5 + $0x9b0] sm:$0xff] }
  0xc4   :  { %1280 = vmatmul.mubr.f32.vlgmr.msra.gmra.mrb[0].mxu1 %v4859_v1  ;;  %3656 = vmatpush1.bf16.msra.mxu0 %v3655_v4  ;;  %v275_v4 = vld [vmem:[#allocation5 + $0x5b0] sm:$0xff]  ;;  %v3791_v0 = vpack.c.bf16 %v403_v59, %v387_v57  ;;  %v561_v59 = vld [vmem:[#allocation5 + $0xea0] sm:$0xff] }
  0xc5   :  { %3756 = vmatpush1.bf16.msra.mxu1 %v3755_v8  ;;  %3133 = vmatprep.mubr.msk.f32.mxu0 %vm977_vm0, %v4861_v5  ;;  %v292_v8 = vld [vmem:[#allocation5 + $0x638] sm:$0xff]  ;;  %v3775_v11 = vpack.c.bf16 %v275_v4, %v259_v2  ;;  %v433_v4 = vld [vmem:[#allocation5 + $0xaa0] sm:$0xff] }
  0xc6   :  { %3135 = vmatprep.mubr.msk.f32.mxu1 %vm977_vm0, %v4861_v5  ;;  %3658 = vmatprep.subr.bf16.mxu0 %v3657_v12  ;;  %v3677_v12 = vpack.c.bf16 %v306_v7, %v290_v6  ;;  %v419_v6 = vld [vmem:[#allocation5 + $0xa30] sm:$0xff] }
  0xc7   :  { %1132 = vmatmul.mubr.f32.gmra.mrb[2].mxu0 %v4865_v21  ;;  %3758 = vmatprep.subr.bf16.mxu1 %v3757_v18  ;;  %v3777_v18 = vpack.c.bf16 %v308_v9, %v292_v8  ;;  %v435_v8 = vld [vmem:[#allocation5 + $0xab0] sm:$0xff]  ;;  %v450_v9 = vld [vmem:[#allocation5 + $0xb28] sm:$0xff] }
  0xc8   :  { %1286 = vmatmul.mubr.f32.gmra.mrb[2].mxu1 %v4865_v21  ;;  %3660 = vmatpush1.bf16.msra.mxu0 %v3659_v22  ;;  %v338_v22 = vld [vmem:[#allocation5 + $0x7a8] sm:$0xff]  ;;  %v3795_v14 = vpack.c.bf16 %v435_v8, %v419_v6  ;;  %v593_v8 = vld [vmem:[#allocation5 + $0xfa0] sm:$0xff] }
  0xc9   :  { %3760 = vmatpush1.bf16.msra.mxu1 %v3759_v23  ;;  %3662 = vmatprep.subr.bf16.mxu0 %v3661_v24  ;;  %v324_v23 = vld [vmem:[#allocation5 + $0x738] sm:$0xff]  ;;  %v3681_v27 = vpack.c.bf16 %v338_v22, %v322_v20  ;;  %v451_v20 = vld [vmem:[#allocation5 + $0xb30] sm:$0xff] }
  0xca   :  { %3762 = vmatprep.subr.bf16.mxu1 %v3761_v28  ;;  %1356 = vmatprep.mubr.f32.mxu0 %v4837_v16  ;;  %v340_v24 = vld [vmem:[#allocation5 + $0x7b8] sm:$0xff]  ;;  %v321_v28 = vld [vmem:[#allocation5 + $0x720] sm:$0xff] }
  0xcb   :  { %1510 = vmatprep.mubr.f32.mxu1 %v4837_v16  ;;  %v3771_v16 = vpack.c.bf16 %v243_v56, %v227_v54  ;;  %v3781_v33 = vpack.c.bf16 %v340_v24, %v324_v23  ;;  %v3683_v39 = vpack.c.bf16 %v337_v30, %v321_v28  ;;  %v401_v56 = vld [vmem:[#allocation5 + $0x9a0] sm:$0xff]  ;;  %v467_v23 = vld [vmem:[#allocation5 + $0xbb0] sm:$0xff]  ;;  %v482_v24 = vld [vmem:[#allocation5 + $0xc28] sm:$0xff] }
  0xcc   :  { %3664 = vmatpush1.bf16.msra.mxu0 %v3663_v36  ;;  %v370_v36 = vld [vmem:[#allocation5 + $0x8a8] sm:$0xff]  ;;  %v3799_v30 = vpack.c.bf16 %v467_v23, %v451_v20  ;;  %v625_v23 = vld [vmem:[#allocation5 + $0x10a0] sm:$0xff] }
  0xcd   :  { %3764 = vmatpush1.bf16.msra.mxu1 %v3763_v37  ;;  %3666 = vmatprep.subr.bf16.mxu0 %v3665_v38  ;;  %v356_v37 = vld [vmem:[#allocation5 + $0x838] sm:$0xff]  ;;  %v3685_v41 = vpack.c.bf16 %v370_v36, %v354_v35  ;;  %v483_v35 = vld [vmem:[#allocation5 + $0xc30] sm:$0xff] }
  0xce   :  { %3766 = vmatprep.subr.bf16.mxu1 %v3765_v42  ;;  %v372_v38 = vld [vmem:[#allocation5 + $0x8b8] sm:$0xff]  ;;  %v353_v42 = vld [vmem:[#allocation5 + $0x820] sm:$0xff] }
  0xcf   :  { %v3785_v46 = vpack.c.bf16 %v372_v38, %v356_v37  ;;  %v3687_v52 = vpack.c.bf16 %v369_v44, %v353_v42  ;;  %v499_v37 = vld [vmem:[#allocation5 + $0xcb0] sm:$0xff]  ;;  %v514_v38 = vld [vmem:[#allocation5 + $0xd28] sm:$0xff] }
  0xd0   :  { %3668 = vmatpush1.bf16.msra.mxu0 %v3667_v49  ;;  %v402_v49 = vld [vmem:[#allocation5 + $0x9a8] sm:$0xff]  ;;  %v3803_v44 = vpack.c.bf16 %v499_v37, %v483_v35  ;;  %v657_v37 = vld [vmem:[#allocation5 + $0x11a0] sm:$0xff] }
  0xd1   :  { %3768 = vmatpush1.bf16.msra.mxu1 %v3767_v50  ;;  %3670 = vmatprep.subr.bf16.mxu0 %v3669_v51  ;;  %v388_v50 = vld [vmem:[#allocation5 + $0x938] sm:$0xff]  ;;  %v3689_v54 = vpack.c.bf16 %v402_v49, %v386_v48  ;;  %v515_v48 = vld [vmem:[#allocation5 + $0xd30] sm:$0xff] }
  0xd2   :  { %3770 = vmatprep.subr.bf16.mxu1 %v3769_v55  ;;  %v404_v51 = vld [vmem:[#allocation5 + $0x9b8] sm:$0xff]  ;;  %v385_v55 = vld [vmem:[#allocation5 + $0x920] sm:$0xff] }
  0xd3   :  { %v3789_v58 = vpack.c.bf16 %v404_v51, %v388_v50  ;;  %v3691_v63 = vpack.c.bf16 %v401_v56, %v385_v55  ;;  %v531_v50 = vld [vmem:[#allocation5 + $0xdb0] sm:$0xff]  ;;  %v546_v51 = vld [vmem:[#allocation5 + $0xe28] sm:$0xff] }
  0xd4   :  { %3672 = vmatpush1.bf16.msra.mxu0 %v3671_v61  ;;  %v434_v61 = vld [vmem:[#allocation5 + $0xaa8] sm:$0xff]  ;;  %v3807_v56 = vpack.c.bf16 %v531_v50, %v515_v48  ;;  %v689_v50 = vld [vmem:[#allocation5 + $0x12a0] sm:$0xff] }
  0xd5   :  { %3772 = vmatpush1.bf16.msra.mxu1 %v3771_v16  ;;  %3674 = vmatprep.subr.bf16.mxu0 %v3673_v62  ;;  %v420_v16 = vld [vmem:[#allocation5 + $0xa38] sm:$0xff]  ;;  %v3693_v2 = vpack.c.bf16 %v434_v61, %v418_v60  ;;  %v547_v60 = vld [vmem:[#allocation5 + $0xe30] sm:$0xff] }
  0xd6   :  { %3774 = vmatprep.subr.bf16.mxu1 %v3773_v3  ;;  %v436_v62 = vld [vmem:[#allocation5 + $0xab8] sm:$0xff]  ;;  %v417_v3 = vld [vmem:[#allocation5 + $0xa20] sm:$0xff] }
  0xd7   :  { %v3793_v7 = vpack.c.bf16 %v436_v62, %v420_v16  ;;  %v3695_v13 = vpack.c.bf16 %v433_v4, %v417_v3  ;;  %v563_v16 = vld [vmem:[#allocation5 + $0xeb0] sm:$0xff]  ;;  %v578_v62 = vld [vmem:[#allocation5 + $0xf28] sm:$0xff] }
  0xd8   :  { %3676 = vmatpush1.bf16.msra.mxu0 %v3675_v10  ;;  %v466_v10 = vld [vmem:[#allocation5 + $0xba8] sm:$0xff]  ;;  %v3811_v4 = vpack.c.bf16 %v563_v16, %v547_v60  ;;  %v705_v60 = vld [vmem:[#allocation5 + $0x1320] sm:$0xff]  ;;  %v707_v16 = vld [vmem:[#allocation5 + $0x1330] sm:$0xff] }
  0xd9   :  { %3776 = vmatpush1.bf16.msra.mxu1 %v3775_v11  ;;  %3678 = vmatprep.subr.bf16.mxu0 %v3677_v12  ;;  %v452_v11 = vld [vmem:[#allocation5 + $0xb38] sm:$0xff]  ;;  %v3697_v17 = vpack.c.bf16 %v466_v10, %v450_v9  ;;  %v579_v9 = vld [vmem:[#allocation5 + $0xf30] sm:$0xff] }
  0xda   :  { %3778 = vmatprep.subr.bf16.mxu1 %v3777_v18  ;;  %v468_v12 = vld [vmem:[#allocation5 + $0xbb8] sm:$0xff]  ;;  %v449_v18 = vld [vmem:[#allocation5 + $0xb20] sm:$0xff] }
  0xdb   :  { %v3797_v22 = vpack.c.bf16 %v468_v12, %v452_v11  ;;  %v3699_v28 = vpack.c.bf16 %v465_v19, %v449_v18  ;;  %v595_v11 = vld [vmem:[#allocation5 + $0xfb0] sm:$0xff]  ;;  %v610_v12 = vld [vmem:[#allocation5 + $0x1028] sm:$0xff] }
  0xdc   :  { %3680 = vmatpush1.bf16.msra.mxu0 %v3679_v25  ;;  %v498_v25 = vld [vmem:[#allocation5 + $0xca8] sm:$0xff]  ;;  %v3815_v19 = vpack.c.bf16 %v595_v11, %v579_v9  ;;  %v739_v9 = vld [vmem:[#allocation5 + $0x1430] sm:$0xff] }
  0xdd   :  { %3780 = vmatpush1.bf16.msra.mxu1 %v3779_v26  ;;  %3682 = vmatprep.subr.bf16.mxu0 %v3681_v27  ;;  %v484_v26 = vld [vmem:[#allocation5 + $0xc38] sm:$0xff]  ;;  %v3701_v32 = vpack.c.bf16 %v498_v25, %v482_v24  ;;  %v611_v24 = vld [vmem:[#allocation5 + $0x1030] sm:$0xff] }
  0xde   :  { %3782 = vmatprep.subr.bf16.mxu1 %v3781_v33  ;;  %v500_v27 = vld [vmem:[#allocation5 + $0xcb8] sm:$0xff]  ;;  %v481_v33 = vld [vmem:[#allocation5 + $0xc20] sm:$0xff]  ;;  %v755_v11 = vld [vmem:[#allocation5 + $0x14b0] sm:$0xff] }
  0xdf   :  { %v3801_v36 = vpack.c.bf16 %v500_v27, %v484_v26  ;;  %v3703_v42 = vpack.c.bf16 %v497_v34, %v481_v33  ;;  %v627_v26 = vld [vmem:[#allocation5 + $0x10b0] sm:$0xff]  ;;  %v642_v27 = vld [vmem:[#allocation5 + $0x1128] sm:$0xff] }
  0xe0   :  { %3684 = vmatpush1.bf16.msra.mxu0 %v3683_v39  ;;  %v530_v39 = vld [vmem:[#allocation5 + $0xda8] sm:$0xff]  ;;  %v3819_v34 = vpack.c.bf16 %v627_v26, %v611_v24 }
  0xe1   :  { %3784 = vmatpush1.bf16.msra.mxu1 %v3783_v40  ;;  %3686 = vmatprep.subr.bf16.mxu0 %v3685_v41  ;;  %v516_v40 = vld [vmem:[#allocation5 + $0xd38] sm:$0xff]  ;;  %v3705_v45 = vpack.c.bf16 %v530_v39, %v514_v38  ;;  %v643_v38 = vld [vmem:[#allocation5 + $0x1130] sm:$0xff]  ;;  %v802_v26 = vld [vmem:[#allocation5 + $0x1628] sm:$0xff] }
  0xe2   :  { %3786 = vmatprep.subr.bf16.mxu1 %v3785_v46  ;;  %v532_v41 = vld [vmem:[#allocation5 + $0xdb8] sm:$0xff]  ;;  %v513_v46 = vld [vmem:[#allocation5 + $0xd20] sm:$0xff] }
  0xe3   :  { %v3805_v49 = vpack.c.bf16 %v532_v41, %v516_v40  ;;  %v3707_v55 = vpack.c.bf16 %v529_v47, %v513_v46  ;;  %v659_v40 = vld [vmem:[#allocation5 + $0x11b0] sm:$0xff]  ;;  %v674_v41 = vld [vmem:[#allocation5 + $0x1228] sm:$0xff] }
  0xe4   :  { %3688 = vmatpush1.bf16.msra.mxu0 %v3687_v52  ;;  %v562_v52 = vld [vmem:[#allocation5 + $0xea8] sm:$0xff]  ;;  %v3823_v47 = vpack.c.bf16 %v659_v40, %v643_v38 }
  0xe5   :  { %3788 = vmatpush1.bf16.msra.mxu1 %v3787_v53  ;;  %3690 = vmatprep.subr.bf16.mxu0 %v3689_v54  ;;  %v548_v53 = vld [vmem:[#allocation5 + $0xe38] sm:$0xff]  ;;  %v3709_v57 = vpack.c.bf16 %v562_v52, %v546_v51  ;;  %v675_v51 = vld [vmem:[#allocation5 + $0x1230] sm:$0xff]  ;;  %v834_v40 = vld [vmem:[#allocation5 + $0x1728] sm:$0xff] }
  0xe6   :  { %3790 = vmatprep.subr.bf16.mxu1 %v3789_v58  ;;  %v564_v54 = vld [vmem:[#allocation5 + $0xeb8] sm:$0xff]  ;;  %v545_v58 = vld [vmem:[#allocation5 + $0xe20] sm:$0xff] }
  0xe7   :  { %v3809_v61 = vpack.c.bf16 %v564_v54, %v548_v53  ;;  %v3711_v3 = vpack.c.bf16 %v561_v59, %v545_v58  ;;  %v691_v53 = vld [vmem:[#allocation5 + $0x12b0] sm:$0xff]  ;;  %v706_v54 = vld [vmem:[#allocation5 + $0x1328] sm:$0xff] }
  0xe8   :  { %3692 = vmatpush1.bf16.msra.mxu0 %v3691_v63  ;;  %v594_v63 = vld [vmem:[#allocation5 + $0xfa8] sm:$0xff]  ;;  %v3827_v58 = vpack.c.bf16 %v691_v53, %v675_v51 }
  0xe9   :  { %3792 = vmatpush1.bf16.msra.mxu1 %v3791_v0  ;;  %3694 = vmatprep.subr.bf16.mxu0 %v3693_v2  ;;  %v580_v0 = vld [vmem:[#allocation5 + $0xf38] sm:$0xff]  ;;  %v3713_v6 = vpack.c.bf16 %v594_v63, %v578_v62  ;;  %v723_v63 = vld [vmem:[#allocation5 + $0x13b0] sm:$0xff]  ;;  %v866_v53 = vld [vmem:[#allocation5 + $0x1828] sm:$0xff] }
  0xea   :  { %3794 = vmatprep.subr.bf16.mxu1 %v3793_v7  ;;  %v596_v2 = vld [vmem:[#allocation5 + $0xfb8] sm:$0xff]  ;;  %v577_v7 = vld [vmem:[#allocation5 + $0xf20] sm:$0xff] }
  0xeb   :  { %v3813_v10 = vpack.c.bf16 %v596_v2, %v580_v0  ;;  %v3715_v18 = vpack.c.bf16 %v593_v8, %v577_v7  ;;  %v738_v0 = vld [vmem:[#allocation5 + $0x1428] sm:$0xff]  ;;  %v737_v7 = vld [vmem:[#allocation5 + $0x1420] sm:$0xff] }
  0xec   :  { %3696 = vmatpush1.bf16.msra.mxu0 %v3695_v13  ;;  %v626_v13 = vld [vmem:[#allocation5 + $0x10a8] sm:$0xff]  ;;  %v753_v8 = vld [vmem:[#allocation5 + $0x14a0] sm:$0xff] }
  0xed   :  { %3796 = vmatpush1.bf16.msra.mxu1 %v3795_v14  ;;  %3698 = vmatprep.subr.bf16.mxu0 %v3697_v17  ;;  %v612_v14 = vld [vmem:[#allocation5 + $0x1038] sm:$0xff]  ;;  %v3717_v20 = vpack.c.bf16 %v626_v13, %v610_v12  ;;  %v754_v2 = vld [vmem:[#allocation5 + $0x14a8] sm:$0xff] }
  0xee   :  { %3798 = vmatprep.subr.bf16.mxu1 %v3797_v22  ;;  %v628_v17 = vld [vmem:[#allocation5 + $0x10b8] sm:$0xff]  ;;  %v609_v22 = vld [vmem:[#allocation5 + $0x1020] sm:$0xff]  ;;  %v770_v12 = vld [vmem:[#allocation5 + $0x1528] sm:$0xff] }
  0xef   :  { %v3817_v25 = vpack.c.bf16 %v628_v17, %v612_v14  ;;  %v3719_v33 = vpack.c.bf16 %v625_v23, %v609_v22  ;;  %v786_v13 = vld [vmem:[#allocation5 + $0x15a8] sm:$0xff]  ;;  %v772_v14 = vld [vmem:[#allocation5 + $0x1538] sm:$0xff]  ;;  %v785_v22 = vld [vmem:[#allocation5 + $0x15a0] sm:$0xff] }
  0xf0   :  { %3700 = vmatpush1.bf16.msra.mxu0 %v3699_v28  ;;  %v658_v28 = vld [vmem:[#allocation5 + $0x11a8] sm:$0xff]  ;;  %v788_v17 = vld [vmem:[#allocation5 + $0x15b8] sm:$0xff]  ;;  %v771_v23 = vld [vmem:[#allocation5 + $0x1530] sm:$0xff] }
  0xf1   :  { %3800 = vmatpush1.bf16.msra.mxu1 %v3799_v30  ;;  %3702 = vmatprep.subr.bf16.mxu0 %v3701_v32  ;;  %v644_v30 = vld [vmem:[#allocation5 + $0x1138] sm:$0xff]  ;;  %v3721_v35 = vpack.c.bf16 %v658_v28, %v642_v27  ;;  %v3837_v24 = vpack.c.bf16 %v788_v17, %v772_v14  ;;  %v818_v27 = vld [vmem:[#allocation5 + $0x16a8] sm:$0xff] }
  0xf2   :  { %3802 = vmatprep.subr.bf16.mxu1 %v3801_v36  ;;  %v660_v32 = vld [vmem:[#allocation5 + $0x11b8] sm:$0xff]  ;;  %v641_v36 = vld [vmem:[#allocation5 + $0x1120] sm:$0xff] }
  0xf3   :  { %v3821_v39 = vpack.c.bf16 %v660_v32, %v644_v30  ;;  %v3723_v46 = vpack.c.bf16 %v657_v37, %v641_v36  ;;  %v804_v28 = vld [vmem:[#allocation5 + $0x1638] sm:$0xff]  ;;  %v817_v36 = vld [vmem:[#allocation5 + $0x16a0] sm:$0xff]  ;;  %v803_v37 = vld [vmem:[#allocation5 + $0x1630] sm:$0xff] }
  0xf4   :  { %3704 = vmatpush1.bf16.msra.mxu0 %v3703_v42  ;;  %v690_v42 = vld [vmem:[#allocation5 + $0x12a8] sm:$0xff]  ;;  %v820_v30 = vld [vmem:[#allocation5 + $0x16b8] sm:$0xff] }
  0xf5   :  { %3804 = vmatpush1.bf16.msra.mxu1 %v3803_v44  ;;  %3706 = vmatprep.subr.bf16.mxu0 %v3705_v45  ;;  %v676_v44 = vld [vmem:[#allocation5 + $0x1238] sm:$0xff]  ;;  %v3725_v48 = vpack.c.bf16 %v690_v42, %v674_v41  ;;  %v3841_v38 = vpack.c.bf16 %v820_v30, %v804_v28  ;;  %v850_v41 = vld [vmem:[#allocation5 + $0x17a8] sm:$0xff] }
  0xf6   :  { %3806 = vmatprep.subr.bf16.mxu1 %v3805_v49  ;;  %v692_v45 = vld [vmem:[#allocation5 + $0x12b8] sm:$0xff]  ;;  %v673_v49 = vld [vmem:[#allocation5 + $0x1220] sm:$0xff] }
  0xf7   :  { %v3825_v52 = vpack.c.bf16 %v692_v45, %v676_v44  ;;  %v836_v42 = vld [vmem:[#allocation5 + $0x1738] sm:$0xff] }
  0xf8   :  { %3708 = vmatpush1.bf16.msra.mxu0 %v3707_v55  ;;  %v722_v55 = vld [vmem:[#allocation5 + $0x13a8] sm:$0xff]  ;;  %v852_v44 = vld [vmem:[#allocation5 + $0x17b8] sm:$0xff] }
  0xf9   :  { %3808 = vmatpush1.bf16.msra.mxu1 %v3807_v56  ;;  %3710 = vmatprep.subr.bf16.mxu0 %v3709_v57  ;;  %v708_v56 = vld [vmem:[#allocation5 + $0x1338] sm:$0xff]  ;;  %v3729_v59 = vpack.c.bf16 %v722_v55, %v706_v54  ;;  %v3845_v51 = vpack.c.bf16 %v852_v44, %v836_v42  ;;  %v882_v54 = vld [vmem:[#allocation5 + $0x18a8] sm:$0xff] }
  0xfa   :  { %3810 = vmatprep.subr.bf16.mxu1 %v3809_v61  ;;  %v724_v57 = vld [vmem:[#allocation5 + $0x13b8] sm:$0xff]  ;;  %v721_v61 = vld [vmem:[#allocation5 + $0x13a0] sm:$0xff] }
  0xfb   :  { %v3829_v62 = vpack.c.bf16 %v724_v57, %v708_v56  ;;  %v868_v55 = vld [vmem:[#allocation5 + $0x1838] sm:$0xff] }
  0xfc   :  { %3712 = vmatpush1.bf16.msra.mxu0 %v3711_v3  ;;  %v756_v3 = vld [vmem:[#allocation5 + $0x14b8] sm:$0xff] }
  0xfd   :  { %3812 = vmatpush1.bf16.msra.mxu1 %v3811_v4  ;;  %3714 = vmatprep.subr.bf16.mxu0 %v3713_v6  ;;  %v3831_v4 = vpack.c.bf16 %v723_v63, %v707_v16  ;;  %v3733_v6 = vpack.c.bf16 %v754_v2, %v738_v0  ;;  %v884_v56 = vld [vmem:[#allocation5 + $0x18b8] sm:$0xff]  ;;  %v102_v63 = vld [vmem:[#allocation5 + $0x48] sm:$0xff] }
  0xfe   :  { %3814 = vmatprep.subr.bf16.mxu1 %v3813_v10  ;;  %v3849_v16 = vpack.c.bf16 %v884_v56, %v868_v55  ;;  %v118_v0 = vld [vmem:[#allocation5 + $0xc8] sm:$0xff]  ;;  %v104_v2 = vld [vmem:[#allocation5 + $0x58] sm:$0xff] }
  0xff   :  { %v136_v14 = vld [vmem:[#allocation5 + $0x158] sm:$0xff] }
 0x100   :  { %3716 = vmatpush1.bf16.msra.mxu0 %v3715_v18  ;;  %v3735_v18 = vpack.c.bf16 %v753_v8, %v737_v7  ;;  %v117_v7 = vld [vmem:[#allocation5 + $0xc0] sm:$0xff]  ;;  %v152_v17 = vld [vmem:[#allocation5 + $0x1d8] sm:$0xff] }
 0x101   :  { %3816 = vmatpush1.bf16.msra.mxu1 %v3815_v19  ;;  %3718 = vmatprep.subr.bf16.mxu0 %v3717_v20  ;;  %v3737_v19 = vpack.c.bf16 %v786_v13, %v770_v12  ;;  %v769_v20 = vld [vmem:[#allocation5 + $0x1520] sm:$0xff]  ;;  %v150_v12 = vld [vmem:[#allocation5 + $0x1c8] sm:$0xff]  ;;  %v184_v28 = vld [vmem:[#allocation5 + $0x2d8] sm:$0xff] }
 0x102   :  { %3818 = vmatprep.subr.bf16.mxu1 %v3817_v25  ;;  %v787_v25 = vld [vmem:[#allocation5 + $0x15b0] sm:$0xff]  ;;  %v3739_v32 = vpack.c.bf16 %v785_v22, %v769_v20 }
 0x103   :  { %1357 = vmatmul.mubr.f32.vlgmr.msra.gmra.mrb[4].mxu0 %v4841_v15  ;;  %v135_v20 = vld [vmem:[#allocation5 + $0x150] sm:$0xff] }
 0x104   :  { %3720 = vmatpush1.bf16.msra.mxu0 %v3719_v33  ;;  %1511 = vmatmul.mubr.f32.vlgmr.msra.gmra.mrb[4].mxu1 %v4841_v15  ;;  %v3727_v15 = vpack.c.bf16 %v689_v50, %v673_v49  ;;  %v3839_v33 = vpack.c.bf16 %v787_v25, %v771_v23  ;;  %v849_v49 = vld [vmem:[#allocation5 + $0x17a0] sm:$0xff]  ;;  %v835_v50 = vld [vmem:[#allocation5 + $0x1730] sm:$0xff]  ;;  %v182_v25 = vld [vmem:[#allocation5 + $0x2c8] sm:$0xff] }
 0x105   :  { %3820 = vmatpush1.bf16.msra.mxu1 %v3819_v34  ;;  %3722 = vmatprep.subr.bf16.mxu0 %v3721_v35  ;;  %v3741_v34 = vpack.c.bf16 %v818_v27, %v802_v26  ;;  %v801_v35 = vld [vmem:[#allocation5 + $0x1620] sm:$0xff]  ;;  %v151_v23 = vld [vmem:[#allocation5 + $0x1d0] sm:$0xff]  ;;  %v3957_v26 = vpack.c.bf16 %v152_v17, %v136_v14  ;;  %v168_v27 = vld [vmem:[#allocation5 + $0x258] sm:$0xff] }
 0x106   :  { %3822 = vmatprep.subr.bf16.mxu1 %v3821_v39  ;;  %1362 = vmatprep.mubr.f32.mxu0 %v4844_v29  ;;  %v819_v39 = vld [vmem:[#allocation5 + $0x16b0] sm:$0xff]  ;;  %v3743_v45 = vpack.c.bf16 %v817_v36, %v801_v35  ;;  %v181_v35 = vld [vmem:[#allocation5 + $0x2c0] sm:$0xff] }
 0x107   :  { %1516 = vmatprep.mubr.f32.mxu1 %v4844_v29  ;;  %1363 = vmatmul.mubr.f32.gmra.mrb[6].mxu0 %v4847_v31  ;;  %v740_v29 = vld [vmem:[#allocation5 + $0x1438] sm:$0xff]  ;;  %v167_v36 = vld [vmem:[#allocation5 + $0x250] sm:$0xff]  ;;  %v293_v17 = vld [vmem:[#allocation5 + $0x640] sm:$0xff] }
 0x108   :  { %3724 = vmatpush1.bf16.msra.mxu0 %v3723_v46  ;;  %1517 = vmatmul.mubr.f32.gmra.mrb[6].mxu1 %v4847_v31  ;;  %v3731_v31 = vpack.c.bf16 %v721_v61, %v705_v60  ;;  %v3833_v10 = vpack.c.bf16 %v756_v3, %v740_v29  ;;  %v3843_v46 = vpack.c.bf16 %v819_v39, %v803_v37  ;;  %v881_v60 = vld [vmem:[#allocation5 + $0x18a0] sm:$0xff]  ;;  %v867_v61 = vld [vmem:[#allocation5 + $0x1830] sm:$0xff]  ;;  %v120_v29 = vld [vmem:[#allocation5 + $0xd8] sm:$0xff] }
 0x109   :  { %3824 = vmatpush1.bf16.msra.mxu1 %v3823_v47  ;;  %3726 = vmatprep.subr.bf16.mxu0 %v3725_v48  ;;  %v3745_v47 = vpack.c.bf16 %v850_v41, %v834_v40  ;;  %v833_v48 = vld [vmem:[#allocation5 + $0x1720] sm:$0xff]  ;;  %v3953_v8 = vpack.c.bf16 %v120_v29, %v104_v2  ;;  %v3961_v37 = vpack.c.bf16 %v184_v28, %v168_v27  ;;  %v198_v39 = vld [vmem:[#allocation5 + $0x348] sm:$0xff]  ;;  %v216_v41 = vld [vmem:[#allocation5 + $0x3d8] sm:$0xff] }
 0x10a   :  { %3826 = vmatprep.subr.bf16.mxu1 %v3825_v52  ;;  %3136 = vmatprep.mubr.msk.f32.mxu0 %vm977_vm0, %v4852_v43  ;;  %v851_v52 = vld [vmem:[#allocation5 + $0x17b0] sm:$0xff]  ;;  %v3747_v57 = vpack.c.bf16 %v849_v49, %v833_v48  ;;  %v214_v40 = vld [vmem:[#allocation5 + $0x3c8] sm:$0xff] }
 0x10b   :  { %3138 = vmatprep.mubr.msk.f32.mxu1 %vm977_vm0, %v4852_v43  ;;  %v3835_v43 = vpack.c.bf16 %v755_v11, %v739_v9  ;;  %v103_v9 = vld [vmem:[#allocation5 + $0x50] sm:$0xff]  ;;  %v134_v11 = vld [vmem:[#allocation5 + $0x148] sm:$0xff] }
 0x10c   :  { %3728 = vmatpush1.bf16.msra.mxu0 %v3727_v15  ;;  %v3847_v15 = vpack.c.bf16 %v851_v52, %v835_v50  ;;  %v3857_v22 = vpack.c.bf16 %v150_v12, %v134_v11  ;;  %v215_v49 = vld [vmem:[#allocation5 + $0x3d0] sm:$0xff]  ;;  %v230_v50 = vld [vmem:[#allocation5 + $0x448] sm:$0xff]  ;;  %v312_v11 = vld [vmem:[#allocation5 + $0x6d8] sm:$0xff] }
 0x10d   :  { %3828 = vmatpush1.bf16.msra.mxu1 %v3827_v58  ;;  %3730 = vmatprep.subr.bf16.mxu0 %v3729_v59  ;;  %v3749_v58 = vpack.c.bf16 %v882_v54, %v866_v53  ;;  %v865_v59 = vld [vmem:[#allocation5 + $0x1820] sm:$0xff]  ;;  %v4893_v52 = vld [vmem:[#allocation2 + $0x8] sm:$0xff]  ;;  %v232_v53 = vld [vmem:[#allocation5 + $0x458] sm:$0xff] }
 0x10e   :  { %3830 = vmatprep.subr.bf16.mxu1 %v3829_v62  ;;  %v883_v62 = vld [vmem:[#allocation5 + $0x18b0] sm:$0xff]  ;;  %v3751_v3 = vpack.c.bf16 %v881_v60, %v865_v59 }
 0x10f   :  { %v247_v60 = vld [vmem:[#allocation5 + $0x4d0] sm:$0xff] }
 0x110   :  { %3732 = vmatpush1.bf16.msra.mxu0 %v3731_v31  ;;  %v3851_v31 = vpack.c.bf16 %v883_v62, %v867_v61  ;;  %v262_v61 = vld [vmem:[#allocation5 + $0x548] sm:$0xff]  ;;  %v264_v62 = vld [vmem:[#allocation5 + $0x558] sm:$0xff] }
 0x111   :  { %3832 = vmatpush1.bf16.msra.mxu1 %v3831_v4  ;;  %3734 = vmatprep.subr.bf16.mxu0 %v3733_v6  ;;  %v3853_v4 = vpack.c.bf16 %v118_v0, %v102_v63  ;;  %v101_v6 = vld [vmem:[#allocation5 + $0x40] sm:$0xff]  ;;  %v280_v63 = vld [vmem:[#allocation5 + $0x5d8] sm:$0xff] }
 0x112   :  { %3834 = vmatprep.subr.bf16.mxu1 %v3833_v10  ;;  %v119_v10 = vld [vmem:[#allocation5 + $0xd0] sm:$0xff]  ;;  %v3855_v13 = vpack.c.bf16 %v117_v7, %v101_v6  ;;  %v3973_v6 = vpack.c.bf16 %v280_v63, %v264_v62 }
 0x113   :  { %v279_v7 = vld [vmem:[#allocation5 + $0x5d0] sm:$0xff] }
 0x114   :  { %3736 = vmatpush1.bf16.msra.mxu0 %v3735_v18  ;;  %v3955_v18 = vpack.c.bf16 %v119_v10, %v103_v9  ;;  %v310_v9 = vld [vmem:[#allocation5 + $0x6c8] sm:$0xff]  ;;  %v296_v10 = vld [vmem:[#allocation5 + $0x658] sm:$0xff] }
 0x115   :  { %3836 = vmatpush1.bf16.msra.mxu1 %v3835_v43  ;;  %3738 = vmatprep.subr.bf16.mxu0 %v3737_v19  ;;  %v133_v43 = vld [vmem:[#allocation5 + $0x140] sm:$0xff] }
 0x116   :  { %3838 = vmatprep.subr.bf16.mxu1 %v3837_v24  ;;  %v149_v19 = vld [vmem:[#allocation5 + $0x1c0] sm:$0xff]  ;;  %v166_v24 = vld [vmem:[#allocation5 + $0x248] sm:$0xff] }
 0x117   :  { %v3859_v30 = vpack.c.bf16 %v149_v19, %v133_v43  ;;  %v295_v43 = vld [vmem:[#allocation5 + $0x650] sm:$0xff]  ;;  %v3977_v19 = vpack.c.bf16 %v312_v11, %v296_v10 }
 0x118   :  { %3740 = vmatpush1.bf16.msra.mxu0 %v3739_v32  ;;  %v3959_v32 = vpack.c.bf16 %v151_v23, %v135_v20  ;;  %v311_v20 = vld [vmem:[#allocation5 + $0x6d0] sm:$0xff]  ;;  %v342_v23 = vld [vmem:[#allocation5 + $0x7c8] sm:$0xff] }
 0x119   :  { %3840 = vmatpush1.bf16.msra.mxu1 %v3839_v33  ;;  %3742 = vmatprep.subr.bf16.mxu0 %v3741_v34  ;;  %v3861_v33 = vpack.c.bf16 %v182_v25, %v166_v24  ;;  %v165_v34 = vld [vmem:[#allocation5 + $0x240] sm:$0xff]  ;;  %v328_v24 = vld [vmem:[#allocation5 + $0x758] sm:$0xff]  ;;  %v3979_v27 = vpack.c.bf16 %v311_v20, %v295_v43  ;;  %v486_v43 = vld [vmem:[#allocation5 + $0xc48] sm:$0xff] }
 0x11a   :  { %3842 = vmatprep.subr.bf16.mxu1 %v3841_v38  ;;  %v183_v38 = vld [vmem:[#allocation5 + $0x2d0] sm:$0xff]  ;;  %v3863_v42 = vpack.c.bf16 %v181_v35, %v165_v34  ;;  %v344_v25 = vld [vmem:[#allocation5 + $0x7d8] sm:$0xff] }
 0x11b   :  { %v3963_v44 = vpack.c.bf16 %v183_v38, %v167_v36  ;;  %v3981_v34 = vpack.c.bf16 %v344_v25, %v328_v24  ;;  %v343_v35 = vld [vmem:[#allocation5 + $0x7d0] sm:$0xff]  ;;  %v358_v36 = vld [vmem:[#allocation5 + $0x848] sm:$0xff]  ;;  %v360_v38 = vld [vmem:[#allocation5 + $0x858] sm:$0xff] }
 0x11c   :  { %3744 = vmatpush1.bf16.msra.mxu0 %v3743_v45  ;;  %v3865_v45 = vpack.c.bf16 %v214_v40, %v198_v39  ;;  %v376_v39 = vld [vmem:[#allocation5 + $0x8d8] sm:$0xff] }
 0x11d   :  { %3844 = vmatpush1.bf16.msra.mxu1 %v3843_v46  ;;  %3746 = vmatprep.subr.bf16.mxu0 %v3745_v47  ;;  %v197_v46 = vld [vmem:[#allocation5 + $0x340] sm:$0xff]  ;;  %v199_v47 = vld [vmem:[#allocation5 + $0x350] sm:$0xff]  ;;  %v488_v20 = vld [vmem:[#allocation5 + $0xc58] sm:$0xff] }
 0x11e   :  { %3846 = vmatprep.subr.bf16.mxu1 %v3845_v51  ;;  %v246_v51 = vld [vmem:[#allocation5 + $0x4c8] sm:$0xff]  ;;  %v3967_v55 = vpack.c.bf16 %v215_v49, %v199_v47  ;;  %v392_v49 = vld [vmem:[#allocation5 + $0x958] sm:$0xff] }
 0x11f   :  { %v3869_v56 = vpack.c.bf16 %v246_v51, %v230_v50  ;;  %v390_v47 = vld [vmem:[#allocation5 + $0x948] sm:$0xff]  ;;  %v408_v50 = vld [vmem:[#allocation5 + $0x9d8] sm:$0xff] }
 0x120   :  { %3748 = vmatpush1.bf16.msra.mxu0 %v3747_v57  ;;  %v229_v57 = vld [vmem:[#allocation5 + $0x440] sm:$0xff] }
 0x121   :  { %3848 = vmatpush1.bf16.msra.mxu1 %v3847_v15  ;;  %3750 = vmatprep.subr.bf16.mxu0 %v3749_v58  ;;  %v245_v15 = vld [vmem:[#allocation5 + $0x4c0] sm:$0xff]  ;;  %v231_v58 = vld [vmem:[#allocation5 + $0x450] sm:$0xff] }
 0x122   :  { %3850 = vmatprep.subr.bf16.mxu1 %v3849_v16  ;;  %v278_v16 = vld [vmem:[#allocation5 + $0x5c8] sm:$0xff]  ;;  %v3871_v0 = vpack.c.bf16 %v245_v15, %v229_v57  ;;  %v3971_v2 = vpack.c.bf16 %v247_v60, %v231_v58  ;;  %v3989_v57 = vpack.c.bf16 %v408_v50, %v392_v49  ;;  %v407_v15 = vld [vmem:[#allocation5 + $0x9d0] sm:$0xff]  ;;  %v424_v60 = vld [vmem:[#allocation5 + $0xa58] sm:$0xff] }
 0x123   :  { %v3873_v29 = vpack.c.bf16 %v278_v16, %v262_v61  ;;  %v422_v58 = vld [vmem:[#allocation5 + $0xa48] sm:$0xff]  ;;  %v440_v61 = vld [vmem:[#allocation5 + $0xad8] sm:$0xff] }
 0x124   :  { %3752 = vmatpush1.bf16.msra.mxu0 %v3751_v3  ;;  %v261_v3 = vld [vmem:[#allocation5 + $0x540] sm:$0xff] }
 0x125   :  { %3852 = vmatpush1.bf16.msra.mxu1 %v3851_v31  ;;  %3854 = vmatprep.subr.bf16.mxu0 %v3853_v4  ;;  %v277_v31 = vld [vmem:[#allocation5 + $0x5c0] sm:$0xff]  ;;  %v263_v4 = vld [vmem:[#allocation5 + $0x550] sm:$0xff] }
 0x126   :  { %3954 = vmatprep.subr.bf16.mxu1 %v3953_v8  ;;  %v294_v8 = vld [vmem:[#allocation5 + $0x648] sm:$0xff]  ;;  %v3875_v12 = vpack.c.bf16 %v277_v31, %v261_v3  ;;  %v3993_v3 = vpack.c.bf16 %v440_v61, %v424_v60  ;;  %v439_v31 = vld [vmem:[#allocation5 + $0xad0] sm:$0xff] }
 0x127   :  { %1434 = vmatmul.mubr.f32.vlgmr.msra.gmra.mrb[4].mxu0 %v4859_v1  ;;  %v3877_v14 = vpack.c.bf16 %v310_v9, %v294_v8  ;;  %v472_v8 = vld [vmem:[#allocation5 + $0xbd8] sm:$0xff] }
 0x128   :  { %1588 = vmatmul.mubr.f32.vlgmr.msra.gmra.mrb[4].mxu1 %v4859_v1  ;;  %3856 = vmatpush1.bf16.msra.mxu0 %v3855_v13  ;;  %v200_v1 = vld [vmem:[#allocation5 + $0x358] sm:$0xff]  ;;  %v3975_v13 = vpack.c.bf16 %v279_v7, %v263_v4  ;;  %v454_v4 = vld [vmem:[#allocation5 + $0xb48] sm:$0xff] }
 0x129   :  { %3956 = vmatpush1.bf16.msra.mxu1 %v3955_v18  ;;  %3137 = vmatprep.mubr.msk.f32.mxu0 %vm977_vm0, %v4861_v5  ;;  %v3965_v48 = vpack.c.bf16 %v216_v41, %v200_v1  ;;  %v309_v18 = vld [vmem:[#allocation5 + $0x6c0] sm:$0xff]  ;;  %v456_v7 = vld [vmem:[#allocation5 + $0xb58] sm:$0xff] }
 0x12a   :  { %3139 = vmatprep.mubr.msk.f32.mxu1 %vm977_vm0, %v4861_v5  ;;  %3858 = vmatprep.subr.bf16.mxu0 %v3857_v22  ;;  %v213_v5 = vld [vmem:[#allocation5 + $0x3c0] sm:$0xff]  ;;  %v326_v22 = vld [vmem:[#allocation5 + $0x748] sm:$0xff] }
 0x12b   :  { %1440 = vmatmul.mubr.f32.gmra.mrb[6].mxu0 %v4865_v21  ;;  %3958 = vmatprep.subr.bf16.mxu1 %v3957_v26  ;;  %v3867_v54 = vpack.c.bf16 %v213_v5, %v197_v46  ;;  %v3879_v26 = vpack.c.bf16 %v309_v18, %v293_v17  ;;  %v3881_v28 = vpack.c.bf16 %v342_v23, %v326_v22  ;;  %v375_v5 = vld [vmem:[#allocation5 + $0x8d0] sm:$0xff]  ;;  %v504_v22 = vld [vmem:[#allocation5 + $0xcd8] sm:$0xff] }
 0x12c   :  { %1594 = vmatmul.mubr.f32.gmra.mrb[6].mxu1 %v4865_v21  ;;  %3860 = vmatpush1.bf16.msra.mxu0 %v3859_v30  ;;  %v248_v21 = vld [vmem:[#allocation5 + $0x4d8] sm:$0xff]  ;;  %v325_v30 = vld [vmem:[#allocation5 + $0x740] sm:$0xff]  ;;  %v3985_v46 = vpack.c.bf16 %v376_v39, %v360_v38  ;;  %v3997_v17 = vpack.c.bf16 %v472_v8, %v456_v7  ;;  %v471_v18 = vld [vmem:[#allocation5 + $0xbd0] sm:$0xff] }
 0x12d   :  { %3960 = vmatpush1.bf16.msra.mxu1 %v3959_v32  ;;  %3862 = vmatprep.subr.bf16.mxu0 %v3861_v33  ;;  %v3969_v59 = vpack.c.bf16 %v248_v21, %v232_v53  ;;  %v341_v32 = vld [vmem:[#allocation5 + $0x7c0] sm:$0xff]  ;;  %v327_v33 = vld [vmem:[#allocation5 + $0x750] sm:$0xff] }
 0x12e   :  { %3962 = vmatprep.subr.bf16.mxu1 %v3961_v37  ;;  %1664 = vmatprep.mubr.f32.mxu0 %v4893_v52  ;;  %v374_v37 = vld [vmem:[#allocation5 + $0x8c8] sm:$0xff]  ;;  %v3883_v40 = vpack.c.bf16 %v341_v32, %v325_v30  ;;  %v3983_v1 = vpack.c.bf16 %v343_v35, %v327_v33  ;;  %v4001_v30 = vpack.c.bf16 %v504_v22, %v488_v20  ;;  %v503_v32 = vld [vmem:[#allocation5 + $0xcd0] sm:$0xff]  ;;  %v520_v35 = vld [vmem:[#allocation5 + $0xd58] sm:$0xff] }
 0x12f   :  { %1818 = vmatprep.mubr.f32.mxu1 %v4893_v52  ;;  %v3885_v41 = vpack.c.bf16 %v374_v37, %v358_v36  ;;  %v518_v33 = vld [vmem:[#allocation5 + $0xd48] sm:$0xff]  ;;  %v536_v36 = vld [vmem:[#allocation5 + $0xdd8] sm:$0xff] }
 0x130   :  { %3864 = vmatpush1.bf16.msra.mxu0 %v3863_v42  ;;  %v357_v42 = vld [vmem:[#allocation5 + $0x840] sm:$0xff] }
 0x131   :  { %3964 = vmatpush1.bf16.msra.mxu1 %v3963_v44  ;;  %3866 = vmatprep.subr.bf16.mxu0 %v3865_v45  ;;  %v373_v44 = vld [vmem:[#allocation5 + $0x8c0] sm:$0xff]  ;;  %v359_v45 = vld [vmem:[#allocation5 + $0x850] sm:$0xff] }
 0x132   :  { %3966 = vmatprep.subr.bf16.mxu1 %v3965_v48  ;;  %v406_v48 = vld [vmem:[#allocation5 + $0x9c8] sm:$0xff]  ;;  %v3887_v51 = vpack.c.bf16 %v373_v44, %v357_v42  ;;  %v3987_v53 = vpack.c.bf16 %v375_v5, %v359_v45  ;;  %v4005_v42 = vpack.c.bf16 %v536_v36, %v520_v35  ;;  %v535_v44 = vld [vmem:[#allocation5 + $0xdd0] sm:$0xff]  ;;  %v552_v5 = vld [vmem:[#allocation5 + $0xe58] sm:$0xff] }
 0x133   :  { %v3889_v21 = vpack.c.bf16 %v406_v48, %v390_v47  ;;  %v550_v45 = vld [vmem:[#allocation5 + $0xe48] sm:$0xff]  ;;  %v568_v47 = vld [vmem:[#allocation5 + $0xed8] sm:$0xff] }
 0x134   :  { %3868 = vmatpush1.bf16.msra.mxu0 %v3867_v54  ;;  %v389_v54 = vld [vmem:[#allocation5 + $0x940] sm:$0xff] }
 0x135   :  { %3968 = vmatpush1.bf16.msra.mxu1 %v3967_v55  ;;  %3870 = vmatprep.subr.bf16.mxu0 %v3869_v56  ;;  %v405_v55 = vld [vmem:[#allocation5 + $0x9c0] sm:$0xff]  ;;  %v391_v56 = vld [vmem:[#allocation5 + $0x950] sm:$0xff] }
 0x136   :  { %3970 = vmatprep.subr.bf16.mxu1 %v3969_v59  ;;  %v438_v59 = vld [vmem:[#allocation5 + $0xac8] sm:$0xff]  ;;  %v3891_v16 = vpack.c.bf16 %v405_v55, %v389_v54  ;;  %v3991_v62 = vpack.c.bf16 %v407_v15, %v391_v56  ;;  %v4009_v54 = vpack.c.bf16 %v568_v47, %v552_v5  ;;  %v567_v55 = vld [vmem:[#allocation5 + $0xed0] sm:$0xff]  ;;  %v584_v15 = vld [vmem:[#allocation5 + $0xf58] sm:$0xff] }
 0x137   :  { %v3893_v63 = vpack.c.bf16 %v438_v59, %v422_v58  ;;  %v582_v56 = vld [vmem:[#allocation5 + $0xf48] sm:$0xff]  ;;  %v600_v58 = vld [vmem:[#allocation5 + $0xfd8] sm:$0xff]  ;;  %v4905_v47 = vld [vmem:[#allocation2 + $0x20] sm:$0xff] }
 0x138   :  { %3872 = vmatpush1.bf16.msra.mxu0 %v3871_v0  ;;  %v421_v0 = vld [vmem:[#allocation5 + $0xa40] sm:$0xff]  ;;  %v728_v5 = vld [vmem:[#allocation5 + $0x13d8] sm:$0xff] }
 0x139   :  { %3972 = vmatpush1.bf16.msra.mxu1 %v3971_v2  ;;  %3874 = vmatprep.subr.bf16.mxu0 %v3873_v29  ;;  %v437_v2 = vld [vmem:[#allocation5 + $0xac0] sm:$0xff]  ;;  %v423_v29 = vld [vmem:[#allocation5 + $0xa50] sm:$0xff] }
 0x13a   :  { %3974 = vmatprep.subr.bf16.mxu1 %v3973_v6  ;;  %v470_v6 = vld [vmem:[#allocation5 + $0xbc8] sm:$0xff]  ;;  %v3895_v9 = vpack.c.bf16 %v437_v2, %v421_v0  ;;  %v3995_v10 = vpack.c.bf16 %v439_v31, %v423_v29  ;;  %v4013_v0 = vpack.c.bf16 %v600_v58, %v584_v15  ;;  %v599_v2 = vld [vmem:[#allocation5 + $0xfd0] sm:$0xff]  ;;  %v616_v31 = vld [vmem:[#allocation5 + $0x1058] sm:$0xff] }
 0x13b   :  { %v3897_v11 = vpack.c.bf16 %v470_v6, %v454_v4  ;;  %v614_v29 = vld [vmem:[#allocation5 + $0x1048] sm:$0xff]  ;;  %v632_v4 = vld [vmem:[#allocation5 + $0x10d8] sm:$0xff] }
 0x13c   :  { %3876 = vmatpush1.bf16.msra.mxu0 %v3875_v12  ;;  %v453_v12 = vld [vmem:[#allocation5 + $0xb40] sm:$0xff]  ;;  %v4909_v15 = vld [vmem:[#allocation2 + $0x18] sm:$0xff] }
 0x13d   :  { %3976 = vmatpush1.bf16.msra.mxu1 %v3975_v13  ;;  %3878 = vmatprep.subr.bf16.mxu0 %v3877_v14  ;;  %v469_v13 = vld [vmem:[#allocation5 + $0xbc0] sm:$0xff]  ;;  %v455_v14 = vld [vmem:[#allocation5 + $0xb50] sm:$0xff]  ;;  %v744_v58 = vld [vmem:[#allocation5 + $0x1458] sm:$0xff] }
 0x13e   :  { %3978 = vmatprep.subr.bf16.mxu1 %v3977_v19  ;;  %v502_v19 = vld [vmem:[#allocation5 + $0xcc8] sm:$0xff]  ;;  %v3899_v23 = vpack.c.bf16 %v469_v13, %v453_v12  ;;  %v3999_v24 = vpack.c.bf16 %v471_v18, %v455_v14  ;;  %v4017_v12 = vpack.c.bf16 %v632_v4, %v616_v31  ;;  %v631_v13 = vld [vmem:[#allocation5 + $0x10d0] sm:$0xff]  ;;  %v648_v18 = vld [vmem:[#allocation5 + $0x1158] sm:$0xff] }
 0x13f   :  { %v3901_v25 = vpack.c.bf16 %v502_v19, %v486_v43  ;;  %v646_v14 = vld [vmem:[#allocation5 + $0x1148] sm:$0xff]  ;;  %v664_v43 = vld [vmem:[#allocation5 + $0x11d8] sm:$0xff] }
 0x140   :  { %3880 = vmatpush1.bf16.msra.mxu0 %v3879_v26  ;;  %v485_v26 = vld [vmem:[#allocation5 + $0xc40] sm:$0xff]  ;;  %v790_v31 = vld [vmem:[#allocation5 + $0x15c8] sm:$0xff]  ;;  %v776_v4 = vld [vmem:[#allocation5 + $0x1558] sm:$0xff] }
 0x141   :  { %3980 = vmatpush1.bf16.msra.mxu1 %v3979_v27  ;;  %3882 = vmatprep.subr.bf16.mxu0 %v3881_v28  ;;  %v501_v27 = vld [vmem:[#allocation5 + $0xcc0] sm:$0xff]  ;;  %v487_v28 = vld [vmem:[#allocation5 + $0xc50] sm:$0xff] }
 0x142   :  { %3982 = vmatprep.subr.bf16.mxu1 %v3981_v34  ;;  %v534_v34 = vld [vmem:[#allocation5 + $0xdc8] sm:$0xff]  ;;  %v3903_v37 = vpack.c.bf16 %v501_v27, %v485_v26  ;;  %v4003_v38 = vpack.c.bf16 %v503_v32, %v487_v28  ;;  %v4021_v26 = vpack.c.bf16 %v664_v43, %v648_v18  ;;  %v663_v27 = vld [vmem:[#allocation5 + $0x11d0] sm:$0xff]  ;;  %v4897_v32 = vld [vmem:[#allocation2] sm:$0xff] }
 0x143   :  { %v3905_v39 = vpack.c.bf16 %v534_v34, %v518_v33  ;;  %v678_v28 = vld [vmem:[#allocation5 + $0x1248] sm:$0xff]  ;;  %v680_v33 = vld [vmem:[#allocation5 + $0x1258] sm:$0xff] }
 0x144   :  { %3884 = vmatpush1.bf16.msra.mxu0 %v3883_v40  ;;  %v517_v40 = vld [vmem:[#allocation5 + $0xd40] sm:$0xff]  ;;  %v696_v34 = vld [vmem:[#allocation5 + $0x12d8] sm:$0xff]  ;;  %v822_v18 = vld [vmem:[#allocation5 + $0x16c8] sm:$0xff] }
 0x145   :  { %3984 = vmatpush1.bf16.msra.mxu1 %v3983_v1  ;;  %3886 = vmatprep.subr.bf16.mxu0 %v3885_v41  ;;  %v533_v1 = vld [vmem:[#allocation5 + $0xdc0] sm:$0xff]  ;;  %v519_v41 = vld [vmem:[#allocation5 + $0xd50] sm:$0xff]  ;;  %v808_v43 = vld [vmem:[#allocation5 + $0x1658] sm:$0xff] }
 0x146   :  { %3986 = vmatprep.subr.bf16.mxu1 %v3985_v46  ;;  %v566_v46 = vld [vmem:[#allocation5 + $0xec8] sm:$0xff]  ;;  %v3907_v48 = vpack.c.bf16 %v533_v1, %v517_v40  ;;  %v4007_v49 = vpack.c.bf16 %v535_v44, %v519_v41  ;;  %v679_v40 = vld [vmem:[#allocation5 + $0x1250] sm:$0xff]  ;;  %v4025_v1 = vpack.c.bf16 %v696_v34, %v680_v33  ;;  %v840_v34 = vld [vmem:[#allocation5 + $0x1758] sm:$0xff] }
 0x147   :  { %v3909_v50 = vpack.c.bf16 %v566_v46, %v550_v45  ;;  %v695_v41 = vld [vmem:[#allocation5 + $0x12d0] sm:$0xff]  ;;  %v726_v44 = vld [vmem:[#allocation5 + $0x13c8] sm:$0xff]  ;;  %v712_v46 = vld [vmem:[#allocation5 + $0x1358] sm:$0xff] }
 0x148   :  { %3888 = vmatpush1.bf16.msra.mxu0 %v3887_v51  ;;  %v549_v51 = vld [vmem:[#allocation5 + $0xe40] sm:$0xff]  ;;  %v4901_v45 = vld [vmem:[#allocation2 + $0x28] sm:$0xff] }
 0x149   :  { %3988 = vmatpush1.bf16.msra.mxu1 %v3987_v53  ;;  %3890 = vmatprep.subr.bf16.mxu0 %v3889_v21  ;;  %v565_v53 = vld [vmem:[#allocation5 + $0xec0] sm:$0xff]  ;;  %v551_v21 = vld [vmem:[#allocation5 + $0xe50] sm:$0xff]  ;;  %v854_v33 = vld [vmem:[#allocation5 + $0x17c8] sm:$0xff] }
 0x14a   :  { %3990 = vmatprep.subr.bf16.mxu1 %v3989_v57  ;;  %v598_v57 = vld [vmem:[#allocation5 + $0xfc8] sm:$0xff]  ;;  %v3911_v59 = vpack.c.bf16 %v565_v53, %v549_v51  ;;  %v4011_v60 = vpack.c.bf16 %v567_v55, %v551_v21  ;;  %v709_v51 = vld [vmem:[#allocation5 + $0x1340] sm:$0xff]  ;;  %v711_v21 = vld [vmem:[#allocation5 + $0x1350] sm:$0xff] }
 0x14b   :  { %v3913_v61 = vpack.c.bf16 %v598_v57, %v582_v56  ;;  %v725_v53 = vld [vmem:[#allocation5 + $0x13c0] sm:$0xff]  ;;  %v727_v55 = vld [vmem:[#allocation5 + $0x13d0] sm:$0xff]  ;;  %v742_v56 = vld [vmem:[#allocation5 + $0x1448] sm:$0xff] }
 0x14c   :  { %3892 = vmatpush1.bf16.msra.mxu0 %v3891_v16  ;;  %v581_v16 = vld [vmem:[#allocation5 + $0xf40] sm:$0xff]  ;;  %v758_v57 = vld [vmem:[#allocation5 + $0x14c8] sm:$0xff] }
 0x14d   :  { %3992 = vmatpush1.bf16.msra.mxu1 %v3991_v62  ;;  %3894 = vmatprep.subr.bf16.mxu0 %v3893_v63  ;;  %v597_v62 = vld [vmem:[#allocation5 + $0xfc0] sm:$0xff]  ;;  %v583_v63 = vld [vmem:[#allocation5 + $0xf50] sm:$0xff] }
 0x14e   :  { %3994 = vmatprep.subr.bf16.mxu1 %v3993_v3  ;;  %v630_v3 = vld [vmem:[#allocation5 + $0x10c8] sm:$0xff]  ;;  %v3915_v6 = vpack.c.bf16 %v597_v62, %v581_v16  ;;  %v4015_v7 = vpack.c.bf16 %v599_v2, %v583_v63  ;;  %v3933_v16 = vpack.c.bf16 %v758_v57, %v742_v56  ;;  %v741_v62 = vld [vmem:[#allocation5 + $0x1440] sm:$0xff]  ;;  %v887_v56 = vld [vmem:[#allocation5 + $0x18d0] sm:$0xff] }
 0x14f   :  { %v3917_v8 = vpack.c.bf16 %v630_v3, %v614_v29  ;;  %v757_v63 = vld [vmem:[#allocation5 + $0x14c0] sm:$0xff]  ;;  %v759_v29 = vld [vmem:[#allocation5 + $0x14d0] sm:$0xff]  ;;  %v774_v3 = vld [vmem:[#allocation5 + $0x1548] sm:$0xff] }
 0x150   :  { %3896 = vmatpush1.bf16.msra.mxu0 %v3895_v9  ;;  %v613_v9 = vld [vmem:[#allocation5 + $0x1040] sm:$0xff]  ;;  %v106_v57 = vld [vmem:[#allocation5 + $0x68] sm:$0xff] }
 0x151   :  { %3996 = vmatpush1.bf16.msra.mxu1 %v3995_v10  ;;  %3898 = vmatprep.subr.bf16.mxu0 %v3897_v11  ;;  %v629_v10 = vld [vmem:[#allocation5 + $0x10c0] sm:$0xff]  ;;  %v615_v11 = vld [vmem:[#allocation5 + $0x1050] sm:$0xff] }
 0x152   :  { %3998 = vmatprep.subr.bf16.mxu1 %v3997_v17  ;;  %v662_v17 = vld [vmem:[#allocation5 + $0x11c8] sm:$0xff]  ;;  %v3919_v19 = vpack.c.bf16 %v629_v10, %v613_v9  ;;  %v4019_v20 = vpack.c.bf16 %v631_v13, %v615_v11  ;;  %v3937_v9 = vpack.c.bf16 %v790_v31, %v774_v3  ;;  %v773_v10 = vld [vmem:[#allocation5 + $0x1540] sm:$0xff]  ;;  %v123_v3 = vld [vmem:[#allocation5 + $0xf0] sm:$0xff] }
 0x153   :  { %v3921_v22 = vpack.c.bf16 %v662_v17, %v646_v14  ;;  %v789_v11 = vld [vmem:[#allocation5 + $0x15c0] sm:$0xff]  ;;  %v791_v14 = vld [vmem:[#allocation5 + $0x15d0] sm:$0xff]  ;;  %v806_v17 = vld [vmem:[#allocation5 + $0x1648] sm:$0xff] }
 0x154   :  { %3900 = vmatpush1.bf16.msra.mxu0 %v3899_v23  ;;  %v645_v23 = vld [vmem:[#allocation5 + $0x1140] sm:$0xff]  ;;  %v138_v31 = vld [vmem:[#allocation5 + $0x168] sm:$0xff] }
 0x155   :  { %4000 = vmatpush1.bf16.msra.mxu1 %v3999_v24  ;;  %3902 = vmatprep.subr.bf16.mxu0 %v3901_v25  ;;  %v661_v24 = vld [vmem:[#allocation5 + $0x11c0] sm:$0xff]  ;;  %v647_v25 = vld [vmem:[#allocation5 + $0x1150] sm:$0xff] }
 0x156   :  { %4002 = vmatprep.subr.bf16.mxu1 %v4001_v30  ;;  %v694_v30 = vld [vmem:[#allocation5 + $0x12c8] sm:$0xff]  ;;  %v3923_v35 = vpack.c.bf16 %v661_v24, %v645_v23  ;;  %v4023_v36 = vpack.c.bf16 %v663_v27, %v647_v25  ;;  %v3941_v23 = vpack.c.bf16 %v822_v18, %v806_v17  ;;  %v805_v24 = vld [vmem:[#allocation5 + $0x1640] sm:$0xff] }
 0x157   :  { %v821_v25 = vld [vmem:[#allocation5 + $0x16c0] sm:$0xff]  ;;  %v170_v17 = vld [vmem:[#allocation5 + $0x268] sm:$0xff] }
 0x158   :  { %3904 = vmatpush1.bf16.msra.mxu0 %v3903_v37  ;;  %v3925_v37 = vpack.c.bf16 %v694_v30, %v678_v28  ;;  %v823_v28 = vld [vmem:[#allocation5 + $0x16d0] sm:$0xff]  ;;  %v838_v30 = vld [vmem:[#allocation5 + $0x1748] sm:$0xff] }
 0x159   :  { %4004 = vmatpush1.bf16.msra.mxu1 %v4003_v38  ;;  %3906 = vmatprep.subr.bf16.mxu0 %v3905_v39  ;;  %v677_v38 = vld [vmem:[#allocation5 + $0x1240] sm:$0xff]  ;;  %v186_v18 = vld [vmem:[#allocation5 + $0x2e8] sm:$0xff] }
 0x15a   :  { %4006 = vmatprep.subr.bf16.mxu1 %v4005_v42  ;;  %v693_v39 = vld [vmem:[#allocation5 + $0x12c0] sm:$0xff]  ;;  %v710_v42 = vld [vmem:[#allocation5 + $0x1348] sm:$0xff] }
 0x15c   :  { %3908 = vmatpush1.bf16.msra.mxu0 %v3907_v48  ;;  %v3927_v48 = vpack.c.bf16 %v693_v39, %v677_v38  ;;  %v3945_v38 = vpack.c.bf16 %v854_v33, %v838_v30  ;;  %v837_v39 = vld [vmem:[#allocation5 + $0x1740] sm:$0xff]  ;;  %v171_v30 = vld [vmem:[#allocation5 + $0x270] sm:$0xff] }
 0x15d   :  { %4008 = vmatpush1.bf16.msra.mxu1 %v4007_v49  ;;  %3910 = vmatprep.subr.bf16.mxu0 %v3909_v50  ;;  %v4027_v49 = vpack.c.bf16 %v695_v41, %v679_v40  ;;  %v3929_v50 = vpack.c.bf16 %v726_v44, %v710_v42  ;;  %v853_v40 = vld [vmem:[#allocation5 + $0x17c0] sm:$0xff]  ;;  %v855_v42 = vld [vmem:[#allocation5 + $0x17d0] sm:$0xff]  ;;  %v870_v44 = vld [vmem:[#allocation5 + $0x1848] sm:$0xff] }
 0x15e   :  { %4010 = vmatprep.subr.bf16.mxu1 %v4009_v54  ;;  %v4029_v54 = vpack.c.bf16 %v728_v5, %v712_v46  ;;  %v886_v46 = vld [vmem:[#allocation5 + $0x18c8] sm:$0xff]  ;;  %v872_v5 = vld [vmem:[#allocation5 + $0x1858] sm:$0xff] }
 0x160   :  { %3912 = vmatpush1.bf16.msra.mxu0 %v3911_v59  ;;  %v760_v59 = vld [vmem:[#allocation5 + $0x14d8] sm:$0xff] }
 0x161   :  { %4012 = vmatpush1.bf16.msra.mxu1 %v4011_v60  ;;  %3914 = vmatprep.subr.bf16.mxu0 %v3913_v61  ;;  %v3931_v60 = vpack.c.bf16 %v725_v53, %v709_v51  ;;  %v4031_v61 = vpack.c.bf16 %v727_v55, %v711_v21  ;;  %v4033_v2 = vpack.c.bf16 %v760_v59, %v744_v58  ;;  %v869_v53 = vld [vmem:[#allocation5 + $0x1840] sm:$0xff]  ;;  %v122_v58 = vld [vmem:[#allocation5 + $0xe8] sm:$0xff]  ;;  %v108_v59 = vld [vmem:[#allocation5 + $0x78] sm:$0xff] }
 0x162   :  { %4014 = vmatprep.subr.bf16.mxu1 %v4013_v0  ;;  %v743_v0 = vld [vmem:[#allocation5 + $0x1450] sm:$0xff]  ;;  %v3949_v51 = vpack.c.bf16 %v886_v46, %v870_v44  ;;  %v885_v21 = vld [vmem:[#allocation5 + $0x18c0] sm:$0xff] }
 0x163   :  { %v217_v44 = vld [vmem:[#allocation5 + $0x3e0] sm:$0xff]  ;;  %v203_v46 = vld [vmem:[#allocation5 + $0x370] sm:$0xff] }
 0x164   :  { %3916 = vmatpush1.bf16.msra.mxu0 %v3915_v6  ;;  %v792_v6 = vld [vmem:[#allocation5 + $0x15d8] sm:$0xff] }
 0x165   :  { %4016 = vmatpush1.bf16.msra.mxu1 %v4015_v7  ;;  %3918 = vmatprep.subr.bf16.mxu0 %v3917_v8  ;;  %v3935_v7 = vpack.c.bf16 %v757_v63, %v741_v62  ;;  %v4035_v8 = vpack.c.bf16 %v759_v29, %v743_v0  ;;  %v4037_v13 = vpack.c.bf16 %v792_v6, %v776_v4  ;;  %v105_v63 = vld [vmem:[#allocation5 + $0x60] sm:$0xff]  ;;  %v107_v29 = vld [vmem:[#allocation5 + $0x70] sm:$0xff]  ;;  %v154_v4 = vld [vmem:[#allocation5 + $0x1e8] sm:$0xff] }
 0x166   :  { %4018 = vmatprep.subr.bf16.mxu1 %v4017_v12  ;;  %v775_v12 = vld [vmem:[#allocation5 + $0x1550] sm:$0xff]  ;;  %v4053_v62 = vpack.c.bf16 %v122_v58, %v106_v57  ;;  %v121_v0 = vld [vmem:[#allocation5 + $0xe0] sm:$0xff] }
 0x167   :  { %1665 = vmatmul.mubr.f32.vlgmr.msra.gmra.mrb[8].mxu0 %v4897_v32  ;;  %v4055_v6 = vpack.c.bf16 %v121_v0, %v105_v63  ;;  %v249_v57 = vld [vmem:[#allocation5 + $0x4e0] sm:$0xff]  ;;  %v235_v58 = vld [vmem:[#allocation5 + $0x470] sm:$0xff] }
 0x168   :  { %3920 = vmatpush1.bf16.msra.mxu0 %v3919_v19  ;;  %1819 = vmatmul.mubr.f32.vlgmr.msra.gmra.mrb[8].mxu1 %v4897_v32  ;;  %v824_v19 = vld [vmem:[#allocation5 + $0x16d8] sm:$0xff] }
 0x169   :  { %4020 = vmatpush1.bf16.msra.mxu1 %v4019_v20  ;;  %3922 = vmatprep.subr.bf16.mxu0 %v3921_v22  ;;  %v3939_v20 = vpack.c.bf16 %v789_v11, %v773_v10  ;;  %v4039_v22 = vpack.c.bf16 %v791_v14, %v775_v12  ;;  %v4041_v27 = vpack.c.bf16 %v824_v19, %v808_v43  ;;  %v137_v10 = vld [vmem:[#allocation5 + $0x160] sm:$0xff]  ;;  %v139_v12 = vld [vmem:[#allocation5 + $0x170] sm:$0xff] }
 0x16a   :  { %4022 = vmatprep.subr.bf16.mxu1 %v4021_v26  ;;  %1670 = vmatprep.mubr.f32.mxu0 %v4901_v45  ;;  %v807_v26 = vld [vmem:[#allocation5 + $0x1650] sm:$0xff]  ;;  %v153_v11 = vld [vmem:[#allocation5 + $0x1e0] sm:$0xff] }
 0x16b   :  { %1824 = vmatprep.mubr.f32.mxu1 %v4901_v45  ;;  %1671 = vmatmul.mubr.f32.gmra.mrb[10].mxu0 %v4905_v47  ;;  %v155_v14 = vld [vmem:[#allocation5 + $0x1f0] sm:$0xff] }
 0x16c   :  { %3924 = vmatpush1.bf16.msra.mxu0 %v3923_v35  ;;  %1825 = vmatmul.mubr.f32.gmra.mrb[10].mxu1 %v4905_v47  ;;  %v856_v35 = vld [vmem:[#allocation5 + $0x17d8] sm:$0xff]  ;;  %v4915_v43 = vld [vmem:[#allocation2 + $0x10] sm:$0xff] }
 0x16d   :  { %4024 = vmatpush1.bf16.msra.mxu1 %v4023_v36  ;;  %3926 = vmatprep.subr.bf16.mxu0 %v3925_v37  ;;  %v3943_v36 = vpack.c.bf16 %v821_v25, %v805_v24  ;;  %v4043_v37 = vpack.c.bf16 %v823_v28, %v807_v26  ;;  %v4045_v41 = vpack.c.bf16 %v856_v35, %v840_v34  ;;  %v4919_v24 = vld [vmem:[#allocation2 + $0x38] sm:$0xff]  ;;  %v185_v28 = vld [vmem:[#allocation5 + $0x2e0] sm:$0xff]  ;;  %v187_v34 = vld [vmem:[#allocation5 + $0x2f0] sm:$0xff] }
 0x16e   :  { %4026 = vmatprep.subr.bf16.mxu1 %v4025_v1  ;;  %3140 = vmatprep.mubr.msk.f32.mxu0 %vm977_vm0, %v4909_v15  ;;  %v839_v1 = vld [vmem:[#allocation5 + $0x1750] sm:$0xff]  ;;  %v4159_v25 = vpack.c.bf16 %v155_v14, %v139_v12  ;;  %v4061_v26 = vpack.c.bf16 %v186_v18, %v170_v17  ;;  %v202_v35 = vld [vmem:[#allocation5 + $0x368] sm:$0xff]  ;;  %v300_v18 = vld [vmem:[#allocation5 + $0x678] sm:$0xff] }
 0x16f   :  { %3142 = vmatprep.mubr.msk.f32.mxu1 %vm977_vm0, %v4909_v15  ;;  %v298_v12 = vld [vmem:[#allocation5 + $0x668] sm:$0xff] }
 0x170   :  { %3928 = vmatpush1.bf16.msra.mxu0 %v3927_v48  ;;  %v888_v48 = vld [vmem:[#allocation5 + $0x18d8] sm:$0xff] }
 0x171   :  { %4028 = vmatpush1.bf16.msra.mxu1 %v4027_v49  ;;  %3930 = vmatprep.subr.bf16.mxu0 %v3929_v50  ;;  %v3947_v49 = vpack.c.bf16 %v853_v40, %v837_v39  ;;  %v4047_v50 = vpack.c.bf16 %v855_v42, %v839_v1  ;;  %v4049_v55 = vpack.c.bf16 %v888_v48, %v872_v5  ;;  %v220_v39 = vld [vmem:[#allocation5 + $0x3f8] sm:$0xff]  ;;  %v201_v42 = vld [vmem:[#allocation5 + $0x360] sm:$0xff]  ;;  %v219_v48 = vld [vmem:[#allocation5 + $0x3f0] sm:$0xff] }
 0x172   :  { %4030 = vmatprep.subr.bf16.mxu1 %v4029_v54  ;;  %v871_v54 = vld [vmem:[#allocation5 + $0x1850] sm:$0xff]  ;;  %v4163_v1 = vpack.c.bf16 %v187_v34, %v171_v30  ;;  %v330_v34 = vld [vmem:[#allocation5 + $0x768] sm:$0xff] }
 0x174   :  { %3932 = vmatpush1.bf16.msra.mxu0 %v3931_v60  ;;  %v124_v60 = vld [vmem:[#allocation5 + $0xf8] sm:$0xff] }
 0x175   :  { %4032 = vmatpush1.bf16.msra.mxu1 %v4031_v61  ;;  %3934 = vmatprep.subr.bf16.mxu0 %v3933_v16  ;;  %v3951_v61 = vpack.c.bf16 %v885_v21, %v869_v53  ;;  %v4051_v16 = vpack.c.bf16 %v887_v56, %v871_v54  ;;  %v252_v53 = vld [vmem:[#allocation5 + $0x4f8] sm:$0xff]  ;;  %v4067_v21 = vpack.c.bf16 %v217_v44, %v201_v42  ;;  %v233_v56 = vld [vmem:[#allocation5 + $0x460] sm:$0xff]  ;;  %v331_v44 = vld [vmem:[#allocation5 + $0x770] sm:$0xff] }
 0x176   :  { %4034 = vmatprep.subr.bf16.mxu1 %v4033_v2  ;;  %v4153_v2 = vpack.c.bf16 %v124_v60, %v108_v59  ;;  %v4167_v54 = vpack.c.bf16 %v219_v48, %v203_v46  ;;  %v345_v42 = vld [vmem:[#allocation5 + $0x7e0] sm:$0xff]  ;;  %v362_v48 = vld [vmem:[#allocation5 + $0x868] sm:$0xff] }
 0x178   :  { %3936 = vmatpush1.bf16.msra.mxu0 %v3935_v7  ;;  %v140_v7 = vld [vmem:[#allocation5 + $0x178] sm:$0xff] }
 0x179   :  { %4036 = vmatpush1.bf16.msra.mxu1 %v4035_v8  ;;  %3938 = vmatprep.subr.bf16.mxu0 %v3937_v9  ;;  %v156_v8 = vld [vmem:[#allocation5 + $0x1f8] sm:$0xff]  ;;  %v4155_v9 = vpack.c.bf16 %v123_v3, %v107_v29  ;;  %v4071_v3 = vpack.c.bf16 %v249_v57, %v233_v56  ;;  %v377_v56 = vld [vmem:[#allocation5 + $0x8e0] sm:$0xff]  ;;  %v363_v57 = vld [vmem:[#allocation5 + $0x870] sm:$0xff] }
 0x17a   :  { %4038 = vmatprep.subr.bf16.mxu1 %v4037_v13  ;;  %v4057_v13 = vpack.c.bf16 %v154_v4, %v138_v31  ;;  %v4157_v19 = vpack.c.bf16 %v156_v8, %v140_v7  ;;  %v281_v7 = vld [vmem:[#allocation5 + $0x5e0] sm:$0xff]  ;;  %v267_v8 = vld [vmem:[#allocation5 + $0x570] sm:$0xff] }
 0x17c   :  { %3940 = vmatpush1.bf16.msra.mxu0 %v3939_v20  ;;  %v172_v20 = vld [vmem:[#allocation5 + $0x278] sm:$0xff] }
 0x17d   :  { %4040 = vmatpush1.bf16.msra.mxu1 %v4039_v22  ;;  %3942 = vmatprep.subr.bf16.mxu0 %v3941_v23  ;;  %v188_v22 = vld [vmem:[#allocation5 + $0x2f8] sm:$0xff]  ;;  %v4059_v23 = vpack.c.bf16 %v153_v11, %v137_v10  ;;  %v283_v11 = vld [vmem:[#allocation5 + $0x5f0] sm:$0xff] }
 0x17e   :  { %4042 = vmatprep.subr.bf16.mxu1 %v4041_v27  ;;  %v169_v27 = vld [vmem:[#allocation5 + $0x260] sm:$0xff]  ;;  %v4161_v33 = vpack.c.bf16 %v188_v22, %v172_v20 }
 0x17f   :  { %v4063_v40 = vpack.c.bf16 %v185_v28, %v169_v27  ;;  %v313_v27 = vld [vmem:[#allocation5 + $0x6e0] sm:$0xff]  ;;  %v299_v28 = vld [vmem:[#allocation5 + $0x670] sm:$0xff] }
 0x180   :  { %3944 = vmatpush1.bf16.msra.mxu0 %v3943_v36  ;;  %v218_v36 = vld [vmem:[#allocation5 + $0x3e8] sm:$0xff] }
 0x181   :  { %4044 = vmatpush1.bf16.msra.mxu1 %v4043_v37  ;;  %3946 = vmatprep.subr.bf16.mxu0 %v3945_v38  ;;  %v4925_v37 = vld [vmem:[#allocation2 + $0x30] sm:$0xff]  ;;  %v204_v38 = vld [vmem:[#allocation5 + $0x378] sm:$0xff] }
 0x182   :  { %4046 = vmatprep.subr.bf16.mxu1 %v4045_v41  ;;  %v4065_v41 = vpack.c.bf16 %v218_v36, %v202_v35  ;;  %v4165_v5 = vpack.c.bf16 %v220_v39, %v204_v38  ;;  %v346_v35 = vld [vmem:[#allocation5 + $0x7e8] sm:$0xff]  ;;  %v332_v36 = vld [vmem:[#allocation5 + $0x778] sm:$0xff] }
 0x183   :  { %v348_v38 = vld [vmem:[#allocation5 + $0x7f8] sm:$0xff] }
 0x184   :  { %3948 = vmatpush1.bf16.msra.mxu0 %v3947_v49  ;;  %v234_v49 = vld [vmem:[#allocation5 + $0x468] sm:$0xff]  ;;  %v4181_v46 = vpack.c.bf16 %v348_v38, %v332_v36  ;;  %v476_v36 = vld [vmem:[#allocation5 + $0xbf8] sm:$0xff] }
 0x185   :  { %4048 = vmatpush1.bf16.msra.mxu1 %v4047_v50  ;;  %3950 = vmatprep.subr.bf16.mxu0 %v3949_v51  ;;  %v250_v50 = vld [vmem:[#allocation5 + $0x4e8] sm:$0xff]  ;;  %v236_v51 = vld [vmem:[#allocation5 + $0x478] sm:$0xff] }
 0x186   :  { %4050 = vmatprep.subr.bf16.mxu1 %v4049_v55  ;;  %v4069_v55 = vpack.c.bf16 %v250_v50, %v234_v49  ;;  %v4169_v60 = vpack.c.bf16 %v252_v53, %v236_v51  ;;  %v378_v49 = vld [vmem:[#allocation5 + $0x8e8] sm:$0xff]  ;;  %v364_v50 = vld [vmem:[#allocation5 + $0x878] sm:$0xff] }
 0x187   :  { %v380_v51 = vld [vmem:[#allocation5 + $0x8f8] sm:$0xff] }
 0x188   :  { %3952 = vmatpush1.bf16.msra.mxu0 %v3951_v61  ;;  %v251_v61 = vld [vmem:[#allocation5 + $0x4f0] sm:$0xff] }
 0x189   :  { %4052 = vmatpush1.bf16.msra.mxu1 %v4051_v16  ;;  %4054 = vmatprep.subr.bf16.mxu0 %v4053_v62  ;;  %v266_v16 = vld [vmem:[#allocation5 + $0x568] sm:$0xff]  ;;  %v4171_v31 = vpack.c.bf16 %v251_v61, %v235_v58  ;;  %v4185_v58 = vpack.c.bf16 %v380_v51, %v364_v50  ;;  %v508_v50 = vld [vmem:[#allocation5 + $0xcf8] sm:$0xff] }
 0x18a   :  { %4154 = vmatprep.subr.bf16.mxu1 %v4153_v2  ;;  %v282_v62 = vld [vmem:[#allocation5 + $0x5e8] sm:$0xff]  ;;  %v284_v2 = vld [vmem:[#allocation5 + $0x5f8] sm:$0xff] }
 0x18b   :  { %1742 = vmatmul.mubr.f32.vlgmr.msra.gmra.mrb[8].mxu0 %v4915_v43  ;;  %v4073_v4 = vpack.c.bf16 %v282_v62, %v266_v16  ;;  %v394_v61 = vld [vmem:[#allocation5 + $0x968] sm:$0xff]  ;;  %v396_v62 = vld [vmem:[#allocation5 + $0x978] sm:$0xff] }
 0x18c   :  { %1896 = vmatmul.mubr.f32.vlgmr.msra.gmra.mrb[8].mxu1 %v4915_v43  ;;  %4056 = vmatpush1.bf16.msra.mxu0 %v4055_v6  ;;  %v265_v6 = vld [vmem:[#allocation5 + $0x560] sm:$0xff]  ;;  %v410_v16 = vld [vmem:[#allocation5 + $0x9e8] sm:$0xff] }
 0x18d   :  { %4156 = vmatpush1.bf16.msra.mxu1 %v4155_v9  ;;  %3141 = vmatprep.mubr.msk.f32.mxu0 %vm977_vm0, %v4919_v24  ;;  %v4075_v22 = vpack.c.bf16 %v281_v7, %v265_v6  ;;  %v409_v6 = vld [vmem:[#allocation5 + $0x9e0] sm:$0xff]  ;;  %v395_v7 = vld [vmem:[#allocation5 + $0x970] sm:$0xff] }
 0x18e   :  { %3143 = vmatprep.mubr.msk.f32.mxu1 %vm977_vm0, %v4919_v24  ;;  %4058 = vmatprep.subr.bf16.mxu0 %v4057_v13  ;;  %v314_v13 = vld [vmem:[#allocation5 + $0x6e8] sm:$0xff] }
 0x18f   :  { %1748 = vmatmul.mubr.f32.gmra.mrb[10].mxu0 %v4925_v37  ;;  %4158 = vmatprep.subr.bf16.mxu1 %v4157_v19  ;;  %v316_v19 = vld [vmem:[#allocation5 + $0x6f8] sm:$0xff] }
 0x190   :  { %1902 = vmatmul.mubr.f32.gmra.mrb[10].mxu1 %v4925_v37  ;;  %4060 = vmatpush1.bf16.msra.mxu0 %v4059_v23  ;;  %v4175_v23 = vpack.c.bf16 %v283_v11, %v267_v8  ;;  %v4177_v30 = vpack.c.bf16 %v316_v19, %v300_v18  ;;  %v426_v11 = vld [vmem:[#allocation5 + $0xa68] sm:$0xff]  ;;  %v444_v18 = vld [vmem:[#allocation5 + $0xaf8] sm:$0xff] }
 0x191   :  { %4160 = vmatpush1.bf16.msra.mxu1 %v4159_v25  ;;  %4062 = vmatprep.subr.bf16.mxu0 %v4061_v26  ;;  %v4077_v25 = vpack.c.bf16 %v314_v13, %v298_v12  ;;  %v297_v26 = vld [vmem:[#allocation5 + $0x660] sm:$0xff]  ;;  %v442_v12 = vld [vmem:[#allocation5 + $0xae8] sm:$0xff]  ;;  %v428_v13 = vld [vmem:[#allocation5 + $0xa78] sm:$0xff] }
 0x192   :  { %4162 = vmatprep.subr.bf16.mxu1 %v4161_v33  ;;  %1972 = vmatprep.mubr.f32.mxu0 %v4893_v52  ;;  %v315_v33 = vld [vmem:[#allocation5 + $0x6f0] sm:$0xff]  ;;  %v4079_v39 = vpack.c.bf16 %v313_v27, %v297_v26  ;;  %v441_v26 = vld [vmem:[#allocation5 + $0xae0] sm:$0xff] }
 0x193   :  { %2126 = vmatprep.mubr.f32.mxu1 %v4893_v52  ;;  %v268_v52 = vld [vmem:[#allocation5 + $0x578] sm:$0xff]  ;;  %v427_v27 = vld [vmem:[#allocation5 + $0xa70] sm:$0xff] }
 0x194   :  { %4064 = vmatpush1.bf16.msra.mxu0 %v4063_v40  ;;  %v4173_v10 = vpack.c.bf16 %v284_v2, %v268_v52  ;;  %v4179_v40 = vpack.c.bf16 %v315_v33, %v299_v28  ;;  %v412_v52 = vld [vmem:[#allocation5 + $0x9f8] sm:$0xff]  ;;  %v4193_v28 = vpack.c.bf16 %v444_v18, %v428_v13  ;;  %v458_v33 = vld [vmem:[#allocation5 + $0xb68] sm:$0xff] }
 0x195   :  { %4164 = vmatpush1.bf16.msra.mxu1 %v4163_v1  ;;  %4066 = vmatprep.subr.bf16.mxu0 %v4065_v41  ;;  %v4081_v1 = vpack.c.bf16 %v346_v35, %v330_v34  ;;  %v329_v41 = vld [vmem:[#allocation5 + $0x760] sm:$0xff]  ;;  %v4189_v8 = vpack.c.bf16 %v412_v52, %v396_v62  ;;  %v474_v34 = vld [vmem:[#allocation5 + $0xbe8] sm:$0xff]  ;;  %v460_v35 = vld [vmem:[#allocation5 + $0xb78] sm:$0xff] }
 0x196   :  { %v4931_v59 = vpop.f32.mrb[0].mxu0  ;;  %4166 = vmatprep.subr.bf16.mxu1 %v4165_v5  ;;  %v347_v5 = vld [vmem:[#allocation5 + $0x7f0] sm:$0xff]  ;;  %v4083_v53 = vpack.c.bf16 %v345_v42, %v329_v41  ;;  %v473_v41 = vld [vmem:[#allocation5 + $0xbe0] sm:$0xff]  ;;  %v540_v62 = vld [vmem:[#allocation5 + $0xdf8] sm:$0xff] }
 0x197   :  { %v4933_v63 = vpop.f32.mrb[0].mxu1  ;;  %v4935_v0 = vpop.f32.mrb[1].mxu0  ;;  %v459_v42 = vld [vmem:[#allocation5 + $0xb70] sm:$0xff]  ;;  %v572_v13 = vld [vmem:[#allocation5 + $0xef8] sm:$0xff] }
 0x198   :  { %v4937_v29 = vpop.f32.mrb[1].mxu1  ;;  %4068 = vmatpush1.bf16.msra.mxu0 %v4067_v21  ;;  %v4183_v21 = vpack.c.bf16 %v347_v5, %v331_v44  ;;  %v4197_v44 = vpack.c.bf16 %v476_v36, %v460_v35  ;;  %v490_v5 = vld [vmem:[#allocation5 + $0xc68] sm:$0xff]  ;;  %v604_v35 = vld [vmem:[#allocation5 + $0xff8] sm:$0xff] }
 0x199   :  { %4168 = vmatpush1.bf16.msra.mxu1 %v4167_v54  ;;  %4070 = vmatprep.subr.bf16.mxu0 %v4069_v55  ;;  %v4085_v54 = vpack.c.bf16 %v378_v49, %v362_v48  ;;  %v361_v55 = vld [vmem:[#allocation5 + $0x860] sm:$0xff]  ;;  %v506_v48 = vld [vmem:[#allocation5 + $0xce8] sm:$0xff]  ;;  %v492_v49 = vld [vmem:[#allocation5 + $0xc78] sm:$0xff] }
 0x19a   :  { %v4939_v9 = vpop.f32.mrb[2].mxu0  ;;  %4170 = vmatprep.subr.bf16.mxu1 %v4169_v60  ;;  %v379_v60 = vld [vmem:[#allocation5 + $0x8f0] sm:$0xff]  ;;  %v4087_v2 = vpack.c.bf16 %v377_v56, %v361_v55  ;;  %v505_v55 = vld [vmem:[#allocation5 + $0xce0] sm:$0xff] }
 0x19b   :  { %v4941_v14 = vpop.f32.mrb[2].mxu1  ;;  %v4943_v17 = vpop.f32.mrb[3].mxu0  ;;  %v491_v56 = vld [vmem:[#allocation5 + $0xc70] sm:$0xff] }
 0x19c   :  { %v4945_v20 = vpop.f32.mrb[3].mxu1  ;;  %4072 = vmatpush1.bf16.msra.mxu0 %v4071_v3  ;;  %v4187_v3 = vpack.c.bf16 %v379_v60, %v363_v57  ;;  %v4201_v57 = vpack.c.bf16 %v508_v50, %v492_v49  ;;  %v522_v60 = vld [vmem:[#allocation5 + $0xd68] sm:$0xff]  ;;  %v636_v49 = vld [vmem:[#allocation5 + $0x10f8] sm:$0xff] }
 0x19d   :  { %4172 = vmatpush1.bf16.msra.mxu1 %v4171_v31  ;;  %4074 = vmatprep.subr.bf16.mxu0 %v4073_v4  ;;  %v4089_v31 = vpack.c.bf16 %v410_v16, %v394_v61  ;;  %v393_v4 = vld [vmem:[#allocation5 + $0x960] sm:$0xff]  ;;  %v538_v61 = vld [vmem:[#allocation5 + $0xde8] sm:$0xff]  ;;  %v524_v16 = vld [vmem:[#allocation5 + $0xd78] sm:$0xff] }
 0x19e   :  { %4174 = vmatprep.subr.bf16.mxu1 %v4173_v10  ;;  %v411_v10 = vld [vmem:[#allocation5 + $0x9f0] sm:$0xff]  ;;  %v4091_v19 = vpack.c.bf16 %v409_v6, %v393_v4  ;;  %v537_v4 = vld [vmem:[#allocation5 + $0xde0] sm:$0xff] }
 0x19f   :  { %v523_v6 = vld [vmem:[#allocation5 + $0xd70] sm:$0xff] }
 0x1a0   :  { %4076 = vmatpush1.bf16.msra.mxu0 %v4075_v22  ;;  %v4191_v22 = vpack.c.bf16 %v411_v10, %v395_v7  ;;  %v4205_v7 = vpack.c.bf16 %v540_v62, %v524_v16  ;;  %v554_v10 = vld [vmem:[#allocation5 + $0xe68] sm:$0xff]  ;;  %v668_v16 = vld [vmem:[#allocation5 + $0x11f8] sm:$0xff] }
 0x1a1   :  { %4176 = vmatpush1.bf16.msra.mxu1 %v4175_v23  ;;  %4078 = vmatprep.subr.bf16.mxu0 %v4077_v25  ;;  %v4093_v23 = vpack.c.bf16 %v442_v12, %v426_v11  ;;  %v425_v25 = vld [vmem:[#allocation5 + $0xa60] sm:$0xff]  ;;  %v570_v11 = vld [vmem:[#allocation5 + $0xee8] sm:$0xff]  ;;  %v556_v12 = vld [vmem:[#allocation5 + $0xe78] sm:$0xff] }
 0x1a2   :  { %4178 = vmatprep.subr.bf16.mxu1 %v4177_v30  ;;  %v443_v30 = vld [vmem:[#allocation5 + $0xaf0] sm:$0xff]  ;;  %v4095_v38 = vpack.c.bf16 %v441_v26, %v425_v25  ;;  %v569_v25 = vld [vmem:[#allocation5 + $0xee0] sm:$0xff] }
 0x1a3   :  { %v555_v26 = vld [vmem:[#allocation5 + $0xe70] sm:$0xff] }
 0x1a4   :  { %4080 = vmatpush1.bf16.msra.mxu0 %v4079_v39  ;;  %v4195_v39 = vpack.c.bf16 %v443_v30, %v427_v27  ;;  %v4209_v27 = vpack.c.bf16 %v572_v13, %v556_v12  ;;  %v586_v30 = vld [vmem:[#allocation5 + $0xf68] sm:$0xff]  ;;  %v700_v12 = vld [vmem:[#allocation5 + $0x12f8] sm:$0xff] }
 0x1a5   :  { %4180 = vmatpush1.bf16.msra.mxu1 %v4179_v40  ;;  %4082 = vmatprep.subr.bf16.mxu0 %v4081_v1  ;;  %v4097_v40 = vpack.c.bf16 %v474_v34, %v458_v33  ;;  %v457_v1 = vld [vmem:[#allocation5 + $0xb60] sm:$0xff]  ;;  %v602_v33 = vld [vmem:[#allocation5 + $0xfe8] sm:$0xff]  ;;  %v588_v34 = vld [vmem:[#allocation5 + $0xf78] sm:$0xff] }
 0x1a6   :  { %4182 = vmatprep.subr.bf16.mxu1 %v4181_v46  ;;  %v475_v46 = vld [vmem:[#allocation5 + $0xbf0] sm:$0xff]  ;;  %v4099_v51 = vpack.c.bf16 %v473_v41, %v457_v1  ;;  %v601_v1 = vld [vmem:[#allocation5 + $0xfe0] sm:$0xff] }
 0x1a7   :  { %v587_v41 = vld [vmem:[#allocation5 + $0xf70] sm:$0xff] }
 0x1a8   :  { %4084 = vmatpush1.bf16.msra.mxu0 %v4083_v53  ;;  %v4199_v53 = vpack.c.bf16 %v475_v46, %v459_v42  ;;  %v4213_v42 = vpack.c.bf16 %v604_v35, %v588_v34  ;;  %v618_v46 = vld [vmem:[#allocation5 + $0x1068] sm:$0xff]  ;;  %v732_v34 = vld [vmem:[#allocation5 + $0x13f8] sm:$0xff] }
 0x1a9   :  { %4184 = vmatpush1.bf16.msra.mxu1 %v4183_v21  ;;  %4086 = vmatprep.subr.bf16.mxu0 %v4085_v54  ;;  %v4101_v21 = vpack.c.bf16 %v506_v48, %v490_v5  ;;  %v489_v54 = vld [vmem:[#allocation5 + $0xc60] sm:$0xff]  ;;  %v634_v5 = vld [vmem:[#allocation5 + $0x10e8] sm:$0xff]  ;;  %v620_v48 = vld [vmem:[#allocation5 + $0x1078] sm:$0xff] }
 0x1aa   :  { %4186 = vmatprep.subr.bf16.mxu1 %v4185_v58  ;;  %v507_v58 = vld [vmem:[#allocation5 + $0xcf0] sm:$0xff]  ;;  %v4103_v52 = vpack.c.bf16 %v505_v55, %v489_v54  ;;  %v633_v54 = vld [vmem:[#allocation5 + $0x10e0] sm:$0xff] }
 0x1ab   :  { %v619_v55 = vld [vmem:[#allocation5 + $0x1070] sm:$0xff] }
 0x1ac   :  { %4088 = vmatpush1.bf16.msra.mxu0 %v4087_v2  ;;  %v4203_v2 = vpack.c.bf16 %v507_v58, %v491_v56  ;;  %v4217_v56 = vpack.c.bf16 %v636_v49, %v620_v48  ;;  %v650_v58 = vld [vmem:[#allocation5 + $0x1168] sm:$0xff]  ;;  %v745_v49 = vld [vmem:[#allocation5 + $0x1460] sm:$0xff] }
 0x1ad   :  { %4188 = vmatpush1.bf16.msra.mxu1 %v4187_v3  ;;  %4090 = vmatprep.subr.bf16.mxu0 %v4089_v31  ;;  %v4105_v3 = vpack.c.bf16 %v538_v61, %v522_v60  ;;  %v521_v31 = vld [vmem:[#allocation5 + $0xd60] sm:$0xff]  ;;  %v666_v60 = vld [vmem:[#allocation5 + $0x11e8] sm:$0xff]  ;;  %v652_v61 = vld [vmem:[#allocation5 + $0x1178] sm:$0xff] }
 0x1ae   :  { %4190 = vmatprep.subr.bf16.mxu1 %v4189_v8  ;;  %v539_v8 = vld [vmem:[#allocation5 + $0xdf0] sm:$0xff]  ;;  %v4107_v18 = vpack.c.bf16 %v537_v4, %v521_v31  ;;  %v665_v31 = vld [vmem:[#allocation5 + $0x11e0] sm:$0xff] }
 0x1af   :  { %v651_v4 = vld [vmem:[#allocation5 + $0x1170] sm:$0xff] }
 0x1b0   :  { %4092 = vmatpush1.bf16.msra.mxu0 %v4091_v19  ;;  %v4207_v19 = vpack.c.bf16 %v539_v8, %v523_v6  ;;  %v4221_v6 = vpack.c.bf16 %v668_v16, %v652_v61  ;;  %v682_v8 = vld [vmem:[#allocation5 + $0x1268] sm:$0xff]  ;;  %v777_v61 = vld [vmem:[#allocation5 + $0x1560] sm:$0xff] }
 0x1b1   :  { %4192 = vmatpush1.bf16.msra.mxu1 %v4191_v22  ;;  %4094 = vmatprep.subr.bf16.mxu0 %v4093_v23  ;;  %v4109_v22 = vpack.c.bf16 %v570_v11, %v554_v10  ;;  %v553_v23 = vld [vmem:[#allocation5 + $0xe60] sm:$0xff]  ;;  %v698_v10 = vld [vmem:[#allocation5 + $0x12e8] sm:$0xff]  ;;  %v684_v11 = vld [vmem:[#allocation5 + $0x1278] sm:$0xff] }
 0x1b2   :  { %4194 = vmatprep.subr.bf16.mxu1 %v4193_v28  ;;  %v571_v28 = vld [vmem:[#allocation5 + $0xef0] sm:$0xff]  ;;  %v4111_v36 = vpack.c.bf16 %v569_v25, %v553_v23  ;;  %v697_v23 = vld [vmem:[#allocation5 + $0x12e0] sm:$0xff] }
 0x1b3   :  { %v683_v25 = vld [vmem:[#allocation5 + $0x1270] sm:$0xff]  ;;  %v793_v16 = vld [vmem:[#allocation5 + $0x15e0] sm:$0xff] }
 0x1b4   :  { %4096 = vmatpush1.bf16.msra.mxu0 %v4095_v38  ;;  %v4211_v38 = vpack.c.bf16 %v571_v28, %v555_v26  ;;  %v4225_v26 = vpack.c.bf16 %v700_v12, %v684_v11  ;;  %v714_v28 = vld [vmem:[#allocation5 + $0x1368] sm:$0xff]  ;;  %v809_v11 = vld [vmem:[#allocation5 + $0x1660] sm:$0xff] }
 0x1b5   :  { %4196 = vmatpush1.bf16.msra.mxu1 %v4195_v39  ;;  %4098 = vmatprep.subr.bf16.mxu0 %v4097_v40  ;;  %v4113_v39 = vpack.c.bf16 %v602_v33, %v586_v30  ;;  %v585_v40 = vld [vmem:[#allocation5 + $0xf60] sm:$0xff]  ;;  %v730_v30 = vld [vmem:[#allocation5 + $0x13e8] sm:$0xff]  ;;  %v716_v33 = vld [vmem:[#allocation5 + $0x1378] sm:$0xff] }
 0x1b6   :  { %4198 = vmatprep.subr.bf16.mxu1 %v4197_v44  ;;  %v603_v44 = vld [vmem:[#allocation5 + $0xff0] sm:$0xff]  ;;  %v4115_v50 = vpack.c.bf16 %v601_v1, %v585_v40  ;;  %v4229_v1 = vpack.c.bf16 %v732_v34, %v716_v33  ;;  %v825_v12 = vld [vmem:[#allocation5 + $0x16e0] sm:$0xff] }
 0x1b7   :  { %v715_v40 = vld [vmem:[#allocation5 + $0x1370] sm:$0xff]  ;;  %v841_v34 = vld [vmem:[#allocation5 + $0x1760] sm:$0xff] }
 0x1b8   :  { %4100 = vmatpush1.bf16.msra.mxu0 %v4099_v51  ;;  %v4215_v51 = vpack.c.bf16 %v603_v44, %v587_v41  ;;  %v731_v41 = vld [vmem:[#allocation5 + $0x13f0] sm:$0xff]  ;;  %v762_v44 = vld [vmem:[#allocation5 + $0x14e8] sm:$0xff] }
 0x1b9   :  { %4200 = vmatpush1.bf16.msra.mxu1 %v4199_v53  ;;  %4102 = vmatprep.subr.bf16.mxu0 %v4101_v21  ;;  %v4117_v53 = vpack.c.bf16 %v634_v5, %v618_v46  ;;  %v617_v21 = vld [vmem:[#allocation5 + $0x1060] sm:$0xff]  ;;  %v764_v46 = vld [vmem:[#allocation5 + $0x14f8] sm:$0xff]  ;;  %v4231_v5 = vpack.c.bf16 %v731_v41, %v715_v40  ;;  %v890_v40 = vld [vmem:[#allocation5 + $0x18e8] sm:$0xff] }
 0x1ba   :  { %4202 = vmatprep.subr.bf16.mxu1 %v4201_v57  ;;  %v635_v57 = vld [vmem:[#allocation5 + $0x10f0] sm:$0xff]  ;;  %v4119_v62 = vpack.c.bf16 %v633_v54, %v617_v21  ;;  %v778_v54 = vld [vmem:[#allocation5 + $0x1568] sm:$0xff]  ;;  %v876_v41 = vld [vmem:[#allocation5 + $0x1878] sm:$0xff] }
 0x1bb   :  { %v763_v21 = vld [vmem:[#allocation5 + $0x14f0] sm:$0xff] }
 0x1bc   :  { %4104 = vmatpush1.bf16.msra.mxu0 %v4103_v52  ;;  %v4219_v52 = vpack.c.bf16 %v635_v57, %v619_v55  ;;  %v794_v55 = vld [vmem:[#allocation5 + $0x15e8] sm:$0xff]  ;;  %v796_v57 = vld [vmem:[#allocation5 + $0x15f8] sm:$0xff] }
 0x1bd   :  { %4204 = vmatpush1.bf16.msra.mxu1 %v4203_v2  ;;  %4106 = vmatprep.subr.bf16.mxu0 %v4105_v3  ;;  %v4121_v2 = vpack.c.bf16 %v666_v60, %v650_v58  ;;  %v649_v3 = vld [vmem:[#allocation5 + $0x1160] sm:$0xff]  ;;  %v4137_v60 = vpack.c.bf16 %v794_v55, %v778_v54  ;;  %v2296_v54 = vld [vmem:[#allocation8 + $0x180] sm:$0xff]  ;;  %v2297_v55 = vld [vmem:[#allocation8 + $0x188] sm:$0xff] }
 0x1be   :  { %4206 = vmatprep.subr.bf16.mxu1 %v4205_v7  ;;  %v667_v7 = vld [vmem:[#allocation5 + $0x11f0] sm:$0xff]  ;;  %v4123_v13 = vpack.c.bf16 %v665_v31, %v649_v3  ;;  %v810_v3 = vld [vmem:[#allocation5 + $0x1668] sm:$0xff] }
 0x1bf   :  { %v826_v31 = vld [vmem:[#allocation5 + $0x16e8] sm:$0xff] }
 0x1c0   :  { %4108 = vmatpush1.bf16.msra.mxu0 %v4107_v18  ;;  %v4223_v18 = vpack.c.bf16 %v667_v7, %v651_v4  ;;  %v812_v4 = vld [vmem:[#allocation5 + $0x1678] sm:$0xff]  ;;  %v4139_v7 = vpack.c.bf16 %v793_v16, %v777_v61  ;;  %v2248_v61 = vld [vmem:[#allocation8] sm:$0xff] }
 0x1c1   :  { %4208 = vmatpush1.bf16.msra.mxu1 %v4207_v19  ;;  %4110 = vmatprep.subr.bf16.mxu0 %v4109_v22  ;;  %v4125_v19 = vpack.c.bf16 %v698_v10, %v682_v8  ;;  %v681_v22 = vld [vmem:[#allocation5 + $0x1260] sm:$0xff]  ;;  %v4141_v10 = vpack.c.bf16 %v826_v31, %v810_v3  ;;  %v2249_v16 = vld [vmem:[#allocation8 + $0x8] sm:$0xff] }
 0x1c2   :  { %4210 = vmatprep.subr.bf16.mxu1 %v4209_v27  ;;  %v699_v27 = vld [vmem:[#allocation5 + $0x12f0] sm:$0xff]  ;;  %v2266_v31 = vld [vmem:[#allocation8 + $0x90] sm:$0xff] }
 0x1c3   :  { %v4227_v35 = vpack.c.bf16 %v699_v27, %v683_v25  ;;  %v897_v25 = vlaneseq  ;;  %v860_v27 = vld [vmem:[#allocation5 + $0x17f8] sm:$0xff] }
 0x1c4   :  { %4112 = vmatpush1.bf16.msra.mxu0 %v4111_v36  ;;  %v4129_v36 = vpack.c.bf16 %v730_v30, %v714_v28  ;;  %v4143_v28 = vpack.c.bf16 %v825_v12, %v809_v11  ;;  %v2250_v12 = vld [vmem:[#allocation8 + $0x10] sm:$0xff] }
 0x1c5   :  { %4212 = vmatpush1.bf16.msra.mxu1 %v4211_v38  ;;  %4114 = vmatprep.subr.bf16.mxu0 %v4113_v39  ;;  %v713_v38 = vld [vmem:[#allocation5 + $0x1360] sm:$0xff] }
 0x1c6   :  { %4214 = vmatprep.subr.bf16.mxu1 %v4213_v42  ;;  %v729_v39 = vld [vmem:[#allocation5 + $0x13e0] sm:$0xff]  ;;  %v746_v42 = vld [vmem:[#allocation5 + $0x1468] sm:$0xff] }
 0x1c7   :  { %v4133_v48 = vpack.c.bf16 %v762_v44, %v746_v42  ;;  %v892_v42 = vld [vmem:[#allocation5 + $0x18f8] sm:$0xff] }
 0x1c8   :  { %4116 = vmatpush1.bf16.msra.mxu0 %v4115_v50  ;;  %v761_v50 = vld [vmem:[#allocation5 + $0x14e0] sm:$0xff] }
 0x1c9   :  { %4216 = vmatpush1.bf16.msra.mxu1 %v4215_v51  ;;  %4118 = vmatprep.subr.bf16.mxu0 %v4117_v53  ;;  %v747_v51 = vld [vmem:[#allocation5 + $0x1470] sm:$0xff]  ;;  %v4135_v58 = vpack.c.bf16 %v761_v50, %v745_v49  ;;  %v4249_v49 = vpack.c.bf16 %v892_v42, %v876_v41  ;;  %v2302_v42 = vld [vmem:[#allocation8 + $0x1b0] sm:$0xff] }
 0x1ca   :  { %4218 = vmatprep.subr.bf16.mxu1 %v4217_v56  ;;  %v780_v56 = vld [vmem:[#allocation5 + $0x1578] sm:$0xff]  ;;  %v891_v50 = vld [vmem:[#allocation5 + $0x18f0] sm:$0xff] }
 0x1cb   :  { %1973 = vmatmul.mubr.f32.vlgmr.msra.gmra.mrb[12].mxu0 %v4897_v32 }
 0x1cc   :  { %4120 = vmatpush1.bf16.msra.mxu0 %v4119_v62  ;;  %2127 = vmatmul.mubr.f32.vlgmr.msra.gmra.mrb[12].mxu1 %v4897_v32  ;;  %v4127_v32 = vpack.c.bf16 %v697_v23, %v681_v22  ;;  %v779_v62 = vld [vmem:[#allocation5 + $0x1570] sm:$0xff]  ;;  %v842_v22 = vld [vmem:[#allocation5 + $0x1768] sm:$0xff] }
 0x1cd   :  { %4220 = vmatpush1.bf16.msra.mxu1 %v4219_v52  ;;  %4122 = vmatprep.subr.bf16.mxu0 %v4121_v2  ;;  %v4237_v52 = vpack.c.bf16 %v796_v57, %v780_v56  ;;  %v795_v2 = vld [vmem:[#allocation5 + $0x15f0] sm:$0xff]  ;;  %v858_v23 = vld [vmem:[#allocation5 + $0x17e8] sm:$0xff]  ;;  %v4960_v56 = vld [vmem:[#allocation7] sm:$0xff] }
 0x1ce   :  { %4222 = vmatprep.subr.bf16.mxu1 %v4221_v6  ;;  %1978 = vmatprep.mubr.f32.mxu0 %v4901_v45  ;;  %v828_v6 = vld [vmem:[#allocation5 + $0x16f8] sm:$0xff]  ;;  %v4239_v8 = vpack.c.bf16 %v795_v2, %v779_v62  ;;  %v4145_v33 = vpack.c.bf16 %v858_v23, %v842_v22  ;;  %v4285_v62 = vpack.c.bf16 %v2297_v55, %v2296_v54  ;;  %v2283_v22 = vld [vmem:[#allocation8 + $0x118] sm:$0xff]  ;;  %v2304_v55 = vld [vmem:[#allocation8 + $0x1c0] sm:$0xff] }
 0x1cf   :  { %2132 = vmatprep.mubr.f32.mxu1 %v4901_v45  ;;  %1979 = vmatmul.mubr.f32.gmra.mrb[14].mxu0 %v4905_v47  ;;  %v748_v45 = vld [vmem:[#allocation5 + $0x1478] sm:$0xff] }
 0x1d0   :  { %4124 = vmatpush1.bf16.msra.mxu0 %v4123_v13  ;;  %2133 = vmatmul.mubr.f32.gmra.mrb[14].mxu1 %v4905_v47  ;;  %v4131_v47 = vpack.c.bf16 %v729_v39, %v713_v38  ;;  %v4233_v53 = vpack.c.bf16 %v764_v46, %v748_v45  ;;  %v811_v13 = vld [vmem:[#allocation5 + $0x1670] sm:$0xff]  ;;  %v874_v39 = vld [vmem:[#allocation5 + $0x1868] sm:$0xff]  ;;  %v2281_v2 = vld [vmem:[#allocation8 + $0x108] sm:$0xff] }
 0x1d1   :  { %4224 = vmatpush1.bf16.msra.mxu1 %v4223_v18  ;;  %4126 = vmatprep.subr.bf16.mxu0 %v4125_v19  ;;  %v4241_v18 = vpack.c.bf16 %v828_v6, %v812_v4  ;;  %v827_v19 = vld [vmem:[#allocation5 + $0x16f0] sm:$0xff]  ;;  %v4149_v46 = vpack.c.bf16 %v890_v40, %v874_v39  ;;  %v2267_v4 = vld [vmem:[#allocation8 + $0x98] sm:$0xff]  ;;  %v2270_v39 = vld [vmem:[#allocation8 + $0xb0] sm:$0xff] }
 0x1d2   :  { %4226 = vmatprep.subr.bf16.mxu1 %v4225_v26  ;;  %3144 = vmatprep.mubr.msk.f32.mxu0 %vm977_vm0, %v4909_v15  ;;  %v844_v26 = vld [vmem:[#allocation5 + $0x1778] sm:$0xff]  ;;  %v4243_v30 = vpack.c.bf16 %v827_v19, %v811_v13  ;;  %v859_v38 = vld [vmem:[#allocation5 + $0x17f0] sm:$0xff]  ;;  %v2251_v13 = vld [vmem:[#allocation8 + $0x18] sm:$0xff] }
 0x1d3   :  { %3146 = vmatprep.mubr.msk.f32.mxu1 %vm977_vm0, %v4909_v15  ;;  %v4235_v15 = vpack.c.bf16 %v763_v21, %v747_v51  ;;  %v2264_v51 = vld [vmem:[#allocation8 + $0x80] sm:$0xff]  ;;  %v2282_v19 = vld [vmem:[#allocation8 + $0x110] sm:$0xff]  ;;  %v2273_v54 = vld [vmem:[#allocation8 + $0xc8] sm:$0xff] }
 0x1d4   :  { %4128 = vmatpush1.bf16.msra.mxu0 %v4127_v32  ;;  %v857_v32 = vld [vmem:[#allocation5 + $0x17e0] sm:$0xff] }
 0x1d5   :  { %4228 = vmatpush1.bf16.msra.mxu1 %v4227_v35  ;;  %4130 = vmatprep.subr.bf16.mxu0 %v4129_v36  ;;  %v843_v35 = vld [vmem:[#allocation5 + $0x1770] sm:$0xff]  ;;  %v4245_v36 = vpack.c.bf16 %v860_v27, %v844_v26  ;;  %v4147_v44 = vpack.c.bf16 %v857_v32, %v841_v34  ;;  %v2269_v27 = vld [vmem:[#allocation8 + $0xa8] sm:$0xff]  ;;  %v4291_v32 = vpack.c.bf16 %v2283_v22, %v2282_v19 }
 0x1d6   :  { %4230 = vmatprep.subr.bf16.mxu1 %v4229_v1  ;;  %v4957_v1 = vshrl.u32 %v897_v25, 7  ;;  %v4247_v45 = vpack.c.bf16 %v859_v38, %v843_v35  ;;  %v2268_v26 = vld [vmem:[#allocation8 + $0xa0] sm:$0xff]  ;;  %v2301_v34 = vld [vmem:[#allocation8 + $0x1a8] sm:$0xff] }
 0x1d7   :  { %v2253_v35 = vld [vmem:[#allocation8 + $0x28] sm:$0xff]  ;;  %v4261_v38 = vpack.c.bf16 %v2269_v27, %v2268_v26  ;;  %v2290_v26 = vld [vmem:[#allocation8 + $0x150] sm:$0xff] }
 0x1d8   :  { %4132 = vmatpush1.bf16.msra.mxu0 %v4131_v47  ;;  %v873_v47 = vld [vmem:[#allocation5 + $0x1860] sm:$0xff]  ;;  %v903_v21 = vsub.s32 1, %v4957_v1  ;;  %v911_v57 = vsub.s32 3, %v4957_v1 }
 0x1d9   :  { %4232 = vmatpush1.bf16.msra.mxu1 %v4231_v5  ;;  %4134 = vmatprep.subr.bf16.mxu0 %v4133_v48  ;;  %v889_v5 = vld [vmem:[#allocation5 + $0x18e0] sm:$0xff]  ;;  %v875_v48 = vld [vmem:[#allocation5 + $0x1870] sm:$0xff] }
 0x1da   :  { %4234 = vmatprep.subr.bf16.mxu1 %v4233_v53  ;;  %v2265_v53 = vld [vmem:[#allocation8 + $0x88] sm:$0xff]  ;;  %v4966_v3 = vrot.slane %v4960_v56, %v903_v21  ;;  %v4971_v6 = vrot.slane %v4960_v56, %v911_v57 }
 0x1dc   :  { %4136 = vmatpush1.bf16.msra.mxu0 %v4135_v58  ;;  %v4151_v58 = vpack.c.bf16 %v889_v5, %v873_v47  ;;  %v4510_v23 = vadd.f32 %v4935_v0, %v4966_v3  ;;  %v2252_v0 = vld [vmem:[#allocation8 + $0x20] sm:$0xff]  ;;  %v2254_v5 = vld [vmem:[#allocation8 + $0x30] sm:$0xff] }
 0x1dd   :  { %4236 = vmatpush1.bf16.msra.mxu1 %v4235_v15  ;;  %4138 = vmatprep.subr.bf16.mxu0 %v4137_v60  ;;  %v4251_v15 = vpack.c.bf16 %v891_v50, %v875_v48  ;;  %v4253_v60 = vpack.c.bf16 %v2265_v53, %v2264_v51  ;;  %v2255_v48 = vld [vmem:[#allocation8 + $0x38] sm:$0xff]  ;;  %v2272_v53 = vld [vmem:[#allocation8 + $0xc0] sm:$0xff] }
 0x1de   :  { %4238 = vmatprep.subr.bf16.mxu1 %v4237_v52  ;;  %v2280_v52 = vld [vmem:[#allocation8 + $0x100] sm:$0xff]  ;;  %v2217_v40 = vmax.f32 %v4510_v23, 0.0  ;;  %v2287_v51 = vld [vmem:[#allocation8 + $0x138] sm:$0xff]  ;;  %v2258_v23 = vld [vmem:[#allocation8 + $0x50] sm:$0xff] }
 0x1df   :  { %v4287_v11 = vpack.c.bf16 %v2281_v2, %v2280_v52 }
 0x1e0   :  { %4140 = vmatpush1.bf16.msra.mxu0 %v4139_v7  ;;  %v4255_v7 = vpack.c.bf16 %v2249_v16, %v2248_v61  ;;  %v2256_v61 = vld [vmem:[#allocation8 + $0x40] sm:$0xff]  ;;  %v2257_v16 = vld [vmem:[#allocation8 + $0x48] sm:$0xff] }
 0x1e1   :  { %4240 = vmatpush1.bf16.msra.mxu1 %v4239_v8  ;;  %4142 = vmatprep.subr.bf16.mxu0 %v4141_v10  ;;  %v2298_v8 = vld [vmem:[#allocation8 + $0x190] sm:$0xff]  ;;  %v2299_v10 = vld [vmem:[#allocation8 + $0x198] sm:$0xff] }
 0x1e2   :  { %4242 = vmatprep.subr.bf16.mxu1 %v4241_v18  ;;  %v4257_v18 = vpack.c.bf16 %v2267_v4, %v2266_v31  ;;  %v4289_v25 = vpack.c.bf16 %v2299_v10, %v2298_v8  ;;  %v2289_v31 = vld [vmem:[#allocation8 + $0x148] sm:$0xff]  ;;  %v2274_v4 = vld [vmem:[#allocation8 + $0xd0] sm:$0xff] }
 0x1e4   :  { %4144 = vmatpush1.bf16.msra.mxu0 %v4143_v28  ;;  %v4514_v28 = vadd.f32 %v4937_v29, %v4971_v6  ;;  %v2285_v29 = vld [vmem:[#allocation8 + $0x128] sm:$0xff] }
 0x1e5   :  { %4244 = vmatpush1.bf16.msra.mxu1 %v4243_v30  ;;  %4146 = vmatprep.subr.bf16.mxu0 %v4145_v33  ;;  %v4259_v30 = vpack.c.bf16 %v2251_v13, %v2250_v12  ;;  %v2300_v33 = vld [vmem:[#allocation8 + $0x1a0] sm:$0xff]  ;;  %v2307_v12 = vld [vmem:[#allocation8 + $0x1d8] sm:$0xff] }
 0x1e6   :  { %4246 = vmatprep.subr.bf16.mxu1 %v4245_v36  ;;  %v2284_v36 = vld [vmem:[#allocation8 + $0x120] sm:$0xff]  ;;  %v4293_v41 = vpack.c.bf16 %v2301_v34, %v2300_v33  ;;  %v2277_v34 = vld [vmem:[#allocation8 + $0xe8] sm:$0xff] }
 0x1e7   :  { %v2276_v33 = vld [vmem:[#allocation8 + $0xe0] sm:$0xff] }
 0x1e8   :  { %4148 = vmatpush1.bf16.msra.mxu0 %v4147_v44  ;;  %v2303_v44 = vld [vmem:[#allocation8 + $0x1b8] sm:$0xff] }
 0x1e9   :  { %4248 = vmatpush1.bf16.msra.mxu1 %v4247_v45  ;;  %4150 = vmatprep.subr.bf16.mxu0 %v4149_v46  ;;  %v2219_v45 = vmax.f32 %v4514_v28, 0.0  ;;  %v4263_v46 = vpack.c.bf16 %v2253_v35, %v2252_v0  ;;  %v4297_v50 = vpack.c.bf16 %v2303_v44, %v2302_v42  ;;  %v2308_v35 = vld [vmem:[#allocation8 + $0x1e0] sm:$0xff]  ;;  %v2261_v42 = vld [vmem:[#allocation8 + $0x68] sm:$0xff] }
 0x1ea   :  { %4250 = vmatprep.subr.bf16.mxu1 %v4249_v49  ;;  %v2286_v49 = vld [vmem:[#allocation8 + $0x130] sm:$0xff]  ;;  %v2292_v44 = vld [vmem:[#allocation8 + $0x160] sm:$0xff] }
 0x1ec   :  { %4152 = vmatpush1.bf16.msra.mxu0 %v4151_v58  ;;  %v2305_v58 = vld [vmem:[#allocation8 + $0x1c8] sm:$0xff] }
 0x1ed   :  { %4252 = vmatpush1.bf16.msra.mxu1 %v4251_v15  ;;  %4254 = vmatprep.subr.bf16.mxu0 %v4253_v60  ;;  %v4299_v15 = vpack.c.bf16 %v2287_v51, %v2286_v49  ;;  %v4269_v60 = vpack.c.bf16 %v2273_v54, %v2272_v53  ;;  %v4301_v2 = vpack.c.bf16 %v2305_v58, %v2304_v55  ;;  %v2311_v49 = vld [vmem:[#allocation8 + $0x1f8] sm:$0xff]  ;;  %v2262_v55 = vld [vmem:[#allocation8 + $0x70] sm:$0xff] }
 0x1ee   :  { %4286 = vmatprep.subr.bf16.mxu1 %v4285_v62  ;;  %v2288_v62 = vld [vmem:[#allocation8 + $0x140] sm:$0xff]  ;;  %v2263_v58 = vld [vmem:[#allocation8 + $0x78] sm:$0xff] }
 0x1ef   :  { %2050 = vmatmul.mubr.f32.vlgmr.msra.gmra.mrb[12].mxu0 %v4915_v43  ;;  %v4303_v19 = vpack.c.bf16 %v2289_v31, %v2288_v62  ;;  %v2328_v62 = vld [vmem:[#allocation8 + $0x280] sm:$0xff]  ;;  %v927_v31 = vsub.s32 7, %v4957_v1 }
 0x1f0   :  { %2204 = vmatmul.mubr.f32.vlgmr.msra.gmra.mrb[12].mxu1 %v4915_v43  ;;  %4256 = vmatpush3.bf16.msra.mxu0 %v4255_v7  ;;  %v2271_v43 = vld [vmem:[#allocation8 + $0xb8] sm:$0xff] }
 0x1f1   :  { %4288 = vmatpush3.bf16.msra.mxu1 %v4287_v11  ;;  %3145 = vmatprep.mubr.msk.f32.mxu0 %vm977_vm0, %v4919_v24  ;;  %v4265_v47 = vpack.c.bf16 %v2271_v43, %v2270_v39  ;;  %v2275_v7 = vld [vmem:[#allocation8 + $0xd8] sm:$0xff]  ;;  %v2306_v11 = vld [vmem:[#allocation8 + $0x1d0] sm:$0xff]  ;;  %v899_v39 = vsub.s32 0, %v4957_v1 }
 0x1f2   :  { %3147 = vmatprep.mubr.msk.f32.mxu1 %vm977_vm0, %v4919_v24  ;;  %4258 = vmatprep.subr.bf16.mxu0 %v4257_v18  ;;  %v4295_v24 = vpack.c.bf16 %v2285_v29, %v2284_v36  ;;  %v4271_v18 = vpack.c.bf16 %v2257_v16, %v2256_v61  ;;  %v4273_v22 = vpack.c.bf16 %v2275_v7, %v2274_v4  ;;  %v2309_v36 = vld [vmem:[#allocation8 + $0x1e8] sm:$0xff]  ;;  %v2295_v16 = vld [vmem:[#allocation8 + $0x178] sm:$0xff]  ;;  %v2360_v4 = vld [vmem:[#allocation8 + $0x380] sm:$0xff] }
 0x1f3   :  { %2056 = vmatmul.mubr.f32.gmra.mrb[14].mxu0 %v4925_v37  ;;  %4290 = vmatprep.subr.bf16.mxu1 %v4289_v25  ;;  %v2259_v25 = vld [vmem:[#allocation8 + $0x58] sm:$0xff]  ;;  %v4305_v28 = vpack.c.bf16 %v2307_v12, %v2306_v11  ;;  %v900_v51 = vrot.slane %v4960_v56, %v899_v39  ;;  %v2361_v7 = vld [vmem:[#allocation8 + $0x388] sm:$0xff]  ;;  %v4283_v11 = vpack.c.bf16 %v2263_v58, %v2262_v55 }
 0x1f4   :  { %2210 = vmatmul.mubr.f32.gmra.mrb[14].mxu1 %v4925_v37  ;;  %4260 = vmatpush3.bf16.msra.mxu0 %v4259_v30  ;;  %v4267_v37 = vpack.c.bf16 %v2255_v48, %v2254_v5  ;;  %v2291_v30 = vld [vmem:[#allocation8 + $0x158] sm:$0xff]  ;;  %v4275_v29 = vpack.c.bf16 %v2259_v25, %v2258_v23  ;;  %v2310_v48 = vld [vmem:[#allocation8 + $0x1f0] sm:$0xff]  ;;  %v2313_v23 = vld [vmem:[#allocation8 + $0x208] sm:$0xff] }
 0x1f5   :  { %2575 = vmatprep.mubr.f32.mxu0 %v2217_v40  ;;  %4292 = vmatpush3.bf16.msra.mxu1 %v4291_v32  ;;  %v4307_v43 = vpack.c.bf16 %v2291_v30, %v2290_v26  ;;  %v4277_v40 = vpack.c.bf16 %v2277_v34, %v2276_v33  ;;  %v2279_v5 = vld [vmem:[#allocation8 + $0xf8] sm:$0xff]  ;;  %v4313_v61 = vpack.c.bf16 %v2311_v49, %v2310_v48  ;;  %v2344_v25 = vld [vmem:[#allocation8 + $0x300] sm:$0xff]  ;;  %v2330_v34 = vld [vmem:[#allocation8 + $0x290] sm:$0xff] }
 0x1f6   :  { %2650 = vmatprep.mubr.f32.mxu1 %v2219_v45  ;;  %4262 = vmatprep.subr.bf16.mxu0 %v4261_v38  ;;  %v907_v45 = vsub.s32 2, %v4957_v1  ;;  %v4509_v12 = vadd.f32 %v4931_v59, %v900_v51  ;;  %v4349_v33 = vpack.c.bf16 %v2361_v7, %v2360_v4  ;;  %v2345_v59 = vld [vmem:[#allocation8 + $0x308] sm:$0xff] }
 0x1f7   :  { %4294 = vmatprep.subr.bf16.mxu1 %v4293_v41  ;;  %v2260_v41 = vld [vmem:[#allocation8 + $0x60] sm:$0xff]  ;;  %v2349_v7 = vld [vmem:[#allocation8 + $0x328] sm:$0xff] }
 0x1f8   :  { %4264 = vmatpush3.bf16.msra.mxu0 %v4263_v46  ;;  %v4309_v46 = vpack.c.bf16 %v2309_v36, %v2308_v35  ;;  %v2331_v35 = vld [vmem:[#allocation8 + $0x298] sm:$0xff]  ;;  %v4516_v36 = vadd.f32 %v4945_v20, %v4971_v6 }
 0x1f9   :  { %4296 = vmatpush3.bf16.msra.mxu1 %v4295_v24  ;;  %4266 = vmatprep.subr.bf16.mxu0 %v4265_v47  ;;  %v2293_v24 = vld [vmem:[#allocation8 + $0x168] sm:$0xff]  ;;  %v2278_v47 = vld [vmem:[#allocation8 + $0xf0] sm:$0xff] }
 0x1fa   :  { %v4985_v52 = vpop.f32.mrb[4].mxu0  ;;  %4298 = vmatprep.subr.bf16.mxu1 %v4297_v50  ;;  %v4279_v50 = vpack.c.bf16 %v2261_v42, %v2260_v41  ;;  %v4311_v53 = vpack.c.bf16 %v2293_v24, %v2292_v44  ;;  %v4281_v54 = vpack.c.bf16 %v2279_v5, %v2278_v47  ;;  %v4351_v41 = vpack.c.bf16 %v2345_v59, %v2344_v25  ;;  %v2314_v24 = vld [vmem:[#allocation8 + $0x210] sm:$0xff]  ;;  %v2315_v47 = vld [vmem:[#allocation8 + $0x218] sm:$0xff] }
 0x1fb   :  { %v4987_v8 = vpop.f32.mrb[4].mxu1  ;;  %v4989_v10 = vpop.f32.mrb[5].mxu0  ;;  %v4321_v42 = vpack.c.bf16 %v2331_v35, %v2330_v34  ;;  %v2346_v5 = vld [vmem:[#allocation8 + $0x310] sm:$0xff]  ;;  %v2235_v48 = vmax.f32 %v4516_v36, 0.0  ;;  %v2351_v34 = vld [vmem:[#allocation8 + $0x338] sm:$0xff]  ;;  %v2336_v35 = vld [vmem:[#allocation8 + $0x2c0] sm:$0xff] }
 0x1fc   :  { %v4991_v13 = vpop.f32.mrb[5].mxu1  ;;  %4268 = vmatpush3.bf16.msra.mxu0 %v4267_v37  ;;  %v2294_v37 = vld [vmem:[#allocation8 + $0x170] sm:$0xff]  ;;  %v2337_v36 = vld [vmem:[#allocation8 + $0x2c8] sm:$0xff] }
 0x1fd   :  { %4300 = vmatpush3.bf16.msra.mxu1 %v4299_v15  ;;  %4270 = vmatprep.subr.bf16.mxu0 %v4269_v60  ;;  %v908_v15 = vrot.slane %v4960_v56, %v907_v45  ;;  %v919_v60 = vsub.s32 5, %v4957_v1 }
 0x1fe   :  { %v4993_v27 = vpop.f32.mrb[6].mxu0  ;;  %4302 = vmatprep.subr.bf16.mxu1 %v4301_v2  ;;  %v2329_v2 = vld [vmem:[#allocation8 + $0x288] sm:$0xff] }
 0x1ff   :  { %v4995_v32 = vpop.f32.mrb[6].mxu1  ;;  %v4997_v0 = vpop.f32.mrb[7].mxu0  ;;  %v4513_v26 = vadd.f32 %v4933_v63, %v908_v15  ;;  %v5018_v30 = vrot.slane %v4960_v56, %v919_v60  ;;  %v5025_v63 = vrot.slane %v4960_v56, %v927_v31 }
 0x200   :  { %v4999_v38 = vpop.f32.mrb[7].mxu1  ;;  %4272 = vmatpush3.bf16.msra.mxu0 %v4271_v18  ;;  %v4315_v18 = vpack.c.bf16 %v2295_v16, %v2294_v37  ;;  %v2317_v16 = vld [vmem:[#allocation8 + $0x228] sm:$0xff] }
 0x201   :  { %4304 = vmatpush3.bf16.msra.mxu1 %v4303_v19  ;;  %4274 = vmatprep.subr.bf16.mxu0 %v4273_v22  ;;  %v4317_v19 = vpack.c.bf16 %v2329_v2, %v2328_v62  ;;  %v2312_v22 = vld [vmem:[#allocation8 + $0x200] sm:$0xff]  ;;  %v2218_v44 = vmax.f32 %v4513_v26, 0.0  ;;  %v4518_v6 = vadd.f32 %v4989_v10, %v5018_v30  ;;  %v4522_v49 = vadd.f32 %v4991_v13, %v5025_v63  ;;  %v2318_v26 = vld [vmem:[#allocation8 + $0x230] sm:$0xff] }
 0x202   :  { %4306 = vmatprep.subr.bf16.mxu1 %v4305_v28  ;;  %v4512_v28 = vadd.f32 %v4943_v17, %v4966_v3  ;;  %v4319_v17 = vpack.c.bf16 %v2313_v23, %v2312_v22  ;;  %v2362_v3 = vld [vmem:[#allocation8 + $0x390] sm:$0xff]  ;;  %v4323_v10 = vpack.c.bf16 %v2315_v47, %v2314_v24  ;;  %v2316_v13 = vld [vmem:[#allocation8 + $0x220] sm:$0xff]  ;;  %v2339_v24 = vld [vmem:[#allocation8 + $0x2d8] sm:$0xff] }
 0x203   :  { %v2221_v37 = vmax.f32 %v4518_v6, 0.0  ;;  %v2348_v62 = vld [vmem:[#allocation8 + $0x320] sm:$0xff]  ;;  %v2223_v2 = vmax.f32 %v4522_v49, 0.0  ;;  %v4327_v22 = vpack.c.bf16 %v2317_v16, %v2316_v13  ;;  %v2338_v6 = vld [vmem:[#allocation8 + $0x2d0] sm:$0xff] }
 0x204   :  { %4276 = vmatpush3.bf16.msra.mxu0 %v4275_v29  ;;  %v2363_v29 = vld [vmem:[#allocation8 + $0x398] sm:$0xff]  ;;  %v2233_v20 = vmax.f32 %v4512_v28, 0.0  ;;  %v4359_v23 = vpack.c.bf16 %v2349_v7, %v2348_v62  ;;  %v2370_v47 = vld [vmem:[#allocation8 + $0x3d0] sm:$0xff]  ;;  %v2324_v62 = vld [vmem:[#allocation8 + $0x260] sm:$0xff]  ;;  %v923_v7 = vsub.s32 6, %v4957_v1 }
 0x205   :  { %4308 = vmatpush3.bf16.msra.mxu1 %v4307_v43  ;;  %4278 = vmatprep.subr.bf16.mxu0 %v4277_v40  ;;  %v2216_v43 = vmax.f32 %v4509_v12, 0.0  ;;  %v4511_v40 = vadd.f32 %v4939_v9, %v900_v51  ;;  %v4353_v9 = vpack.c.bf16 %v2363_v29, %v2362_v3  ;;  %v2332_v51 = vld [vmem:[#allocation8 + $0x2a0] sm:$0xff]  ;;  %v2335_v12 = vld [vmem:[#allocation8 + $0x2b8] sm:$0xff]  ;;  %v2369_v3 = vld [vmem:[#allocation8 + $0x3c8] sm:$0xff] }
 0x206   :  { %4310 = vmatprep.subr.bf16.mxu1 %v4309_v46  ;;  %v4515_v46 = vadd.f32 %v4941_v14, %v908_v15  ;;  %v2364_v14 = vld [vmem:[#allocation8 + $0x3a0] sm:$0xff]  ;;  %v2319_v28 = vld [vmem:[#allocation8 + $0x238] sm:$0xff] }
 0x207   :  { %v2232_v55 = vmax.f32 %v4511_v40, 0.0  ;;  %v4331_v29 = vpack.c.bf16 %v2319_v28, %v2318_v26  ;;  %v4333_v40 = vpack.c.bf16 %v2337_v36, %v2336_v35  ;;  %v2358_v35 = vld [vmem:[#allocation8 + $0x370] sm:$0xff]  ;;  %v924_v36 = vrot.slane %v4960_v56, %v923_v7 }
 0x208   :  { %4280 = vmatpush3.bf16.msra.mxu0 %v4279_v50  ;;  %v2347_v50 = vld [vmem:[#allocation8 + $0x318] sm:$0xff]  ;;  %v2234_v58 = vmax.f32 %v4515_v46, 0.0 }
 0x209   :  { %4312 = vmatpush3.bf16.msra.mxu1 %v4311_v53  ;;  %4282 = vmatprep.subr.bf16.mxu0 %v4281_v54  ;;  %v2333_v53 = vld [vmem:[#allocation8 + $0x2a8] sm:$0xff]  ;;  %v4355_v15 = vpack.c.bf16 %v2347_v50, %v2346_v5  ;;  %v2371_v5 = vld [vmem:[#allocation8 + $0x3d8] sm:$0xff]  ;;  %v2322_v50 = vld [vmem:[#allocation8 + $0x250] sm:$0xff] }
 0x20a   :  { %4314 = vmatprep.subr.bf16.mxu1 %v4313_v61  ;;  %v2365_v54 = vld [vmem:[#allocation8 + $0x3a8] sm:$0xff]  ;;  %v4325_v61 = vpack.c.bf16 %v2333_v53, %v2332_v51  ;;  %v2323_v51 = vld [vmem:[#allocation8 + $0x258] sm:$0xff]  ;;  %v2354_v53 = vld [vmem:[#allocation8 + $0x350] sm:$0xff] }
 0x20b   :  { %v4357_v4 = vpack.c.bf16 %v2365_v54, %v2364_v14  ;;  %v4369_v14 = vpack.c.bf16 %v2371_v5, %v2370_v47  ;;  %v2355_v54 = vld [vmem:[#allocation8 + $0x358] sm:$0xff]  ;;  %v2377_v5 = vld [vmem:[#allocation8 + $0x408] sm:$0xff] }
 0x20c   :  { %4284 = vmatpush3.bf16.msra.mxu0 %v4283_v11  ;;  %v2334_v11 = vld [vmem:[#allocation8 + $0x2b0] sm:$0xff]  ;;  %v4371_v13 = vpack.c.bf16 %v2355_v54, %v2354_v53  ;;  %v2427_v53 = vld [vmem:[#allocation8 + $0x598] sm:$0xff] }
 0x20d   :  { %4316 = vmatpush3.bf16.msra.mxu1 %v4315_v18  ;;  %4318 = vmatprep.subr.bf16.mxu0 %v4317_v19  ;;  %v2366_v18 = vld [vmem:[#allocation8 + $0x3b0] sm:$0xff]  ;;  %v2367_v19 = vld [vmem:[#allocation8 + $0x3b8] sm:$0xff]  ;;  %v4329_v25 = vpack.c.bf16 %v2335_v12, %v2334_v11  ;;  %v2357_v12 = vld [vmem:[#allocation8 + $0x368] sm:$0xff] }
 0x20e   :  { %4350 = vmatprep.subr.bf16.mxu1 %v4349_v33  ;;  %v2350_v33 = vld [vmem:[#allocation8 + $0x330] sm:$0xff]  ;;  %v4361_v59 = vpack.c.bf16 %v2367_v19, %v2366_v18  ;;  %v2343_v19 = vld [vmem:[#allocation8 + $0x2f8] sm:$0xff] }
 0x20f   :  { %2576 = vmatmul.mubr.f32.vlgmr.msra.gmra.mrb[16].mxu0 %v2216_v43  ;;  %v4363_v43 = vpack.c.bf16 %v2351_v34, %v2350_v33  ;;  %v2342_v18 = vld [vmem:[#allocation8 + $0x2f0] sm:$0xff]  ;;  %v2327_v34 = vld [vmem:[#allocation8 + $0x278] sm:$0xff] }
 0x210   :  { %2651 = vmatmul.mubr.f32.vlgmr.msra.gmra.mrb[16].mxu1 %v2218_v44  ;;  %2580 = vmatprep.mubr.f32.mxu0 %v2233_v20  ;;  %v2352_v44 = vld [vmem:[#allocation8 + $0x340] sm:$0xff]  ;;  %v2353_v20 = vld [vmem:[#allocation8 + $0x348] sm:$0xff]  ;;  %v4345_v33 = vpack.c.bf16 %v2343_v19, %v2342_v18 }
 0x211   :  { %2655 = vmatprep.mubr.f32.mxu1 %v2235_v48  ;;  %4320 = vmatpush3.bf16.msra.mxu0 %v4319_v17  ;;  %v2368_v17 = vld [vmem:[#allocation8 + $0x3c0] sm:$0xff]  ;;  %v4367_v49 = vpack.c.bf16 %v2353_v20, %v2352_v44 }
 0x212   :  { %4352 = vmatpush3.bf16.msra.mxu1 %v4351_v41  ;;  %4322 = vmatprep.subr.bf16.mxu0 %v4321_v42  ;;  %v2320_v41 = vld [vmem:[#allocation8 + $0x240] sm:$0xff]  ;;  %v2321_v42 = vld [vmem:[#allocation8 + $0x248] sm:$0xff]  ;;  %v4365_v46 = vpack.c.bf16 %v2369_v3, %v2368_v17  ;;  %v2359_v3 = vld [vmem:[#allocation8 + $0x378] sm:$0xff] }
 0x213   :  { %2581 = vmatmul.mubr.f32.gmra.mrb[18].mxu0 %v2232_v55  ;;  %4354 = vmatprep.subr.bf16.mxu1 %v4353_v9  ;;  %v4335_v48 = vpack.c.bf16 %v2321_v42, %v2320_v41  ;;  %v4337_v9 = vpack.c.bf16 %v2339_v24, %v2338_v6  ;;  %v2340_v55 = vld [vmem:[#allocation8 + $0x2e0] sm:$0xff]  ;;  %v2425_v41 = vld [vmem:[#allocation8 + $0x588] sm:$0xff]  ;;  %v4521_v24 = vadd.f32 %v4987_v8, %v924_v36 }
 0x214   :  { %2656 = vmatmul.mubr.f32.gmra.mrb[18].mxu1 %v2234_v58  ;;  %2725 = vmatprep.mubr.f32.mxu0 %v2221_v37  ;;  %v2372_v58 = vld [vmem:[#allocation8 + $0x3e0] sm:$0xff]  ;;  %v2373_v37 = vld [vmem:[#allocation8 + $0x3e8] sm:$0xff] }
 0x215   :  { %4324 = vmatpush3.bf16.msra.mxu0 %v4323_v10  ;;  %2800 = vmatprep.mubr.f32.mxu1 %v2223_v2  ;;  %v2341_v10 = vld [vmem:[#allocation8 + $0x2e8] sm:$0xff]  ;;  %v4373_v11 = vpack.c.bf16 %v2373_v37, %v2372_v58  ;;  %v2376_v6 = vld [vmem:[#allocation8 + $0x400] sm:$0xff]  ;;  %v2378_v37 = vld [vmem:[#allocation8 + $0x410] sm:$0xff] }
 0x216   :  { %4356 = vmatpush3.bf16.msra.mxu1 %v4355_v15  ;;  %4326 = vmatprep.subr.bf16.mxu0 %v4325_v61  ;;  %v4339_v15 = vpack.c.bf16 %v2323_v51, %v2322_v50  ;;  %v915_v61 = vsub.s32 4, %v4957_v1  ;;  %v4341_v16 = vpack.c.bf16 %v2341_v10, %v2340_v55  ;;  %v2325_v2 = vld [vmem:[#allocation8 + $0x268] sm:$0xff]  ;;  %v2394_v50 = vld [vmem:[#allocation8 + $0x490] sm:$0xff]  ;;  %v4383_v8 = vpack.c.bf16 %v2377_v5, %v2376_v6  ;;  %v2384_v5 = vld [vmem:[#allocation8 + $0x440] sm:$0xff] }
 0x217   :  { %4358 = vmatprep.subr.bf16.mxu1 %v4357_v4  ;;  %v2356_v4 = vld [vmem:[#allocation8 + $0x360] sm:$0xff]  ;;  %v2426_v51 = vld [vmem:[#allocation8 + $0x590] sm:$0xff]  ;;  %v4523_v55 = vadd.f32 %v4995_v32, %v924_v36  ;;  %v2433_v6 = vld [vmem:[#allocation8 + $0x5c8] sm:$0xff] }
 0x218   :  { %v916_v26 = vrot.slane %v4960_v56, %v915_v61  ;;  %v4375_v28 = vpack.c.bf16 %v2357_v12, %v2356_v4  ;;  %v4520_v56 = vadd.f32 %v4997_v0, %v5018_v30  ;;  %v2222_v30 = vmax.f32 %v4521_v24, 0.0  ;;  %v2429_v4 = vld [vmem:[#allocation8 + $0x5a8] sm:$0xff] }
 0x219   :  { %4328 = vmatpush3.bf16.msra.mxu0 %v4327_v22  ;;  %v2374_v22 = vld [vmem:[#allocation8 + $0x3f0] sm:$0xff]  ;;  %v2238_v12 = vmax.f32 %v4523_v55, 0.0  ;;  %v2387_v55 = vld [vmem:[#allocation8 + $0x458] sm:$0xff] }
 0x21a   :  { %4360 = vmatpush3.bf16.msra.mxu1 %v4359_v23  ;;  %4330 = vmatprep.subr.bf16.mxu0 %v4329_v25  ;;  %v2375_v23 = vld [vmem:[#allocation8 + $0x3f8] sm:$0xff]  ;;  %v4343_v25 = vpack.c.bf16 %v2325_v2, %v2324_v62  ;;  %v4517_v44 = vadd.f32 %v4985_v52, %v916_v26  ;;  %v4519_v54 = vadd.f32 %v4993_v27, %v916_v26  ;;  %v2237_v10 = vmax.f32 %v4520_v56, 0.0  ;;  %v2396_v62 = vld [vmem:[#allocation8 + $0x4a0] sm:$0xff]  ;;  %v2397_v2 = vld [vmem:[#allocation8 + $0x4a8] sm:$0xff] }
 0x21b   :  { %4362 = vmatprep.subr.bf16.mxu1 %v4361_v59  ;;  %v2326_v59 = vld [vmem:[#allocation8 + $0x270] sm:$0xff]  ;;  %v4377_v17 = vpack.c.bf16 %v2375_v23, %v2374_v22  ;;  %v2395_v52 = vld [vmem:[#allocation8 + $0x498] sm:$0xff]  ;;  %v2428_v27 = vld [vmem:[#allocation8 + $0x5a0] sm:$0xff]  ;;  %v4389_v19 = vpack.c.bf16 %v2397_v2, %v2396_v62 }
 0x21c   :  { %v4347_v42 = vpack.c.bf16 %v2327_v34, %v2326_v59  ;;  %v4385_v58 = vpack.c.bf16 %v2395_v52, %v2394_v50  ;;  %v2380_v22 = vld [vmem:[#allocation8 + $0x420] sm:$0xff]  ;;  %v2381_v23 = vld [vmem:[#allocation8 + $0x428] sm:$0xff]  ;;  %v4421_v26 = vpack.c.bf16 %v2429_v4, %v2428_v27  ;;  %v2399_v59 = vld [vmem:[#allocation8 + $0x4b8] sm:$0xff] }
 0x21d   :  { %4332 = vmatpush3.bf16.msra.mxu0 %v4331_v29  ;;  %v2392_v29 = vld [vmem:[#allocation8 + $0x480] sm:$0xff]  ;;  %v2430_v34 = vld [vmem:[#allocation8 + $0x5b0] sm:$0xff]  ;;  %v4391_v36 = vpack.c.bf16 %v2381_v23, %v2380_v22  ;;  %v2417_v50 = vld [vmem:[#allocation8 + $0x548] sm:$0xff] }
 0x21e   :  { %4364 = vmatpush3.bf16.msra.mxu1 %v4363_v43  ;;  %4334 = vmatprep.subr.bf16.mxu0 %v4333_v40  ;;  %v2393_v43 = vld [vmem:[#allocation8 + $0x488] sm:$0xff]  ;;  %v2424_v40 = vld [vmem:[#allocation8 + $0x580] sm:$0xff]  ;;  %v2402_v52 = vld [vmem:[#allocation8 + $0x4d0] sm:$0xff] }
 0x21f   :  { %4366 = vmatprep.subr.bf16.mxu1 %v4365_v46  ;;  %v4379_v46 = vpack.c.bf16 %v2359_v3, %v2358_v35  ;;  %v4381_v20 = vpack.c.bf16 %v2393_v43, %v2392_v29  ;;  %v4413_v47 = vpack.c.bf16 %v2425_v41, %v2424_v40  ;;  %v2431_v35 = vld [vmem:[#allocation8 + $0x5b8] sm:$0xff]  ;;  %v2382_v29 = vld [vmem:[#allocation8 + $0x430] sm:$0xff]  ;;  %v2388_v27 = vld [vmem:[#allocation8 + $0x460] sm:$0xff] }
 0x220   :  { %v2383_v43 = vld [vmem:[#allocation8 + $0x438] sm:$0xff]  ;;  %v2414_v40 = vld [vmem:[#allocation8 + $0x530] sm:$0xff]  ;;  %v4425_v41 = vpack.c.bf16 %v2431_v35, %v2430_v34  ;;  %v2389_v4 = vld [vmem:[#allocation8 + $0x468] sm:$0xff] }
 0x221   :  { %4336 = vmatpush3.bf16.msra.mxu0 %v4335_v48  ;;  %v2408_v48 = vld [vmem:[#allocation8 + $0x500] sm:$0xff]  ;;  %v4395_v24 = vpack.c.bf16 %v2383_v43, %v2382_v29  ;;  %v2438_v22 = vld [vmem:[#allocation8 + $0x5f0] sm:$0xff]  ;;  %v2439_v23 = vld [vmem:[#allocation8 + $0x5f8] sm:$0xff] }
 0x222   :  { %4368 = vmatpush3.bf16.msra.mxu1 %v4367_v49  ;;  %4338 = vmatprep.subr.bf16.mxu0 %v4337_v9  ;;  %v2409_v49 = vld [vmem:[#allocation8 + $0x508] sm:$0xff]  ;;  %v4524_v9 = vadd.f32 %v4999_v38, %v5025_v63  ;;  %v2379_v38 = vld [vmem:[#allocation8 + $0x418] sm:$0xff]  ;;  %v2410_v63 = vld [vmem:[#allocation8 + $0x510] sm:$0xff]  ;;  %v4441_v35 = vpack.c.bf16 %v2439_v23, %v2438_v22 }
 0x223   :  { %4370 = vmatprep.subr.bf16.mxu1 %v4369_v14  ;;  %v2220_v14 = vmax.f32 %v4517_v44, 0.0  ;;  %v4415_v0 = vpack.c.bf16 %v2409_v49, %v2408_v48  ;;  %v4387_v32 = vpack.c.bf16 %v2379_v38, %v2378_v37  ;;  %v2400_v44 = vld [vmem:[#allocation8 + $0x4c0] sm:$0xff]  ;;  %v2385_v48 = vld [vmem:[#allocation8 + $0x448] sm:$0xff]  ;;  %v2419_v37 = vld [vmem:[#allocation8 + $0x558] sm:$0xff] }
 0x224   :  { %v2416_v49 = vld [vmem:[#allocation8 + $0x540] sm:$0xff]  ;;  %v2422_v34 = vld [vmem:[#allocation8 + $0x570] sm:$0xff]  ;;  %v2489_v43 = vld [vmem:[#allocation8 + $0x788] sm:$0xff] }
 0x225   :  { %4340 = vmatpush3.bf16.msra.mxu0 %v4339_v15  ;;  %v2239_v15 = vmax.f32 %v4524_v9, 0.0  ;;  %v2404_v38 = vld [vmem:[#allocation8 + $0x4e0] sm:$0xff]  ;;  %v2461_v22 = vld [vmem:[#allocation8 + $0x6a8] sm:$0xff] }
 0x226   :  { %4372 = vmatpush3.bf16.msra.mxu1 %v4371_v13  ;;  %4342 = vmatprep.subr.bf16.mxu0 %v4341_v16  ;;  %v4417_v13 = vpack.c.bf16 %v2427_v53, %v2426_v51  ;;  %v2411_v16 = vld [vmem:[#allocation8 + $0x518] sm:$0xff]  ;;  %v2434_v53 = vld [vmem:[#allocation8 + $0x5d0] sm:$0xff]  ;;  %v2488_v29 = vld [vmem:[#allocation8 + $0x780] sm:$0xff] }
 0x227   :  { %4374 = vmatprep.subr.bf16.mxu1 %v4373_v11  ;;  %v2236_v11 = vmax.f32 %v4519_v54, 0.0  ;;  %v4419_v18 = vpack.c.bf16 %v2411_v16, %v2410_v63  ;;  %v2403_v51 = vld [vmem:[#allocation8 + $0x4d8] sm:$0xff]  ;;  %v4399_v54 = vpack.c.bf16 %v2385_v48, %v2384_v5  ;;  %v2405_v63 = vld [vmem:[#allocation8 + $0x4e8] sm:$0xff]  ;;  %v2440_v5 = vld [vmem:[#allocation8 + $0x600] sm:$0xff] }
 0x228   :  { %v4405_v2 = vpack.c.bf16 %v2405_v63, %v2404_v38 }
 0x229   :  { %4344 = vmatpush3.bf16.msra.mxu0 %v4343_v25  ;;  %v2412_v25 = vld [vmem:[#allocation8 + $0x520] sm:$0xff] }
 0x22a   :  { %4376 = vmatpush3.bf16.msra.mxu1 %v4375_v28  ;;  %4346 = vmatprep.subr.bf16.mxu0 %v4345_v33  ;;  %v2413_v28 = vld [vmem:[#allocation8 + $0x528] sm:$0xff]  ;;  %v2398_v33 = vld [vmem:[#allocation8 + $0x4b0] sm:$0xff] }
 0x22b   :  { %4378 = vmatprep.subr.bf16.mxu1 %v4377_v17  ;;  %v4423_v17 = vpack.c.bf16 %v2413_v28, %v2412_v25  ;;  %v4393_v3 = vpack.c.bf16 %v2399_v59, %v2398_v33  ;;  %v4407_v25 = vpack.c.bf16 %v2389_v4, %v2388_v27  ;;  %v2390_v33 = vld [vmem:[#allocation8 + $0x470] sm:$0xff]  ;;  %v2391_v59 = vld [vmem:[#allocation8 + $0x478] sm:$0xff] }
 0x22d   :  { %4348 = vmatpush3.bf16.msra.mxu0 %v4347_v42  ;;  %v2415_v42 = vld [vmem:[#allocation8 + $0x538] sm:$0xff] }
 0x22e   :  { %4380 = vmatpush3.bf16.msra.mxu1 %v4379_v46  ;;  %4382 = vmatprep.subr.bf16.mxu0 %v4381_v20  ;;  %v2401_v46 = vld [vmem:[#allocation8 + $0x4c8] sm:$0xff]  ;;  %v2432_v20 = vld [vmem:[#allocation8 + $0x5c0] sm:$0xff]  ;;  %v4427_v56 = vpack.c.bf16 %v2415_v42, %v2414_v40  ;;  %v4411_v40 = vpack.c.bf16 %v2391_v59, %v2390_v33 }
 0x22f   :  { %4414 = vmatprep.subr.bf16.mxu1 %v4413_v47  ;;  %v4397_v47 = vpack.c.bf16 %v2401_v46, %v2400_v44  ;;  %v4429_v9 = vpack.c.bf16 %v2433_v6, %v2432_v20  ;;  %v4477_v44 = vpack.c.bf16 %v2489_v43, %v2488_v29  ;;  %v5049_v46 = vld [vmem:[#allocation7 + $0x8] sm:$0xff]  ;;  %v2476_v29 = vld [vmem:[#allocation8 + $0x720] sm:$0xff] }
 0x230   :  { %2726 = vmatmul.mubr.f32.vlgmr.msra.gmra.mrb[20].mxu0 %v2220_v14  ;;  %v2435_v14 = vld [vmem:[#allocation8 + $0x5d8] sm:$0xff]  ;;  %v932_v20 = vrot.slane %v5049_v46, %v899_v39  ;;  %v940_v6 = vrot.slane %v5049_v46, %v907_v45  ;;  %v2473_v39 = vld [vmem:[#allocation8 + $0x708] sm:$0xff]  ;;  %v2458_v45 = vld [vmem:[#allocation8 + $0x690] sm:$0xff] }
 0x231   :  { %2801 = vmatmul.mubr.f32.vlgmr.msra.gmra.mrb[20].mxu1 %v2222_v30  ;;  %2730 = vmatprep.mubr.f32.mxu0 %v2237_v10  ;;  %v2386_v30 = vld [vmem:[#allocation8 + $0x450] sm:$0xff] }
 0x232   :  { %2805 = vmatprep.mubr.f32.mxu1 %v2239_v15  ;;  %4384 = vmatpush3.bf16.msra.mxu0 %v4383_v8  ;;  %v4431_v8 = vpack.c.bf16 %v2417_v50, %v2416_v49  ;;  %v2418_v10 = vld [vmem:[#allocation8 + $0x550] sm:$0xff]  ;;  %v2436_v15 = vld [vmem:[#allocation8 + $0x5e0] sm:$0xff]  ;;  %v4403_v16 = vpack.c.bf16 %v2387_v55, %v2386_v30  ;;  %v2441_v50 = vld [vmem:[#allocation8 + $0x608] sm:$0xff] }
 0x233   :  { %4416 = vmatpush3.bf16.msra.mxu1 %v4415_v0  ;;  %4386 = vmatprep.subr.bf16.mxu0 %v4385_v58  ;;  %v4401_v0 = vpack.c.bf16 %v2403_v51, %v2402_v52  ;;  %v4433_v58 = vpack.c.bf16 %v2435_v14, %v2434_v53  ;;  %v4435_v62 = vpack.c.bf16 %v2419_v37, %v2418_v10  ;;  %v2472_v52 = vld [vmem:[#allocation8 + $0x700] sm:$0xff] }
 0x234   :  { %2731 = vmatmul.mubr.f32.gmra.mrb[22].mxu0 %v2236_v11  ;;  %4418 = vmatprep.subr.bf16.mxu1 %v4417_v13  ;;  %v2437_v13 = vld [vmem:[#allocation8 + $0x5e8] sm:$0xff]  ;;  %v2420_v11 = vld [vmem:[#allocation8 + $0x560] sm:$0xff]  ;;  %v4447_v10 = vpack.c.bf16 %v2441_v50, %v2440_v5  ;;  %v2446_v5 = vld [vmem:[#allocation8 + $0x630] sm:$0xff] }
 0x235   :  { %2806 = vmatmul.mubr.f32.gmra.mrb[22].mxu1 %v2238_v12  ;;  %v2421_v12 = vld [vmem:[#allocation8 + $0x568] sm:$0xff]  ;;  %v2479_v50 = vld [vmem:[#allocation8 + $0x738] sm:$0xff] }
 0x236   :  { %4388 = vmatpush3.bf16.msra.mxu0 %v4387_v32  ;;  %v4437_v32 = vpack.c.bf16 %v2437_v13, %v2436_v15 }
 0x237   :  { %4420 = vmatpush3.bf16.msra.mxu1 %v4419_v18  ;;  %4390 = vmatprep.subr.bf16.mxu0 %v4389_v19  ;;  %v2406_v18 = vld [vmem:[#allocation8 + $0x4f0] sm:$0xff]  ;;  %v2407_v19 = vld [vmem:[#allocation8 + $0x4f8] sm:$0xff] }
 0x238   :  { %4422 = vmatprep.subr.bf16.mxu1 %v4421_v26  ;;  %v4439_v26 = vpack.c.bf16 %v2421_v12, %v2420_v11  ;;  %v4409_v28 = vpack.c.bf16 %v2407_v19, %v2406_v18  ;;  %v2475_v18 = vld [vmem:[#allocation8 + $0x718] sm:$0xff]  ;;  %v2460_v19 = vld [vmem:[#allocation8 + $0x6a0] sm:$0xff] }
 0x23a   :  { %4392 = vmatpush3.bf16.msra.mxu0 %v4391_v36  ;;  %v2423_v36 = vld [vmem:[#allocation8 + $0x578] sm:$0xff] }
 0x23b   :  { %4424 = vmatpush3.bf16.msra.mxu1 %v4423_v17  ;;  %4394 = vmatprep.subr.bf16.mxu0 %v4393_v3  ;;  %v2456_v17 = vld [vmem:[#allocation8 + $0x680] sm:$0xff]  ;;  %v2457_v3 = vld [vmem:[#allocation8 + $0x688] sm:$0xff] }
 0x23c   :  { %4426 = vmatprep.subr.bf16.mxu1 %v4425_v41  ;;  %v4443_v41 = vpack.c.bf16 %v2423_v36, %v2422_v34  ;;  %v4445_v42 = vpack.c.bf16 %v2457_v3, %v2456_v17  ;;  %v4453_v36 = vpack.c.bf16 %v2461_v22, %v2460_v19  ;;  %v2444_v17 = vld [vmem:[#allocation8 + $0x620] sm:$0xff]  ;;  %v2445_v3 = vld [vmem:[#allocation8 + $0x628] sm:$0xff] }
 0x23e   :  { %4396 = vmatpush3.bf16.msra.mxu0 %v4395_v24  ;;  %v936_v24 = vrot.slane %v5049_v46, %v903_v21  ;;  %v2491_v21 = vld [vmem:[#allocation8 + $0x798] sm:$0xff] }
 0x23f   :  { %4428 = vmatpush3.bf16.msra.mxu1 %v4427_v56  ;;  %4398 = vmatprep.subr.bf16.mxu0 %v4397_v47  ;;  %v944_v56 = vrot.slane %v5049_v46, %v911_v57  ;;  %v4479_v57 = vpack.c.bf16 %v2473_v39, %v2472_v52  ;;  %v2464_v52 = vld [vmem:[#allocation8 + $0x6c0] sm:$0xff]  ;;  %v2465_v39 = vld [vmem:[#allocation8 + $0x6c8] sm:$0xff] }
 0x240   :  { %4430 = vmatprep.subr.bf16.mxu1 %v4429_v9 }
 0x242   :  { %4400 = vmatpush3.bf16.msra.mxu0 %v4399_v54  ;;  %v2459_v54 = vld [vmem:[#allocation8 + $0x698] sm:$0xff] }
 0x243   :  { %4432 = vmatpush3.bf16.msra.mxu1 %v4431_v8  ;;  %4402 = vmatprep.subr.bf16.mxu0 %v4401_v0  ;;  %v2490_v0 = vld [vmem:[#allocation8 + $0x790] sm:$0xff] }
 0x244   :  { %4434 = vmatprep.subr.bf16.mxu1 %v4433_v58  ;;  %v2442_v58 = vld [vmem:[#allocation8 + $0x610] sm:$0xff]  ;;  %v4481_v12 = vpack.c.bf16 %v2491_v21, %v2490_v0  ;;  %v2449_v0 = vld [vmem:[#allocation8 + $0x648] sm:$0xff]  ;;  %v2480_v21 = vld [vmem:[#allocation8 + $0x740] sm:$0xff] }
 0x246   :  { %4404 = vmatpush3.bf16.msra.mxu0 %v4403_v16  ;;  %v4449_v16 = vpack.c.bf16 %v2459_v54, %v2458_v45  ;;  %v4461_v54 = vpack.c.bf16 %v2465_v39, %v2464_v52 }
 0x247   :  { %4436 = vmatpush3.bf16.msra.mxu1 %v4435_v62  ;;  %4406 = vmatprep.subr.bf16.mxu0 %v4405_v2  ;;  %v2443_v62 = vld [vmem:[#allocation8 + $0x618] sm:$0xff]  ;;  %v2474_v2 = vld [vmem:[#allocation8 + $0x710] sm:$0xff] }
 0x248   :  { %4438 = vmatprep.subr.bf16.mxu1 %v4437_v32  ;;  %v4451_v33 = vpack.c.bf16 %v2443_v62, %v2442_v58  ;;  %v2498_v58 = vld [vmem:[#allocation8 + $0x7d0] sm:$0xff] }
 0x249   :  { %v2482_v62 = vld [vmem:[#allocation8 + $0x750] sm:$0xff] }
 0x24a   :  { %4408 = vmatpush3.bf16.msra.mxu0 %v4407_v25  ;;  %v2492_v25 = vld [vmem:[#allocation8 + $0x7a0] sm:$0xff] }
 0x24b   :  { %4440 = vmatpush3.bf16.msra.mxu1 %v4439_v26  ;;  %4410 = vmatprep.subr.bf16.mxu0 %v4409_v28  ;;  %v2493_v26 = vld [vmem:[#allocation8 + $0x7a8] sm:$0xff] }
 0x24c   :  { %4442 = vmatprep.subr.bf16.mxu1 %v4441_v35  ;;  %v4483_v35 = vpack.c.bf16 %v2475_v18, %v2474_v2 }
 0x24e   :  { %4412 = vmatpush3.bf16.msra.mxu0 %v4411_v40  ;;  %v4485_v40 = vpack.c.bf16 %v2493_v26, %v2492_v25  ;;  %v2453_v25 = vld [vmem:[#allocation8 + $0x668] sm:$0xff]  ;;  %v2484_v26 = vld [vmem:[#allocation8 + $0x760] sm:$0xff] }
 0x24f   :  { %4444 = vmatpush3.bf16.msra.mxu1 %v4443_v41  ;;  %4446 = vmatprep.subr.bf16.mxu0 %v4445_v42  ;;  %v2477_v41 = vld [vmem:[#allocation8 + $0x728] sm:$0xff]  ;;  %v2462_v42 = vld [vmem:[#allocation8 + $0x6b0] sm:$0xff] }
 0x250   :  { %4478 = vmatprep.subr.bf16.mxu1 %v4477_v44  ;;  %v2463_v44 = vld [vmem:[#allocation8 + $0x6b8] sm:$0xff] }
 0x25e   :  { %v1743_v47 = vpop.f32.mrb[8].mxu0 }
 0x25f   :  { %v4525_v48 = vadd.f32 %v1743_v47, %v932_v20  ;;  %v1897_v49 = vpop.f32.mrb[8].mxu1  ;;  %v1745_v9 = vpop.f32.mrb[9].mxu0  ;;  %v4457_v47 = vpack.c.bf16 %v2463_v44, %v2462_v42  ;;  %v2486_v42 = vld [vmem:[#allocation8 + $0x770] sm:$0xff]  ;;  %v2487_v44 = vld [vmem:[#allocation8 + $0x778] sm:$0xff] }
 0x260   :  { %v4529_v51 = vadd.f32 %v1897_v49, %v940_v6  ;;  %v4526_v53 = vadd.f32 %v1745_v9, %v936_v24  ;;  %v1899_v14 = vpop.f32.mrb[9].mxu1  ;;  %v2478_v49 = vld [vmem:[#allocation8 + $0x730] sm:$0xff] }
 0x261   :  { %v4530_v8 = vadd.f32 %v1899_v14, %v944_v56  ;;  %v2224_v37 = vmax.f32 %v4525_v48, 0.0  ;;  %v2447_v48 = vld [vmem:[#allocation8 + $0x638] sm:$0xff]  ;;  %v4491_v45 = vpack.c.bf16 %v2479_v50, %v2478_v49 }
 0x262   :  { %v2225_v30 = vmax.f32 %v4526_v53, 0.0  ;;  %v1749_v55 = vpop.f32.mrb[10].mxu0  ;;  %v2226_v27 = vmax.f32 %v4529_v51, 0.0  ;;  %v2496_v51 = vld [vmem:[#allocation8 + $0x7c0] sm:$0xff]  ;;  %v2497_v53 = vld [vmem:[#allocation8 + $0x7c8] sm:$0xff]  ;;  %v4459_v14 = vpack.c.bf16 %v2447_v48, %v2446_v5  ;;  %v960_v5 = vrot.slane %v5049_v46, %v927_v31 }
 0x263   :  { %v2227_v38 = vmax.f32 %v4530_v8, 0.0  ;;  %v4527_v63 = vadd.f32 %v1749_v55, %v932_v20  ;;  %v1903_v15 = vpop.f32.mrb[10].mxu1  ;;  %v1751_v13 = vpop.f32.mrb[11].mxu0  ;;  %v2494_v20 = vld [vmem:[#allocation8 + $0x7b0] sm:$0xff]  ;;  %v2448_v8 = vld [vmem:[#allocation8 + $0x640] sm:$0xff]  ;;  %v2481_v55 = vld [vmem:[#allocation8 + $0x748] sm:$0xff] }
 0x264   :  { %v4531_v4 = vadd.f32 %v1903_v15, %v940_v6  ;;  %v4528_v11 = vadd.f32 %v1751_v13, %v936_v24  ;;  %v1905_v32 = vpop.f32.mrb[11].mxu1  ;;  %2875 = vmatprep.mubr.f32.mxu0 %v2225_v30  ;;  %v2495_v6 = vld [vmem:[#allocation8 + $0x7b8] sm:$0xff]  ;;  %v4455_v24 = vpack.c.bf16 %v2445_v3, %v2444_v17  ;;  %v4493_v30 = vpack.c.bf16 %v2497_v53, %v2496_v51  ;;  %v2450_v13 = vld [vmem:[#allocation8 + $0x650] sm:$0xff] }
 0x265   :  { %v4532_v23 = vadd.f32 %v1905_v32, %v944_v56  ;;  %2950 = vmatprep.mubr.f32.mxu1 %v2227_v38  ;;  %2876 = vmatmul.mubr.f32.vlgmr.msra.gmra.mrb[24].mxu0 %v2224_v37  ;;  %v2240_v59 = vmax.f32 %v4527_v63, 0.0  ;;  %v4487_v56 = vpack.c.bf16 %v2477_v41, %v2476_v29  ;;  %v4489_v9 = vpack.c.bf16 %v2495_v6, %v2494_v20  ;;  %v2499_v37 = vld [vmem:[#allocation8 + $0x7d8] sm:$0xff]  ;;  %v2500_v32 = vld [vmem:[#allocation8 + $0x7e0] sm:$0xff] }
 0x266   :  { %v2241_v28 = vmax.f32 %v4528_v11, 0.0  ;;  %2951 = vmatmul.mubr.f32.vlgmr.msra.gmra.mrb[24].mxu1 %v2226_v27  ;;  %4448 = vmatpush3.bf16.msra.mxu0 %v4447_v10  ;;  %v2242_v43 = vmax.f32 %v4531_v4, 0.0  ;;  %v2466_v10 = vld [vmem:[#allocation8 + $0x6d0] sm:$0xff]  ;;  %v4463_v38 = vpack.c.bf16 %v2449_v0, %v2448_v8  ;;  %v4495_v63 = vpack.c.bf16 %v2481_v55, %v2480_v21  ;;  %v2483_v27 = vld [vmem:[#allocation8 + $0x758] sm:$0xff]  ;;  %v2468_v4 = vld [vmem:[#allocation8 + $0x6e0] sm:$0xff] }
 0x267   :  { %v2243_v34 = vmax.f32 %v4532_v23, 0.0  ;;  %4480 = vmatpush3.bf16.msra.mxu1 %v4479_v57  ;;  %4450 = vmatprep.subr.bf16.mxu0 %v4449_v16  ;;  %v2467_v57 = vld [vmem:[#allocation8 + $0x6d8] sm:$0xff]  ;;  %v4497_v2 = vpack.c.bf16 %v2499_v37, %v2498_v58  ;;  %v2469_v11 = vld [vmem:[#allocation8 + $0x6e8] sm:$0xff]  ;;  %v4499_v19 = vpack.c.bf16 %v2483_v27, %v2482_v62  ;;  %v2452_v23 = vld [vmem:[#allocation8 + $0x660] sm:$0xff]  ;;  %v4507_v6 = vpack.c.bf16 %v2487_v44, %v2486_v42 }
 0x268   :  { %2880 = vmatprep.mubr.f32.mxu0 %v2241_v28  ;;  %4482 = vmatprep.subr.bf16.mxu1 %v4481_v12  ;;  %v4465_v15 = vpack.c.bf16 %v2467_v57, %v2466_v10  ;;  %v2451_v16 = vld [vmem:[#allocation8 + $0x658] sm:$0xff]  ;;  %v2501_v12 = vld [vmem:[#allocation8 + $0x7e8] sm:$0xff]  ;;  %v4469_v22 = vpack.c.bf16 %v2469_v11, %v2468_v4  ;;  %v4471_v17 = vpack.c.bf16 %v2453_v25, %v2452_v23 }
 0x269   :  { %2955 = vmatprep.mubr.f32.mxu1 %v2243_v34  ;;  %2881 = vmatmul.mubr.f32.gmra.mrb[26].mxu0 %v2240_v59  ;;  %v4467_v18 = vpack.c.bf16 %v2451_v16, %v2450_v13  ;;  %v4501_v28 = vpack.c.bf16 %v2501_v12, %v2500_v32  ;;  %v2470_v59 = vld [vmem:[#allocation8 + $0x6f0] sm:$0xff]  ;;  %v2471_v34 = vld [vmem:[#allocation8 + $0x6f8] sm:$0xff] }
 0x26a   :  { %2956 = vmatmul.mubr.f32.gmra.mrb[26].mxu1 %v2242_v43  ;;  %4452 = vmatpush3.bf16.msra.mxu0 %v4451_v33  ;;  %v2485_v33 = vld [vmem:[#allocation8 + $0x768] sm:$0xff]  ;;  %v4473_v29 = vpack.c.bf16 %v2471_v34, %v2470_v59  ;;  %v2454_v43 = vld [vmem:[#allocation8 + $0x670] sm:$0xff] }
 0x26b   :  { %4484 = vmatpush3.bf16.msra.mxu1 %v4483_v35  ;;  %4454 = vmatprep.subr.bf16.mxu0 %v4453_v36  ;;  %v2502_v35 = vld [vmem:[#allocation8 + $0x7f0] sm:$0xff]  ;;  %v2503_v36 = vld [vmem:[#allocation8 + $0x7f8] sm:$0xff]  ;;  %v4503_v3 = vpack.c.bf16 %v2485_v33, %v2484_v26 }
 0x26c   :  { %4486 = vmatprep.subr.bf16.mxu1 %v4485_v40  ;;  %v2455_v40 = vld [vmem:[#allocation8 + $0x678] sm:$0xff]  ;;  %v4505_v41 = vpack.c.bf16 %v2503_v36, %v2502_v35 }
 0x26d   :  { %v4475_v20 = vpack.c.bf16 %v2455_v40, %v2454_v43 }
 0x26e   :  { %4456 = vmatpush3.bf16.msra.mxu0 %v4455_v24  ;;  %v948_v24 = vrot.slane %v5049_v46, %v915_v61 }
 0x26f   :  { %4488 = vmatpush3.bf16.msra.mxu1 %v4487_v56  ;;  %4458 = vmatprep.subr.bf16.mxu0 %v4457_v47  ;;  %v956_v56 = vrot.slane %v5049_v46, %v923_v7  ;;  %v952_v47 = vrot.slane %v5049_v46, %v919_v60 }
 0x270   :  { %4490 = vmatprep.subr.bf16.mxu1 %v4489_v9 }
 0x272   :  { %4460 = vmatpush3.bf16.msra.mxu0 %v4459_v14 }
 0x273   :  { %4492 = vmatpush3.bf16.msra.mxu1 %v4491_v45  ;;  %4462 = vmatprep.subr.bf16.mxu0 %v4461_v54 }
 0x274   :  { %4494 = vmatprep.subr.bf16.mxu1 %v4493_v30 }
 0x276   :  { %4464 = vmatpush3.bf16.msra.mxu0 %v4463_v38  ;;  %v3148_v38 = vld [vmem:[#allocation10] ss:$0 sm:$0xff] }
 0x277   :  { %4496 = vmatpush3.bf16.msra.mxu1 %v4495_v63  ;;  %4466 = vmatprep.subr.bf16.mxu0 %v4465_v15 }
 0x278   :  { %4498 = vmatprep.subr.bf16.mxu1 %v4497_v2 }
 0x27a   :  { %4468 = vmatpush3.bf16.msra.mxu0 %v4467_v18 }
 0x27b   :  { %4500 = vmatpush3.bf16.msra.mxu1 %v4499_v19  ;;  %4470 = vmatprep.subr.bf16.mxu0 %v4469_v22 }
 0x27c   :  { %4502 = vmatprep.subr.bf16.mxu1 %v4501_v28 }
 0x27e   :  { %4472 = vmatpush3.bf16.msra.mxu0 %v4471_v17 }
 0x27f   :  { %4504 = vmatpush3.bf16.msra.mxu1 %v4503_v3  ;;  %4474 = vmatprep.subr.bf16.mxu0 %v4473_v29 }
 0x280   :  { %4506 = vmatprep.subr.bf16.mxu1 %v4505_v41 }
 0x282   :  { %4476 = vmatpush3.bf16.msra.mxu0 %v4475_v20 }
 0x283   :  { %4508 = vmatpush3.bf16.msra.mxu1 %v4507_v6 }
 0x2c2   :  { %v2051_v48 = vpop.f32.mrb[12].mxu0 }
 0x2c3   :  { %v4533_v49 = vadd.f32 %v2051_v48, %v948_v24  ;;  %v2205_v9 = vpop.f32.mrb[12].mxu1  ;;  %v2053_v50 = vpop.f32.mrb[13].mxu0 }
 0x2c4   :  { %v4537_v52 = vadd.f32 %v2205_v9, %v956_v56  ;;  %v4534_v39 = vadd.f32 %v2053_v50, %v952_v47  ;;  %v2207_v51 = vpop.f32.mrb[13].mxu1 }
 0x2c5   :  { %v4538_v61 = vadd.f32 %v2207_v51, %v960_v5  ;;  %v2228_v45 = vmax.f32 %v4533_v49, 0.0 }
 0x2c6   :  { %v2229_v53 = vmax.f32 %v4534_v39, 0.0  ;;  %v2057_v14 = vpop.f32.mrb[14].mxu0  ;;  %v2230_v60 = vmax.f32 %v4537_v52, 0.0 }
 0x2c7   :  { %v2231_v7 = vmax.f32 %v4538_v61, 0.0  ;;  %v4535_v54 = vadd.f32 %v2057_v14, %v948_v24  ;;  %v2211_v8 = vpop.f32.mrb[14].mxu1  ;;  %v2059_v0 = vpop.f32.mrb[15].mxu0 }
 0x2c8   :  { %v4539_v21 = vadd.f32 %v2211_v8, %v956_v56  ;;  %v4536_v1 = vadd.f32 %v2059_v0, %v952_v47  ;;  %v2213_v30 = vpop.f32.mrb[15].mxu1  ;;  %3025 = vmatprep.mubr.f32.mxu0 %v2229_v53 }
 0x2c9   :  { %v4540_v31 = vadd.f32 %v2213_v30, %v960_v5  ;;  %3100 = vmatprep.mubr.f32.mxu1 %v2231_v7  ;;  %3026 = vmatmul.mubr.f32.vlgmr.msra.gmra.mrb[28].mxu0 %v2228_v45  ;;  %v2244_v55 = vmax.f32 %v4535_v54, 0.0 }
 0x2ca   :  { %v2245_v46 = vmax.f32 %v4536_v1, 0.0  ;;  %3101 = vmatmul.mubr.f32.vlgmr.msra.gmra.mrb[28].mxu1 %v2230_v60  ;;  %v2246_v57 = vmax.f32 %v4539_v21, 0.0 }
 0x2cb   :  { %v2247_v10 = vmax.f32 %v4540_v31, 0.0 }
 0x2cc   :  { %3030 = vmatprep.mubr.f32.mxu0 %v2245_v46 }
 0x2cd   :  { %3105 = vmatprep.mubr.f32.mxu1 %v2247_v10  ;;  %3031 = vmatmul.mubr.f32.gmra.mrb[30].mxu0 %v2244_v55 }
 0x2ce   :  { %3106 = vmatmul.mubr.f32.gmra.mrb[30].mxu1 %v2246_v57 }
 0x2e2   :  { %v3181_v58 = vpop.f32.mrb[16].mxu0 }
 0x2e3   :  { %v3219_v37 = vpop.f32.mrb[16].mxu1  ;;  %v3182_v63 = vpop.f32.mrb[17].mxu0 }
 0x2e4   :  { %v3183_v15 = vadd.f32 %v3182_v63, %v3181_v58  ;;  %v3220_v13 = vpop.f32.mrb[17].mxu1 }
 0x2e5   :  { %v3221_v16 = vadd.f32 %v3220_v13, %v3219_v37 }
 0x2e6   :  { %v2578_v62 = vadd.f32 %v3183_v15, %v3148_v38  ;;  %v3184_v2 = vpop.f32.mrb[18].mxu0 }
 0x2e7   :  { %v3222_v27 = vpop.f32.mrb[18].mxu1  ;;  %v3185_v4 = vpop.f32.mrb[19].mxu0 }
 0x2e8   :  { %v2653_v11 = vadd.f32 %v3221_v16, %v2578_v62  ;;  %v3186_v32 = vadd.f32 %v3185_v4, %v3184_v2  ;;  %v3223_v12 = vpop.f32.mrb[19].mxu1 }
 0x2e9   :  { %v3224_v18 = vadd.f32 %v3223_v12, %v3222_v27 }
 0x2ea   :  { %v2583_v19 = vadd.f32 %v3186_v32, %v3148_v38 }
 0x2ec   :  { %v2658_v22 = vadd.f32 %v3224_v18, %v2583_v19 }
 0x303   :  { %v3257_v23 = vpop.f32.mrb[20].mxu0 }
 0x304   :  { %v3295_v25 = vpop.f32.mrb[20].mxu1  ;;  %v3258_v26 = vpop.f32.mrb[21].mxu0 }
 0x305   :  { %v3259_v28 = vadd.f32 %v3258_v26, %v3257_v23  ;;  %v3296_v33 = vpop.f32.mrb[21].mxu1 }
 0x306   :  { %v3297_v59 = vadd.f32 %v3296_v33, %v3295_v25 }
 0x307   :  { %v2728_v34 = vadd.f32 %v3259_v28, %v2653_v11  ;;  %v3260_v35 = vpop.f32.mrb[22].mxu0 }
 0x308   :  { %v3298_v36 = vpop.f32.mrb[22].mxu1  ;;  %v3261_v17 = vpop.f32.mrb[23].mxu0 }
 0x309   :  { %v2803_v3 = vadd.f32 %v3297_v59, %v2728_v34  ;;  %v3262_v29 = vadd.f32 %v3261_v17, %v3260_v35  ;;  %v3299_v43 = vpop.f32.mrb[23].mxu1 }
 0x30a   :  { %v3300_v40 = vadd.f32 %v3299_v43, %v3298_v36 }
 0x30b   :  { %v2733_v41 = vadd.f32 %v3262_v29, %v2658_v22 }
 0x30d   :  { %v2808_v42 = vadd.f32 %v3300_v40, %v2733_v41 }
 0x338   :  { %v3333_v44 = vpop.f32.mrb[24].mxu0 }
 0x339   :  { %v3371_v20 = vpop.f32.mrb[24].mxu1  ;;  %v3334_v6 = vpop.f32.mrb[25].mxu0 }
 0x33a   :  { %v3335_v24 = vadd.f32 %v3334_v6, %v3333_v44  ;;  %v3372_v56 = vpop.f32.mrb[25].mxu1 }
 0x33b   :  { %v3373_v47 = vadd.f32 %v3372_v56, %v3371_v20 }
 0x33c   :  { %v2878_v5 = vadd.f32 %v3335_v24, %v2803_v3  ;;  %v3336_v48 = vpop.f32.mrb[26].mxu0 }
 0x33d   :  { %v3374_v49 = vpop.f32.mrb[26].mxu1  ;;  %v3337_v9 = vpop.f32.mrb[27].mxu0 }
 0x33e   :  { %v2953_v50 = vadd.f32 %v3373_v47, %v2878_v5  ;;  %v3338_v52 = vadd.f32 %v3337_v9, %v3336_v48  ;;  %v3375_v39 = vpop.f32.mrb[27].mxu1 }
 0x33f   :  { %v3376_v51 = vadd.f32 %v3375_v39, %v3374_v49 }
 0x340   :  { %v2883_v61 = vadd.f32 %v3338_v52, %v2808_v42 }
 0x342   :  { %v2958_v53 = vadd.f32 %v3376_v51, %v2883_v61 }
 0x39c   :  { %v3409_v14 = vpop.f32.mrb[28].mxu0 }
 0x39d   :  { %v3447_v45 = vpop.f32.mrb[28].mxu1  ;;  %v3410_v7 = vpop.f32.mrb[29].mxu0 }
 0x39e   :  { %v3411_v54 = vadd.f32 %v3410_v7, %v3409_v14  ;;  %v3448_v8 = vpop.f32.mrb[29].mxu1 }
 0x39f   :  { %v3449_v0 = vadd.f32 %v3448_v8, %v3447_v45 }
 0x3a0   :  { %v3028_v60 = vadd.f32 %v3411_v54, %v2953_v50  ;;  %v3412_v21 = vpop.f32.mrb[30].mxu0 }
 0x3a1   :  { %v3450_v1 = vpop.f32.mrb[30].mxu1  ;;  %v3413_v30 = vpop.f32.mrb[31].mxu0 }
 0x3a2   :  { %v3103_v31 = vadd.f32 %v3449_v0, %v3028_v60  ;;  %v3414_v46 = vadd.f32 %v3413_v30, %v3412_v21  ;;  %v3451_v55 = vpop.f32.mrb[31].mxu1 }
 0x3a3   :  { %v3452_v10 = vadd.f32 %v3451_v55, %v3450_v1 }
 0x3a4   :  { %3111 = vst [vmem:[#allocation11] sm:$0xff] %v3103_v31  ;;  %v3033_v57 = vadd.f32 %v3414_v46, %v2958_v53 }
 0x3a6   :  { %v3108_v58 = vadd.f32 %v3452_v10, %v3033_v57 }
 0x3a8   :  { %3112 = vst [vmem:[#allocation11 + $0x8] sm:$0xff] %v3108_v58 }
 0x3a9   :  { %4713 = shalt.err (!%p4710_p2)
}
 0x3aa   :  { %s4714_s10 = scalar_lea.hbm %s5095_s5, 256 }
 0x3ab   :  { %p4715_p3 = scmp.ne.s32.totalorder %s5095_s5, %s4714_s10  ;;  %p4718_p4 = scmp.lt.u32.totalorder %s4714_s10, %s5095_s5 }
 0x3ad   :  { %p4720_p5 = pnand %p4718_p4, %p4715_p3 }
 0x3af   :  { %4723 = shalt.err (!%p4720_p5)
}
 0x3b0   :  { %3124 = dma.vmem_to_hbm [thread:$0]  %s3119_s6, 256, %s5095_s5, [#allocation4], %s4734_s29, %s4734_s29, %s4736_s1  }
 0x3b1   :  { %4730 = dma.done.wait [#allocation4], 256  }
 0x3b2   :  { %4731 = vsyncadd [#allocation4], 4294967040 }
 0x3b3   :  { %3128 = vsyncpa [#allocation3], 1 }
 0x3b4   :  { %3129 = vsyncpa [#allocation6], 1 }
 0x3b5   :  { %3130 = vsyncpa [#allocation9], 1 }
 0x3b6   :  { %3131 = vsyncpa [#allocation4], 1 }

// kernel: tpu_custom_call.1
= control target key start
LH: loop header
LB: loop body
LE: loop exit
PB: predicated region body
PF: predicated region fallthrough
CT: control target
= control target key end

     0   :  { %10 = vsyncpa [#allocation3], 0  ;;  %s5090_s0 = inlined_call_operand.hbm [shape: f32[16,400], index: 0, kind: input, shape index: {}]   ;;  %s5091_s1 = inlined_call_operand.hbm [shape: f32[400,2048], index: 1, kind: input, shape index: {}]   ;;  %s5092_s2 = inlined_call_operand.hbm [shape: f32[1,2048], index: 2, kind: input, shape index: {}]   ;;  %s5093_s3 = inlined_call_operand.hbm [shape: f32[2048,128], index: 3, kind: input, shape index: {}]   ;;  %s5094_s4 = inlined_call_operand.hbm [shape: f32[1,128], index: 4, kind: input, shape index: {}]   ;;  %s5095_s5 = inlined_call_operand.hbm [shape: f32[16,128], index: 5, kind: output, shape index: {}]  }
   0x1   :  { %11 = vsyncpa [#allocation6], 0 }
   0x2   :  { %12 = vsyncpa [#allocation9], 0 }
   0x3   :  { %13 = vsyncpa [#allocation4], 0  ;;  %s4732_s18 = smov [#allocation5]   ;;  %s4592_s22 = scalar_lea.hbm %s5091_s1, 102400 }
   0x4   :  { %s31_s19 = sshll.u32 %s4732_s18, 4  ;;  %p4593_p0 = scmp.ne.s32.totalorder %s5091_s1, %s4592_s22  ;;  %s32_s19 = int_to_ptr.vmem [resolvable:$true] %s31_s19 }
   0x5   :  { %p4596_p1 = scmp.lt.u32.totalorder %s4592_s22, %s5091_s1 }
   0x7   :  { %p4598_p2 = pnand %p4596_p1, %p4593_p0 }
   0x9   :  { %4601 = shalt.err (!%p4598_p2)
}
   0xa   :  { %s4602_s27 = scalar_lea.vmem %s32_s19, 102400  ;;  %p4607_p4 = scmp.lt.s32.totalorder %s32_s19, %s32_s19 }
   0xb   :  { %p4603_p3 = scmp.ne.s32.totalorder %s32_s19, %s4602_s27  ;;  %p4608_p5 = scmp.lt.s32.totalorder %s4602_s27, %s4602_s27 }
   0xd   :  { %p4609_p6 = por %p4608_p5, %p4607_p4 }
   0xf   :  { %p4610_p7 = pnand %p4609_p6, %p4603_p3 }
  0x11   :  { %4613 = shalt.err (!%p4610_p7)
}
  0x12   :  { %s4733_s28 = smov 2048   ;;  %s4734_s29 = smov 128  }
  0x13   :  { %37 = dma.hbm_to_vmem [thread:$0]  %s5091_s1, 102400, %s32_s19, [#allocation6], %s4733_s28, %s4733_s28, %s4734_s29  }
  0x14   :  { %s4735_s7 = smov [#allocation8]   ;;  %s4614_s11 = scalar_lea.hbm %s5093_s3, 32768 }
  0x15   :  { %s53_s8 = sshll.u32 %s4735_s7, 4  ;;  %p4615_p8 = scmp.ne.s32.totalorder %s5093_s3, %s4614_s11  ;;  %s54_s8 = int_to_ptr.vmem [resolvable:$true] %s53_s8 }
  0x16   :  { %p4618_p9 = scmp.lt.u32.totalorder %s4614_s11, %s5093_s3 }
  0x18   :  { %p4620_p10 = pnand %p4618_p9, %p4615_p8 }
  0x1a   :  { %4623 = shalt.err (!%p4620_p10)
}
  0x1b   :  { %s4624_s16 = scalar_lea.vmem %s54_s8, 32768  ;;  %p4629_p12 = scmp.lt.s32.totalorder %s54_s8, %s54_s8 }
  0x1c   :  { %p4625_p11 = scmp.ne.s32.totalorder %s54_s8, %s4624_s16  ;;  %p4630_p13 = scmp.lt.s32.totalorder %s4624_s16, %s4624_s16 }
  0x1e   :  { %p4631_p0 = por %p4630_p13, %p4629_p12 }
  0x20   :  { %p4632_p1 = pnand %p4631_p0, %p4625_p11 }
  0x22   :  { %4635 = shalt.err (!%p4632_p1)
}
  0x23   :  { %s4736_s1 = smov 8   ;;  %s4737_s19 = smov [#allocation2]  }
  0x24   :  { %59 = dma.hbm_to_vmem [thread:$0]  %s5093_s3, 32768, %s54_s8, [#allocation9], %s4734_s29, %s4734_s29, %s4736_s1  }
  0x25   :  { %s19_s20 = sshll.u32 %s4737_s19, 4  ;;  %s4636_s23 = scalar_lea.hbm %s5090_s0, 1024  ;;  %s20_s20 = int_to_ptr.vmem [resolvable:$true] %s19_s20 }
  0x26   :  { %p4637_p2 = scmp.ne.s32.totalorder %s5090_s0, %s4636_s23  ;;  %p4640_p3 = scmp.lt.u32.totalorder %s4636_s23, %s5090_s0 }
  0x28   :  { %p4642_p4 = pnand %p4640_p3, %p4637_p2 }
  0x2a   :  { %4645 = shalt.err (!%p4642_p4)
}
  0x2b   :  { %s4646_s28 = scalar_lea.vmem %s20_s20, 1024  ;;  %p4651_p6 = scmp.lt.s32.totalorder %s20_s20, %s20_s20 }
  0x2c   :  { %p4647_p5 = scmp.ne.s32.totalorder %s20_s20, %s4646_s28  ;;  %p4652_p7 = scmp.lt.s32.totalorder %s4646_s28, %s4646_s28 }
  0x2e   :  { %p4653_p8 = por %p4652_p7, %p4651_p6 }
  0x30   :  { %p4654_p9 = pnand %p4653_p8, %p4647_p5 }
  0x32   :  { %4657 = shalt.err (!%p4654_p9)
}
  0x33   :  { %s4738_s3 = smov 512   ;;  %s4739_s30 = smov 32  }
  0x34   :  { %25 = dma.hbm_to_vmem [thread:$0]  %s5090_s0, 1024, %s20_s20, [#allocation3], %s4738_s3, %s4738_s3, %s4739_s30  }
  0x35   :  { %s4740_s8 = smov [#allocation7]   ;;  %s4741_s10 = smov [#allocation10]  }
  0x36   :  { %s44_s9 = sshll.u32 %s4740_s8, 4  ;;  %s66_s11 = sshll.u32 %s4741_s10, 4  ;;  %s45_s9 = int_to_ptr.vmem [resolvable:$true] %s44_s9  ;;  %s67_s11 = int_to_ptr.vmem [resolvable:$true] %s66_s11 }
  0x37   :  { %s4658_s14 = scalar_lea.hbm %s5092_s2, 256 }
  0x38   :  { %p4659_p10 = scmp.ne.s32.totalorder %s5092_s2, %s4658_s14  ;;  %p4662_p11 = scmp.lt.u32.totalorder %s4658_s14, %s5092_s2 }
  0x3a   :  { %p4664_p12 = pnand %p4662_p11, %p4659_p10 }
  0x3c   :  { %4667 = shalt.err (!%p4664_p12)
}
  0x3d   :  { %s4668_s0 = scalar_lea.vmem %s45_s9, 256  ;;  %p4673_p0 = scmp.lt.s32.totalorder %s45_s9, %s45_s9 }
  0x3e   :  { %p4669_p13 = scmp.ne.s32.totalorder %s45_s9, %s4668_s0  ;;  %p4674_p1 = scmp.lt.s32.totalorder %s4668_s0, %s4668_s0 }
  0x40   :  { %p4675_p2 = por %p4674_p1, %p4673_p0 }
  0x42   :  { %p4676_p3 = pnand %p4675_p2, %p4669_p13 }
  0x44   :  { %4679 = shalt.err (!%p4676_p3)
}
  0x45   :  { %47 = dma.hbm_to_vmem [thread:$0]  %s5092_s2, 256, %s45_s9, [#allocation6]  }
  0x46   :  { %s4680_s23 = scalar_lea.hbm %s5094_s4, 16 }
  0x47   :  { %p4681_p4 = scmp.ne.s32.totalorder %s5094_s4, %s4680_s23  ;;  %p4684_p5 = scmp.lt.u32.totalorder %s4680_s23, %s5094_s4 }
  0x49   :  { %p4686_p6 = pnand %p4684_p5, %p4681_p4 }
  0x4b   :  { %4689 = shalt.err (!%p4686_p6)
}
  0x4c   :  { %s4690_s28 = scalar_lea.vmem %s67_s11, 16  ;;  %s4694_s3 = scalar_lea.vmem %s67_s11, 32 }
  0x4d   :  { %p4691_p7 = scmp.ne.s32.totalorder %s67_s11, %s4690_s28  ;;  %p4695_p8 = scmp.lt.s32.totalorder %s67_s11, %s67_s11 }
  0x4e   :  { %p4696_p9 = scmp.lt.s32.totalorder %s4694_s3, %s4690_s28 }
  0x50   :  { %p4697_p10 = por %p4696_p9, %p4695_p8 }
  0x52   :  { %p4698_p11 = pnand %p4697_p10, %p4691_p7 }
  0x54   :  { %4701 = shalt.err (!%p4698_p11)
}
  0x55   :  { %69 = dma.hbm_to_vmem [thread:$0]  %s5094_s4, 16, %s67_s11, [#allocation9]  }
  0x56   :  { %4724 = dma.done.wait [#allocation3], 1024  }
  0x57   :  { %4725 = vsyncadd [#allocation3], 4294966272 }
  0x58   :  { %4726 = dma.done.wait [#allocation6], 102656  }
  0x59   :  { %4727 = vsyncadd [#allocation6], 4294864640 }
  0x5a   :  { %4728 = dma.done.wait [#allocation9], 32784  }
  0x5b   :  { %4729 = vsyncadd [#allocation9], 4294934512  ;;  %v94_v0 = vld [vmem:[#allocation5 + $0x8] sm:$0xff]  ;;  %v96_v2 = vld [vmem:[#allocation5 + $0x18] sm:$0xff]  ;;  %vm977_vm0 = vcmask 130048   ;;  %s4742_s4 = smov [#allocation11]  }
  0x5c   :  { %v110_v1 = vld [vmem:[#allocation5 + $0x88] sm:$0xff]  ;;  %v112_v4 = vld [vmem:[#allocation5 + $0x98] sm:$0xff]  ;;  %v93_v5 = vld [vmem:[#allocation5] sm:$0xff]  ;;  %s3118_s6 = sshll.u32 %s4742_s4, 4  ;;  %s3119_s6 = int_to_ptr.vmem [resolvable:$true] %s3118_s6 }
  0x5d   :  { %v3453_v3 = vpack.c.bf16 %v110_v1, %v94_v0  ;;  %v109_v6 = vld [vmem:[#allocation5 + $0x80] sm:$0xff]  ;;  %v3553_v7 = vpack.c.bf16 %v112_v4, %v96_v2  ;;  %v95_v9 = vld [vmem:[#allocation5 + $0x10] sm:$0xff]  ;;  %v126_v11 = vld [vmem:[#allocation5 + $0x108] sm:$0xff]  ;;  %s4702_s7 = scalar_lea.vmem %s3119_s6, 256  ;;  %p4707_p13 = scmp.lt.s32.totalorder %s3119_s6, %s3119_s6 }
  0x5e   :  { %v3455_v8 = vpack.c.bf16 %v109_v6, %v93_v5  ;;  %v111_v10 = vld [vmem:[#allocation5 + $0x90] sm:$0xff]  ;;  %v142_v13 = vld [vmem:[#allocation5 + $0x188] sm:$0xff]  ;;  %v128_v14 = vld [vmem:[#allocation5 + $0x118] sm:$0xff]  ;;  %p4703_p12 = scmp.ne.s32.totalorder %s3119_s6, %s4702_s7  ;;  %p4708_p0 = scmp.lt.s32.totalorder %s4702_s7, %s4702_s7 }
  0x5f   :  { %3454 = vmatprep.subr.bf16.mxu0 %v3453_v3  ;;  %v3555_v12 = vpack.c.bf16 %v111_v10, %v95_v9  ;;  %v144_v15 = vld [vmem:[#allocation5 + $0x198] sm:$0xff]  ;;  %3554 = vmatprep.subr.bf16.mxu1 %v3553_v7  ;;  %v3457_v16 = vpack.c.bf16 %v142_v13, %v126_v11  ;;  %v125_v18 = vld [vmem:[#allocation5 + $0x100] sm:$0xff]  ;;  %v127_v20 = vld [vmem:[#allocation5 + $0x110] sm:$0xff] }
  0x60   :  { %3456 = vmatpush1.bf16.msra.mxu0 %v3455_v8  ;;  %v3557_v17 = vpack.c.bf16 %v144_v15, %v128_v14  ;;  %v141_v19 = vld [vmem:[#allocation5 + $0x180] sm:$0xff]  ;;  %v143_v22 = vld [vmem:[#allocation5 + $0x190] sm:$0xff]  ;;  %v158_v23 = vld [vmem:[#allocation5 + $0x208] sm:$0xff]  ;;  %p4709_p1 = por %p4708_p0, %p4707_p13 }
  0x61   :  { %3556 = vmatpush1.bf16.msra.mxu1 %v3555_v12  ;;  %v3459_v21 = vpack.c.bf16 %v141_v19, %v125_v18  ;;  %v174_v24 = vld [vmem:[#allocation5 + $0x288] sm:$0xff]  ;;  %3458 = vmatprep.subr.bf16.mxu0 %v3457_v16  ;;  %v3559_v25 = vpack.c.bf16 %v143_v22, %v127_v20  ;;  %v160_v27 = vld [vmem:[#allocation5 + $0x218] sm:$0xff]  ;;  %v157_v29 = vld [vmem:[#allocation5 + $0x200] sm:$0xff] }
  0x62   :  { %3558 = vmatprep.subr.bf16.mxu1 %v3557_v17  ;;  %v3461_v26 = vpack.c.bf16 %v174_v24, %v158_v23  ;;  %v176_v28 = vld [vmem:[#allocation5 + $0x298] sm:$0xff]  ;;  %v173_v31 = vld [vmem:[#allocation5 + $0x280] sm:$0xff]  ;;  %v159_v32 = vld [vmem:[#allocation5 + $0x210] sm:$0xff]  ;;  %p4710_p2 = pnand %p4709_p1, %p4703_p12 }
  0x63   :  { %v3561_v30 = vpack.c.bf16 %v176_v28, %v160_v27  ;;  %v175_v33 = vld [vmem:[#allocation5 + $0x290] sm:$0xff]  ;;  %v3463_v34 = vpack.c.bf16 %v173_v31, %v157_v29  ;;  %v190_v35 = vld [vmem:[#allocation5 + $0x308] sm:$0xff]  ;;  %v192_v37 = vld [vmem:[#allocation5 + $0x318] sm:$0xff] }
  0x64   :  { %3460 = vmatpush1.bf16.msra.mxu0 %v3459_v21  ;;  %v206_v36 = vld [vmem:[#allocation5 + $0x388] sm:$0xff]  ;;  %v3563_v38 = vpack.c.bf16 %v175_v33, %v159_v32  ;;  %v208_v40 = vld [vmem:[#allocation5 + $0x398] sm:$0xff]  ;;  %v189_v41 = vld [vmem:[#allocation5 + $0x300] sm:$0xff] }
  0x65   :  { %3560 = vmatpush1.bf16.msra.mxu1 %v3559_v25  ;;  %3462 = vmatprep.subr.bf16.mxu0 %v3461_v26  ;;  %v3465_v39 = vpack.c.bf16 %v206_v36, %v190_v35  ;;  %v205_v42 = vld [vmem:[#allocation5 + $0x380] sm:$0xff]  ;;  %v3565_v43 = vpack.c.bf16 %v208_v40, %v192_v37  ;;  %v191_v44 = vld [vmem:[#allocation5 + $0x310] sm:$0xff]  ;;  %v222_v46 = vld [vmem:[#allocation5 + $0x408] sm:$0xff] }
  0x66   :  { %3562 = vmatprep.subr.bf16.mxu1 %v3561_v30  ;;  %v207_v45 = vld [vmem:[#allocation5 + $0x390] sm:$0xff]  ;;  %v238_v47 = vld [vmem:[#allocation5 + $0x488] sm:$0xff]  ;;  %v224_v48 = vld [vmem:[#allocation5 + $0x418] sm:$0xff]  ;;  %v3467_v50 = vpack.c.bf16 %v205_v42, %v189_v41 }
  0x67   :  { %v240_v49 = vld [vmem:[#allocation5 + $0x498] sm:$0xff]  ;;  %v3567_v51 = vpack.c.bf16 %v207_v45, %v191_v44  ;;  %v3469_v52 = vpack.c.bf16 %v238_v47, %v222_v46  ;;  %v221_v53 = vld [vmem:[#allocation5 + $0x400] sm:$0xff]  ;;  %v223_v55 = vld [vmem:[#allocation5 + $0x410] sm:$0xff] }
  0x68   :  { %3464 = vmatpush1.bf16.msra.mxu0 %v3463_v34  ;;  %v237_v54 = vld [vmem:[#allocation5 + $0x480] sm:$0xff]  ;;  %v3569_v56 = vpack.c.bf16 %v240_v49, %v224_v48  ;;  %v239_v57 = vld [vmem:[#allocation5 + $0x490] sm:$0xff]  ;;  %v254_v58 = vld [vmem:[#allocation5 + $0x508] sm:$0xff] }
  0x69   :  { %3564 = vmatpush1.bf16.msra.mxu1 %v3563_v38  ;;  %3466 = vmatprep.subr.bf16.mxu0 %v3465_v39  ;;  %v270_v59 = vld [vmem:[#allocation5 + $0x588] sm:$0xff]  ;;  %v256_v60 = vld [vmem:[#allocation5 + $0x518] sm:$0xff]  ;;  %v3471_v62 = vpack.c.bf16 %v237_v54, %v221_v53  ;;  %v3571_v63 = vpack.c.bf16 %v239_v57, %v223_v55  ;;  %v253_v1 = vld [vmem:[#allocation5 + $0x500] sm:$0xff] }
  0x6a   :  { %3566 = vmatprep.subr.bf16.mxu1 %v3565_v43  ;;  %v272_v61 = vld [vmem:[#allocation5 + $0x598] sm:$0xff]  ;;  %v3473_v0 = vpack.c.bf16 %v270_v59, %v254_v58  ;;  %v269_v2 = vld [vmem:[#allocation5 + $0x580] sm:$0xff]  ;;  %v255_v3 = vld [vmem:[#allocation5 + $0x510] sm:$0xff] }
  0x6b   :  { %v3573_v4 = vpack.c.bf16 %v272_v61, %v256_v60  ;;  %v271_v5 = vld [vmem:[#allocation5 + $0x590] sm:$0xff]  ;;  %v286_v6 = vld [vmem:[#allocation5 + $0x608] sm:$0xff]  ;;  %v288_v8 = vld [vmem:[#allocation5 + $0x618] sm:$0xff]  ;;  %v3475_v10 = vpack.c.bf16 %v269_v2, %v253_v1 }
  0x6c   :  { %3468 = vmatpush1.bf16.msra.mxu0 %v3467_v50  ;;  %v302_v7 = vld [vmem:[#allocation5 + $0x688] sm:$0xff]  ;;  %v304_v9 = vld [vmem:[#allocation5 + $0x698] sm:$0xff]  ;;  %v3575_v11 = vpack.c.bf16 %v271_v5, %v255_v3  ;;  %v285_v13 = vld [vmem:[#allocation5 + $0x600] sm:$0xff] }
  0x6d   :  { %3568 = vmatpush1.bf16.msra.mxu1 %v3567_v51  ;;  %3470 = vmatprep.subr.bf16.mxu0 %v3469_v52  ;;  %v3477_v12 = vpack.c.bf16 %v302_v7, %v286_v6  ;;  %v301_v14 = vld [vmem:[#allocation5 + $0x680] sm:$0xff]  ;;  %v287_v15 = vld [vmem:[#allocation5 + $0x610] sm:$0xff]  ;;  %v3577_v16 = vpack.c.bf16 %v304_v9, %v288_v8  ;;  %v318_v18 = vld [vmem:[#allocation5 + $0x708] sm:$0xff] }
  0x6e   :  { %3570 = vmatprep.subr.bf16.mxu1 %v3569_v56  ;;  %v303_v17 = vld [vmem:[#allocation5 + $0x690] sm:$0xff]  ;;  %v334_v19 = vld [vmem:[#allocation5 + $0x788] sm:$0xff]  ;;  %v320_v20 = vld [vmem:[#allocation5 + $0x718] sm:$0xff]  ;;  %v3479_v22 = vpack.c.bf16 %v301_v14, %v285_v13 }
  0x6f   :  { %v336_v21 = vld [vmem:[#allocation5 + $0x798] sm:$0xff]  ;;  %v3579_v23 = vpack.c.bf16 %v303_v17, %v287_v15  ;;  %v3481_v24 = vpack.c.bf16 %v334_v19, %v318_v18  ;;  %v317_v25 = vld [vmem:[#allocation5 + $0x700] sm:$0xff]  ;;  %v319_v27 = vld [vmem:[#allocation5 + $0x710] sm:$0xff] }
  0x70   :  { %3472 = vmatpush1.bf16.msra.mxu0 %v3471_v62  ;;  %v333_v26 = vld [vmem:[#allocation5 + $0x780] sm:$0xff]  ;;  %v3581_v28 = vpack.c.bf16 %v336_v21, %v320_v20  ;;  %v335_v29 = vld [vmem:[#allocation5 + $0x790] sm:$0xff]  ;;  %v350_v30 = vld [vmem:[#allocation5 + $0x808] sm:$0xff] }
  0x71   :  { %3572 = vmatpush1.bf16.msra.mxu1 %v3571_v63  ;;  %3474 = vmatprep.subr.bf16.mxu0 %v3473_v0  ;;  %v366_v31 = vld [vmem:[#allocation5 + $0x888] sm:$0xff]  ;;  %v352_v32 = vld [vmem:[#allocation5 + $0x818] sm:$0xff]  ;;  %v3483_v34 = vpack.c.bf16 %v333_v26, %v317_v25  ;;  %v3583_v35 = vpack.c.bf16 %v335_v29, %v319_v27  ;;  %v349_v37 = vld [vmem:[#allocation5 + $0x800] sm:$0xff] }
  0x72   :  { %3574 = vmatprep.subr.bf16.mxu1 %v3573_v4  ;;  %v368_v33 = vld [vmem:[#allocation5 + $0x898] sm:$0xff]  ;;  %v3485_v36 = vpack.c.bf16 %v366_v31, %v350_v30  ;;  %v365_v38 = vld [vmem:[#allocation5 + $0x880] sm:$0xff]  ;;  %v351_v39 = vld [vmem:[#allocation5 + $0x810] sm:$0xff] }
  0x73   :  { %v3585_v40 = vpack.c.bf16 %v368_v33, %v352_v32  ;;  %v367_v41 = vld [vmem:[#allocation5 + $0x890] sm:$0xff]  ;;  %v382_v42 = vld [vmem:[#allocation5 + $0x908] sm:$0xff]  ;;  %v384_v44 = vld [vmem:[#allocation5 + $0x918] sm:$0xff]  ;;  %v3487_v46 = vpack.c.bf16 %v365_v38, %v349_v37 }
  0x74   :  { %3476 = vmatpush1.bf16.msra.mxu0 %v3475_v10  ;;  %v398_v43 = vld [vmem:[#allocation5 + $0x988] sm:$0xff]  ;;  %v400_v45 = vld [vmem:[#allocation5 + $0x998] sm:$0xff]  ;;  %v3587_v47 = vpack.c.bf16 %v367_v41, %v351_v39  ;;  %v381_v49 = vld [vmem:[#allocation5 + $0x900] sm:$0xff] }
  0x75   :  { %3576 = vmatpush1.bf16.msra.mxu1 %v3575_v11  ;;  %3478 = vmatprep.subr.bf16.mxu0 %v3477_v12  ;;  %v3489_v48 = vpack.c.bf16 %v398_v43, %v382_v42  ;;  %v397_v50 = vld [vmem:[#allocation5 + $0x980] sm:$0xff]  ;;  %v383_v51 = vld [vmem:[#allocation5 + $0x910] sm:$0xff]  ;;  %v3589_v52 = vpack.c.bf16 %v400_v45, %v384_v44  ;;  %v414_v54 = vld [vmem:[#allocation5 + $0xa08] sm:$0xff] }
  0x76   :  { %3578 = vmatprep.subr.bf16.mxu1 %v3577_v16  ;;  %v399_v53 = vld [vmem:[#allocation5 + $0x990] sm:$0xff]  ;;  %v430_v55 = vld [vmem:[#allocation5 + $0xa88] sm:$0xff]  ;;  %v416_v56 = vld [vmem:[#allocation5 + $0xa18] sm:$0xff]  ;;  %v3491_v58 = vpack.c.bf16 %v397_v50, %v381_v49 }
  0x77   :  { %v432_v57 = vld [vmem:[#allocation5 + $0xa98] sm:$0xff]  ;;  %v3591_v59 = vpack.c.bf16 %v399_v53, %v383_v51  ;;  %v3493_v60 = vpack.c.bf16 %v430_v55, %v414_v54  ;;  %v413_v61 = vld [vmem:[#allocation5 + $0xa00] sm:$0xff]  ;;  %v415_v63 = vld [vmem:[#allocation5 + $0xa10] sm:$0xff] }
  0x78   :  { %3480 = vmatpush1.bf16.msra.mxu0 %v3479_v22  ;;  %v429_v62 = vld [vmem:[#allocation5 + $0xa80] sm:$0xff]  ;;  %v3593_v0 = vpack.c.bf16 %v432_v57, %v416_v56  ;;  %v431_v1 = vld [vmem:[#allocation5 + $0xa90] sm:$0xff]  ;;  %v446_v2 = vld [vmem:[#allocation5 + $0xb08] sm:$0xff] }
  0x79   :  { %3580 = vmatpush1.bf16.msra.mxu1 %v3579_v23  ;;  %3482 = vmatprep.subr.bf16.mxu0 %v3481_v24  ;;  %v462_v3 = vld [vmem:[#allocation5 + $0xb88] sm:$0xff]  ;;  %v448_v4 = vld [vmem:[#allocation5 + $0xb18] sm:$0xff]  ;;  %v3495_v6 = vpack.c.bf16 %v429_v62, %v413_v61  ;;  %v445_v7 = vld [vmem:[#allocation5 + $0xb00] sm:$0xff]  ;;  %v3595_v8 = vpack.c.bf16 %v431_v1, %v415_v63 }
  0x7a   :  { %3582 = vmatprep.subr.bf16.mxu1 %v3581_v28  ;;  %v464_v5 = vld [vmem:[#allocation5 + $0xb98] sm:$0xff]  ;;  %v3497_v9 = vpack.c.bf16 %v462_v3, %v446_v2  ;;  %v461_v10 = vld [vmem:[#allocation5 + $0xb80] sm:$0xff]  ;;  %v447_v11 = vld [vmem:[#allocation5 + $0xb10] sm:$0xff] }
  0x7b   :  { %v463_v12 = vld [vmem:[#allocation5 + $0xb90] sm:$0xff]  ;;  %v3597_v13 = vpack.c.bf16 %v464_v5, %v448_v4  ;;  %v478_v14 = vld [vmem:[#allocation5 + $0xc08] sm:$0xff]  ;;  %v480_v17 = vld [vmem:[#allocation5 + $0xc18] sm:$0xff]  ;;  %v3499_v19 = vpack.c.bf16 %v461_v10, %v445_v7 }
  0x7c   :  { %3484 = vmatpush1.bf16.msra.mxu0 %v3483_v34  ;;  %v494_v15 = vld [vmem:[#allocation5 + $0xc88] sm:$0xff]  ;;  %v496_v18 = vld [vmem:[#allocation5 + $0xc98] sm:$0xff]  ;;  %v3599_v20 = vpack.c.bf16 %v463_v12, %v447_v11  ;;  %v477_v22 = vld [vmem:[#allocation5 + $0xc00] sm:$0xff] }
  0x7d   :  { %3584 = vmatpush1.bf16.msra.mxu1 %v3583_v35  ;;  %3486 = vmatprep.subr.bf16.mxu0 %v3485_v36  ;;  %v4837_v16 = vld [vmem:[#allocation2 + $0x8] sm:$0xff]  ;;  %v3501_v21 = vpack.c.bf16 %v494_v15, %v478_v14  ;;  %v493_v23 = vld [vmem:[#allocation5 + $0xc80] sm:$0xff]  ;;  %v479_v24 = vld [vmem:[#allocation5 + $0xc10] sm:$0xff]  ;;  %v3601_v25 = vpack.c.bf16 %v496_v18, %v480_v17 }
  0x7e   :  { %3586 = vmatprep.subr.bf16.mxu1 %v3585_v40  ;;  %1048 = vmatprep.mubr.f32.mxu0 %v4837_v16  ;;  %v495_v26 = vld [vmem:[#allocation5 + $0xc90] sm:$0xff]  ;;  %v510_v27 = vld [vmem:[#allocation5 + $0xd08] sm:$0xff]  ;;  %v512_v29 = vld [vmem:[#allocation5 + $0xd18] sm:$0xff]  ;;  %v3503_v31 = vpack.c.bf16 %v493_v23, %v477_v22 }
  0x7f   :  { %1202 = vmatprep.mubr.f32.mxu1 %v4837_v16  ;;  %v526_v28 = vld [vmem:[#allocation5 + $0xd88] sm:$0xff]  ;;  %v528_v30 = vld [vmem:[#allocation5 + $0xd98] sm:$0xff]  ;;  %v3603_v32 = vpack.c.bf16 %v495_v26, %v479_v24  ;;  %v509_v34 = vld [vmem:[#allocation5 + $0xd00] sm:$0xff] }
  0x80   :  { %3488 = vmatpush1.bf16.msra.mxu0 %v3487_v46  ;;  %v3505_v33 = vpack.c.bf16 %v526_v28, %v510_v27  ;;  %v525_v35 = vld [vmem:[#allocation5 + $0xd80] sm:$0xff]  ;;  %v511_v36 = vld [vmem:[#allocation5 + $0xd10] sm:$0xff]  ;;  %v3605_v37 = vpack.c.bf16 %v528_v30, %v512_v29  ;;  %v542_v39 = vld [vmem:[#allocation5 + $0xe08] sm:$0xff] }
  0x81   :  { %3588 = vmatpush1.bf16.msra.mxu1 %v3587_v47  ;;  %3490 = vmatprep.subr.bf16.mxu0 %v3489_v48  ;;  %v527_v38 = vld [vmem:[#allocation5 + $0xd90] sm:$0xff]  ;;  %v558_v40 = vld [vmem:[#allocation5 + $0xe88] sm:$0xff]  ;;  %v544_v41 = vld [vmem:[#allocation5 + $0xe18] sm:$0xff]  ;;  %v3507_v43 = vpack.c.bf16 %v525_v35, %v509_v34 }
  0x82   :  { %3590 = vmatprep.subr.bf16.mxu1 %v3589_v52  ;;  %v560_v42 = vld [vmem:[#allocation5 + $0xe98] sm:$0xff]  ;;  %v3607_v44 = vpack.c.bf16 %v527_v38, %v511_v36  ;;  %v3509_v45 = vpack.c.bf16 %v558_v40, %v542_v39  ;;  %v541_v46 = vld [vmem:[#allocation5 + $0xe00] sm:$0xff]  ;;  %v543_v48 = vld [vmem:[#allocation5 + $0xe10] sm:$0xff] }
  0x83   :  { %v557_v47 = vld [vmem:[#allocation5 + $0xe80] sm:$0xff]  ;;  %v3609_v49 = vpack.c.bf16 %v560_v42, %v544_v41  ;;  %v559_v50 = vld [vmem:[#allocation5 + $0xe90] sm:$0xff]  ;;  %v574_v51 = vld [vmem:[#allocation5 + $0xf08] sm:$0xff] }
  0x84   :  { %3492 = vmatpush1.bf16.msra.mxu0 %v3491_v58  ;;  %v590_v52 = vld [vmem:[#allocation5 + $0xf88] sm:$0xff]  ;;  %v576_v53 = vld [vmem:[#allocation5 + $0xf18] sm:$0xff]  ;;  %v3511_v55 = vpack.c.bf16 %v557_v47, %v541_v46  ;;  %v3611_v56 = vpack.c.bf16 %v559_v50, %v543_v48  ;;  %v573_v58 = vld [vmem:[#allocation5 + $0xf00] sm:$0xff] }
  0x85   :  { %3592 = vmatpush1.bf16.msra.mxu1 %v3591_v59  ;;  %3494 = vmatprep.subr.bf16.mxu0 %v3493_v60  ;;  %v592_v54 = vld [vmem:[#allocation5 + $0xf98] sm:$0xff]  ;;  %v3513_v57 = vpack.c.bf16 %v590_v52, %v574_v51  ;;  %v589_v59 = vld [vmem:[#allocation5 + $0xf80] sm:$0xff]  ;;  %v575_v60 = vld [vmem:[#allocation5 + $0xf10] sm:$0xff] }
  0x86   :  { %3594 = vmatprep.subr.bf16.mxu1 %v3593_v0  ;;  %v3613_v61 = vpack.c.bf16 %v592_v54, %v576_v53  ;;  %v591_v62 = vld [vmem:[#allocation5 + $0xf90] sm:$0xff]  ;;  %v606_v63 = vld [vmem:[#allocation5 + $0x1008] sm:$0xff]  ;;  %v608_v1 = vld [vmem:[#allocation5 + $0x1018] sm:$0xff]  ;;  %v3515_v3 = vpack.c.bf16 %v589_v59, %v573_v58 }
  0x87   :  { %v622_v0 = vld [vmem:[#allocation5 + $0x1088] sm:$0xff]  ;;  %v624_v2 = vld [vmem:[#allocation5 + $0x1098] sm:$0xff]  ;;  %v3615_v4 = vpack.c.bf16 %v591_v62, %v575_v60  ;;  %v621_v7 = vld [vmem:[#allocation5 + $0x1080] sm:$0xff] }
  0x88   :  { %3496 = vmatpush1.bf16.msra.mxu0 %v3495_v6  ;;  %v3517_v5 = vpack.c.bf16 %v622_v0, %v606_v63  ;;  %v605_v6 = vld [vmem:[#allocation5 + $0x1000] sm:$0xff]  ;;  %v623_v10 = vld [vmem:[#allocation5 + $0x1090] sm:$0xff]  ;;  %v638_v11 = vld [vmem:[#allocation5 + $0x1108] sm:$0xff] }
  0x89   :  { %3596 = vmatpush1.bf16.msra.mxu1 %v3595_v8  ;;  %3498 = vmatprep.subr.bf16.mxu0 %v3497_v9  ;;  %v607_v8 = vld [vmem:[#allocation5 + $0x1010] sm:$0xff]  ;;  %v3617_v9 = vpack.c.bf16 %v624_v2, %v608_v1  ;;  %v654_v12 = vld [vmem:[#allocation5 + $0x1188] sm:$0xff]  ;;  %v656_v14 = vld [vmem:[#allocation5 + $0x1198] sm:$0xff]  ;;  %v3519_v17 = vpack.c.bf16 %v621_v7, %v605_v6 }
  0x8a   :  { %3598 = vmatprep.subr.bf16.mxu1 %v3597_v13  ;;  %v640_v13 = vld [vmem:[#allocation5 + $0x1118] sm:$0xff]  ;;  %v4841_v15 = vld [vmem:[#allocation2] sm:$0xff]  ;;  %v3619_v18 = vpack.c.bf16 %v623_v10, %v607_v8  ;;  %v639_v22 = vld [vmem:[#allocation5 + $0x1110] sm:$0xff] }
  0x8b   :  { %v3621_v23 = vpack.c.bf16 %v656_v14, %v640_v13  ;;  %v655_v24 = vld [vmem:[#allocation5 + $0x1190] sm:$0xff]  ;;  %v686_v26 = vld [vmem:[#allocation5 + $0x1288] sm:$0xff]  ;;  %v672_v27 = vld [vmem:[#allocation5 + $0x1218] sm:$0xff] }
  0x8c   :  { %3500 = vmatpush1.bf16.msra.mxu0 %v3499_v19  ;;  %v3521_v19 = vpack.c.bf16 %v654_v12, %v638_v11  ;;  %v688_v28 = vld [vmem:[#allocation5 + $0x1298] sm:$0xff]  ;;  %v4844_v29 = vld [vmem:[#allocation2 + $0x28] sm:$0xff]  ;;  %v669_v34 = vld [vmem:[#allocation5 + $0x1200] sm:$0xff] }
  0x8d   :  { %3600 = vmatpush1.bf16.msra.mxu1 %v3599_v20  ;;  %3502 = vmatprep.subr.bf16.mxu0 %v3501_v21  ;;  %v637_v20 = vld [vmem:[#allocation5 + $0x1100] sm:$0xff]  ;;  %v671_v36 = vld [vmem:[#allocation5 + $0x1210] sm:$0xff]  ;;  %v702_v39 = vld [vmem:[#allocation5 + $0x1308] sm:$0xff] }
  0x8e   :  { %3602 = vmatprep.subr.bf16.mxu1 %v3601_v25  ;;  %v653_v21 = vld [vmem:[#allocation5 + $0x1180] sm:$0xff]  ;;  %v670_v25 = vld [vmem:[#allocation5 + $0x1208] sm:$0xff]  ;;  %v687_v38 = vld [vmem:[#allocation5 + $0x1290] sm:$0xff] }
  0x8f   :  { %v3523_v30 = vpack.c.bf16 %v653_v21, %v637_v20  ;;  %v685_v35 = vld [vmem:[#allocation5 + $0x1280] sm:$0xff]  ;;  %v718_v40 = vld [vmem:[#allocation5 + $0x1388] sm:$0xff]  ;;  %v704_v41 = vld [vmem:[#allocation5 + $0x1318] sm:$0xff] }
  0x90   :  { %3504 = vmatpush1.bf16.msra.mxu0 %v3503_v31  ;;  %v4847_v31 = vld [vmem:[#allocation2 + $0x20] sm:$0xff]  ;;  %v720_v42 = vld [vmem:[#allocation5 + $0x1398] sm:$0xff]  ;;  %v3529_v46 = vpack.c.bf16 %v718_v40, %v702_v39  ;;  %v719_v51 = vld [vmem:[#allocation5 + $0x1390] sm:$0xff] }
  0x91   :  { %3604 = vmatpush1.bf16.msra.mxu1 %v3603_v32  ;;  %3506 = vmatprep.subr.bf16.mxu0 %v3505_v33  ;;  %v3623_v32 = vpack.c.bf16 %v655_v24, %v639_v22  ;;  %v3525_v33 = vpack.c.bf16 %v686_v26, %v670_v25  ;;  %v701_v47 = vld [vmem:[#allocation5 + $0x1300] sm:$0xff]  ;;  %v3629_v50 = vpack.c.bf16 %v720_v42, %v704_v41  ;;  %v734_v52 = vld [vmem:[#allocation5 + $0x1408] sm:$0xff]  ;;  %v736_v54 = vld [vmem:[#allocation5 + $0x1418] sm:$0xff] }
  0x92   :  { %3606 = vmatprep.subr.bf16.mxu1 %v3605_v37  ;;  %v3625_v37 = vpack.c.bf16 %v688_v28, %v672_v27  ;;  %v717_v48 = vld [vmem:[#allocation5 + $0x1380] sm:$0xff]  ;;  %v750_v53 = vld [vmem:[#allocation5 + $0x1488] sm:$0xff]  ;;  %v751_v63 = vld [vmem:[#allocation5 + $0x1490] sm:$0xff] }
  0x93   :  { %v3533_v58 = vpack.c.bf16 %v750_v53, %v734_v52  ;;  %v733_v59 = vld [vmem:[#allocation5 + $0x1400] sm:$0xff]  ;;  %v766_v0 = vld [vmem:[#allocation5 + $0x1508] sm:$0xff]  ;;  %v768_v2 = vld [vmem:[#allocation5 + $0x1518] sm:$0xff] }
  0x94   :  { %3508 = vmatpush1.bf16.msra.mxu0 %v3507_v43  ;;  %v4852_v43 = vld [vmem:[#allocation2 + $0x18] sm:$0xff]  ;;  %v749_v60 = vld [vmem:[#allocation5 + $0x1480] sm:$0xff]  ;;  %v782_v1 = vld [vmem:[#allocation5 + $0x1588] sm:$0xff] }
  0x95   :  { %3608 = vmatpush1.bf16.msra.mxu1 %v3607_v44  ;;  %3510 = vmatprep.subr.bf16.mxu0 %v3509_v45  ;;  %v3527_v44 = vpack.c.bf16 %v685_v35, %v669_v34  ;;  %v3627_v45 = vpack.c.bf16 %v687_v38, %v671_v36  ;;  %v3537_v6 = vpack.c.bf16 %v782_v1, %v766_v0  ;;  %v765_v7 = vld [vmem:[#allocation5 + $0x1500] sm:$0xff]  ;;  %v783_v11 = vld [vmem:[#allocation5 + $0x1590] sm:$0xff]  ;;  %v798_v12 = vld [vmem:[#allocation5 + $0x1608] sm:$0xff] }
  0x96   :  { %3610 = vmatprep.subr.bf16.mxu1 %v3609_v49  ;;  %v703_v49 = vld [vmem:[#allocation5 + $0x1310] sm:$0xff]  ;;  %v781_v8 = vld [vmem:[#allocation5 + $0x1580] sm:$0xff]  ;;  %v814_v13 = vld [vmem:[#allocation5 + $0x1688] sm:$0xff] }
  0x97   :  { %v800_v14 = vld [vmem:[#allocation5 + $0x1618] sm:$0xff]  ;;  %v3541_v20 = vpack.c.bf16 %v814_v13, %v798_v12  ;;  %v797_v21 = vld [vmem:[#allocation5 + $0x1600] sm:$0xff]  ;;  %v815_v25 = vld [vmem:[#allocation5 + $0x1690] sm:$0xff] }
  0x98   :  { %3512 = vmatpush1.bf16.msra.mxu0 %v3511_v55  ;;  %v752_v55 = vld [vmem:[#allocation5 + $0x1498] sm:$0xff]  ;;  %v813_v22 = vld [vmem:[#allocation5 + $0x1680] sm:$0xff]  ;;  %v830_v26 = vld [vmem:[#allocation5 + $0x1708] sm:$0xff] }
  0x99   :  { %3612 = vmatpush1.bf16.msra.mxu1 %v3611_v56  ;;  %3514 = vmatprep.subr.bf16.mxu0 %v3513_v57  ;;  %v3531_v56 = vpack.c.bf16 %v717_v48, %v701_v47  ;;  %v3631_v57 = vpack.c.bf16 %v719_v51, %v703_v49  ;;  %v3633_v62 = vpack.c.bf16 %v752_v55, %v736_v54  ;;  %v846_v27 = vld [vmem:[#allocation5 + $0x1788] sm:$0xff]  ;;  %v832_v28 = vld [vmem:[#allocation5 + $0x1718] sm:$0xff]  ;;  %v829_v35 = vld [vmem:[#allocation5 + $0x1700] sm:$0xff] }
  0x9a   :  { %3614 = vmatprep.subr.bf16.mxu1 %v3613_v61  ;;  %v735_v61 = vld [vmem:[#allocation5 + $0x1410] sm:$0xff]  ;;  %v3545_v34 = vpack.c.bf16 %v846_v27, %v830_v26  ;;  %v845_v36 = vld [vmem:[#allocation5 + $0x1780] sm:$0xff]  ;;  %v862_v40 = vld [vmem:[#allocation5 + $0x1808] sm:$0xff] }
  0x9b   :  { %v847_v39 = vld [vmem:[#allocation5 + $0x1790] sm:$0xff]  ;;  %v878_v41 = vld [vmem:[#allocation5 + $0x1888] sm:$0xff]  ;;  %v864_v42 = vld [vmem:[#allocation5 + $0x1818] sm:$0xff] }
  0x9c   :  { %3516 = vmatpush1.bf16.msra.mxu0 %v3515_v3  ;;  %v784_v3 = vld [vmem:[#allocation5 + $0x1598] sm:$0xff]  ;;  %v3549_v47 = vpack.c.bf16 %v878_v41, %v862_v40  ;;  %v861_v48 = vld [vmem:[#allocation5 + $0x1800] sm:$0xff]  ;;  %v879_v52 = vld [vmem:[#allocation5 + $0x1890] sm:$0xff] }
  0x9d   :  { %3616 = vmatpush1.bf16.msra.mxu1 %v3615_v4  ;;  %3518 = vmatprep.subr.bf16.mxu0 %v3517_v5  ;;  %v3535_v4 = vpack.c.bf16 %v749_v60, %v733_v59  ;;  %v3635_v5 = vpack.c.bf16 %v751_v63, %v735_v61  ;;  %v3637_v10 = vpack.c.bf16 %v784_v3, %v768_v2  ;;  %v877_v49 = vld [vmem:[#allocation5 + $0x1880] sm:$0xff]  ;;  %v98_v53 = vld [vmem:[#allocation5 + $0x28] sm:$0xff]  ;;  %v100_v55 = vld [vmem:[#allocation5 + $0x38] sm:$0xff] }
  0x9e   :  { %3618 = vmatprep.subr.bf16.mxu1 %v3617_v9  ;;  %v767_v9 = vld [vmem:[#allocation5 + $0x1510] sm:$0xff]  ;;  %v114_v54 = vld [vmem:[#allocation5 + $0xa8] sm:$0xff]  ;;  %v97_v60 = vld [vmem:[#allocation5 + $0x20] sm:$0xff] }
  0x9f   :  { %1049 = vmatmul.mubr.f32.vlgmr.msra.gmra.mrb[0].mxu0 %v4841_v15  ;;  %v3653_v59 = vpack.c.bf16 %v114_v54, %v98_v53  ;;  %v113_v61 = vld [vmem:[#allocation5 + $0xa0] sm:$0xff]  ;;  %v99_v63 = vld [vmem:[#allocation5 + $0x30] sm:$0xff]  ;;  %v130_v2 = vld [vmem:[#allocation5 + $0x128] sm:$0xff] }
  0xa0   :  { %3520 = vmatpush1.bf16.msra.mxu0 %v3519_v17  ;;  %1203 = vmatmul.mubr.f32.vlgmr.msra.gmra.mrb[0].mxu1 %v4841_v15  ;;  %v816_v17 = vld [vmem:[#allocation5 + $0x1698] sm:$0xff]  ;;  %v115_v0 = vld [vmem:[#allocation5 + $0xb0] sm:$0xff]  ;;  %v146_v3 = vld [vmem:[#allocation5 + $0x1a8] sm:$0xff] }
  0xa1   :  { %3620 = vmatpush1.bf16.msra.mxu1 %v3619_v18  ;;  %3522 = vmatprep.subr.bf16.mxu0 %v3521_v19  ;;  %v3539_v18 = vpack.c.bf16 %v781_v8, %v765_v7  ;;  %v3639_v19 = vpack.c.bf16 %v783_v11, %v767_v9  ;;  %v3641_v24 = vpack.c.bf16 %v816_v17, %v800_v14  ;;  %v4859_v1 = vld [vmem:[#allocation2 + $0x10] sm:$0xff]  ;;  %v148_v7 = vld [vmem:[#allocation5 + $0x1b8] sm:$0xff]  ;;  %v129_v9 = vld [vmem:[#allocation5 + $0x120] sm:$0xff] }
  0xa2   :  { %3622 = vmatprep.subr.bf16.mxu1 %v3621_v23  ;;  %1054 = vmatprep.mubr.f32.mxu0 %v4844_v29  ;;  %v799_v23 = vld [vmem:[#allocation5 + $0x1610] sm:$0xff]  ;;  %v3755_v8 = vpack.c.bf16 %v115_v0, %v99_v63  ;;  %v3657_v12 = vpack.c.bf16 %v146_v3, %v130_v2  ;;  %v162_v14 = vld [vmem:[#allocation5 + $0x228] sm:$0xff]  ;;  %v177_v26 = vld [vmem:[#allocation5 + $0x2a0] sm:$0xff] }
  0xa3   :  { %1208 = vmatprep.mubr.f32.mxu1 %v4844_v29  ;;  %1055 = vmatmul.mubr.f32.gmra.mrb[2].mxu0 %v4847_v31  ;;  %v131_v11 = vld [vmem:[#allocation5 + $0x130] sm:$0xff]  ;;  %v178_v17 = vld [vmem:[#allocation5 + $0x2a8] sm:$0xff]  ;;  %v209_v40 = vld [vmem:[#allocation5 + $0x3a0] sm:$0xff] }
  0xa4   :  { %3524 = vmatpush1.bf16.msra.mxu0 %v3523_v30  ;;  %1209 = vmatmul.mubr.f32.gmra.mrb[2].mxu1 %v4847_v31  ;;  %v848_v30 = vld [vmem:[#allocation5 + $0x1798] sm:$0xff]  ;;  %v147_v13 = vld [vmem:[#allocation5 + $0x1b0] sm:$0xff]  ;;  %v241_v53 = vld [vmem:[#allocation5 + $0x4a0] sm:$0xff] }
  0xa5   :  { %3624 = vmatpush1.bf16.msra.mxu1 %v3623_v32  ;;  %3526 = vmatprep.subr.bf16.mxu0 %v3525_v33  ;;  %v3543_v32 = vpack.c.bf16 %v813_v22, %v797_v21  ;;  %v3643_v33 = vpack.c.bf16 %v815_v25, %v799_v23  ;;  %v3645_v38 = vpack.c.bf16 %v848_v30, %v832_v28  ;;  %v4865_v21 = vld [vmem:[#allocation2 + $0x30] sm:$0xff]  ;;  %v161_v25 = vld [vmem:[#allocation5 + $0x220] sm:$0xff] }
  0xa6   :  { %3626 = vmatprep.subr.bf16.mxu1 %v3625_v37  ;;  %3132 = vmatprep.mubr.msk.f32.mxu0 %vm977_vm0, %v4852_v43  ;;  %v831_v37 = vld [vmem:[#allocation5 + $0x1710] sm:$0xff]  ;;  %v3759_v23 = vpack.c.bf16 %v147_v13, %v131_v11  ;;  %v257_v63 = vld [vmem:[#allocation5 + $0x520] sm:$0xff] }
  0xa7   :  { %3134 = vmatprep.mubr.msk.f32.mxu1 %vm977_vm0, %v4852_v43  ;;  %v163_v27 = vld [vmem:[#allocation5 + $0x230] sm:$0xff]  ;;  %v273_v0 = vld [vmem:[#allocation5 + $0x5a0] sm:$0xff] }
  0xa8   :  { %3528 = vmatpush1.bf16.msra.mxu0 %v3527_v44  ;;  %v880_v44 = vld [vmem:[#allocation5 + $0x1898] sm:$0xff]  ;;  %v179_v30 = vld [vmem:[#allocation5 + $0x2b0] sm:$0xff]  ;;  %v289_v13 = vld [vmem:[#allocation5 + $0x620] sm:$0xff] }
  0xa9   :  { %3628 = vmatpush1.bf16.msra.mxu1 %v3627_v45  ;;  %3530 = vmatprep.subr.bf16.mxu0 %v3529_v46  ;;  %v3547_v45 = vpack.c.bf16 %v845_v36, %v829_v35  ;;  %v3647_v46 = vpack.c.bf16 %v847_v39, %v831_v37  ;;  %v3649_v51 = vpack.c.bf16 %v880_v44, %v864_v42  ;;  %v212_v35 = vld [vmem:[#allocation5 + $0x3b8] sm:$0xff]  ;;  %v193_v39 = vld [vmem:[#allocation5 + $0x320] sm:$0xff]  ;;  %v195_v41 = vld [vmem:[#allocation5 + $0x330] sm:$0xff] }
  0xaa   :  { %3630 = vmatprep.subr.bf16.mxu1 %v3629_v50  ;;  %v863_v50 = vld [vmem:[#allocation5 + $0x1810] sm:$0xff]  ;;  %v3663_v36 = vpack.c.bf16 %v177_v26, %v161_v25  ;;  %v3763_v37 = vpack.c.bf16 %v179_v30, %v163_v27  ;;  %v337_v30 = vld [vmem:[#allocation5 + $0x7a0] sm:$0xff] }
  0xab   :  { %v211_v44 = vld [vmem:[#allocation5 + $0x3b0] sm:$0xff] }
  0xac   :  { %3532 = vmatpush1.bf16.msra.mxu0 %v3531_v56  ;;  %v116_v56 = vld [vmem:[#allocation5 + $0xb8] sm:$0xff]  ;;  %v227_v54 = vld [vmem:[#allocation5 + $0x430] sm:$0xff] }
  0xad   :  { %3632 = vmatpush1.bf16.msra.mxu1 %v3631_v57  ;;  %3534 = vmatprep.subr.bf16.mxu0 %v3533_v58  ;;  %v3551_v57 = vpack.c.bf16 %v877_v49, %v861_v48  ;;  %v3651_v58 = vpack.c.bf16 %v879_v52, %v863_v50  ;;  %v244_v48 = vld [vmem:[#allocation5 + $0x4b8] sm:$0xff]  ;;  %v3667_v49 = vpack.c.bf16 %v209_v40, %v193_v39  ;;  %v225_v52 = vld [vmem:[#allocation5 + $0x420] sm:$0xff]  ;;  %v259_v2 = vld [vmem:[#allocation5 + $0x530] sm:$0xff] }
  0xae   :  { %3634 = vmatprep.subr.bf16.mxu1 %v3633_v62  ;;  %v3753_v62 = vpack.c.bf16 %v116_v56, %v100_v55  ;;  %v3767_v50 = vpack.c.bf16 %v211_v44, %v195_v41  ;;  %v243_v56 = vld [vmem:[#allocation5 + $0x4b0] sm:$0xff]  ;;  %v369_v44 = vld [vmem:[#allocation5 + $0x8a0] sm:$0xff] }
  0xb0   :  { %3536 = vmatpush1.bf16.msra.mxu0 %v3535_v4  ;;  %v3655_v4 = vpack.c.bf16 %v113_v61, %v97_v60  ;;  %v276_v60 = vld [vmem:[#allocation5 + $0x5b8] sm:$0xff]  ;;  %v3671_v61 = vpack.c.bf16 %v241_v53, %v225_v52 }
  0xb1   :  { %3636 = vmatpush1.bf16.msra.mxu1 %v3635_v5  ;;  %3538 = vmatprep.subr.bf16.mxu0 %v3537_v6  ;;  %v4861_v5 = vld [vmem:[#allocation2 + $0x38] sm:$0xff] }
  0xb2   :  { %3638 = vmatprep.subr.bf16.mxu1 %v3637_v10  ;;  %v132_v6 = vld [vmem:[#allocation5 + $0x138] sm:$0xff]  ;;  %v145_v10 = vld [vmem:[#allocation5 + $0x1a0] sm:$0xff] }
  0xb3   :  { %v3659_v22 = vpack.c.bf16 %v145_v10, %v129_v9  ;;  %v308_v9 = vld [vmem:[#allocation5 + $0x6b8] sm:$0xff]  ;;  %v3675_v10 = vpack.c.bf16 %v273_v0, %v257_v63 }
  0xb4   :  { %3540 = vmatpush1.bf16.msra.mxu0 %v3539_v18  ;;  %v3757_v18 = vpack.c.bf16 %v148_v7, %v132_v6  ;;  %v290_v6 = vld [vmem:[#allocation5 + $0x628] sm:$0xff] }
  0xb5   :  { %3640 = vmatpush1.bf16.msra.mxu1 %v3639_v19  ;;  %3542 = vmatprep.subr.bf16.mxu0 %v3541_v20  ;;  %v164_v19 = vld [vmem:[#allocation5 + $0x238] sm:$0xff]  ;;  %v306_v7 = vld [vmem:[#allocation5 + $0x6a8] sm:$0xff] }
  0xb6   :  { %3642 = vmatprep.subr.bf16.mxu1 %v3641_v24  ;;  %v180_v20 = vld [vmem:[#allocation5 + $0x2b8] sm:$0xff]  ;;  %v3661_v24 = vpack.c.bf16 %v178_v17, %v162_v14  ;;  %v305_v14 = vld [vmem:[#allocation5 + $0x6a0] sm:$0xff]  ;;  %v291_v17 = vld [vmem:[#allocation5 + $0x630] sm:$0xff] }
  0xb7   :  { %v3761_v28 = vpack.c.bf16 %v180_v20, %v164_v19  ;;  %v307_v19 = vld [vmem:[#allocation5 + $0x6b0] sm:$0xff]  ;;  %v322_v20 = vld [vmem:[#allocation5 + $0x728] sm:$0xff]  ;;  %v3679_v25 = vpack.c.bf16 %v305_v14, %v289_v13 }
  0xb8   :  { %3544 = vmatpush1.bf16.msra.mxu0 %v3543_v32  ;;  %v194_v32 = vld [vmem:[#allocation5 + $0x328] sm:$0xff]  ;;  %v3779_v26 = vpack.c.bf16 %v307_v19, %v291_v17  ;;  %v465_v19 = vld [vmem:[#allocation5 + $0xba0] sm:$0xff] }
  0xb9   :  { %3644 = vmatpush1.bf16.msra.mxu1 %v3643_v33  ;;  %3546 = vmatprep.subr.bf16.mxu0 %v3545_v34  ;;  %v210_v33 = vld [vmem:[#allocation5 + $0x3a8] sm:$0xff]  ;;  %v196_v34 = vld [vmem:[#allocation5 + $0x338] sm:$0xff] }
  0xba   :  { %3646 = vmatprep.subr.bf16.mxu1 %v3645_v38  ;;  %v3665_v38 = vpack.c.bf16 %v210_v33, %v194_v32  ;;  %v3765_v42 = vpack.c.bf16 %v212_v35, %v196_v34  ;;  %v323_v32 = vld [vmem:[#allocation5 + $0x730] sm:$0xff]  ;;  %v354_v35 = vld [vmem:[#allocation5 + $0x828] sm:$0xff] }
  0xbb   :  { %v339_v34 = vld [vmem:[#allocation5 + $0x7b0] sm:$0xff] }
  0xbc   :  { %3548 = vmatpush1.bf16.msra.mxu0 %v3547_v45  ;;  %v226_v45 = vld [vmem:[#allocation5 + $0x428] sm:$0xff]  ;;  %v3783_v40 = vpack.c.bf16 %v339_v34, %v323_v32  ;;  %v497_v34 = vld [vmem:[#allocation5 + $0xca0] sm:$0xff] }
  0xbd   :  { %3648 = vmatpush1.bf16.msra.mxu1 %v3647_v46  ;;  %3550 = vmatprep.subr.bf16.mxu0 %v3549_v47  ;;  %v242_v46 = vld [vmem:[#allocation5 + $0x4a8] sm:$0xff]  ;;  %v228_v47 = vld [vmem:[#allocation5 + $0x438] sm:$0xff] }
  0xbe   :  { %3650 = vmatprep.subr.bf16.mxu1 %v3649_v51  ;;  %v3669_v51 = vpack.c.bf16 %v242_v46, %v226_v45  ;;  %v3769_v55 = vpack.c.bf16 %v244_v48, %v228_v47  ;;  %v355_v45 = vld [vmem:[#allocation5 + $0x830] sm:$0xff]  ;;  %v386_v48 = vld [vmem:[#allocation5 + $0x928] sm:$0xff] }
  0xbf   :  { %v371_v47 = vld [vmem:[#allocation5 + $0x8b0] sm:$0xff] }
  0xc0   :  { %3552 = vmatpush1.bf16.msra.mxu0 %v3551_v57  ;;  %v258_v57 = vld [vmem:[#allocation5 + $0x528] sm:$0xff]  ;;  %v3787_v53 = vpack.c.bf16 %v371_v47, %v355_v45  ;;  %v529_v47 = vld [vmem:[#allocation5 + $0xda0] sm:$0xff] }
  0xc1   :  { %3652 = vmatpush1.bf16.msra.mxu1 %v3651_v58  ;;  %3654 = vmatprep.subr.bf16.mxu0 %v3653_v59  ;;  %v274_v58 = vld [vmem:[#allocation5 + $0x5a8] sm:$0xff]  ;;  %v260_v59 = vld [vmem:[#allocation5 + $0x538] sm:$0xff] }
  0xc2   :  { %3754 = vmatprep.subr.bf16.mxu1 %v3753_v62  ;;  %v3673_v62 = vpack.c.bf16 %v274_v58, %v258_v57  ;;  %v3773_v3 = vpack.c.bf16 %v276_v60, %v260_v59  ;;  %v387_v57 = vld [vmem:[#allocation5 + $0x930] sm:$0xff]  ;;  %v418_v60 = vld [vmem:[#allocation5 + $0xa28] sm:$0xff] }
  0xc3   :  { %1126 = vmatmul.mubr.f32.vlgmr.msra.gmra.mrb[0].mxu0 %v4859_v1  ;;  %v403_v59 = vld [vmem:[#allocation5 + $0x9b0] sm:$0xff] }
  0xc4   :  { %1280 = vmatmul.mubr.f32.vlgmr.msra.gmra.mrb[0].mxu1 %v4859_v1  ;;  %3656 = vmatpush1.bf16.msra.mxu0 %v3655_v4  ;;  %v275_v4 = vld [vmem:[#allocation5 + $0x5b0] sm:$0xff]  ;;  %v3791_v0 = vpack.c.bf16 %v403_v59, %v387_v57  ;;  %v561_v59 = vld [vmem:[#allocation5 + $0xea0] sm:$0xff] }
  0xc5   :  { %3756 = vmatpush1.bf16.msra.mxu1 %v3755_v8  ;;  %3133 = vmatprep.mubr.msk.f32.mxu0 %vm977_vm0, %v4861_v5  ;;  %v292_v8 = vld [vmem:[#allocation5 + $0x638] sm:$0xff]  ;;  %v3775_v11 = vpack.c.bf16 %v275_v4, %v259_v2  ;;  %v433_v4 = vld [vmem:[#allocation5 + $0xaa0] sm:$0xff] }
  0xc6   :  { %3135 = vmatprep.mubr.msk.f32.mxu1 %vm977_vm0, %v4861_v5  ;;  %3658 = vmatprep.subr.bf16.mxu0 %v3657_v12  ;;  %v3677_v12 = vpack.c.bf16 %v306_v7, %v290_v6  ;;  %v419_v6 = vld [vmem:[#allocation5 + $0xa30] sm:$0xff] }
  0xc7   :  { %1132 = vmatmul.mubr.f32.gmra.mrb[2].mxu0 %v4865_v21  ;;  %3758 = vmatprep.subr.bf16.mxu1 %v3757_v18  ;;  %v3777_v18 = vpack.c.bf16 %v308_v9, %v292_v8  ;;  %v435_v8 = vld [vmem:[#allocation5 + $0xab0] sm:$0xff]  ;;  %v450_v9 = vld [vmem:[#allocation5 + $0xb28] sm:$0xff] }
  0xc8   :  { %1286 = vmatmul.mubr.f32.gmra.mrb[2].mxu1 %v4865_v21  ;;  %3660 = vmatpush1.bf16.msra.mxu0 %v3659_v22  ;;  %v338_v22 = vld [vmem:[#allocation5 + $0x7a8] sm:$0xff]  ;;  %v3795_v14 = vpack.c.bf16 %v435_v8, %v419_v6  ;;  %v593_v8 = vld [vmem:[#allocation5 + $0xfa0] sm:$0xff] }
  0xc9   :  { %3760 = vmatpush1.bf16.msra.mxu1 %v3759_v23  ;;  %3662 = vmatprep.subr.bf16.mxu0 %v3661_v24  ;;  %v324_v23 = vld [vmem:[#allocation5 + $0x738] sm:$0xff]  ;;  %v3681_v27 = vpack.c.bf16 %v338_v22, %v322_v20  ;;  %v451_v20 = vld [vmem:[#allocation5 + $0xb30] sm:$0xff] }
  0xca   :  { %3762 = vmatprep.subr.bf16.mxu1 %v3761_v28  ;;  %1356 = vmatprep.mubr.f32.mxu0 %v4837_v16  ;;  %v340_v24 = vld [vmem:[#allocation5 + $0x7b8] sm:$0xff]  ;;  %v321_v28 = vld [vmem:[#allocation5 + $0x720] sm:$0xff] }
  0xcb   :  { %1510 = vmatprep.mubr.f32.mxu1 %v4837_v16  ;;  %v3771_v16 = vpack.c.bf16 %v243_v56, %v227_v54  ;;  %v3781_v33 = vpack.c.bf16 %v340_v24, %v324_v23  ;;  %v3683_v39 = vpack.c.bf16 %v337_v30, %v321_v28  ;;  %v401_v56 = vld [vmem:[#allocation5 + $0x9a0] sm:$0xff]  ;;  %v467_v23 = vld [vmem:[#allocation5 + $0xbb0] sm:$0xff]  ;;  %v482_v24 = vld [vmem:[#allocation5 + $0xc28] sm:$0xff] }
  0xcc   :  { %3664 = vmatpush1.bf16.msra.mxu0 %v3663_v36  ;;  %v370_v36 = vld [vmem:[#allocation5 + $0x8a8] sm:$0xff]  ;;  %v3799_v30 = vpack.c.bf16 %v467_v23, %v451_v20  ;;  %v625_v23 = vld [vmem:[#allocation5 + $0x10a0] sm:$0xff] }
  0xcd   :  { %3764 = vmatpush1.bf16.msra.mxu1 %v3763_v37  ;;  %3666 = vmatprep.subr.bf16.mxu0 %v3665_v38  ;;  %v356_v37 = vld [vmem:[#allocation5 + $0x838] sm:$0xff]  ;;  %v3685_v41 = vpack.c.bf16 %v370_v36, %v354_v35  ;;  %v483_v35 = vld [vmem:[#allocation5 + $0xc30] sm:$0xff] }
  0xce   :  { %3766 = vmatprep.subr.bf16.mxu1 %v3765_v42  ;;  %v372_v38 = vld [vmem:[#allocation5 + $0x8b8] sm:$0xff]  ;;  %v353_v42 = vld [vmem:[#allocation5 + $0x820] sm:$0xff] }
  0xcf   :  { %v3785_v46 = vpack.c.bf16 %v372_v38, %v356_v37  ;;  %v3687_v52 = vpack.c.bf16 %v369_v44, %v353_v42  ;;  %v499_v37 = vld [vmem:[#allocation5 + $0xcb0] sm:$0xff]  ;;  %v514_v38 = vld [vmem:[#allocation5 + $0xd28] sm:$0xff] }
  0xd0   :  { %3668 = vmatpush1.bf16.msra.mxu0 %v3667_v49  ;;  %v402_v49 = vld [vmem:[#allocation5 + $0x9a8] sm:$0xff]  ;;  %v3803_v44 = vpack.c.bf16 %v499_v37, %v483_v35  ;;  %v657_v37 = vld [vmem:[#allocation5 + $0x11a0] sm:$0xff] }
  0xd1   :  { %3768 = vmatpush1.bf16.msra.mxu1 %v3767_v50  ;;  %3670 = vmatprep.subr.bf16.mxu0 %v3669_v51  ;;  %v388_v50 = vld [vmem:[#allocation5 + $0x938] sm:$0xff]  ;;  %v3689_v54 = vpack.c.bf16 %v402_v49, %v386_v48  ;;  %v515_v48 = vld [vmem:[#allocation5 + $0xd30] sm:$0xff] }
  0xd2   :  { %3770 = vmatprep.subr.bf16.mxu1 %v3769_v55  ;;  %v404_v51 = vld [vmem:[#allocation5 + $0x9b8] sm:$0xff]  ;;  %v385_v55 = vld [vmem:[#allocation5 + $0x920] sm:$0xff] }
  0xd3   :  { %v3789_v58 = vpack.c.bf16 %v404_v51, %v388_v50  ;;  %v3691_v63 = vpack.c.bf16 %v401_v56, %v385_v55  ;;  %v531_v50 = vld [vmem:[#allocation5 + $0xdb0] sm:$0xff]  ;;  %v546_v51 = vld [vmem:[#allocation5 + $0xe28] sm:$0xff] }
  0xd4   :  { %3672 = vmatpush1.bf16.msra.mxu0 %v3671_v61  ;;  %v434_v61 = vld [vmem:[#allocation5 + $0xaa8] sm:$0xff]  ;;  %v3807_v56 = vpack.c.bf16 %v531_v50, %v515_v48  ;;  %v689_v50 = vld [vmem:[#allocation5 + $0x12a0] sm:$0xff] }
  0xd5   :  { %3772 = vmatpush1.bf16.msra.mxu1 %v3771_v16  ;;  %3674 = vmatprep.subr.bf16.mxu0 %v3673_v62  ;;  %v420_v16 = vld [vmem:[#allocation5 + $0xa38] sm:$0xff]  ;;  %v3693_v2 = vpack.c.bf16 %v434_v61, %v418_v60  ;;  %v547_v60 = vld [vmem:[#allocation5 + $0xe30] sm:$0xff] }
  0xd6   :  { %3774 = vmatprep.subr.bf16.mxu1 %v3773_v3  ;;  %v436_v62 = vld [vmem:[#allocation5 + $0xab8] sm:$0xff]  ;;  %v417_v3 = vld [vmem:[#allocation5 + $0xa20] sm:$0xff] }
  0xd7   :  { %v3793_v7 = vpack.c.bf16 %v436_v62, %v420_v16  ;;  %v3695_v13 = vpack.c.bf16 %v433_v4, %v417_v3  ;;  %v563_v16 = vld [vmem:[#allocation5 + $0xeb0] sm:$0xff]  ;;  %v578_v62 = vld [vmem:[#allocation5 + $0xf28] sm:$0xff] }
  0xd8   :  { %3676 = vmatpush1.bf16.msra.mxu0 %v3675_v10  ;;  %v466_v10 = vld [vmem:[#allocation5 + $0xba8] sm:$0xff]  ;;  %v3811_v4 = vpack.c.bf16 %v563_v16, %v547_v60  ;;  %v705_v60 = vld [vmem:[#allocation5 + $0x1320] sm:$0xff]  ;;  %v707_v16 = vld [vmem:[#allocation5 + $0x1330] sm:$0xff] }
  0xd9   :  { %3776 = vmatpush1.bf16.msra.mxu1 %v3775_v11  ;;  %3678 = vmatprep.subr.bf16.mxu0 %v3677_v12  ;;  %v452_v11 = vld [vmem:[#allocation5 + $0xb38] sm:$0xff]  ;;  %v3697_v17 = vpack.c.bf16 %v466_v10, %v450_v9  ;;  %v579_v9 = vld [vmem:[#allocation5 + $0xf30] sm:$0xff] }
  0xda   :  { %3778 = vmatprep.subr.bf16.mxu1 %v3777_v18  ;;  %v468_v12 = vld [vmem:[#allocation5 + $0xbb8] sm:$0xff]  ;;  %v449_v18 = vld [vmem:[#allocation5 + $0xb20] sm:$0xff] }
  0xdb   :  { %v3797_v22 = vpack.c.bf16 %v468_v12, %v452_v11  ;;  %v3699_v28 = vpack.c.bf16 %v465_v19, %v449_v18  ;;  %v595_v11 = vld [vmem:[#allocation5 + $0xfb0] sm:$0xff]  ;;  %v610_v12 = vld [vmem:[#allocation5 + $0x1028] sm:$0xff] }
  0xdc   :  { %3680 = vmatpush1.bf16.msra.mxu0 %v3679_v25  ;;  %v498_v25 = vld [vmem:[#allocation5 + $0xca8] sm:$0xff]  ;;  %v3815_v19 = vpack.c.bf16 %v595_v11, %v579_v9  ;;  %v739_v9 = vld [vmem:[#allocation5 + $0x1430] sm:$0xff] }
  0xdd   :  { %3780 = vmatpush1.bf16.msra.mxu1 %v3779_v26  ;;  %3682 = vmatprep.subr.bf16.mxu0 %v3681_v27  ;;  %v484_v26 = vld [vmem:[#allocation5 + $0xc38] sm:$0xff]  ;;  %v3701_v32 = vpack.c.bf16 %v498_v25, %v482_v24  ;;  %v611_v24 = vld [vmem:[#allocation5 + $0x1030] sm:$0xff] }
  0xde   :  { %3782 = vmatprep.subr.bf16.mxu1 %v3781_v33  ;;  %v500_v27 = vld [vmem:[#allocation5 + $0xcb8] sm:$0xff]  ;;  %v481_v33 = vld [vmem:[#allocation5 + $0xc20] sm:$0xff]  ;;  %v755_v11 = vld [vmem:[#allocation5 + $0x14b0] sm:$0xff] }
  0xdf   :  { %v3801_v36 = vpack.c.bf16 %v500_v27, %v484_v26  ;;  %v3703_v42 = vpack.c.bf16 %v497_v34, %v481_v33  ;;  %v627_v26 = vld [vmem:[#allocation5 + $0x10b0] sm:$0xff]  ;;  %v642_v27 = vld [vmem:[#allocation5 + $0x1128] sm:$0xff] }
  0xe0   :  { %3684 = vmatpush1.bf16.msra.mxu0 %v3683_v39  ;;  %v530_v39 = vld [vmem:[#allocation5 + $0xda8] sm:$0xff]  ;;  %v3819_v34 = vpack.c.bf16 %v627_v26, %v611_v24 }
  0xe1   :  { %3784 = vmatpush1.bf16.msra.mxu1 %v3783_v40  ;;  %3686 = vmatprep.subr.bf16.mxu0 %v3685_v41  ;;  %v516_v40 = vld [vmem:[#allocation5 + $0xd38] sm:$0xff]  ;;  %v3705_v45 = vpack.c.bf16 %v530_v39, %v514_v38  ;;  %v643_v38 = vld [vmem:[#allocation5 + $0x1130] sm:$0xff]  ;;  %v802_v26 = vld [vmem:[#allocation5 + $0x1628] sm:$0xff] }
  0xe2   :  { %3786 = vmatprep.subr.bf16.mxu1 %v3785_v46  ;;  %v532_v41 = vld [vmem:[#allocation5 + $0xdb8] sm:$0xff]  ;;  %v513_v46 = vld [vmem:[#allocation5 + $0xd20] sm:$0xff] }
  0xe3   :  { %v3805_v49 = vpack.c.bf16 %v532_v41, %v516_v40  ;;  %v3707_v55 = vpack.c.bf16 %v529_v47, %v513_v46  ;;  %v659_v40 = vld [vmem:[#allocation5 + $0x11b0] sm:$0xff]  ;;  %v674_v41 = vld [vmem:[#allocation5 + $0x1228] sm:$0xff] }
  0xe4   :  { %3688 = vmatpush1.bf16.msra.mxu0 %v3687_v52  ;;  %v562_v52 = vld [vmem:[#allocation5 + $0xea8] sm:$0xff]  ;;  %v3823_v47 = vpack.c.bf16 %v659_v40, %v643_v38 }
  0xe5   :  { %3788 = vmatpush1.bf16.msra.mxu1 %v3787_v53  ;;  %3690 = vmatprep.subr.bf16.mxu0 %v3689_v54  ;;  %v548_v53 = vld [vmem:[#allocation5 + $0xe38] sm:$0xff]  ;;  %v3709_v57 = vpack.c.bf16 %v562_v52, %v546_v51  ;;  %v675_v51 = vld [vmem:[#allocation5 + $0x1230] sm:$0xff]  ;;  %v834_v40 = vld [vmem:[#allocation5 + $0x1728] sm:$0xff] }
  0xe6   :  { %3790 = vmatprep.subr.bf16.mxu1 %v3789_v58  ;;  %v564_v54 = vld [vmem:[#allocation5 + $0xeb8] sm:$0xff]  ;;  %v545_v58 = vld [vmem:[#allocation5 + $0xe20] sm:$0xff] }
  0xe7   :  { %v3809_v61 = vpack.c.bf16 %v564_v54, %v548_v53  ;;  %v3711_v3 = vpack.c.bf16 %v561_v59, %v545_v58  ;;  %v691_v53 = vld [vmem:[#allocation5 + $0x12b0] sm:$0xff]  ;;  %v706_v54 = vld [vmem:[#allocation5 + $0x1328] sm:$0xff] }
  0xe8   :  { %3692 = vmatpush1.bf16.msra.mxu0 %v3691_v63  ;;  %v594_v63 = vld [vmem:[#allocation5 + $0xfa8] sm:$0xff]  ;;  %v3827_v58 = vpack.c.bf16 %v691_v53, %v675_v51 }
  0xe9   :  { %3792 = vmatpush1.bf16.msra.mxu1 %v3791_v0  ;;  %3694 = vmatprep.subr.bf16.mxu0 %v3693_v2  ;;  %v580_v0 = vld [vmem:[#allocation5 + $0xf38] sm:$0xff]  ;;  %v3713_v6 = vpack.c.bf16 %v594_v63, %v578_v62  ;;  %v723_v63 = vld [vmem:[#allocation5 + $0x13b0] sm:$0xff]  ;;  %v866_v53 = vld [vmem:[#allocation5 + $0x1828] sm:$0xff] }
  0xea   :  { %3794 = vmatprep.subr.bf16.mxu1 %v3793_v7  ;;  %v596_v2 = vld [vmem:[#allocation5 + $0xfb8] sm:$0xff]  ;;  %v577_v7 = vld [vmem:[#allocation5 + $0xf20] sm:$0xff] }
  0xeb   :  { %v3813_v10 = vpack.c.bf16 %v596_v2, %v580_v0  ;;  %v3715_v18 = vpack.c.bf16 %v593_v8, %v577_v7  ;;  %v738_v0 = vld [vmem:[#allocation5 + $0x1428] sm:$0xff]  ;;  %v737_v7 = vld [vmem:[#allocation5 + $0x1420] sm:$0xff] }
  0xec   :  { %3696 = vmatpush1.bf16.msra.mxu0 %v3695_v13  ;;  %v626_v13 = vld [vmem:[#allocation5 + $0x10a8] sm:$0xff]  ;;  %v753_v8 = vld [vmem:[#allocation5 + $0x14a0] sm:$0xff] }
  0xed   :  { %3796 = vmatpush1.bf16.msra.mxu1 %v3795_v14  ;;  %3698 = vmatprep.subr.bf16.mxu0 %v3697_v17  ;;  %v612_v14 = vld [vmem:[#allocation5 + $0x1038] sm:$0xff]  ;;  %v3717_v20 = vpack.c.bf16 %v626_v13, %v610_v12  ;;  %v754_v2 = vld [vmem:[#allocation5 + $0x14a8] sm:$0xff] }
  0xee   :  { %3798 = vmatprep.subr.bf16.mxu1 %v3797_v22  ;;  %v628_v17 = vld [vmem:[#allocation5 + $0x10b8] sm:$0xff]  ;;  %v609_v22 = vld [vmem:[#allocation5 + $0x1020] sm:$0xff]  ;;  %v770_v12 = vld [vmem:[#allocation5 + $0x1528] sm:$0xff] }
  0xef   :  { %v3817_v25 = vpack.c.bf16 %v628_v17, %v612_v14  ;;  %v3719_v33 = vpack.c.bf16 %v625_v23, %v609_v22  ;;  %v786_v13 = vld [vmem:[#allocation5 + $0x15a8] sm:$0xff]  ;;  %v772_v14 = vld [vmem:[#allocation5 + $0x1538] sm:$0xff]  ;;  %v785_v22 = vld [vmem:[#allocation5 + $0x15a0] sm:$0xff] }
  0xf0   :  { %3700 = vmatpush1.bf16.msra.mxu0 %v3699_v28  ;;  %v658_v28 = vld [vmem:[#allocation5 + $0x11a8] sm:$0xff]  ;;  %v788_v17 = vld [vmem:[#allocation5 + $0x15b8] sm:$0xff]  ;;  %v771_v23 = vld [vmem:[#allocation5 + $0x1530] sm:$0xff] }
  0xf1   :  { %3800 = vmatpush1.bf16.msra.mxu1 %v3799_v30  ;;  %3702 = vmatprep.subr.bf16.mxu0 %v3701_v32  ;;  %v644_v30 = vld [vmem:[#allocation5 + $0x1138] sm:$0xff]  ;;  %v3721_v35 = vpack.c.bf16 %v658_v28, %v642_v27  ;;  %v3837_v24 = vpack.c.bf16 %v788_v17, %v772_v14  ;;  %v818_v27 = vld [vmem:[#allocation5 + $0x16a8] sm:$0xff] }
  0xf2   :  { %3802 = vmatprep.subr.bf16.mxu1 %v3801_v36  ;;  %v660_v32 = vld [vmem:[#allocation5 + $0x11b8] sm:$0xff]  ;;  %v641_v36 = vld [vmem:[#allocation5 + $0x1120] sm:$0xff] }
  0xf3   :  { %v3821_v39 = vpack.c.bf16 %v660_v32, %v644_v30  ;;  %v3723_v46 = vpack.c.bf16 %v657_v37, %v641_v36  ;;  %v804_v28 = vld [vmem:[#allocation5 + $0x1638] sm:$0xff]  ;;  %v817_v36 = vld [vmem:[#allocation5 + $0x16a0] sm:$0xff]  ;;  %v803_v37 = vld [vmem:[#allocation5 + $0x1630] sm:$0xff] }
  0xf4   :  { %3704 = vmatpush1.bf16.msra.mxu0 %v3703_v42  ;;  %v690_v42 = vld [vmem:[#allocation5 + $0x12a8] sm:$0xff]  ;;  %v820_v30 = vld [vmem:[#allocation5 + $0x16b8] sm:$0xff] }
  0xf5   :  { %3804 = vmatpush1.bf16.msra.mxu1 %v3803_v44  ;;  %3706 = vmatprep.subr.bf16.mxu0 %v3705_v45  ;;  %v676_v44 = vld [vmem:[#allocation5 + $0x1238] sm:$0xff]  ;;  %v3725_v48 = vpack.c.bf16 %v690_v42, %v674_v41  ;;  %v3841_v38 = vpack.c.bf16 %v820_v30, %v804_v28  ;;  %v850_v41 = vld [vmem:[#allocation5 + $0x17a8] sm:$0xff] }
  0xf6   :  { %3806 = vmatprep.subr.bf16.mxu1 %v3805_v49  ;;  %v692_v45 = vld [vmem:[#allocation5 + $0x12b8] sm:$0xff]  ;;  %v673_v49 = vld [vmem:[#allocation5 + $0x1220] sm:$0xff] }
  0xf7   :  { %v3825_v52 = vpack.c.bf16 %v692_v45, %v676_v44  ;;  %v836_v42 = vld [vmem:[#allocation5 + $0x1738] sm:$0xff] }
  0xf8   :  { %3708 = vmatpush1.bf16.msra.mxu0 %v3707_v55  ;;  %v722_v55 = vld [vmem:[#allocation5 + $0x13a8] sm:$0xff]  ;;  %v852_v44 = vld [vmem:[#allocation5 + $0x17b8] sm:$0xff] }
  0xf9   :  { %3808 = vmatpush1.bf16.msra.mxu1 %v3807_v56  ;;  %3710 = vmatprep.subr.bf16.mxu0 %v3709_v57  ;;  %v708_v56 = vld [vmem:[#allocation5 + $0x1338] sm:$0xff]  ;;  %v3729_v59 = vpack.c.bf16 %v722_v55, %v706_v54  ;;  %v3845_v51 = vpack.c.bf16 %v852_v44, %v836_v42  ;;  %v882_v54 = vld [vmem:[#allocation5 + $0x18a8] sm:$0xff] }
  0xfa   :  { %3810 = vmatprep.subr.bf16.mxu1 %v3809_v61  ;;  %v724_v57 = vld [vmem:[#allocation5 + $0x13b8] sm:$0xff]  ;;  %v721_v61 = vld [vmem:[#allocation5 + $0x13a0] sm:$0xff] }
  0xfb   :  { %v3829_v62 = vpack.c.bf16 %v724_v57, %v708_v56  ;;  %v868_v55 = vld [vmem:[#allocation5 + $0x1838] sm:$0xff] }
  0xfc   :  { %3712 = vmatpush1.bf16.msra.mxu0 %v3711_v3  ;;  %v756_v3 = vld [vmem:[#allocation5 + $0x14b8] sm:$0xff] }
  0xfd   :  { %3812 = vmatpush1.bf16.msra.mxu1 %v3811_v4  ;;  %3714 = vmatprep.subr.bf16.mxu0 %v3713_v6  ;;  %v3831_v4 = vpack.c.bf16 %v723_v63, %v707_v16  ;;  %v3733_v6 = vpack.c.bf16 %v754_v2, %v738_v0  ;;  %v884_v56 = vld [vmem:[#allocation5 + $0x18b8] sm:$0xff]  ;;  %v102_v63 = vld [vmem:[#allocation5 + $0x48] sm:$0xff] }
  0xfe   :  { %3814 = vmatprep.subr.bf16.mxu1 %v3813_v10  ;;  %v3849_v16 = vpack.c.bf16 %v884_v56, %v868_v55  ;;  %v118_v0 = vld [vmem:[#allocation5 + $0xc8] sm:$0xff]  ;;  %v104_v2 = vld [vmem:[#allocation5 + $0x58] sm:$0xff] }
  0xff   :  { %v136_v14 = vld [vmem:[#allocation5 + $0x158] sm:$0xff] }
 0x100   :  { %3716 = vmatpush1.bf16.msra.mxu0 %v3715_v18  ;;  %v3735_v18 = vpack.c.bf16 %v753_v8, %v737_v7  ;;  %v117_v7 = vld [vmem:[#allocation5 + $0xc0] sm:$0xff]  ;;  %v152_v17 = vld [vmem:[#allocation5 + $0x1d8] sm:$0xff] }
 0x101   :  { %3816 = vmatpush1.bf16.msra.mxu1 %v3815_v19  ;;  %3718 = vmatprep.subr.bf16.mxu0 %v3717_v20  ;;  %v3737_v19 = vpack.c.bf16 %v786_v13, %v770_v12  ;;  %v769_v20 = vld [vmem:[#allocation5 + $0x1520] sm:$0xff]  ;;  %v150_v12 = vld [vmem:[#allocation5 + $0x1c8] sm:$0xff]  ;;  %v184_v28 = vld [vmem:[#allocation5 + $0x2d8] sm:$0xff] }
 0x102   :  { %3818 = vmatprep.subr.bf16.mxu1 %v3817_v25  ;;  %v787_v25 = vld [vmem:[#allocation5 + $0x15b0] sm:$0xff]  ;;  %v3739_v32 = vpack.c.bf16 %v785_v22, %v769_v20 }
 0x103   :  { %1357 = vmatmul.mubr.f32.vlgmr.msra.gmra.mrb[4].mxu0 %v4841_v15  ;;  %v135_v20 = vld [vmem:[#allocation5 + $0x150] sm:$0xff] }
 0x104   :  { %3720 = vmatpush1.bf16.msra.mxu0 %v3719_v33  ;;  %1511 = vmatmul.mubr.f32.vlgmr.msra.gmra.mrb[4].mxu1 %v4841_v15  ;;  %v3727_v15 = vpack.c.bf16 %v689_v50, %v673_v49  ;;  %v3839_v33 = vpack.c.bf16 %v787_v25, %v771_v23  ;;  %v849_v49 = vld [vmem:[#allocation5 + $0x17a0] sm:$0xff]  ;;  %v835_v50 = vld [vmem:[#allocation5 + $0x1730] sm:$0xff]  ;;  %v182_v25 = vld [vmem:[#allocation5 + $0x2c8] sm:$0xff] }
 0x105   :  { %3820 = vmatpush1.bf16.msra.mxu1 %v3819_v34  ;;  %3722 = vmatprep.subr.bf16.mxu0 %v3721_v35  ;;  %v3741_v34 = vpack.c.bf16 %v818_v27, %v802_v26  ;;  %v801_v35 = vld [vmem:[#allocation5 + $0x1620] sm:$0xff]  ;;  %v151_v23 = vld [vmem:[#allocation5 + $0x1d0] sm:$0xff]  ;;  %v3957_v26 = vpack.c.bf16 %v152_v17, %v136_v14  ;;  %v168_v27 = vld [vmem:[#allocation5 + $0x258] sm:$0xff] }
 0x106   :  { %3822 = vmatprep.subr.bf16.mxu1 %v3821_v39  ;;  %1362 = vmatprep.mubr.f32.mxu0 %v4844_v29  ;;  %v819_v39 = vld [vmem:[#allocation5 + $0x16b0] sm:$0xff]  ;;  %v3743_v45 = vpack.c.bf16 %v817_v36, %v801_v35  ;;  %v181_v35 = vld [vmem:[#allocation5 + $0x2c0] sm:$0xff] }
 0x107   :  { %1516 = vmatprep.mubr.f32.mxu1 %v4844_v29  ;;  %1363 = vmatmul.mubr.f32.gmra.mrb[6].mxu0 %v4847_v31  ;;  %v740_v29 = vld [vmem:[#allocation5 + $0x1438] sm:$0xff]  ;;  %v167_v36 = vld [vmem:[#allocation5 + $0x250] sm:$0xff]  ;;  %v293_v17 = vld [vmem:[#allocation5 + $0x640] sm:$0xff] }
 0x108   :  { %3724 = vmatpush1.bf16.msra.mxu0 %v3723_v46  ;;  %1517 = vmatmul.mubr.f32.gmra.mrb[6].mxu1 %v4847_v31  ;;  %v3731_v31 = vpack.c.bf16 %v721_v61, %v705_v60  ;;  %v3833_v10 = vpack.c.bf16 %v756_v3, %v740_v29  ;;  %v3843_v46 = vpack.c.bf16 %v819_v39, %v803_v37  ;;  %v881_v60 = vld [vmem:[#allocation5 + $0x18a0] sm:$0xff]  ;;  %v867_v61 = vld [vmem:[#allocation5 + $0x1830] sm:$0xff]  ;;  %v120_v29 = vld [vmem:[#allocation5 + $0xd8] sm:$0xff] }
 0x109   :  { %3824 = vmatpush1.bf16.msra.mxu1 %v3823_v47  ;;  %3726 = vmatprep.subr.bf16.mxu0 %v3725_v48  ;;  %v3745_v47 = vpack.c.bf16 %v850_v41, %v834_v40  ;;  %v833_v48 = vld [vmem:[#allocation5 + $0x1720] sm:$0xff]  ;;  %v3953_v8 = vpack.c.bf16 %v120_v29, %v104_v2  ;;  %v3961_v37 = vpack.c.bf16 %v184_v28, %v168_v27  ;;  %v198_v39 = vld [vmem:[#allocation5 + $0x348] sm:$0xff]  ;;  %v216_v41 = vld [vmem:[#allocation5 + $0x3d8] sm:$0xff] }
 0x10a   :  { %3826 = vmatprep.subr.bf16.mxu1 %v3825_v52  ;;  %3136 = vmatprep.mubr.msk.f32.mxu0 %vm977_vm0, %v4852_v43  ;;  %v851_v52 = vld [vmem:[#allocation5 + $0x17b0] sm:$0xff]  ;;  %v3747_v57 = vpack.c.bf16 %v849_v49, %v833_v48  ;;  %v214_v40 = vld [vmem:[#allocation5 + $0x3c8] sm:$0xff] }
 0x10b   :  { %3138 = vmatprep.mubr.msk.f32.mxu1 %vm977_vm0, %v4852_v43  ;;  %v3835_v43 = vpack.c.bf16 %v755_v11, %v739_v9  ;;  %v103_v9 = vld [vmem:[#allocation5 + $0x50] sm:$0xff]  ;;  %v134_v11 = vld [vmem:[#allocation5 + $0x148] sm:$0xff] }
 0x10c   :  { %3728 = vmatpush1.bf16.msra.mxu0 %v3727_v15  ;;  %v3847_v15 = vpack.c.bf16 %v851_v52, %v835_v50  ;;  %v3857_v22 = vpack.c.bf16 %v150_v12, %v134_v11  ;;  %v215_v49 = vld [vmem:[#allocation5 + $0x3d0] sm:$0xff]  ;;  %v230_v50 = vld [vmem:[#allocation5 + $0x448] sm:$0xff]  ;;  %v312_v11 = vld [vmem:[#allocation5 + $0x6d8] sm:$0xff] }
 0x10d   :  { %3828 = vmatpush1.bf16.msra.mxu1 %v3827_v58  ;;  %3730 = vmatprep.subr.bf16.mxu0 %v3729_v59  ;;  %v3749_v58 = vpack.c.bf16 %v882_v54, %v866_v53  ;;  %v865_v59 = vld [vmem:[#allocation5 + $0x1820] sm:$0xff]  ;;  %v4893_v52 = vld [vmem:[#allocation2 + $0x8] sm:$0xff]  ;;  %v232_v53 = vld [vmem:[#allocation5 + $0x458] sm:$0xff] }
 0x10e   :  { %3830 = vmatprep.subr.bf16.mxu1 %v3829_v62  ;;  %v883_v62 = vld [vmem:[#allocation5 + $0x18b0] sm:$0xff]  ;;  %v3751_v3 = vpack.c.bf16 %v881_v60, %v865_v59 }
 0x10f   :  { %v247_v60 = vld [vmem:[#allocation5 + $0x4d0] sm:$0xff] }
 0x110   :  { %3732 = vmatpush1.bf16.msra.mxu0 %v3731_v31  ;;  %v3851_v31 = vpack.c.bf16 %v883_v62, %v867_v61  ;;  %v262_v61 = vld [vmem:[#allocation5 + $0x548] sm:$0xff]  ;;  %v264_v62 = vld [vmem:[#allocation5 + $0x558] sm:$0xff] }
 0x111   :  { %3832 = vmatpush1.bf16.msra.mxu1 %v3831_v4  ;;  %3734 = vmatprep.subr.bf16.mxu0 %v3733_v6  ;;  %v3853_v4 = vpack.c.bf16 %v118_v0, %v102_v63  ;;  %v101_v6 = vld [vmem:[#allocation5 + $0x40] sm:$0xff]  ;;  %v280_v63 = vld [vmem:[#allocation5 + $0x5d8] sm:$0xff] }
 0x112   :  { %3834 = vmatprep.subr.bf16.mxu1 %v3833_v10  ;;  %v119_v10 = vld [vmem:[#allocation5 + $0xd0] sm:$0xff]  ;;  %v3855_v13 = vpack.c.bf16 %v117_v7, %v101_v6  ;;  %v3973_v6 = vpack.c.bf16 %v280_v63, %v264_v62 }
 0x113   :  { %v279_v7 = vld [vmem:[#allocation5 + $0x5d0] sm:$0xff] }
 0x114   :  { %3736 = vmatpush1.bf16.msra.mxu0 %v3735_v18  ;;  %v3955_v18 = vpack.c.bf16 %v119_v10, %v103_v9  ;;  %v310_v9 = vld [vmem:[#allocation5 + $0x6c8] sm:$0xff]  ;;  %v296_v10 = vld [vmem:[#allocation5 + $0x658] sm:$0xff] }
 0x115   :  { %3836 = vmatpush1.bf16.msra.mxu1 %v3835_v43  ;;  %3738 = vmatprep.subr.bf16.mxu0 %v3737_v19  ;;  %v133_v43 = vld [vmem:[#allocation5 + $0x140] sm:$0xff] }
 0x116   :  { %3838 = vmatprep.subr.bf16.mxu1 %v3837_v24  ;;  %v149_v19 = vld [vmem:[#allocation5 + $0x1c0] sm:$0xff]  ;;  %v166_v24 = vld [vmem:[#allocation5 + $0x248] sm:$0xff] }
 0x117   :  { %v3859_v30 = vpack.c.bf16 %v149_v19, %v133_v43  ;;  %v295_v43 = vld [vmem:[#allocation5 + $0x650] sm:$0xff]  ;;  %v3977_v19 = vpack.c.bf16 %v312_v11, %v296_v10 }
 0x118   :  { %3740 = vmatpush1.bf16.msra.mxu0 %v3739_v32  ;;  %v3959_v32 = vpack.c.bf16 %v151_v23, %v135_v20  ;;  %v311_v20 = vld [vmem:[#allocation5 + $0x6d0] sm:$0xff]  ;;  %v342_v23 = vld [vmem:[#allocation5 + $0x7c8] sm:$0xff] }
 0x119   :  { %3840 = vmatpush1.bf16.msra.mxu1 %v3839_v33  ;;  %3742 = vmatprep.subr.bf16.mxu0 %v3741_v34  ;;  %v3861_v33 = vpack.c.bf16 %v182_v25, %v166_v24  ;;  %v165_v34 = vld [vmem:[#allocation5 + $0x240] sm:$0xff]  ;;  %v328_v24 = vld [vmem:[#allocation5 + $0x758] sm:$0xff]  ;;  %v3979_v27 = vpack.c.bf16 %v311_v20, %v295_v43  ;;  %v486_v43 = vld [vmem:[#allocation5 + $0xc48] sm:$0xff] }
 0x11a   :  { %3842 = vmatprep.subr.bf16.mxu1 %v3841_v38  ;;  %v183_v38 = vld [vmem:[#allocation5 + $0x2d0] sm:$0xff]  ;;  %v3863_v42 = vpack.c.bf16 %v181_v35, %v165_v34  ;;  %v344_v25 = vld [vmem:[#allocation5 + $0x7d8] sm:$0xff] }
 0x11b   :  { %v3963_v44 = vpack.c.bf16 %v183_v38, %v167_v36  ;;  %v3981_v34 = vpack.c.bf16 %v344_v25, %v328_v24  ;;  %v343_v35 = vld [vmem:[#allocation5 + $0x7d0] sm:$0xff]  ;;  %v358_v36 = vld [vmem:[#allocation5 + $0x848] sm:$0xff]  ;;  %v360_v38 = vld [vmem:[#allocation5 + $0x858] sm:$0xff] }
 0x11c   :  { %3744 = vmatpush1.bf16.msra.mxu0 %v3743_v45  ;;  %v3865_v45 = vpack.c.bf16 %v214_v40, %v198_v39  ;;  %v376_v39 = vld [vmem:[#allocation5 + $0x8d8] sm:$0xff] }
 0x11d   :  { %3844 = vmatpush1.bf16.msra.mxu1 %v3843_v46  ;;  %3746 = vmatprep.subr.bf16.mxu0 %v3745_v47  ;;  %v197_v46 = vld [vmem:[#allocation5 + $0x340] sm:$0xff]  ;;  %v199_v47 = vld [vmem:[#allocation5 + $0x350] sm:$0xff]  ;;  %v488_v20 = vld [vmem:[#allocation5 + $0xc58] sm:$0xff] }
 0x11e   :  { %3846 = vmatprep.subr.bf16.mxu1 %v3845_v51  ;;  %v246_v51 = vld [vmem:[#allocation5 + $0x4c8] sm:$0xff]  ;;  %v3967_v55 = vpack.c.bf16 %v215_v49, %v199_v47  ;;  %v392_v49 = vld [vmem:[#allocation5 + $0x958] sm:$0xff] }
 0x11f   :  { %v3869_v56 = vpack.c.bf16 %v246_v51, %v230_v50  ;;  %v390_v47 = vld [vmem:[#allocation5 + $0x948] sm:$0xff]  ;;  %v408_v50 = vld [vmem:[#allocation5 + $0x9d8] sm:$0xff] }
 0x120   :  { %3748 = vmatpush1.bf16.msra.mxu0 %v3747_v57  ;;  %v229_v57 = vld [vmem:[#allocation5 + $0x440] sm:$0xff] }
 0x121   :  { %3848 = vmatpush1.bf16.msra.mxu1 %v3847_v15  ;;  %3750 = vmatprep.subr.bf16.mxu0 %v3749_v58  ;;  %v245_v15 = vld [vmem:[#allocation5 + $0x4c0] sm:$0xff]  ;;  %v231_v58 = vld [vmem:[#allocation5 + $0x450] sm:$0xff] }
 0x122   :  { %3850 = vmatprep.subr.bf16.mxu1 %v3849_v16  ;;  %v278_v16 = vld [vmem:[#allocation5 + $0x5c8] sm:$0xff]  ;;  %v3871_v0 = vpack.c.bf16 %v245_v15, %v229_v57  ;;  %v3971_v2 = vpack.c.bf16 %v247_v60, %v231_v58  ;;  %v3989_v57 = vpack.c.bf16 %v408_v50, %v392_v49  ;;  %v407_v15 = vld [vmem:[#allocation5 + $0x9d0] sm:$0xff]  ;;  %v424_v60 = vld [vmem:[#allocation5 + $0xa58] sm:$0xff] }
 0x123   :  { %v3873_v29 = vpack.c.bf16 %v278_v16, %v262_v61  ;;  %v422_v58 = vld [vmem:[#allocation5 + $0xa48] sm:$0xff]  ;;  %v440_v61 = vld [vmem:[#allocation5 + $0xad8] sm:$0xff] }
 0x124   :  { %3752 = vmatpush1.bf16.msra.mxu0 %v3751_v3  ;;  %v261_v3 = vld [vmem:[#allocation5 + $0x540] sm:$0xff] }
 0x125   :  { %3852 = vmatpush1.bf16.msra.mxu1 %v3851_v31  ;;  %3854 = vmatprep.subr.bf16.mxu0 %v3853_v4  ;;  %v277_v31 = vld [vmem:[#allocation5 + $0x5c0] sm:$0xff]  ;;  %v263_v4 = vld [vmem:[#allocation5 + $0x550] sm:$0xff] }
 0x126   :  { %3954 = vmatprep.subr.bf16.mxu1 %v3953_v8  ;;  %v294_v8 = vld [vmem:[#allocation5 + $0x648] sm:$0xff]  ;;  %v3875_v12 = vpack.c.bf16 %v277_v31, %v261_v3  ;;  %v3993_v3 = vpack.c.bf16 %v440_v61, %v424_v60  ;;  %v439_v31 = vld [vmem:[#allocation5 + $0xad0] sm:$0xff] }
 0x127   :  { %1434 = vmatmul.mubr.f32.vlgmr.msra.gmra.mrb[4].mxu0 %v4859_v1  ;;  %v3877_v14 = vpack.c.bf16 %v310_v9, %v294_v8  ;;  %v472_v8 = vld [vmem:[#allocation5 + $0xbd8] sm:$0xff] }
 0x128   :  { %1588 = vmatmul.mubr.f32.vlgmr.msra.gmra.mrb[4].mxu1 %v4859_v1  ;;  %3856 = vmatpush1.bf16.msra.mxu0 %v3855_v13  ;;  %v200_v1 = vld [vmem:[#allocation5 + $0x358] sm:$0xff]  ;;  %v3975_v13 = vpack.c.bf16 %v279_v7, %v263_v4  ;;  %v454_v4 = vld [vmem:[#allocation5 + $0xb48] sm:$0xff] }
 0x129   :  { %3956 = vmatpush1.bf16.msra.mxu1 %v3955_v18  ;;  %3137 = vmatprep.mubr.msk.f32.mxu0 %vm977_vm0, %v4861_v5  ;;  %v3965_v48 = vpack.c.bf16 %v216_v41, %v200_v1  ;;  %v309_v18 = vld [vmem:[#allocation5 + $0x6c0] sm:$0xff]  ;;  %v456_v7 = vld [vmem:[#allocation5 + $0xb58] sm:$0xff] }
 0x12a   :  { %3139 = vmatprep.mubr.msk.f32.mxu1 %vm977_vm0, %v4861_v5  ;;  %3858 = vmatprep.subr.bf16.mxu0 %v3857_v22  ;;  %v213_v5 = vld [vmem:[#allocation5 + $0x3c0] sm:$0xff]  ;;  %v326_v22 = vld [vmem:[#allocation5 + $0x748] sm:$0xff] }
 0x12b   :  { %1440 = vmatmul.mubr.f32.gmra.mrb[6].mxu0 %v4865_v21  ;;  %3958 = vmatprep.subr.bf16.mxu1 %v3957_v26  ;;  %v3867_v54 = vpack.c.bf16 %v213_v5, %v197_v46  ;;  %v3879_v26 = vpack.c.bf16 %v309_v18, %v293_v17  ;;  %v3881_v28 = vpack.c.bf16 %v342_v23, %v326_v22  ;;  %v375_v5 = vld [vmem:[#allocation5 + $0x8d0] sm:$0xff]  ;;  %v504_v22 = vld [vmem:[#allocation5 + $0xcd8] sm:$0xff] }
 0x12c   :  { %1594 = vmatmul.mubr.f32.gmra.mrb[6].mxu1 %v4865_v21  ;;  %3860 = vmatpush1.bf16.msra.mxu0 %v3859_v30  ;;  %v248_v21 = vld [vmem:[#allocation5 + $0x4d8] sm:$0xff]  ;;  %v325_v30 = vld [vmem:[#allocation5 + $0x740] sm:$0xff]  ;;  %v3985_v46 = vpack.c.bf16 %v376_v39, %v360_v38  ;;  %v3997_v17 = vpack.c.bf16 %v472_v8, %v456_v7  ;;  %v471_v18 = vld [vmem:[#allocation5 + $0xbd0] sm:$0xff] }
 0x12d   :  { %3960 = vmatpush1.bf16.msra.mxu1 %v3959_v32  ;;  %3862 = vmatprep.subr.bf16.mxu0 %v3861_v33  ;;  %v3969_v59 = vpack.c.bf16 %v248_v21, %v232_v53  ;;  %v341_v32 = vld [vmem:[#allocation5 + $0x7c0] sm:$0xff]  ;;  %v327_v33 = vld [vmem:[#allocation5 + $0x750] sm:$0xff] }
 0x12e   :  { %3962 = vmatprep.subr.bf16.mxu1 %v3961_v37  ;;  %1664 = vmatprep.mubr.f32.mxu0 %v4893_v52  ;;  %v374_v37 = vld [vmem:[#allocation5 + $0x8c8] sm:$0xff]  ;;  %v3883_v40 = vpack.c.bf16 %v341_v32, %v325_v30  ;;  %v3983_v1 = vpack.c.bf16 %v343_v35, %v327_v33  ;;  %v4001_v30 = vpack.c.bf16 %v504_v22, %v488_v20  ;;  %v503_v32 = vld [vmem:[#allocation5 + $0xcd0] sm:$0xff]  ;;  %v520_v35 = vld [vmem:[#allocation5 + $0xd58] sm:$0xff] }
 0x12f   :  { %1818 = vmatprep.mubr.f32.mxu1 %v4893_v52  ;;  %v3885_v41 = vpack.c.bf16 %v374_v37, %v358_v36  ;;  %v518_v33 = vld [vmem:[#allocation5 + $0xd48] sm:$0xff]  ;;  %v536_v36 = vld [vmem:[#allocation5 + $0xdd8] sm:$0xff] }
 0x130   :  { %3864 = vmatpush1.bf16.msra.mxu0 %v3863_v42  ;;  %v357_v42 = vld [vmem:[#allocation5 + $0x840] sm:$0xff] }
 0x131   :  { %3964 = vmatpush1.bf16.msra.mxu1 %v3963_v44  ;;  %3866 = vmatprep.subr.bf16.mxu0 %v3865_v45  ;;  %v373_v44 = vld [vmem:[#allocation5 + $0x8c0] sm:$0xff]  ;;  %v359_v45 = vld [vmem:[#allocation5 + $0x850] sm:$0xff] }
 0x132   :  { %3966 = vmatprep.subr.bf16.mxu1 %v3965_v48  ;;  %v406_v48 = vld [vmem:[#allocation5 + $0x9c8] sm:$0xff]  ;;  %v3887_v51 = vpack.c.bf16 %v373_v44, %v357_v42  ;;  %v3987_v53 = vpack.c.bf16 %v375_v5, %v359_v45  ;;  %v4005_v42 = vpack.c.bf16 %v536_v36, %v520_v35  ;;  %v535_v44 = vld [vmem:[#allocation5 + $0xdd0] sm:$0xff]  ;;  %v552_v5 = vld [vmem:[#allocation5 + $0xe58] sm:$0xff] }
 0x133   :  { %v3889_v21 = vpack.c.bf16 %v406_v48, %v390_v47  ;;  %v550_v45 = vld [vmem:[#allocation5 + $0xe48] sm:$0xff]  ;;  %v568_v47 = vld [vmem:[#allocation5 + $0xed8] sm:$0xff] }
 0x134   :  { %3868 = vmatpush1.bf16.msra.mxu0 %v3867_v54  ;;  %v389_v54 = vld [vmem:[#allocation5 + $0x940] sm:$0xff] }
 0x135   :  { %3968 = vmatpush1.bf16.msra.mxu1 %v3967_v55  ;;  %3870 = vmatprep.subr.bf16.mxu0 %v3869_v56  ;;  %v405_v55 = vld [vmem:[#allocation5 + $0x9c0] sm:$0xff]  ;;  %v391_v56 = vld [vmem:[#allocation5 + $0x950] sm:$0xff] }
 0x136   :  { %3970 = vmatprep.subr.bf16.mxu1 %v3969_v59  ;;  %v438_v59 = vld [vmem:[#allocation5 + $0xac8] sm:$0xff]  ;;  %v3891_v16 = vpack.c.bf16 %v405_v55, %v389_v54  ;;  %v3991_v62 = vpack.c.bf16 %v407_v15, %v391_v56  ;;  %v4009_v54 = vpack.c.bf16 %v568_v47, %v552_v5  ;;  %v567_v55 = vld [vmem:[#allocation5 + $0xed0] sm:$0xff]  ;;  %v584_v15 = vld [vmem:[#allocation5 + $0xf58] sm:$0xff] }
 0x137   :  { %v3893_v63 = vpack.c.bf16 %v438_v59, %v422_v58  ;;  %v582_v56 = vld [vmem:[#allocation5 + $0xf48] sm:$0xff]  ;;  %v600_v58 = vld [vmem:[#allocation5 + $0xfd8] sm:$0xff]  ;;  %v4905_v47 = vld [vmem:[#allocation2 + $0x20] sm:$0xff] }
 0x138   :  { %3872 = vmatpush1.bf16.msra.mxu0 %v3871_v0  ;;  %v421_v0 = vld [vmem:[#allocation5 + $0xa40] sm:$0xff]  ;;  %v728_v5 = vld [vmem:[#allocation5 + $0x13d8] sm:$0xff] }
 0x139   :  { %3972 = vmatpush1.bf16.msra.mxu1 %v3971_v2  ;;  %3874 = vmatprep.subr.bf16.mxu0 %v3873_v29  ;;  %v437_v2 = vld [vmem:[#allocation5 + $0xac0] sm:$0xff]  ;;  %v423_v29 = vld [vmem:[#allocation5 + $0xa50] sm:$0xff] }
 0x13a   :  { %3974 = vmatprep.subr.bf16.mxu1 %v3973_v6  ;;  %v470_v6 = vld [vmem:[#allocation5 + $0xbc8] sm:$0xff]  ;;  %v3895_v9 = vpack.c.bf16 %v437_v2, %v421_v0  ;;  %v3995_v10 = vpack.c.bf16 %v439_v31, %v423_v29  ;;  %v4013_v0 = vpack.c.bf16 %v600_v58, %v584_v15  ;;  %v599_v2 = vld [vmem:[#allocation5 + $0xfd0] sm:$0xff]  ;;  %v616_v31 = vld [vmem:[#allocation5 + $0x1058] sm:$0xff] }
 0x13b   :  { %v3897_v11 = vpack.c.bf16 %v470_v6, %v454_v4  ;;  %v614_v29 = vld [vmem:[#allocation5 + $0x1048] sm:$0xff]  ;;  %v632_v4 = vld [vmem:[#allocation5 + $0x10d8] sm:$0xff] }
 0x13c   :  { %3876 = vmatpush1.bf16.msra.mxu0 %v3875_v12  ;;  %v453_v12 = vld [vmem:[#allocation5 + $0xb40] sm:$0xff]  ;;  %v4909_v15 = vld [vmem:[#allocation2 + $0x18] sm:$0xff] }
 0x13d   :  { %3976 = vmatpush1.bf16.msra.mxu1 %v3975_v13  ;;  %3878 = vmatprep.subr.bf16.mxu0 %v3877_v14  ;;  %v469_v13 = vld [vmem:[#allocation5 + $0xbc0] sm:$0xff]  ;;  %v455_v14 = vld [vmem:[#allocation5 + $0xb50] sm:$0xff]  ;;  %v744_v58 = vld [vmem:[#allocation5 + $0x1458] sm:$0xff] }
 0x13e   :  { %3978 = vmatprep.subr.bf16.mxu1 %v3977_v19  ;;  %v502_v19 = vld [vmem:[#allocation5 + $0xcc8] sm:$0xff]  ;;  %v3899_v23 = vpack.c.bf16 %v469_v13, %v453_v12  ;;  %v3999_v24 = vpack.c.bf16 %v471_v18, %v455_v14  ;;  %v4017_v12 = vpack.c.bf16 %v632_v4, %v616_v31  ;;  %v631_v13 = vld [vmem:[#allocation5 + $0x10d0] sm:$0xff]  ;;  %v648_v18 = vld [vmem:[#allocation5 + $0x1158] sm:$0xff] }
 0x13f   :  { %v3901_v25 = vpack.c.bf16 %v502_v19, %v486_v43  ;;  %v646_v14 = vld [vmem:[#allocation5 + $0x1148] sm:$0xff]  ;;  %v664_v43 = vld [vmem:[#allocation5 + $0x11d8] sm:$0xff] }
 0x140   :  { %3880 = vmatpush1.bf16.msra.mxu0 %v3879_v26  ;;  %v485_v26 = vld [vmem:[#allocation5 + $0xc40] sm:$0xff]  ;;  %v790_v31 = vld [vmem:[#allocation5 + $0x15c8] sm:$0xff]  ;;  %v776_v4 = vld [vmem:[#allocation5 + $0x1558] sm:$0xff] }
 0x141   :  { %3980 = vmatpush1.bf16.msra.mxu1 %v3979_v27  ;;  %3882 = vmatprep.subr.bf16.mxu0 %v3881_v28  ;;  %v501_v27 = vld [vmem:[#allocation5 + $0xcc0] sm:$0xff]  ;;  %v487_v28 = vld [vmem:[#allocation5 + $0xc50] sm:$0xff] }
 0x142   :  { %3982 = vmatprep.subr.bf16.mxu1 %v3981_v34  ;;  %v534_v34 = vld [vmem:[#allocation5 + $0xdc8] sm:$0xff]  ;;  %v3903_v37 = vpack.c.bf16 %v501_v27, %v485_v26  ;;  %v4003_v38 = vpack.c.bf16 %v503_v32, %v487_v28  ;;  %v4021_v26 = vpack.c.bf16 %v664_v43, %v648_v18  ;;  %v663_v27 = vld [vmem:[#allocation5 + $0x11d0] sm:$0xff]  ;;  %v4897_v32 = vld [vmem:[#allocation2] sm:$0xff] }
 0x143   :  { %v3905_v39 = vpack.c.bf16 %v534_v34, %v518_v33  ;;  %v678_v28 = vld [vmem:[#allocation5 + $0x1248] sm:$0xff]  ;;  %v680_v33 = vld [vmem:[#allocation5 + $0x1258] sm:$0xff] }
 0x144   :  { %3884 = vmatpush1.bf16.msra.mxu0 %v3883_v40  ;;  %v517_v40 = vld [vmem:[#allocation5 + $0xd40] sm:$0xff]  ;;  %v696_v34 = vld [vmem:[#allocation5 + $0x12d8] sm:$0xff]  ;;  %v822_v18 = vld [vmem:[#allocation5 + $0x16c8] sm:$0xff] }
 0x145   :  { %3984 = vmatpush1.bf16.msra.mxu1 %v3983_v1  ;;  %3886 = vmatprep.subr.bf16.mxu0 %v3885_v41  ;;  %v533_v1 = vld [vmem:[#allocation5 + $0xdc0] sm:$0xff]  ;;  %v519_v41 = vld [vmem:[#allocation5 + $0xd50] sm:$0xff]  ;;  %v808_v43 = vld [vmem:[#allocation5 + $0x1658] sm:$0xff] }
 0x146   :  { %3986 = vmatprep.subr.bf16.mxu1 %v3985_v46  ;;  %v566_v46 = vld [vmem:[#allocation5 + $0xec8] sm:$0xff]  ;;  %v3907_v48 = vpack.c.bf16 %v533_v1, %v517_v40  ;;  %v4007_v49 = vpack.c.bf16 %v535_v44, %v519_v41  ;;  %v679_v40 = vld [vmem:[#allocation5 + $0x1250] sm:$0xff]  ;;  %v4025_v1 = vpack.c.bf16 %v696_v34, %v680_v33  ;;  %v840_v34 = vld [vmem:[#allocation5 + $0x1758] sm:$0xff] }
 0x147   :  { %v3909_v50 = vpack.c.bf16 %v566_v46, %v550_v45  ;;  %v695_v41 = vld [vmem:[#allocation5 + $0x12d0] sm:$0xff]  ;;  %v726_v44 = vld [vmem:[#allocation5 + $0x13c8] sm:$0xff]  ;;  %v712_v46 = vld [vmem:[#allocation5 + $0x1358] sm:$0xff] }
 0x148   :  { %3888 = vmatpush1.bf16.msra.mxu0 %v3887_v51  ;;  %v549_v51 = vld [vmem:[#allocation5 + $0xe40] sm:$0xff]  ;;  %v4901_v45 = vld [vmem:[#allocation2 + $0x28] sm:$0xff] }
 0x149   :  { %3988 = vmatpush1.bf16.msra.mxu1 %v3987_v53  ;;  %3890 = vmatprep.subr.bf16.mxu0 %v3889_v21  ;;  %v565_v53 = vld [vmem:[#allocation5 + $0xec0] sm:$0xff]  ;;  %v551_v21 = vld [vmem:[#allocation5 + $0xe50] sm:$0xff]  ;;  %v854_v33 = vld [vmem:[#allocation5 + $0x17c8] sm:$0xff] }
 0x14a   :  { %3990 = vmatprep.subr.bf16.mxu1 %v3989_v57  ;;  %v598_v57 = vld [vmem:[#allocation5 + $0xfc8] sm:$0xff]  ;;  %v3911_v59 = vpack.c.bf16 %v565_v53, %v549_v51  ;;  %v4011_v60 = vpack.c.bf16 %v567_v55, %v551_v21  ;;  %v709_v51 = vld [vmem:[#allocation5 + $0x1340] sm:$0xff]  ;;  %v711_v21 = vld [vmem:[#allocation5 + $0x1350] sm:$0xff] }
 0x14b   :  { %v3913_v61 = vpack.c.bf16 %v598_v57, %v582_v56  ;;  %v725_v53 = vld [vmem:[#allocation5 + $0x13c0] sm:$0xff]  ;;  %v727_v55 = vld [vmem:[#allocation5 + $0x13d0] sm:$0xff]  ;;  %v742_v56 = vld [vmem:[#allocation5 + $0x1448] sm:$0xff] }
 0x14c   :  { %3892 = vmatpush1.bf16.msra.mxu0 %v3891_v16  ;;  %v581_v16 = vld [vmem:[#allocation5 + $0xf40] sm:$0xff]  ;;  %v758_v57 = vld [vmem:[#allocation5 + $0x14c8] sm:$0xff] }
 0x14d   :  { %3992 = vmatpush1.bf16.msra.mxu1 %v3991_v62  ;;  %3894 = vmatprep.subr.bf16.mxu0 %v3893_v63  ;;  %v597_v62 = vld [vmem:[#allocation5 + $0xfc0] sm:$0xff]  ;;  %v583_v63 = vld [vmem:[#allocation5 + $0xf50] sm:$0xff] }
 0x14e   :  { %3994 = vmatprep.subr.bf16.mxu1 %v3993_v3  ;;  %v630_v3 = vld [vmem:[#allocation5 + $0x10c8] sm:$0xff]  ;;  %v3915_v6 = vpack.c.bf16 %v597_v62, %v581_v16  ;;  %v4015_v7 = vpack.c.bf16 %v599_v2, %v583_v63  ;;  %v3933_v16 = vpack.c.bf16 %v758_v57, %v742_v56  ;;  %v741_v62 = vld [vmem:[#allocation5 + $0x1440] sm:$0xff]  ;;  %v887_v56 = vld [vmem:[#allocation5 + $0x18d0] sm:$0xff] }
 0x14f   :  { %v3917_v8 = vpack.c.bf16 %v630_v3, %v614_v29  ;;  %v757_v63 = vld [vmem:[#allocation5 + $0x14c0] sm:$0xff]  ;;  %v759_v29 = vld [vmem:[#allocation5 + $0x14d0] sm:$0xff]  ;;  %v774_v3 = vld [vmem:[#allocation5 + $0x1548] sm:$0xff] }
 0x150   :  { %3896 = vmatpush1.bf16.msra.mxu0 %v3895_v9  ;;  %v613_v9 = vld [vmem:[#allocation5 + $0x1040] sm:$0xff]  ;;  %v106_v57 = vld [vmem:[#allocation5 + $0x68] sm:$0xff] }
 0x151   :  { %3996 = vmatpush1.bf16.msra.mxu1 %v3995_v10  ;;  %3898 = vmatprep.subr.bf16.mxu0 %v3897_v11  ;;  %v629_v10 = vld [vmem:[#allocation5 + $0x10c0] sm:$0xff]  ;;  %v615_v11 = vld [vmem:[#allocation5 + $0x1050] sm:$0xff] }
 0x152   :  { %3998 = vmatprep.subr.bf16.mxu1 %v3997_v17  ;;  %v662_v17 = vld [vmem:[#allocation5 + $0x11c8] sm:$0xff]  ;;  %v3919_v19 = vpack.c.bf16 %v629_v10, %v613_v9  ;;  %v4019_v20 = vpack.c.bf16 %v631_v13, %v615_v11  ;;  %v3937_v9 = vpack.c.bf16 %v790_v31, %v774_v3  ;;  %v773_v10 = vld [vmem:[#allocation5 + $0x1540] sm:$0xff]  ;;  %v123_v3 = vld [vmem:[#allocation5 + $0xf0] sm:$0xff] }
 0x153   :  { %v3921_v22 = vpack.c.bf16 %v662_v17, %v646_v14  ;;  %v789_v11 = vld [vmem:[#allocation5 + $0x15c0] sm:$0xff]  ;;  %v791_v14 = vld [vmem:[#allocation5 + $0x15d0] sm:$0xff]  ;;  %v806_v17 = vld [vmem:[#allocation5 + $0x1648] sm:$0xff] }
 0x154   :  { %3900 = vmatpush1.bf16.msra.mxu0 %v3899_v23  ;;  %v645_v23 = vld [vmem:[#allocation5 + $0x1140] sm:$0xff]  ;;  %v138_v31 = vld [vmem:[#allocation5 + $0x168] sm:$0xff] }
 0x155   :  { %4000 = vmatpush1.bf16.msra.mxu1 %v3999_v24  ;;  %3902 = vmatprep.subr.bf16.mxu0 %v3901_v25  ;;  %v661_v24 = vld [vmem:[#allocation5 + $0x11c0] sm:$0xff]  ;;  %v647_v25 = vld [vmem:[#allocation5 + $0x1150] sm:$0xff] }
 0x156   :  { %4002 = vmatprep.subr.bf16.mxu1 %v4001_v30  ;;  %v694_v30 = vld [vmem:[#allocation5 + $0x12c8] sm:$0xff]  ;;  %v3923_v35 = vpack.c.bf16 %v661_v24, %v645_v23  ;;  %v4023_v36 = vpack.c.bf16 %v663_v27, %v647_v25  ;;  %v3941_v23 = vpack.c.bf16 %v822_v18, %v806_v17  ;;  %v805_v24 = vld [vmem:[#allocation5 + $0x1640] sm:$0xff] }
 0x157   :  { %v821_v25 = vld [vmem:[#allocation5 + $0x16c0] sm:$0xff]  ;;  %v170_v17 = vld [vmem:[#allocation5 + $0x268] sm:$0xff] }
 0x158   :  { %3904 = vmatpush1.bf16.msra.mxu0 %v3903_v37  ;;  %v3925_v37 = vpack.c.bf16 %v694_v30, %v678_v28  ;;  %v823_v28 = vld [vmem:[#allocation5 + $0x16d0] sm:$0xff]  ;;  %v838_v30 = vld [vmem:[#allocation5 + $0x1748] sm:$0xff] }
 0x159   :  { %4004 = vmatpush1.bf16.msra.mxu1 %v4003_v38  ;;  %3906 = vmatprep.subr.bf16.mxu0 %v3905_v39  ;;  %v677_v38 = vld [vmem:[#allocation5 + $0x1240] sm:$0xff]  ;;  %v186_v18 = vld [vmem:[#allocation5 + $0x2e8] sm:$0xff] }
 0x15a   :  { %4006 = vmatprep.subr.bf16.mxu1 %v4005_v42  ;;  %v693_v39 = vld [vmem:[#allocation5 + $0x12c0] sm:$0xff]  ;;  %v710_v42 = vld [vmem:[#allocation5 + $0x1348] sm:$0xff] }
 0x15c   :  { %3908 = vmatpush1.bf16.msra.mxu0 %v3907_v48  ;;  %v3927_v48 = vpack.c.bf16 %v693_v39, %v677_v38  ;;  %v3945_v38 = vpack.c.bf16 %v854_v33, %v838_v30  ;;  %v837_v39 = vld [vmem:[#allocation5 + $0x1740] sm:$0xff]  ;;  %v171_v30 = vld [vmem:[#allocation5 + $0x270] sm:$0xff] }
 0x15d   :  { %4008 = vmatpush1.bf16.msra.mxu1 %v4007_v49  ;;  %3910 = vmatprep.subr.bf16.mxu0 %v3909_v50  ;;  %v4027_v49 = vpack.c.bf16 %v695_v41, %v679_v40  ;;  %v3929_v50 = vpack.c.bf16 %v726_v44, %v710_v42  ;;  %v853_v40 = vld [vmem:[#allocation5 + $0x17c0] sm:$0xff]  ;;  %v855_v42 = vld [vmem:[#allocation5 + $0x17d0] sm:$0xff]  ;;  %v870_v44 = vld [vmem:[#allocation5 + $0x1848] sm:$0xff] }
 0x15e   :  { %4010 = vmatprep.subr.bf16.mxu1 %v4009_v54  ;;  %v4029_v54 = vpack.c.bf16 %v728_v5, %v712_v46  ;;  %v886_v46 = vld [vmem:[#allocation5 + $0x18c8] sm:$0xff]  ;;  %v872_v5 = vld [vmem:[#allocation5 + $0x1858] sm:$0xff] }
 0x160   :  { %3912 = vmatpush1.bf16.msra.mxu0 %v3911_v59  ;;  %v760_v59 = vld [vmem:[#allocation5 + $0x14d8] sm:$0xff] }
 0x161   :  { %4012 = vmatpush1.bf16.msra.mxu1 %v4011_v60  ;;  %3914 = vmatprep.subr.bf16.mxu0 %v3913_v61  ;;  %v3931_v60 = vpack.c.bf16 %v725_v53, %v709_v51  ;;  %v4031_v61 = vpack.c.bf16 %v727_v55, %v711_v21  ;;  %v4033_v2 = vpack.c.bf16 %v760_v59, %v744_v58  ;;  %v869_v53 = vld [vmem:[#allocation5 + $0x1840] sm:$0xff]  ;;  %v122_v58 = vld [vmem:[#allocation5 + $0xe8] sm:$0xff]  ;;  %v108_v59 = vld [vmem:[#allocation5 + $0x78] sm:$0xff] }
 0x162   :  { %4014 = vmatprep.subr.bf16.mxu1 %v4013_v0  ;;  %v743_v0 = vld [vmem:[#allocation5 + $0x1450] sm:$0xff]  ;;  %v3949_v51 = vpack.c.bf16 %v886_v46, %v870_v44  ;;  %v885_v21 = vld [vmem:[#allocation5 + $0x18c0] sm:$0xff] }
 0x163   :  { %v217_v44 = vld [vmem:[#allocation5 + $0x3e0] sm:$0xff]  ;;  %v203_v46 = vld [vmem:[#allocation5 + $0x370] sm:$0xff] }
 0x164   :  { %3916 = vmatpush1.bf16.msra.mxu0 %v3915_v6  ;;  %v792_v6 = vld [vmem:[#allocation5 + $0x15d8] sm:$0xff] }
 0x165   :  { %4016 = vmatpush1.bf16.msra.mxu1 %v4015_v7  ;;  %3918 = vmatprep.subr.bf16.mxu0 %v3917_v8  ;;  %v3935_v7 = vpack.c.bf16 %v757_v63, %v741_v62  ;;  %v4035_v8 = vpack.c.bf16 %v759_v29, %v743_v0  ;;  %v4037_v13 = vpack.c.bf16 %v792_v6, %v776_v4  ;;  %v105_v63 = vld [vmem:[#allocation5 + $0x60] sm:$0xff]  ;;  %v107_v29 = vld [vmem:[#allocation5 + $0x70] sm:$0xff]  ;;  %v154_v4 = vld [vmem:[#allocation5 + $0x1e8] sm:$0xff] }
 0x166   :  { %4018 = vmatprep.subr.bf16.mxu1 %v4017_v12  ;;  %v775_v12 = vld [vmem:[#allocation5 + $0x1550] sm:$0xff]  ;;  %v4053_v62 = vpack.c.bf16 %v122_v58, %v106_v57  ;;  %v121_v0 = vld [vmem:[#allocation5 + $0xe0] sm:$0xff] }
 0x167   :  { %1665 = vmatmul.mubr.f32.vlgmr.msra.gmra.mrb[8].mxu0 %v4897_v32  ;;  %v4055_v6 = vpack.c.bf16 %v121_v0, %v105_v63  ;;  %v249_v57 = vld [vmem:[#allocation5 + $0x4e0] sm:$0xff]  ;;  %v235_v58 = vld [vmem:[#allocation5 + $0x470] sm:$0xff] }
 0x168   :  { %3920 = vmatpush1.bf16.msra.mxu0 %v3919_v19  ;;  %1819 = vmatmul.mubr.f32.vlgmr.msra.gmra.mrb[8].mxu1 %v4897_v32  ;;  %v824_v19 = vld [vmem:[#allocation5 + $0x16d8] sm:$0xff] }
 0x169   :  { %4020 = vmatpush1.bf16.msra.mxu1 %v4019_v20  ;;  %3922 = vmatprep.subr.bf16.mxu0 %v3921_v22  ;;  %v3939_v20 = vpack.c.bf16 %v789_v11, %v773_v10  ;;  %v4039_v22 = vpack.c.bf16 %v791_v14, %v775_v12  ;;  %v4041_v27 = vpack.c.bf16 %v824_v19, %v808_v43  ;;  %v137_v10 = vld [vmem:[#allocation5 + $0x160] sm:$0xff]  ;;  %v139_v12 = vld [vmem:[#allocation5 + $0x170] sm:$0xff] }
 0x16a   :  { %4022 = vmatprep.subr.bf16.mxu1 %v4021_v26  ;;  %1670 = vmatprep.mubr.f32.mxu0 %v4901_v45  ;;  %v807_v26 = vld [vmem:[#allocation5 + $0x1650] sm:$0xff]  ;;  %v153_v11 = vld [vmem:[#allocation5 + $0x1e0] sm:$0xff] }
 0x16b   :  { %1824 = vmatprep.mubr.f32.mxu1 %v4901_v45  ;;  %1671 = vmatmul.mubr.f32.gmra.mrb[10].mxu0 %v4905_v47  ;;  %v155_v14 = vld [vmem:[#allocation5 + $0x1f0] sm:$0xff] }
 0x16c   :  { %3924 = vmatpush1.bf16.msra.mxu0 %v3923_v35  ;;  %1825 = vmatmul.mubr.f32.gmra.mrb[10].mxu1 %v4905_v47  ;;  %v856_v35 = vld [vmem:[#allocation5 + $0x17d8] sm:$0xff]  ;;  %v4915_v43 = vld [vmem:[#allocation2 + $0x10] sm:$0xff] }
 0x16d   :  { %4024 = vmatpush1.bf16.msra.mxu1 %v4023_v36  ;;  %3926 = vmatprep.subr.bf16.mxu0 %v3925_v37  ;;  %v3943_v36 = vpack.c.bf16 %v821_v25, %v805_v24  ;;  %v4043_v37 = vpack.c.bf16 %v823_v28, %v807_v26  ;;  %v4045_v41 = vpack.c.bf16 %v856_v35, %v840_v34  ;;  %v4919_v24 = vld [vmem:[#allocation2 + $0x38] sm:$0xff]  ;;  %v185_v28 = vld [vmem:[#allocation5 + $0x2e0] sm:$0xff]  ;;  %v187_v34 = vld [vmem:[#allocation5 + $0x2f0] sm:$0xff] }
 0x16e   :  { %4026 = vmatprep.subr.bf16.mxu1 %v4025_v1  ;;  %3140 = vmatprep.mubr.msk.f32.mxu0 %vm977_vm0, %v4909_v15  ;;  %v839_v1 = vld [vmem:[#allocation5 + $0x1750] sm:$0xff]  ;;  %v4159_v25 = vpack.c.bf16 %v155_v14, %v139_v12  ;;  %v4061_v26 = vpack.c.bf16 %v186_v18, %v170_v17  ;;  %v202_v35 = vld [vmem:[#allocation5 + $0x368] sm:$0xff]  ;;  %v300_v18 = vld [vmem:[#allocation5 + $0x678] sm:$0xff] }
 0x16f   :  { %3142 = vmatprep.mubr.msk.f32.mxu1 %vm977_vm0, %v4909_v15  ;;  %v298_v12 = vld [vmem:[#allocation5 + $0x668] sm:$0xff] }
 0x170   :  { %3928 = vmatpush1.bf16.msra.mxu0 %v3927_v48  ;;  %v888_v48 = vld [vmem:[#allocation5 + $0x18d8] sm:$0xff] }
 0x171   :  { %4028 = vmatpush1.bf16.msra.mxu1 %v4027_v49  ;;  %3930 = vmatprep.subr.bf16.mxu0 %v3929_v50  ;;  %v3947_v49 = vpack.c.bf16 %v853_v40, %v837_v39  ;;  %v4047_v50 = vpack.c.bf16 %v855_v42, %v839_v1  ;;  %v4049_v55 = vpack.c.bf16 %v888_v48, %v872_v5  ;;  %v220_v39 = vld [vmem:[#allocation5 + $0x3f8] sm:$0xff]  ;;  %v201_v42 = vld [vmem:[#allocation5 + $0x360] sm:$0xff]  ;;  %v219_v48 = vld [vmem:[#allocation5 + $0x3f0] sm:$0xff] }
 0x172   :  { %4030 = vmatprep.subr.bf16.mxu1 %v4029_v54  ;;  %v871_v54 = vld [vmem:[#allocation5 + $0x1850] sm:$0xff]  ;;  %v4163_v1 = vpack.c.bf16 %v187_v34, %v171_v30  ;;  %v330_v34 = vld [vmem:[#allocation5 + $0x768] sm:$0xff] }
 0x174   :  { %3932 = vmatpush1.bf16.msra.mxu0 %v3931_v60  ;;  %v124_v60 = vld [vmem:[#allocation5 + $0xf8] sm:$0xff] }
 0x175   :  { %4032 = vmatpush1.bf16.msra.mxu1 %v4031_v61  ;;  %3934 = vmatprep.subr.bf16.mxu0 %v3933_v16  ;;  %v3951_v61 = vpack.c.bf16 %v885_v21, %v869_v53  ;;  %v4051_v16 = vpack.c.bf16 %v887_v56, %v871_v54  ;;  %v252_v53 = vld [vmem:[#allocation5 + $0x4f8] sm:$0xff]  ;;  %v4067_v21 = vpack.c.bf16 %v217_v44, %v201_v42  ;;  %v233_v56 = vld [vmem:[#allocation5 + $0x460] sm:$0xff]  ;;  %v331_v44 = vld [vmem:[#allocation5 + $0x770] sm:$0xff] }
 0x176   :  { %4034 = vmatprep.subr.bf16.mxu1 %v4033_v2  ;;  %v4153_v2 = vpack.c.bf16 %v124_v60, %v108_v59  ;;  %v4167_v54 = vpack.c.bf16 %v219_v48, %v203_v46  ;;  %v345_v42 = vld [vmem:[#allocation5 + $0x7e0] sm:$0xff]  ;;  %v362_v48 = vld [vmem:[#allocation5 + $0x868] sm:$0xff] }
 0x178   :  { %3936 = vmatpush1.bf16.msra.mxu0 %v3935_v7  ;;  %v140_v7 = vld [vmem:[#allocation5 + $0x178] sm:$0xff] }
 0x179   :  { %4036 = vmatpush1.bf16.msra.mxu1 %v4035_v8  ;;  %3938 = vmatprep.subr.bf16.mxu0 %v3937_v9  ;;  %v156_v8 = vld [vmem:[#allocation5 + $0x1f8] sm:$0xff]  ;;  %v4155_v9 = vpack.c.bf16 %v123_v3, %v107_v29  ;;  %v4071_v3 = vpack.c.bf16 %v249_v57, %v233_v56  ;;  %v377_v56 = vld [vmem:[#allocation5 + $0x8e0] sm:$0xff]  ;;  %v363_v57 = vld [vmem:[#allocation5 + $0x870] sm:$0xff] }
 0x17a   :  { %4038 = vmatprep.subr.bf16.mxu1 %v4037_v13  ;;  %v4057_v13 = vpack.c.bf16 %v154_v4, %v138_v31  ;;  %v4157_v19 = vpack.c.bf16 %v156_v8, %v140_v7  ;;  %v281_v7 = vld [vmem:[#allocation5 + $0x5e0] sm:$0xff]  ;;  %v267_v8 = vld [vmem:[#allocation5 + $0x570] sm:$0xff] }
 0x17c   :  { %3940 = vmatpush1.bf16.msra.mxu0 %v3939_v20  ;;  %v172_v20 = vld [vmem:[#allocation5 + $0x278] sm:$0xff] }
 0x17d   :  { %4040 = vmatpush1.bf16.msra.mxu1 %v4039_v22  ;;  %3942 = vmatprep.subr.bf16.mxu0 %v3941_v23  ;;  %v188_v22 = vld [vmem:[#allocation5 + $0x2f8] sm:$0xff]  ;;  %v4059_v23 = vpack.c.bf16 %v153_v11, %v137_v10  ;;  %v283_v11 = vld [vmem:[#allocation5 + $0x5f0] sm:$0xff] }
 0x17e   :  { %4042 = vmatprep.subr.bf16.mxu1 %v4041_v27  ;;  %v169_v27 = vld [vmem:[#allocation5 + $0x260] sm:$0xff]  ;;  %v4161_v33 = vpack.c.bf16 %v188_v22, %v172_v20 }
 0x17f   :  { %v4063_v40 = vpack.c.bf16 %v185_v28, %v169_v27  ;;  %v313_v27 = vld [vmem:[#allocation5 + $0x6e0] sm:$0xff]  ;;  %v299_v28 = vld [vmem:[#allocation5 + $0x670] sm:$0xff] }
 0x180   :  { %3944 = vmatpush1.bf16.msra.mxu0 %v3943_v36  ;;  %v218_v36 = vld [vmem:[#allocation5 + $0x3e8] sm:$0xff] }
 0x181   :  { %4044 = vmatpush1.bf16.msra.mxu1 %v4043_v37  ;;  %3946 = vmatprep.subr.bf16.mxu0 %v3945_v38  ;;  %v4925_v37 = vld [vmem:[#allocation2 + $0x30] sm:$0xff]  ;;  %v204_v38 = vld [vmem:[#allocation5 + $0x378] sm:$0xff] }
 0x182   :  { %4046 = vmatprep.subr.bf16.mxu1 %v4045_v41  ;;  %v4065_v41 = vpack.c.bf16 %v218_v36, %v202_v35  ;;  %v4165_v5 = vpack.c.bf16 %v220_v39, %v204_v38  ;;  %v346_v35 = vld [vmem:[#allocation5 + $0x7e8] sm:$0xff]  ;;  %v332_v36 = vld [vmem:[#allocation5 + $0x778] sm:$0xff] }
 0x183   :  { %v348_v38 = vld [vmem:[#allocation5 + $0x7f8] sm:$0xff] }
 0x184   :  { %3948 = vmatpush1.bf16.msra.mxu0 %v3947_v49  ;;  %v234_v49 = vld [vmem:[#allocation5 + $0x468] sm:$0xff]  ;;  %v4181_v46 = vpack.c.bf16 %v348_v38, %v332_v36  ;;  %v476_v36 = vld [vmem:[#allocation5 + $0xbf8] sm:$0xff] }
 0x185   :  { %4048 = vmatpush1.bf16.msra.mxu1 %v4047_v50  ;;  %3950 = vmatprep.subr.bf16.mxu0 %v3949_v51  ;;  %v250_v50 = vld [vmem:[#allocation5 + $0x4e8] sm:$0xff]  ;;  %v236_v51 = vld [vmem:[#allocation5 + $0x478] sm:$0xff] }
 0x186   :  { %4050 = vmatprep.subr.bf16.mxu1 %v4049_v55  ;;  %v4069_v55 = vpack.c.bf16 %v250_v50, %v234_v49  ;;  %v4169_v60 = vpack.c.bf16 %v252_v53, %v236_v51  ;;  %v378_v49 = vld [vmem:[#allocation5 + $0x8e8] sm:$0xff]  ;;  %v364_v50 = vld [vmem:[#allocation5 + $0x878] sm:$0xff] }
 0x187   :  { %v380_v51 = vld [vmem:[#allocation5 + $0x8f8] sm:$0xff] }
 0x188   :  { %3952 = vmatpush1.bf16.msra.mxu0 %v3951_v61  ;;  %v251_v61 = vld [vmem:[#allocation5 + $0x4f0] sm:$0xff] }
 0x189   :  { %4052 = vmatpush1.bf16.msra.mxu1 %v4051_v16  ;;  %4054 = vmatprep.subr.bf16.mxu0 %v4053_v62  ;;  %v266_v16 = vld [vmem:[#allocation5 + $0x568] sm:$0xff]  ;;  %v4171_v31 = vpack.c.bf16 %v251_v61, %v235_v58  ;;  %v4185_v58 = vpack.c.bf16 %v380_v51, %v364_v50  ;;  %v508_v50 = vld [vmem:[#allocation5 + $0xcf8] sm:$0xff] }
 0x18a   :  { %4154 = vmatprep.subr.bf16.mxu1 %v4153_v2  ;;  %v282_v62 = vld [vmem:[#allocation5 + $0x5e8] sm:$0xff]  ;;  %v284_v2 = vld [vmem:[#allocation5 + $0x5f8] sm:$0xff] }
 0x18b   :  { %1742 = vmatmul.mubr.f32.vlgmr.msra.gmra.mrb[8].mxu0 %v4915_v43  ;;  %v4073_v4 = vpack.c.bf16 %v282_v62, %v266_v16  ;;  %v394_v61 = vld [vmem:[#allocation5 + $0x968] sm:$0xff]  ;;  %v396_v62 = vld [vmem:[#allocation5 + $0x978] sm:$0xff] }
 0x18c   :  { %1896 = vmatmul.mubr.f32.vlgmr.msra.gmra.mrb[8].mxu1 %v4915_v43  ;;  %4056 = vmatpush1.bf16.msra.mxu0 %v4055_v6  ;;  %v265_v6 = vld [vmem:[#allocation5 + $0x560] sm:$0xff]  ;;  %v410_v16 = vld [vmem:[#allocation5 + $0x9e8] sm:$0xff] }
 0x18d   :  { %4156 = vmatpush1.bf16.msra.mxu1 %v4155_v9  ;;  %3141 = vmatprep.mubr.msk.f32.mxu0 %vm977_vm0, %v4919_v24  ;;  %v4075_v22 = vpack.c.bf16 %v281_v7, %v265_v6  ;;  %v409_v6 = vld [vmem:[#allocation5 + $0x9e0] sm:$0xff]  ;;  %v395_v7 = vld [vmem:[#allocation5 + $0x970] sm:$0xff] }
 0x18e   :  { %3143 = vmatprep.mubr.msk.f32.mxu1 %vm977_vm0, %v4919_v24  ;;  %4058 = vmatprep.subr.bf16.mxu0 %v4057_v13  ;;  %v314_v13 = vld [vmem:[#allocation5 + $0x6e8] sm:$0xff] }
 0x18f   :  { %1748 = vmatmul.mubr.f32.gmra.mrb[10].mxu0 %v4925_v37  ;;  %4158 = vmatprep.subr.bf16.mxu1 %v4157_v19  ;;  %v316_v19 = vld [vmem:[#allocation5 + $0x6f8] sm:$0xff] }
 0x190   :  { %1902 = vmatmul.mubr.f32.gmra.mrb[10].mxu1 %v4925_v37  ;;  %4060 = vmatpush1.bf16.msra.mxu0 %v4059_v23  ;;  %v4175_v23 = vpack.c.bf16 %v283_v11, %v267_v8  ;;  %v4177_v30 = vpack.c.bf16 %v316_v19, %v300_v18  ;;  %v426_v11 = vld [vmem:[#allocation5 + $0xa68] sm:$0xff]  ;;  %v444_v18 = vld [vmem:[#allocation5 + $0xaf8] sm:$0xff] }
 0x191   :  { %4160 = vmatpush1.bf16.msra.mxu1 %v4159_v25  ;;  %4062 = vmatprep.subr.bf16.mxu0 %v4061_v26  ;;  %v4077_v25 = vpack.c.bf16 %v314_v13, %v298_v12  ;;  %v297_v26 = vld [vmem:[#allocation5 + $0x660] sm:$0xff]  ;;  %v442_v12 = vld [vmem:[#allocation5 + $0xae8] sm:$0xff]  ;;  %v428_v13 = vld [vmem:[#allocation5 + $0xa78] sm:$0xff] }
 0x192   :  { %4162 = vmatprep.subr.bf16.mxu1 %v4161_v33  ;;  %1972 = vmatprep.mubr.f32.mxu0 %v4893_v52  ;;  %v315_v33 = vld [vmem:[#allocation5 + $0x6f0] sm:$0xff]  ;;  %v4079_v39 = vpack.c.bf16 %v313_v27, %v297_v26  ;;  %v441_v26 = vld [vmem:[#allocation5 + $0xae0] sm:$0xff] }
 0x193   :  { %2126 = vmatprep.mubr.f32.mxu1 %v4893_v52  ;;  %v268_v52 = vld [vmem:[#allocation5 + $0x578] sm:$0xff]  ;;  %v427_v27 = vld [vmem:[#allocation5 + $0xa70] sm:$0xff] }
 0x194   :  { %4064 = vmatpush1.bf16.msra.mxu0 %v4063_v40  ;;  %v4173_v10 = vpack.c.bf16 %v284_v2, %v268_v52  ;;  %v4179_v40 = vpack.c.bf16 %v315_v33, %v299_v28  ;;  %v412_v52 = vld [vmem:[#allocation5 + $0x9f8] sm:$0xff]  ;;  %v4193_v28 = vpack.c.bf16 %v444_v18, %v428_v13  ;;  %v458_v33 = vld [vmem:[#allocation5 + $0xb68] sm:$0xff] }
 0x195   :  { %4164 = vmatpush1.bf16.msra.mxu1 %v4163_v1  ;;  %4066 = vmatprep.subr.bf16.mxu0 %v4065_v41  ;;  %v4081_v1 = vpack.c.bf16 %v346_v35, %v330_v34  ;;  %v329_v41 = vld [vmem:[#allocation5 + $0x760] sm:$0xff]  ;;  %v4189_v8 = vpack.c.bf16 %v412_v52, %v396_v62  ;;  %v474_v34 = vld [vmem:[#allocation5 + $0xbe8] sm:$0xff]  ;;  %v460_v35 = vld [vmem:[#allocation5 + $0xb78] sm:$0xff] }
 0x196   :  { %v4931_v59 = vpop.f32.mrb[0].mxu0  ;;  %4166 = vmatprep.subr.bf16.mxu1 %v4165_v5  ;;  %v347_v5 = vld [vmem:[#allocation5 + $0x7f0] sm:$0xff]  ;;  %v4083_v53 = vpack.c.bf16 %v345_v42, %v329_v41  ;;  %v473_v41 = vld [vmem:[#allocation5 + $0xbe0] sm:$0xff]  ;;  %v540_v62 = vld [vmem:[#allocation5 + $0xdf8] sm:$0xff] }
 0x197   :  { %v4933_v63 = vpop.f32.mrb[0].mxu1  ;;  %v4935_v0 = vpop.f32.mrb[1].mxu0  ;;  %v459_v42 = vld [vmem:[#allocation5 + $0xb70] sm:$0xff]  ;;  %v572_v13 = vld [vmem:[#allocation5 + $0xef8] sm:$0xff] }
 0x198   :  { %v4937_v29 = vpop.f32.mrb[1].mxu1  ;;  %4068 = vmatpush1.bf16.msra.mxu0 %v4067_v21  ;;  %v4183_v21 = vpack.c.bf16 %v347_v5, %v331_v44  ;;  %v4197_v44 = vpack.c.bf16 %v476_v36, %v460_v35  ;;  %v490_v5 = vld [vmem:[#allocation5 + $0xc68] sm:$0xff]  ;;  %v604_v35 = vld [vmem:[#allocation5 + $0xff8] sm:$0xff] }
 0x199   :  { %4168 = vmatpush1.bf16.msra.mxu1 %v4167_v54  ;;  %4070 = vmatprep.subr.bf16.mxu0 %v4069_v55  ;;  %v4085_v54 = vpack.c.bf16 %v378_v49, %v362_v48  ;;  %v361_v55 = vld [vmem:[#allocation5 + $0x860] sm:$0xff]  ;;  %v506_v48 = vld [vmem:[#allocation5 + $0xce8] sm:$0xff]  ;;  %v492_v49 = vld [vmem:[#allocation5 + $0xc78] sm:$0xff] }
 0x19a   :  { %v4939_v9 = vpop.f32.mrb[2].mxu0  ;;  %4170 = vmatprep.subr.bf16.mxu1 %v4169_v60  ;;  %v379_v60 = vld [vmem:[#allocation5 + $0x8f0] sm:$0xff]  ;;  %v4087_v2 = vpack.c.bf16 %v377_v56, %v361_v55  ;;  %v505_v55 = vld [vmem:[#allocation5 + $0xce0] sm:$0xff] }
 0x19b   :  { %v4941_v14 = vpop.f32.mrb[2].mxu1  ;;  %v4943_v17 = vpop.f32.mrb[3].mxu0  ;;  %v491_v56 = vld [vmem:[#allocation5 + $0xc70] sm:$0xff] }
 0x19c   :  { %v4945_v20 = vpop.f32.mrb[3].mxu1  ;;  %4072 = vmatpush1.bf16.msra.mxu0 %v4071_v3  ;;  %v4187_v3 = vpack.c.bf16 %v379_v60, %v363_v57  ;;  %v4201_v57 = vpack.c.bf16 %v508_v50, %v492_v49  ;;  %v522_v60 = vld [vmem:[#allocation5 + $0xd68] sm:$0xff]  ;;  %v636_v49 = vld [vmem:[#allocation5 + $0x10f8] sm:$0xff] }
 0x19d   :  { %4172 = vmatpush1.bf16.msra.mxu1 %v4171_v31  ;;  %4074 = vmatprep.subr.bf16.mxu0 %v4073_v4  ;;  %v4089_v31 = vpack.c.bf16 %v410_v16, %v394_v61  ;;  %v393_v4 = vld [vmem:[#allocation5 + $0x960] sm:$0xff]  ;;  %v538_v61 = vld [vmem:[#allocation5 + $0xde8] sm:$0xff]  ;;  %v524_v16 = vld [vmem:[#allocation5 + $0xd78] sm:$0xff] }
 0x19e   :  { %4174 = vmatprep.subr.bf16.mxu1 %v4173_v10  ;;  %v411_v10 = vld [vmem:[#allocation5 + $0x9f0] sm:$0xff]  ;;  %v4091_v19 = vpack.c.bf16 %v409_v6, %v393_v4  ;;  %v537_v4 = vld [vmem:[#allocation5 + $0xde0] sm:$0xff] }
 0x19f   :  { %v523_v6 = vld [vmem:[#allocation5 + $0xd70] sm:$0xff] }
 0x1a0   :  { %4076 = vmatpush1.bf16.msra.mxu0 %v4075_v22  ;;  %v4191_v22 = vpack.c.bf16 %v411_v10, %v395_v7  ;;  %v4205_v7 = vpack.c.bf16 %v540_v62, %v524_v16  ;;  %v554_v10 = vld [vmem:[#allocation5 + $0xe68] sm:$0xff]  ;;  %v668_v16 = vld [vmem:[#allocation5 + $0x11f8] sm:$0xff] }
 0x1a1   :  { %4176 = vmatpush1.bf16.msra.mxu1 %v4175_v23  ;;  %4078 = vmatprep.subr.bf16.mxu0 %v4077_v25  ;;  %v4093_v23 = vpack.c.bf16 %v442_v12, %v426_v11  ;;  %v425_v25 = vld [vmem:[#allocation5 + $0xa60] sm:$0xff]  ;;  %v570_v11 = vld [vmem:[#allocation5 + $0xee8] sm:$0xff]  ;;  %v556_v12 = vld [vmem:[#allocation5 + $0xe78] sm:$0xff] }
 0x1a2   :  { %4178 = vmatprep.subr.bf16.mxu1 %v4177_v30  ;;  %v443_v30 = vld [vmem:[#allocation5 + $0xaf0] sm:$0xff]  ;;  %v4095_v38 = vpack.c.bf16 %v441_v26, %v425_v25  ;;  %v569_v25 = vld [vmem:[#allocation5 + $0xee0] sm:$0xff] }
 0x1a3   :  { %v555_v26 = vld [vmem:[#allocation5 + $0xe70] sm:$0xff] }
 0x1a4   :  { %4080 = vmatpush1.bf16.msra.mxu0 %v4079_v39  ;;  %v4195_v39 = vpack.c.bf16 %v443_v30, %v427_v27  ;;  %v4209_v27 = vpack.c.bf16 %v572_v13, %v556_v12  ;;  %v586_v30 = vld [vmem:[#allocation5 + $0xf68] sm:$0xff]  ;;  %v700_v12 = vld [vmem:[#allocation5 + $0x12f8] sm:$0xff] }
 0x1a5   :  { %4180 = vmatpush1.bf16.msra.mxu1 %v4179_v40  ;;  %4082 = vmatprep.subr.bf16.mxu0 %v4081_v1  ;;  %v4097_v40 = vpack.c.bf16 %v474_v34, %v458_v33  ;;  %v457_v1 = vld [vmem:[#allocation5 + $0xb60] sm:$0xff]  ;;  %v602_v33 = vld [vmem:[#allocation5 + $0xfe8] sm:$0xff]  ;;  %v588_v34 = vld [vmem:[#allocation5 + $0xf78] sm:$0xff] }
 0x1a6   :  { %4182 = vmatprep.subr.bf16.mxu1 %v4181_v46  ;;  %v475_v46 = vld [vmem:[#allocation5 + $0xbf0] sm:$0xff]  ;;  %v4099_v51 = vpack.c.bf16 %v473_v41, %v457_v1  ;;  %v601_v1 = vld [vmem:[#allocation5 + $0xfe0] sm:$0xff] }
 0x1a7   :  { %v587_v41 = vld [vmem:[#allocation5 + $0xf70] sm:$0xff] }
 0x1a8   :  { %4084 = vmatpush1.bf16.msra.mxu0 %v4083_v53  ;;  %v4199_v53 = vpack.c.bf16 %v475_v46, %v459_v42  ;;  %v4213_v42 = vpack.c.bf16 %v604_v35, %v588_v34  ;;  %v618_v46 = vld [vmem:[#allocation5 + $0x1068] sm:$0xff]  ;;  %v732_v34 = vld [vmem:[#allocation5 + $0x13f8] sm:$0xff] }
 0x1a9   :  { %4184 = vmatpush1.bf16.msra.mxu1 %v4183_v21  ;;  %4086 = vmatprep.subr.bf16.mxu0 %v4085_v54  ;;  %v4101_v21 = vpack.c.bf16 %v506_v48, %v490_v5  ;;  %v489_v54 = vld [vmem:[#allocation5 + $0xc60] sm:$0xff]  ;;  %v634_v5 = vld [vmem:[#allocation5 + $0x10e8] sm:$0xff]  ;;  %v620_v48 = vld [vmem:[#allocation5 + $0x1078] sm:$0xff] }
 0x1aa   :  { %4186 = vmatprep.subr.bf16.mxu1 %v4185_v58  ;;  %v507_v58 = vld [vmem:[#allocation5 + $0xcf0] sm:$0xff]  ;;  %v4103_v52 = vpack.c.bf16 %v505_v55, %v489_v54  ;;  %v633_v54 = vld [vmem:[#allocation5 + $0x10e0] sm:$0xff] }
 0x1ab   :  { %v619_v55 = vld [vmem:[#allocation5 + $0x1070] sm:$0xff] }
 0x1ac   :  { %4088 = vmatpush1.bf16.msra.mxu0 %v4087_v2  ;;  %v4203_v2 = vpack.c.bf16 %v507_v58, %v491_v56  ;;  %v4217_v56 = vpack.c.bf16 %v636_v49, %v620_v48  ;;  %v650_v58 = vld [vmem:[#allocation5 + $0x1168] sm:$0xff]  ;;  %v745_v49 = vld [vmem:[#allocation5 + $0x1460] sm:$0xff] }
 0x1ad   :  { %4188 = vmatpush1.bf16.msra.mxu1 %v4187_v3  ;;  %4090 = vmatprep.subr.bf16.mxu0 %v4089_v31  ;;  %v4105_v3 = vpack.c.bf16 %v538_v61, %v522_v60  ;;  %v521_v31 = vld [vmem:[#allocation5 + $0xd60] sm:$0xff]  ;;  %v666_v60 = vld [vmem:[#allocation5 + $0x11e8] sm:$0xff]  ;;  %v652_v61 = vld [vmem:[#allocation5 + $0x1178] sm:$0xff] }
 0x1ae   :  { %4190 = vmatprep.subr.bf16.mxu1 %v4189_v8  ;;  %v539_v8 = vld [vmem:[#allocation5 + $0xdf0] sm:$0xff]  ;;  %v4107_v18 = vpack.c.bf16 %v537_v4, %v521_v31  ;;  %v665_v31 = vld [vmem:[#allocation5 + $0x11e0] sm:$0xff] }
 0x1af   :  { %v651_v4 = vld [vmem:[#allocation5 + $0x1170] sm:$0xff] }
 0x1b0   :  { %4092 = vmatpush1.bf16.msra.mxu0 %v4091_v19  ;;  %v4207_v19 = vpack.c.bf16 %v539_v8, %v523_v6  ;;  %v4221_v6 = vpack.c.bf16 %v668_v16, %v652_v61  ;;  %v682_v8 = vld [vmem:[#allocation5 + $0x1268] sm:$0xff]  ;;  %v777_v61 = vld [vmem:[#allocation5 + $0x1560] sm:$0xff] }
 0x1b1   :  { %4192 = vmatpush1.bf16.msra.mxu1 %v4191_v22  ;;  %4094 = vmatprep.subr.bf16.mxu0 %v4093_v23  ;;  %v4109_v22 = vpack.c.bf16 %v570_v11, %v554_v10  ;;  %v553_v23 = vld [vmem:[#allocation5 + $0xe60] sm:$0xff]  ;;  %v698_v10 = vld [vmem:[#allocation5 + $0x12e8] sm:$0xff]  ;;  %v684_v11 = vld [vmem:[#allocation5 + $0x1278] sm:$0xff] }
 0x1b2   :  { %4194 = vmatprep.subr.bf16.mxu1 %v4193_v28  ;;  %v571_v28 = vld [vmem:[#allocation5 + $0xef0] sm:$0xff]  ;;  %v4111_v36 = vpack.c.bf16 %v569_v25, %v553_v23  ;;  %v697_v23 = vld [vmem:[#allocation5 + $0x12e0] sm:$0xff] }
 0x1b3   :  { %v683_v25 = vld [vmem:[#allocation5 + $0x1270] sm:$0xff]  ;;  %v793_v16 = vld [vmem:[#allocation5 + $0x15e0] sm:$0xff] }
 0x1b4   :  { %4096 = vmatpush1.bf16.msra.mxu0 %v4095_v38  ;;  %v4211_v38 = vpack.c.bf16 %v571_v28, %v555_v26  ;;  %v4225_v26 = vpack.c.bf16 %v700_v12, %v684_v11  ;;  %v714_v28 = vld [vmem:[#allocation5 + $0x1368] sm:$0xff]  ;;  %v809_v11 = vld [vmem:[#allocation5 + $0x1660] sm:$0xff] }
 0x1b5   :  { %4196 = vmatpush1.bf16.msra.mxu1 %v4195_v39  ;;  %4098 = vmatprep.subr.bf16.mxu0 %v4097_v40  ;;  %v4113_v39 = vpack.c.bf16 %v602_v33, %v586_v30  ;;  %v585_v40 = vld [vmem:[#allocation5 + $0xf60] sm:$0xff]  ;;  %v730_v30 = vld [vmem:[#allocation5 + $0x13e8] sm:$0xff]  ;;  %v716_v33 = vld [vmem:[#allocation5 + $0x1378] sm:$0xff] }
 0x1b6   :  { %4198 = vmatprep.subr.bf16.mxu1 %v4197_v44  ;;  %v603_v44 = vld [vmem:[#allocation5 + $0xff0] sm:$0xff]  ;;  %v4115_v50 = vpack.c.bf16 %v601_v1, %v585_v40  ;;  %v4229_v1 = vpack.c.bf16 %v732_v34, %v716_v33  ;;  %v825_v12 = vld [vmem:[#allocation5 + $0x16e0] sm:$0xff] }
 0x1b7   :  { %v715_v40 = vld [vmem:[#allocation5 + $0x1370] sm:$0xff]  ;;  %v841_v34 = vld [vmem:[#allocation5 + $0x1760] sm:$0xff] }
 0x1b8   :  { %4100 = vmatpush1.bf16.msra.mxu0 %v4099_v51  ;;  %v4215_v51 = vpack.c.bf16 %v603_v44, %v587_v41  ;;  %v731_v41 = vld [vmem:[#allocation5 + $0x13f0] sm:$0xff]  ;;  %v762_v44 = vld [vmem:[#allocation5 + $0x14e8] sm:$0xff] }
 0x1b9   :  { %4200 = vmatpush1.bf16.msra.mxu1 %v4199_v53  ;;  %4102 = vmatprep.subr.bf16.mxu0 %v4101_v21  ;;  %v4117_v53 = vpack.c.bf16 %v634_v5, %v618_v46  ;;  %v617_v21 = vld [vmem:[#allocation5 + $0x1060] sm:$0xff]  ;;  %v764_v46 = vld [vmem:[#allocation5 + $0x14f8] sm:$0xff]  ;;  %v4231_v5 = vpack.c.bf16 %v731_v41, %v715_v40  ;;  %v890_v40 = vld [vmem:[#allocation5 + $0x18e8] sm:$0xff] }
 0x1ba   :  { %4202 = vmatprep.subr.bf16.mxu1 %v4201_v57  ;;  %v635_v57 = vld [vmem:[#allocation5 + $0x10f0] sm:$0xff]  ;;  %v4119_v62 = vpack.c.bf16 %v633_v54, %v617_v21  ;;  %v778_v54 = vld [vmem:[#allocation5 + $0x1568] sm:$0xff]  ;;  %v876_v41 = vld [vmem:[#allocation5 + $0x1878] sm:$0xff] }
 0x1bb   :  { %v763_v21 = vld [vmem:[#allocation5 + $0x14f0] sm:$0xff] }
 0x1bc   :  { %4104 = vmatpush1.bf16.msra.mxu0 %v4103_v52  ;;  %v4219_v52 = vpack.c.bf16 %v635_v57, %v619_v55  ;;  %v794_v55 = vld [vmem:[#allocation5 + $0x15e8] sm:$0xff]  ;;  %v796_v57 = vld [vmem:[#allocation5 + $0x15f8] sm:$0xff] }
 0x1bd   :  { %4204 = vmatpush1.bf16.msra.mxu1 %v4203_v2  ;;  %4106 = vmatprep.subr.bf16.mxu0 %v4105_v3  ;;  %v4121_v2 = vpack.c.bf16 %v666_v60, %v650_v58  ;;  %v649_v3 = vld [vmem:[#allocation5 + $0x1160] sm:$0xff]  ;;  %v4137_v60 = vpack.c.bf16 %v794_v55, %v778_v54  ;;  %v2296_v54 = vld [vmem:[#allocation8 + $0x180] sm:$0xff]  ;;  %v2297_v55 = vld [vmem:[#allocation8 + $0x188] sm:$0xff] }
 0x1be   :  { %4206 = vmatprep.subr.bf16.mxu1 %v4205_v7  ;;  %v667_v7 = vld [vmem:[#allocation5 + $0x11f0] sm:$0xff]  ;;  %v4123_v13 = vpack.c.bf16 %v665_v31, %v649_v3  ;;  %v810_v3 = vld [vmem:[#allocation5 + $0x1668] sm:$0xff] }
 0x1bf   :  { %v826_v31 = vld [vmem:[#allocation5 + $0x16e8] sm:$0xff] }
 0x1c0   :  { %4108 = vmatpush1.bf16.msra.mxu0 %v4107_v18  ;;  %v4223_v18 = vpack.c.bf16 %v667_v7, %v651_v4  ;;  %v812_v4 = vld [vmem:[#allocation5 + $0x1678] sm:$0xff]  ;;  %v4139_v7 = vpack.c.bf16 %v793_v16, %v777_v61  ;;  %v2248_v61 = vld [vmem:[#allocation8] sm:$0xff] }
 0x1c1   :  { %4208 = vmatpush1.bf16.msra.mxu1 %v4207_v19  ;;  %4110 = vmatprep.subr.bf16.mxu0 %v4109_v22  ;;  %v4125_v19 = vpack.c.bf16 %v698_v10, %v682_v8  ;;  %v681_v22 = vld [vmem:[#allocation5 + $0x1260] sm:$0xff]  ;;  %v4141_v10 = vpack.c.bf16 %v826_v31, %v810_v3  ;;  %v2249_v16 = vld [vmem:[#allocation8 + $0x8] sm:$0xff] }
 0x1c2   :  { %4210 = vmatprep.subr.bf16.mxu1 %v4209_v27  ;;  %v699_v27 = vld [vmem:[#allocation5 + $0x12f0] sm:$0xff]  ;;  %v2266_v31 = vld [vmem:[#allocation8 + $0x90] sm:$0xff] }
 0x1c3   :  { %v4227_v35 = vpack.c.bf16 %v699_v27, %v683_v25  ;;  %v897_v25 = vlaneseq  ;;  %v860_v27 = vld [vmem:[#allocation5 + $0x17f8] sm:$0xff] }
 0x1c4   :  { %4112 = vmatpush1.bf16.msra.mxu0 %v4111_v36  ;;  %v4129_v36 = vpack.c.bf16 %v730_v30, %v714_v28  ;;  %v4143_v28 = vpack.c.bf16 %v825_v12, %v809_v11  ;;  %v2250_v12 = vld [vmem:[#allocation8 + $0x10] sm:$0xff] }
 0x1c5   :  { %4212 = vmatpush1.bf16.msra.mxu1 %v4211_v38  ;;  %4114 = vmatprep.subr.bf16.mxu0 %v4113_v39  ;;  %v713_v38 = vld [vmem:[#allocation5 + $0x1360] sm:$0xff] }
 0x1c6   :  { %4214 = vmatprep.subr.bf16.mxu1 %v4213_v42  ;;  %v729_v39 = vld [vmem:[#allocation5 + $0x13e0] sm:$0xff]  ;;  %v746_v42 = vld [vmem:[#allocation5 + $0x1468] sm:$0xff] }
 0x1c7   :  { %v4133_v48 = vpack.c.bf16 %v762_v44, %v746_v42  ;;  %v892_v42 = vld [vmem:[#allocation5 + $0x18f8] sm:$0xff] }
 0x1c8   :  { %4116 = vmatpush1.bf16.msra.mxu0 %v4115_v50  ;;  %v761_v50 = vld [vmem:[#allocation5 + $0x14e0] sm:$0xff] }
 0x1c9   :  { %4216 = vmatpush1.bf16.msra.mxu1 %v4215_v51  ;;  %4118 = vmatprep.subr.bf16.mxu0 %v4117_v53  ;;  %v747_v51 = vld [vmem:[#allocation5 + $0x1470] sm:$0xff]  ;;  %v4135_v58 = vpack.c.bf16 %v761_v50, %v745_v49  ;;  %v4249_v49 = vpack.c.bf16 %v892_v42, %v876_v41  ;;  %v2302_v42 = vld [vmem:[#allocation8 + $0x1b0] sm:$0xff] }
 0x1ca   :  { %4218 = vmatprep.subr.bf16.mxu1 %v4217_v56  ;;  %v780_v56 = vld [vmem:[#allocation5 + $0x1578] sm:$0xff]  ;;  %v891_v50 = vld [vmem:[#allocation5 + $0x18f0] sm:$0xff] }
 0x1cb   :  { %1973 = vmatmul.mubr.f32.vlgmr.msra.gmra.mrb[12].mxu0 %v4897_v32 }
 0x1cc   :  { %4120 = vmatpush1.bf16.msra.mxu0 %v4119_v62  ;;  %2127 = vmatmul.mubr.f32.vlgmr.msra.gmra.mrb[12].mxu1 %v4897_v32  ;;  %v4127_v32 = vpack.c.bf16 %v697_v23, %v681_v22  ;;  %v779_v62 = vld [vmem:[#allocation5 + $0x1570] sm:$0xff]  ;;  %v842_v22 = vld [vmem:[#allocation5 + $0x1768] sm:$0xff] }
 0x1cd   :  { %4220 = vmatpush1.bf16.msra.mxu1 %v4219_v52  ;;  %4122 = vmatprep.subr.bf16.mxu0 %v4121_v2  ;;  %v4237_v52 = vpack.c.bf16 %v796_v57, %v780_v56  ;;  %v795_v2 = vld [vmem:[#allocation5 + $0x15f0] sm:$0xff]  ;;  %v858_v23 = vld [vmem:[#allocation5 + $0x17e8] sm:$0xff]  ;;  %v4960_v56 = vld [vmem:[#allocation7] sm:$0xff] }
 0x1ce   :  { %4222 = vmatprep.subr.bf16.mxu1 %v4221_v6  ;;  %1978 = vmatprep.mubr.f32.mxu0 %v4901_v45  ;;  %v828_v6 = vld [vmem:[#allocation5 + $0x16f8] sm:$0xff]  ;;  %v4239_v8 = vpack.c.bf16 %v795_v2, %v779_v62  ;;  %v4145_v33 = vpack.c.bf16 %v858_v23, %v842_v22  ;;  %v4285_v62 = vpack.c.bf16 %v2297_v55, %v2296_v54  ;;  %v2283_v22 = vld [vmem:[#allocation8 + $0x118] sm:$0xff]  ;;  %v2304_v55 = vld [vmem:[#allocation8 + $0x1c0] sm:$0xff] }
 0x1cf   :  { %2132 = vmatprep.mubr.f32.mxu1 %v4901_v45  ;;  %1979 = vmatmul.mubr.f32.gmra.mrb[14].mxu0 %v4905_v47  ;;  %v748_v45 = vld [vmem:[#allocation5 + $0x1478] sm:$0xff] }
 0x1d0   :  { %4124 = vmatpush1.bf16.msra.mxu0 %v4123_v13  ;;  %2133 = vmatmul.mubr.f32.gmra.mrb[14].mxu1 %v4905_v47  ;;  %v4131_v47 = vpack.c.bf16 %v729_v39, %v713_v38  ;;  %v4233_v53 = vpack.c.bf16 %v764_v46, %v748_v45  ;;  %v811_v13 = vld [vmem:[#allocation5 + $0x1670] sm:$0xff]  ;;  %v874_v39 = vld [vmem:[#allocation5 + $0x1868] sm:$0xff]  ;;  %v2281_v2 = vld [vmem:[#allocation8 + $0x108] sm:$0xff] }
 0x1d1   :  { %4224 = vmatpush1.bf16.msra.mxu1 %v4223_v18  ;;  %4126 = vmatprep.subr.bf16.mxu0 %v4125_v19  ;;  %v4241_v18 = vpack.c.bf16 %v828_v6, %v812_v4  ;;  %v827_v19 = vld [vmem:[#allocation5 + $0x16f0] sm:$0xff]  ;;  %v4149_v46 = vpack.c.bf16 %v890_v40, %v874_v39  ;;  %v2267_v4 = vld [vmem:[#allocation8 + $0x98] sm:$0xff]  ;;  %v2270_v39 = vld [vmem:[#allocation8 + $0xb0] sm:$0xff] }
 0x1d2   :  { %4226 = vmatprep.subr.bf16.mxu1 %v4225_v26  ;;  %3144 = vmatprep.mubr.msk.f32.mxu0 %vm977_vm0, %v4909_v15  ;;  %v844_v26 = vld [vmem:[#allocation5 + $0x1778] sm:$0xff]  ;;  %v4243_v30 = vpack.c.bf16 %v827_v19, %v811_v13  ;;  %v859_v38 = vld [vmem:[#allocation5 + $0x17f0] sm:$0xff]  ;;  %v2251_v13 = vld [vmem:[#allocation8 + $0x18] sm:$0xff] }
 0x1d3   :  { %3146 = vmatprep.mubr.msk.f32.mxu1 %vm977_vm0, %v4909_v15  ;;  %v4235_v15 = vpack.c.bf16 %v763_v21, %v747_v51  ;;  %v2264_v51 = vld [vmem:[#allocation8 + $0x80] sm:$0xff]  ;;  %v2282_v19 = vld [vmem:[#allocation8 + $0x110] sm:$0xff]  ;;  %v2273_v54 = vld [vmem:[#allocation8 + $0xc8] sm:$0xff] }
 0x1d4   :  { %4128 = vmatpush1.bf16.msra.mxu0 %v4127_v32  ;;  %v857_v32 = vld [vmem:[#allocation5 + $0x17e0] sm:$0xff] }
 0x1d5   :  { %4228 = vmatpush1.bf16.msra.mxu1 %v4227_v35  ;;  %4130 = vmatprep.subr.bf16.mxu0 %v4129_v36  ;;  %v843_v35 = vld [vmem:[#allocation5 + $0x1770] sm:$0xff]  ;;  %v4245_v36 = vpack.c.bf16 %v860_v27, %v844_v26  ;;  %v4147_v44 = vpack.c.bf16 %v857_v32, %v841_v34  ;;  %v2269_v27 = vld [vmem:[#allocation8 + $0xa8] sm:$0xff]  ;;  %v4291_v32 = vpack.c.bf16 %v2283_v22, %v2282_v19 }
 0x1d6   :  { %4230 = vmatprep.subr.bf16.mxu1 %v4229_v1  ;;  %v4957_v1 = vshrl.u32 %v897_v25, 7  ;;  %v4247_v45 = vpack.c.bf16 %v859_v38, %v843_v35  ;;  %v2268_v26 = vld [vmem:[#allocation8 + $0xa0] sm:$0xff]  ;;  %v2301_v34 = vld [vmem:[#allocation8 + $0x1a8] sm:$0xff] }
 0x1d7   :  { %v2253_v35 = vld [vmem:[#allocation8 + $0x28] sm:$0xff]  ;;  %v4261_v38 = vpack.c.bf16 %v2269_v27, %v2268_v26  ;;  %v2290_v26 = vld [vmem:[#allocation8 + $0x150] sm:$0xff] }
 0x1d8   :  { %4132 = vmatpush1.bf16.msra.mxu0 %v4131_v47  ;;  %v873_v47 = vld [vmem:[#allocation5 + $0x1860] sm:$0xff]  ;;  %v903_v21 = vsub.s32 1, %v4957_v1  ;;  %v911_v57 = vsub.s32 3, %v4957_v1 }
 0x1d9   :  { %4232 = vmatpush1.bf16.msra.mxu1 %v4231_v5  ;;  %4134 = vmatprep.subr.bf16.mxu0 %v4133_v48  ;;  %v889_v5 = vld [vmem:[#allocation5 + $0x18e0] sm:$0xff]  ;;  %v875_v48 = vld [vmem:[#allocation5 + $0x1870] sm:$0xff] }
 0x1da   :  { %4234 = vmatprep.subr.bf16.mxu1 %v4233_v53  ;;  %v2265_v53 = vld [vmem:[#allocation8 + $0x88] sm:$0xff]  ;;  %v4966_v3 = vrot.slane %v4960_v56, %v903_v21  ;;  %v4971_v6 = vrot.slane %v4960_v56, %v911_v57 }
 0x1dc   :  { %4136 = vmatpush1.bf16.msra.mxu0 %v4135_v58  ;;  %v4151_v58 = vpack.c.bf16 %v889_v5, %v873_v47  ;;  %v4510_v23 = vadd.f32 %v4935_v0, %v4966_v3  ;;  %v2252_v0 = vld [vmem:[#allocation8 + $0x20] sm:$0xff]  ;;  %v2254_v5 = vld [vmem:[#allocation8 + $0x30] sm:$0xff] }
 0x1dd   :  { %4236 = vmatpush1.bf16.msra.mxu1 %v4235_v15  ;;  %4138 = vmatprep.subr.bf16.mxu0 %v4137_v60  ;;  %v4251_v15 = vpack.c.bf16 %v891_v50, %v875_v48  ;;  %v4253_v60 = vpack.c.bf16 %v2265_v53, %v2264_v51  ;;  %v2255_v48 = vld [vmem:[#allocation8 + $0x38] sm:$0xff]  ;;  %v2272_v53 = vld [vmem:[#allocation8 + $0xc0] sm:$0xff] }
 0x1de   :  { %4238 = vmatprep.subr.bf16.mxu1 %v4237_v52  ;;  %v2280_v52 = vld [vmem:[#allocation8 + $0x100] sm:$0xff]  ;;  %v2217_v40 = vmax.f32 %v4510_v23, 0.0  ;;  %v2287_v51 = vld [vmem:[#allocation8 + $0x138] sm:$0xff]  ;;  %v2258_v23 = vld [vmem:[#allocation8 + $0x50] sm:$0xff] }
 0x1df   :  { %v4287_v11 = vpack.c.bf16 %v2281_v2, %v2280_v52 }
 0x1e0   :  { %4140 = vmatpush1.bf16.msra.mxu0 %v4139_v7  ;;  %v4255_v7 = vpack.c.bf16 %v2249_v16, %v2248_v61  ;;  %v2256_v61 = vld [vmem:[#allocation8 + $0x40] sm:$0xff]  ;;  %v2257_v16 = vld [vmem:[#allocation8 + $0x48] sm:$0xff] }
 0x1e1   :  { %4240 = vmatpush1.bf16.msra.mxu1 %v4239_v8  ;;  %4142 = vmatprep.subr.bf16.mxu0 %v4141_v10  ;;  %v2298_v8 = vld [vmem:[#allocation8 + $0x190] sm:$0xff]  ;;  %v2299_v10 = vld [vmem:[#allocation8 + $0x198] sm:$0xff] }
 0x1e2   :  { %4242 = vmatprep.subr.bf16.mxu1 %v4241_v18  ;;  %v4257_v18 = vpack.c.bf16 %v2267_v4, %v2266_v31  ;;  %v4289_v25 = vpack.c.bf16 %v2299_v10, %v2298_v8  ;;  %v2289_v31 = vld [vmem:[#allocation8 + $0x148] sm:$0xff]  ;;  %v2274_v4 = vld [vmem:[#allocation8 + $0xd0] sm:$0xff] }
 0x1e4   :  { %4144 = vmatpush1.bf16.msra.mxu0 %v4143_v28  ;;  %v4514_v28 = vadd.f32 %v4937_v29, %v4971_v6  ;;  %v2285_v29 = vld [vmem:[#allocation8 + $0x128] sm:$0xff] }
 0x1e5   :  { %4244 = vmatpush1.bf16.msra.mxu1 %v4243_v30  ;;  %4146 = vmatprep.subr.bf16.mxu0 %v4145_v33  ;;  %v4259_v30 = vpack.c.bf16 %v2251_v13, %v2250_v12  ;;  %v2300_v33 = vld [vmem:[#allocation8 + $0x1a0] sm:$0xff]  ;;  %v2307_v12 = vld [vmem:[#allocation8 + $0x1d8] sm:$0xff] }
 0x1e6   :  { %4246 = vmatprep.subr.bf16.mxu1 %v4245_v36  ;;  %v2284_v36 = vld [vmem:[#allocation8 + $0x120] sm:$0xff]  ;;  %v4293_v41 = vpack.c.bf16 %v2301_v34, %v2300_v33  ;;  %v2277_v34 = vld [vmem:[#allocation8 + $0xe8] sm:$0xff] }
 0x1e7   :  { %v2276_v33 = vld [vmem:[#allocation8 + $0xe0] sm:$0xff] }
 0x1e8   :  { %4148 = vmatpush1.bf16.msra.mxu0 %v4147_v44  ;;  %v2303_v44 = vld [vmem:[#allocation8 + $0x1b8] sm:$0xff] }
 0x1e9   :  { %4248 = vmatpush1.bf16.msra.mxu1 %v4247_v45  ;;  %4150 = vmatprep.subr.bf16.mxu0 %v4149_v46  ;;  %v2219_v45 = vmax.f32 %v4514_v28, 0.0  ;;  %v4263_v46 = vpack.c.bf16 %v2253_v35, %v2252_v0  ;;  %v4297_v50 = vpack.c.bf16 %v2303_v44, %v2302_v42  ;;  %v2308_v35 = vld [vmem:[#allocation8 + $0x1e0] sm:$0xff]  ;;  %v2261_v42 = vld [vmem:[#allocation8 + $0x68] sm:$0xff] }
 0x1ea   :  { %4250 = vmatprep.subr.bf16.mxu1 %v4249_v49  ;;  %v2286_v49 = vld [vmem:[#allocation8 + $0x130] sm:$0xff]  ;;  %v2292_v44 = vld [vmem:[#allocation8 + $0x160] sm:$0xff] }
 0x1ec   :  { %4152 = vmatpush1.bf16.msra.mxu0 %v4151_v58  ;;  %v2305_v58 = vld [vmem:[#allocation8 + $0x1c8] sm:$0xff] }
 0x1ed   :  { %4252 = vmatpush1.bf16.msra.mxu1 %v4251_v15  ;;  %4254 = vmatprep.subr.bf16.mxu0 %v4253_v60  ;;  %v4299_v15 = vpack.c.bf16 %v2287_v51, %v2286_v49  ;;  %v4269_v60 = vpack.c.bf16 %v2273_v54, %v2272_v53  ;;  %v4301_v2 = vpack.c.bf16 %v2305_v58, %v2304_v55  ;;  %v2311_v49 = vld [vmem:[#allocation8 + $0x1f8] sm:$0xff]  ;;  %v2262_v55 = vld [vmem:[#allocation8 + $0x70] sm:$0xff] }
 0x1ee   :  { %4286 = vmatprep.subr.bf16.mxu1 %v4285_v62  ;;  %v2288_v62 = vld [vmem:[#allocation8 + $0x140] sm:$0xff]  ;;  %v2263_v58 = vld [vmem:[#allocation8 + $0x78] sm:$0xff] }
 0x1ef   :  { %2050 = vmatmul.mubr.f32.vlgmr.msra.gmra.mrb[12].mxu0 %v4915_v43  ;;  %v4303_v19 = vpack.c.bf16 %v2289_v31, %v2288_v62  ;;  %v2328_v62 = vld [vmem:[#allocation8 + $0x280] sm:$0xff]  ;;  %v927_v31 = vsub.s32 7, %v4957_v1 }
 0x1f0   :  { %2204 = vmatmul.mubr.f32.vlgmr.msra.gmra.mrb[12].mxu1 %v4915_v43  ;;  %4256 = vmatpush3.bf16.msra.mxu0 %v4255_v7  ;;  %v2271_v43 = vld [vmem:[#allocation8 + $0xb8] sm:$0xff] }
 0x1f1   :  { %4288 = vmatpush3.bf16.msra.mxu1 %v4287_v11  ;;  %3145 = vmatprep.mubr.msk.f32.mxu0 %vm977_vm0, %v4919_v24  ;;  %v4265_v47 = vpack.c.bf16 %v2271_v43, %v2270_v39  ;;  %v2275_v7 = vld [vmem:[#allocation8 + $0xd8] sm:$0xff]  ;;  %v2306_v11 = vld [vmem:[#allocation8 + $0x1d0] sm:$0xff]  ;;  %v899_v39 = vsub.s32 0, %v4957_v1 }
 0x1f2   :  { %3147 = vmatprep.mubr.msk.f32.mxu1 %vm977_vm0, %v4919_v24  ;;  %4258 = vmatprep.subr.bf16.mxu0 %v4257_v18  ;;  %v4295_v24 = vpack.c.bf16 %v2285_v29, %v2284_v36  ;;  %v4271_v18 = vpack.c.bf16 %v2257_v16, %v2256_v61  ;;  %v4273_v22 = vpack.c.bf16 %v2275_v7, %v2274_v4  ;;  %v2309_v36 = vld [vmem:[#allocation8 + $0x1e8] sm:$0xff]  ;;  %v2295_v16 = vld [vmem:[#allocation8 + $0x178] sm:$0xff]  ;;  %v2360_v4 = vld [vmem:[#allocation8 + $0x380] sm:$0xff] }
 0x1f3   :  { %2056 = vmatmul.mubr.f32.gmra.mrb[14].mxu0 %v4925_v37  ;;  %4290 = vmatprep.subr.bf16.mxu1 %v4289_v25  ;;  %v2259_v25 = vld [vmem:[#allocation8 + $0x58] sm:$0xff]  ;;  %v4305_v28 = vpack.c.bf16 %v2307_v12, %v2306_v11  ;;  %v900_v51 = vrot.slane %v4960_v56, %v899_v39  ;;  %v2361_v7 = vld [vmem:[#allocation8 + $0x388] sm:$0xff]  ;;  %v4283_v11 = vpack.c.bf16 %v2263_v58, %v2262_v55 }
 0x1f4   :  { %2210 = vmatmul.mubr.f32.gmra.mrb[14].mxu1 %v4925_v37  ;;  %4260 = vmatpush3.bf16.msra.mxu0 %v4259_v30  ;;  %v4267_v37 = vpack.c.bf16 %v2255_v48, %v2254_v5  ;;  %v2291_v30 = vld [vmem:[#allocation8 + $0x158] sm:$0xff]  ;;  %v4275_v29 = vpack.c.bf16 %v2259_v25, %v2258_v23  ;;  %v2310_v48 = vld [vmem:[#allocation8 + $0x1f0] sm:$0xff]  ;;  %v2313_v23 = vld [vmem:[#allocation8 + $0x208] sm:$0xff] }
 0x1f5   :  { %2575 = vmatprep.mubr.f32.mxu0 %v2217_v40  ;;  %4292 = vmatpush3.bf16.msra.mxu1 %v4291_v32  ;;  %v4307_v43 = vpack.c.bf16 %v2291_v30, %v2290_v26  ;;  %v4277_v40 = vpack.c.bf16 %v2277_v34, %v2276_v33  ;;  %v2279_v5 = vld [vmem:[#allocation8 + $0xf8] sm:$0xff]  ;;  %v4313_v61 = vpack.c.bf16 %v2311_v49, %v2310_v48  ;;  %v2344_v25 = vld [vmem:[#allocation8 + $0x300] sm:$0xff]  ;;  %v2330_v34 = vld [vmem:[#allocation8 + $0x290] sm:$0xff] }
 0x1f6   :  { %2650 = vmatprep.mubr.f32.mxu1 %v2219_v45  ;;  %4262 = vmatprep.subr.bf16.mxu0 %v4261_v38  ;;  %v907_v45 = vsub.s32 2, %v4957_v1  ;;  %v4509_v12 = vadd.f32 %v4931_v59, %v900_v51  ;;  %v4349_v33 = vpack.c.bf16 %v2361_v7, %v2360_v4  ;;  %v2345_v59 = vld [vmem:[#allocation8 + $0x308] sm:$0xff] }
 0x1f7   :  { %4294 = vmatprep.subr.bf16.mxu1 %v4293_v41  ;;  %v2260_v41 = vld [vmem:[#allocation8 + $0x60] sm:$0xff]  ;;  %v2349_v7 = vld [vmem:[#allocation8 + $0x328] sm:$0xff] }
 0x1f8   :  { %4264 = vmatpush3.bf16.msra.mxu0 %v4263_v46  ;;  %v4309_v46 = vpack.c.bf16 %v2309_v36, %v2308_v35  ;;  %v2331_v35 = vld [vmem:[#allocation8 + $0x298] sm:$0xff]  ;;  %v4516_v36 = vadd.f32 %v4945_v20, %v4971_v6 }
 0x1f9   :  { %4296 = vmatpush3.bf16.msra.mxu1 %v4295_v24  ;;  %4266 = vmatprep.subr.bf16.mxu0 %v4265_v47  ;;  %v2293_v24 = vld [vmem:[#allocation8 + $0x168] sm:$0xff]  ;;  %v2278_v47 = vld [vmem:[#allocation8 + $0xf0] sm:$0xff] }
 0x1fa   :  { %v4985_v52 = vpop.f32.mrb[4].mxu0  ;;  %4298 = vmatprep.subr.bf16.mxu1 %v4297_v50  ;;  %v4279_v50 = vpack.c.bf16 %v2261_v42, %v2260_v41  ;;  %v4311_v53 = vpack.c.bf16 %v2293_v24, %v2292_v44  ;;  %v4281_v54 = vpack.c.bf16 %v2279_v5, %v2278_v47  ;;  %v4351_v41 = vpack.c.bf16 %v2345_v59, %v2344_v25  ;;  %v2314_v24 = vld [vmem:[#allocation8 + $0x210] sm:$0xff]  ;;  %v2315_v47 = vld [vmem:[#allocation8 + $0x218] sm:$0xff] }
 0x1fb   :  { %v4987_v8 = vpop.f32.mrb[4].mxu1  ;;  %v4989_v10 = vpop.f32.mrb[5].mxu0  ;;  %v4321_v42 = vpack.c.bf16 %v2331_v35, %v2330_v34  ;;  %v2346_v5 = vld [vmem:[#allocation8 + $0x310] sm:$0xff]  ;;  %v2235_v48 = vmax.f32 %v4516_v36, 0.0  ;;  %v2351_v34 = vld [vmem:[#allocation8 + $0x338] sm:$0xff]  ;;  %v2336_v35 = vld [vmem:[#allocation8 + $0x2c0] sm:$0xff] }
 0x1fc   :  { %v4991_v13 = vpop.f32.mrb[5].mxu1  ;;  %4268 = vmatpush3.bf16.msra.mxu0 %v4267_v37  ;;  %v2294_v37 = vld [vmem:[#allocation8 + $0x170] sm:$0xff]  ;;  %v2337_v36 = vld [vmem:[#allocation8 + $0x2c8] sm:$0xff] }
 0x1fd   :  { %4300 = vmatpush3.bf16.msra.mxu1 %v4299_v15  ;;  %4270 = vmatprep.subr.bf16.mxu0 %v4269_v60  ;;  %v908_v15 = vrot.slane %v4960_v56, %v907_v45  ;;  %v919_v60 = vsub.s32 5, %v4957_v1 }
 0x1fe   :  { %v4993_v27 = vpop.f32.mrb[6].mxu0  ;;  %4302 = vmatprep.subr.bf16.mxu1 %v4301_v2  ;;  %v2329_v2 = vld [vmem:[#allocation8 + $0x288] sm:$0xff] }
 0x1ff   :  { %v4995_v32 = vpop.f32.mrb[6].mxu1  ;;  %v4997_v0 = vpop.f32.mrb[7].mxu0  ;;  %v4513_v26 = vadd.f32 %v4933_v63, %v908_v15  ;;  %v5018_v30 = vrot.slane %v4960_v56, %v919_v60  ;;  %v5025_v63 = vrot.slane %v4960_v56, %v927_v31 }
 0x200   :  { %v4999_v38 = vpop.f32.mrb[7].mxu1  ;;  %4272 = vmatpush3.bf16.msra.mxu0 %v4271_v18  ;;  %v4315_v18 = vpack.c.bf16 %v2295_v16, %v2294_v37  ;;  %v2317_v16 = vld [vmem:[#allocation8 + $0x228] sm:$0xff] }
 0x201   :  { %4304 = vmatpush3.bf16.msra.mxu1 %v4303_v19  ;;  %4274 = vmatprep.subr.bf16.mxu0 %v4273_v22  ;;  %v4317_v19 = vpack.c.bf16 %v2329_v2, %v2328_v62  ;;  %v2312_v22 = vld [vmem:[#allocation8 + $0x200] sm:$0xff]  ;;  %v2218_v44 = vmax.f32 %v4513_v26, 0.0  ;;  %v4518_v6 = vadd.f32 %v4989_v10, %v5018_v30  ;;  %v4522_v49 = vadd.f32 %v4991_v13, %v5025_v63  ;;  %v2318_v26 = vld [vmem:[#allocation8 + $0x230] sm:$0xff] }
 0x202   :  { %4306 = vmatprep.subr.bf16.mxu1 %v4305_v28  ;;  %v4512_v28 = vadd.f32 %v4943_v17, %v4966_v3  ;;  %v4319_v17 = vpack.c.bf16 %v2313_v23, %v2312_v22  ;;  %v2362_v3 = vld [vmem:[#allocation8 + $0x390] sm:$0xff]  ;;  %v4323_v10 = vpack.c.bf16 %v2315_v47, %v2314_v24  ;;  %v2316_v13 = vld [vmem:[#allocation8 + $0x220] sm:$0xff]  ;;  %v2339_v24 = vld [vmem:[#allocation8 + $0x2d8] sm:$0xff] }
 0x203   :  { %v2221_v37 = vmax.f32 %v4518_v6, 0.0  ;;  %v2348_v62 = vld [vmem:[#allocation8 + $0x320] sm:$0xff]  ;;  %v2223_v2 = vmax.f32 %v4522_v49, 0.0  ;;  %v4327_v22 = vpack.c.bf16 %v2317_v16, %v2316_v13  ;;  %v2338_v6 = vld [vmem:[#allocation8 + $0x2d0] sm:$0xff] }
 0x204   :  { %4276 = vmatpush3.bf16.msra.mxu0 %v4275_v29  ;;  %v2363_v29 = vld [vmem:[#allocation8 + $0x398] sm:$0xff]  ;;  %v2233_v20 = vmax.f32 %v4512_v28, 0.0  ;;  %v4359_v23 = vpack.c.bf16 %v2349_v7, %v2348_v62  ;;  %v2370_v47 = vld [vmem:[#allocation8 + $0x3d0] sm:$0xff]  ;;  %v2324_v62 = vld [vmem:[#allocation8 + $0x260] sm:$0xff]  ;;  %v923_v7 = vsub.s32 6, %v4957_v1 }
 0x205   :  { %4308 = vmatpush3.bf16.msra.mxu1 %v4307_v43  ;;  %4278 = vmatprep.subr.bf16.mxu0 %v4277_v40  ;;  %v2216_v43 = vmax.f32 %v4509_v12, 0.0  ;;  %v4511_v40 = vadd.f32 %v4939_v9, %v900_v51  ;;  %v4353_v9 = vpack.c.bf16 %v2363_v29, %v2362_v3  ;;  %v2332_v51 = vld [vmem:[#allocation8 + $0x2a0] sm:$0xff]  ;;  %v2335_v12 = vld [vmem:[#allocation8 + $0x2b8] sm:$0xff]  ;;  %v2369_v3 = vld [vmem:[#allocation8 + $0x3c8] sm:$0xff] }
 0x206   :  { %4310 = vmatprep.subr.bf16.mxu1 %v4309_v46  ;;  %v4515_v46 = vadd.f32 %v4941_v14, %v908_v15  ;;  %v2364_v14 = vld [vmem:[#allocation8 + $0x3a0] sm:$0xff]  ;;  %v2319_v28 = vld [vmem:[#allocation8 + $0x238] sm:$0xff] }
 0x207   :  { %v2232_v55 = vmax.f32 %v4511_v40, 0.0  ;;  %v4331_v29 = vpack.c.bf16 %v2319_v28, %v2318_v26  ;;  %v4333_v40 = vpack.c.bf16 %v2337_v36, %v2336_v35  ;;  %v2358_v35 = vld [vmem:[#allocation8 + $0x370] sm:$0xff]  ;;  %v924_v36 = vrot.slane %v4960_v56, %v923_v7 }
 0x208   :  { %4280 = vmatpush3.bf16.msra.mxu0 %v4279_v50  ;;  %v2347_v50 = vld [vmem:[#allocation8 + $0x318] sm:$0xff]  ;;  %v2234_v58 = vmax.f32 %v4515_v46, 0.0 }
 0x209   :  { %4312 = vmatpush3.bf16.msra.mxu1 %v4311_v53  ;;  %4282 = vmatprep.subr.bf16.mxu0 %v4281_v54  ;;  %v2333_v53 = vld [vmem:[#allocation8 + $0x2a8] sm:$0xff]  ;;  %v4355_v15 = vpack.c.bf16 %v2347_v50, %v2346_v5  ;;  %v2371_v5 = vld [vmem:[#allocation8 + $0x3d8] sm:$0xff]  ;;  %v2322_v50 = vld [vmem:[#allocation8 + $0x250] sm:$0xff] }
 0x20a   :  { %4314 = vmatprep.subr.bf16.mxu1 %v4313_v61  ;;  %v2365_v54 = vld [vmem:[#allocation8 + $0x3a8] sm:$0xff]  ;;  %v4325_v61 = vpack.c.bf16 %v2333_v53, %v2332_v51  ;;  %v2323_v51 = vld [vmem:[#allocation8 + $0x258] sm:$0xff]  ;;  %v2354_v53 = vld [vmem:[#allocation8 + $0x350] sm:$0xff] }
 0x20b   :  { %v4357_v4 = vpack.c.bf16 %v2365_v54, %v2364_v14  ;;  %v4369_v14 = vpack.c.bf16 %v2371_v5, %v2370_v47  ;;  %v2355_v54 = vld [vmem:[#allocation8 + $0x358] sm:$0xff]  ;;  %v2377_v5 = vld [vmem:[#allocation8 + $0x408] sm:$0xff] }
 0x20c   :  { %4284 = vmatpush3.bf16.msra.mxu0 %v4283_v11  ;;  %v2334_v11 = vld [vmem:[#allocation8 + $0x2b0] sm:$0xff]  ;;  %v4371_v13 = vpack.c.bf16 %v2355_v54, %v2354_v53  ;;  %v2427_v53 = vld [vmem:[#allocation8 + $0x598] sm:$0xff] }
 0x20d   :  { %4316 = vmatpush3.bf16.msra.mxu1 %v4315_v18  ;;  %4318 = vmatprep.subr.bf16.mxu0 %v4317_v19  ;;  %v2366_v18 = vld [vmem:[#allocation8 + $0x3b0] sm:$0xff]  ;;  %v2367_v19 = vld [vmem:[#allocation8 + $0x3b8] sm:$0xff]  ;;  %v4329_v25 = vpack.c.bf16 %v2335_v12, %v2334_v11  ;;  %v2357_v12 = vld [vmem:[#allocation8 + $0x368] sm:$0xff] }
 0x20e   :  { %4350 = vmatprep.subr.bf16.mxu1 %v4349_v33  ;;  %v2350_v33 = vld [vmem:[#allocation8 + $0x330] sm:$0xff]  ;;  %v4361_v59 = vpack.c.bf16 %v2367_v19, %v2366_v18  ;;  %v2343_v19 = vld [vmem:[#allocation8 + $0x2f8] sm:$0xff] }
 0x20f   :  { %2576 = vmatmul.mubr.f32.vlgmr.msra.gmra.mrb[16].mxu0 %v2216_v43  ;;  %v4363_v43 = vpack.c.bf16 %v2351_v34, %v2350_v33  ;;  %v2342_v18 = vld [vmem:[#allocation8 + $0x2f0] sm:$0xff]  ;;  %v2327_v34 = vld [vmem:[#allocation8 + $0x278] sm:$0xff] }
 0x210   :  { %2651 = vmatmul.mubr.f32.vlgmr.msra.gmra.mrb[16].mxu1 %v2218_v44  ;;  %2580 = vmatprep.mubr.f32.mxu0 %v2233_v20  ;;  %v2352_v44 = vld [vmem:[#allocation8 + $0x340] sm:$0xff]  ;;  %v2353_v20 = vld [vmem:[#allocation8 + $0x348] sm:$0xff]  ;;  %v4345_v33 = vpack.c.bf16 %v2343_v19, %v2342_v18 }
 0x211   :  { %2655 = vmatprep.mubr.f32.mxu1 %v2235_v48  ;;  %4320 = vmatpush3.bf16.msra.mxu0 %v4319_v17  ;;  %v2368_v17 = vld [vmem:[#allocation8 + $0x3c0] sm:$0xff]  ;;  %v4367_v49 = vpack.c.bf16 %v2353_v20, %v2352_v44 }
 0x212   :  { %4352 = vmatpush3.bf16.msra.mxu1 %v4351_v41  ;;  %4322 = vmatprep.subr.bf16.mxu0 %v4321_v42  ;;  %v2320_v41 = vld [vmem:[#allocation8 + $0x240] sm:$0xff]  ;;  %v2321_v42 = vld [vmem:[#allocation8 + $0x248] sm:$0xff]  ;;  %v4365_v46 = vpack.c.bf16 %v2369_v3, %v2368_v17  ;;  %v2359_v3 = vld [vmem:[#allocation8 + $0x378] sm:$0xff] }
 0x213   :  { %2581 = vmatmul.mubr.f32.gmra.mrb[18].mxu0 %v2232_v55  ;;  %4354 = vmatprep.subr.bf16.mxu1 %v4353_v9  ;;  %v4335_v48 = vpack.c.bf16 %v2321_v42, %v2320_v41  ;;  %v4337_v9 = vpack.c.bf16 %v2339_v24, %v2338_v6  ;;  %v2340_v55 = vld [vmem:[#allocation8 + $0x2e0] sm:$0xff]  ;;  %v2425_v41 = vld [vmem:[#allocation8 + $0x588] sm:$0xff]  ;;  %v4521_v24 = vadd.f32 %v4987_v8, %v924_v36 }
 0x214   :  { %2656 = vmatmul.mubr.f32.gmra.mrb[18].mxu1 %v2234_v58  ;;  %2725 = vmatprep.mubr.f32.mxu0 %v2221_v37  ;;  %v2372_v58 = vld [vmem:[#allocation8 + $0x3e0] sm:$0xff]  ;;  %v2373_v37 = vld [vmem:[#allocation8 + $0x3e8] sm:$0xff] }
 0x215   :  { %4324 = vmatpush3.bf16.msra.mxu0 %v4323_v10  ;;  %2800 = vmatprep.mubr.f32.mxu1 %v2223_v2  ;;  %v2341_v10 = vld [vmem:[#allocation8 + $0x2e8] sm:$0xff]  ;;  %v4373_v11 = vpack.c.bf16 %v2373_v37, %v2372_v58  ;;  %v2376_v6 = vld [vmem:[#allocation8 + $0x400] sm:$0xff]  ;;  %v2378_v37 = vld [vmem:[#allocation8 + $0x410] sm:$0xff] }
 0x216   :  { %4356 = vmatpush3.bf16.msra.mxu1 %v4355_v15  ;;  %4326 = vmatprep.subr.bf16.mxu0 %v4325_v61  ;;  %v4339_v15 = vpack.c.bf16 %v2323_v51, %v2322_v50  ;;  %v915_v61 = vsub.s32 4, %v4957_v1  ;;  %v4341_v16 = vpack.c.bf16 %v2341_v10, %v2340_v55  ;;  %v2325_v2 = vld [vmem:[#allocation8 + $0x268] sm:$0xff]  ;;  %v2394_v50 = vld [vmem:[#allocation8 + $0x490] sm:$0xff]  ;;  %v4383_v8 = vpack.c.bf16 %v2377_v5, %v2376_v6  ;;  %v2384_v5 = vld [vmem:[#allocation8 + $0x440] sm:$0xff] }
 0x217   :  { %4358 = vmatprep.subr.bf16.mxu1 %v4357_v4  ;;  %v2356_v4 = vld [vmem:[#allocation8 + $0x360] sm:$0xff]  ;;  %v2426_v51 = vld [vmem:[#allocation8 + $0x590] sm:$0xff]  ;;  %v4523_v55 = vadd.f32 %v4995_v32, %v924_v36  ;;  %v2433_v6 = vld [vmem:[#allocation8 + $0x5c8] sm:$0xff] }
 0x218   :  { %v916_v26 = vrot.slane %v4960_v56, %v915_v61  ;;  %v4375_v28 = vpack.c.bf16 %v2357_v12, %v2356_v4  ;;  %v4520_v56 = vadd.f32 %v4997_v0, %v5018_v30  ;;  %v2222_v30 = vmax.f32 %v4521_v24, 0.0  ;;  %v2429_v4 = vld [vmem:[#allocation8 + $0x5a8] sm:$0xff] }
 0x219   :  { %4328 = vmatpush3.bf16.msra.mxu0 %v4327_v22  ;;  %v2374_v22 = vld [vmem:[#allocation8 + $0x3f0] sm:$0xff]  ;;  %v2238_v12 = vmax.f32 %v4523_v55, 0.0  ;;  %v2387_v55 = vld [vmem:[#allocation8 + $0x458] sm:$0xff] }
 0x21a   :  { %4360 = vmatpush3.bf16.msra.mxu1 %v4359_v23  ;;  %4330 = vmatprep.subr.bf16.mxu0 %v4329_v25  ;;  %v2375_v23 = vld [vmem:[#allocation8 + $0x3f8] sm:$0xff]  ;;  %v4343_v25 = vpack.c.bf16 %v2325_v2, %v2324_v62  ;;  %v4517_v44 = vadd.f32 %v4985_v52, %v916_v26  ;;  %v4519_v54 = vadd.f32 %v4993_v27, %v916_v26  ;;  %v2237_v10 = vmax.f32 %v4520_v56, 0.0  ;;  %v2396_v62 = vld [vmem:[#allocation8 + $0x4a0] sm:$0xff]  ;;  %v2397_v2 = vld [vmem:[#allocation8 + $0x4a8] sm:$0xff] }
 0x21b   :  { %4362 = vmatprep.subr.bf16.mxu1 %v4361_v59  ;;  %v2326_v59 = vld [vmem:[#allocation8 + $0x270] sm:$0xff]  ;;  %v4377_v17 = vpack.c.bf16 %v2375_v23, %v2374_v22  ;;  %v2395_v52 = vld [vmem:[#allocation8 + $0x498] sm:$0xff]  ;;  %v2428_v27 = vld [vmem:[#allocation8 + $0x5a0] sm:$0xff]  ;;  %v4389_v19 = vpack.c.bf16 %v2397_v2, %v2396_v62 }
 0x21c   :  { %v4347_v42 = vpack.c.bf16 %v2327_v34, %v2326_v59  ;;  %v4385_v58 = vpack.c.bf16 %v2395_v52, %v2394_v50  ;;  %v2380_v22 = vld [vmem:[#allocation8 + $0x420] sm:$0xff]  ;;  %v2381_v23 = vld [vmem:[#allocation8 + $0x428] sm:$0xff]  ;;  %v4421_v26 = vpack.c.bf16 %v2429_v4, %v2428_v27  ;;  %v2399_v59 = vld [vmem:[#allocation8 + $0x4b8] sm:$0xff] }
 0x21d   :  { %4332 = vmatpush3.bf16.msra.mxu0 %v4331_v29  ;;  %v2392_v29 = vld [vmem:[#allocation8 + $0x480] sm:$0xff]  ;;  %v2430_v34 = vld [vmem:[#allocation8 + $0x5b0] sm:$0xff]  ;;  %v4391_v36 = vpack.c.bf16 %v2381_v23, %v2380_v22  ;;  %v2417_v50 = vld [vmem:[#allocation8 + $0x548] sm:$0xff] }
 0x21e   :  { %4364 = vmatpush3.bf16.msra.mxu1 %v4363_v43  ;;  %4334 = vmatprep.subr.bf16.mxu0 %v4333_v40  ;;  %v2393_v43 = vld [vmem:[#allocation8 + $0x488] sm:$0xff]  ;;  %v2424_v40 = vld [vmem:[#allocation8 + $0x580] sm:$0xff]  ;;  %v2402_v52 = vld [vmem:[#allocation8 + $0x4d0] sm:$0xff] }
 0x21f   :  { %4366 = vmatprep.subr.bf16.mxu1 %v4365_v46  ;;  %v4379_v46 = vpack.c.bf16 %v2359_v3, %v2358_v35  ;;  %v4381_v20 = vpack.c.bf16 %v2393_v43, %v2392_v29  ;;  %v4413_v47 = vpack.c.bf16 %v2425_v41, %v2424_v40  ;;  %v2431_v35 = vld [vmem:[#allocation8 + $0x5b8] sm:$0xff]  ;;  %v2382_v29 = vld [vmem:[#allocation8 + $0x430] sm:$0xff]  ;;  %v2388_v27 = vld [vmem:[#allocation8 + $0x460] sm:$0xff] }
 0x220   :  { %v2383_v43 = vld [vmem:[#allocation8 + $0x438] sm:$0xff]  ;;  %v2414_v40 = vld [vmem:[#allocation8 + $0x530] sm:$0xff]  ;;  %v4425_v41 = vpack.c.bf16 %v2431_v35, %v2430_v34  ;;  %v2389_v4 = vld [vmem:[#allocation8 + $0x468] sm:$0xff] }
 0x221   :  { %4336 = vmatpush3.bf16.msra.mxu0 %v4335_v48  ;;  %v2408_v48 = vld [vmem:[#allocation8 + $0x500] sm:$0xff]  ;;  %v4395_v24 = vpack.c.bf16 %v2383_v43, %v2382_v29  ;;  %v2438_v22 = vld [vmem:[#allocation8 + $0x5f0] sm:$0xff]  ;;  %v2439_v23 = vld [vmem:[#allocation8 + $0x5f8] sm:$0xff] }
 0x222   :  { %4368 = vmatpush3.bf16.msra.mxu1 %v4367_v49  ;;  %4338 = vmatprep.subr.bf16.mxu0 %v4337_v9  ;;  %v2409_v49 = vld [vmem:[#allocation8 + $0x508] sm:$0xff]  ;;  %v4524_v9 = vadd.f32 %v4999_v38, %v5025_v63  ;;  %v2379_v38 = vld [vmem:[#allocation8 + $0x418] sm:$0xff]  ;;  %v2410_v63 = vld [vmem:[#allocation8 + $0x510] sm:$0xff]  ;;  %v4441_v35 = vpack.c.bf16 %v2439_v23, %v2438_v22 }
 0x223   :  { %4370 = vmatprep.subr.bf16.mxu1 %v4369_v14  ;;  %v2220_v14 = vmax.f32 %v4517_v44, 0.0  ;;  %v4415_v0 = vpack.c.bf16 %v2409_v49, %v2408_v48  ;;  %v4387_v32 = vpack.c.bf16 %v2379_v38, %v2378_v37  ;;  %v2400_v44 = vld [vmem:[#allocation8 + $0x4c0] sm:$0xff]  ;;  %v2385_v48 = vld [vmem:[#allocation8 + $0x448] sm:$0xff]  ;;  %v2419_v37 = vld [vmem:[#allocation8 + $0x558] sm:$0xff] }
 0x224   :  { %v2416_v49 = vld [vmem:[#allocation8 + $0x540] sm:$0xff]  ;;  %v2422_v34 = vld [vmem:[#allocation8 + $0x570] sm:$0xff]  ;;  %v2489_v43 = vld [vmem:[#allocation8 + $0x788] sm:$0xff] }
 0x225   :  { %4340 = vmatpush3.bf16.msra.mxu0 %v4339_v15  ;;  %v2239_v15 = vmax.f32 %v4524_v9, 0.0  ;;  %v2404_v38 = vld [vmem:[#allocation8 + $0x4e0] sm:$0xff]  ;;  %v2461_v22 = vld [vmem:[#allocation8 + $0x6a8] sm:$0xff] }
 0x226   :  { %4372 = vmatpush3.bf16.msra.mxu1 %v4371_v13  ;;  %4342 = vmatprep.subr.bf16.mxu0 %v4341_v16  ;;  %v4417_v13 = vpack.c.bf16 %v2427_v53, %v2426_v51  ;;  %v2411_v16 = vld [vmem:[#allocation8 + $0x518] sm:$0xff]  ;;  %v2434_v53 = vld [vmem:[#allocation8 + $0x5d0] sm:$0xff]  ;;  %v2488_v29 = vld [vmem:[#allocation8 + $0x780] sm:$0xff] }
 0x227   :  { %4374 = vmatprep.subr.bf16.mxu1 %v4373_v11  ;;  %v2236_v11 = vmax.f32 %v4519_v54, 0.0  ;;  %v4419_v18 = vpack.c.bf16 %v2411_v16, %v2410_v63  ;;  %v2403_v51 = vld [vmem:[#allocation8 + $0x4d8] sm:$0xff]  ;;  %v4399_v54 = vpack.c.bf16 %v2385_v48, %v2384_v5  ;;  %v2405_v63 = vld [vmem:[#allocation8 + $0x4e8] sm:$0xff]  ;;  %v2440_v5 = vld [vmem:[#allocation8 + $0x600] sm:$0xff] }
 0x228   :  { %v4405_v2 = vpack.c.bf16 %v2405_v63, %v2404_v38 }
 0x229   :  { %4344 = vmatpush3.bf16.msra.mxu0 %v4343_v25  ;;  %v2412_v25 = vld [vmem:[#allocation8 + $0x520] sm:$0xff] }
 0x22a   :  { %4376 = vmatpush3.bf16.msra.mxu1 %v4375_v28  ;;  %4346 = vmatprep.subr.bf16.mxu0 %v4345_v33  ;;  %v2413_v28 = vld [vmem:[#allocation8 + $0x528] sm:$0xff]  ;;  %v2398_v33 = vld [vmem:[#allocation8 + $0x4b0] sm:$0xff] }
 0x22b   :  { %4378 = vmatprep.subr.bf16.mxu1 %v4377_v17  ;;  %v4423_v17 = vpack.c.bf16 %v2413_v28, %v2412_v25  ;;  %v4393_v3 = vpack.c.bf16 %v2399_v59, %v2398_v33  ;;  %v4407_v25 = vpack.c.bf16 %v2389_v4, %v2388_v27  ;;  %v2390_v33 = vld [vmem:[#allocation8 + $0x470] sm:$0xff]  ;;  %v2391_v59 = vld [vmem:[#allocation8 + $0x478] sm:$0xff] }
 0x22d   :  { %4348 = vmatpush3.bf16.msra.mxu0 %v4347_v42  ;;  %v2415_v42 = vld [vmem:[#allocation8 + $0x538] sm:$0xff] }
 0x22e   :  { %4380 = vmatpush3.bf16.msra.mxu1 %v4379_v46  ;;  %4382 = vmatprep.subr.bf16.mxu0 %v4381_v20  ;;  %v2401_v46 = vld [vmem:[#allocation8 + $0x4c8] sm:$0xff]  ;;  %v2432_v20 = vld [vmem:[#allocation8 + $0x5c0] sm:$0xff]  ;;  %v4427_v56 = vpack.c.bf16 %v2415_v42, %v2414_v40  ;;  %v4411_v40 = vpack.c.bf16 %v2391_v59, %v2390_v33 }
 0x22f   :  { %4414 = vmatprep.subr.bf16.mxu1 %v4413_v47  ;;  %v4397_v47 = vpack.c.bf16 %v2401_v46, %v2400_v44  ;;  %v4429_v9 = vpack.c.bf16 %v2433_v6, %v2432_v20  ;;  %v4477_v44 = vpack.c.bf16 %v2489_v43, %v2488_v29  ;;  %v5049_v46 = vld [vmem:[#allocation7 + $0x8] sm:$0xff]  ;;  %v2476_v29 = vld [vmem:[#allocation8 + $0x720] sm:$0xff] }
 0x230   :  { %2726 = vmatmul.mubr.f32.vlgmr.msra.gmra.mrb[20].mxu0 %v2220_v14  ;;  %v2435_v14 = vld [vmem:[#allocation8 + $0x5d8] sm:$0xff]  ;;  %v932_v20 = vrot.slane %v5049_v46, %v899_v39  ;;  %v940_v6 = vrot.slane %v5049_v46, %v907_v45  ;;  %v2473_v39 = vld [vmem:[#allocation8 + $0x708] sm:$0xff]  ;;  %v2458_v45 = vld [vmem:[#allocation8 + $0x690] sm:$0xff] }
 0x231   :  { %2801 = vmatmul.mubr.f32.vlgmr.msra.gmra.mrb[20].mxu1 %v2222_v30  ;;  %2730 = vmatprep.mubr.f32.mxu0 %v2237_v10  ;;  %v2386_v30 = vld [vmem:[#allocation8 + $0x450] sm:$0xff] }
 0x232   :  { %2805 = vmatprep.mubr.f32.mxu1 %v2239_v15  ;;  %4384 = vmatpush3.bf16.msra.mxu0 %v4383_v8  ;;  %v4431_v8 = vpack.c.bf16 %v2417_v50, %v2416_v49  ;;  %v2418_v10 = vld [vmem:[#allocation8 + $0x550] sm:$0xff]  ;;  %v2436_v15 = vld [vmem:[#allocation8 + $0x5e0] sm:$0xff]  ;;  %v4403_v16 = vpack.c.bf16 %v2387_v55, %v2386_v30  ;;  %v2441_v50 = vld [vmem:[#allocation8 + $0x608] sm:$0xff] }
 0x233   :  { %4416 = vmatpush3.bf16.msra.mxu1 %v4415_v0  ;;  %4386 = vmatprep.subr.bf16.mxu0 %v4385_v58  ;;  %v4401_v0 = vpack.c.bf16 %v2403_v51, %v2402_v52  ;;  %v4433_v58 = vpack.c.bf16 %v2435_v14, %v2434_v53  ;;  %v4435_v62 = vpack.c.bf16 %v2419_v37, %v2418_v10  ;;  %v2472_v52 = vld [vmem:[#allocation8 + $0x700] sm:$0xff] }
 0x234   :  { %2731 = vmatmul.mubr.f32.gmra.mrb[22].mxu0 %v2236_v11  ;;  %4418 = vmatprep.subr.bf16.mxu1 %v4417_v13  ;;  %v2437_v13 = vld [vmem:[#allocation8 + $0x5e8] sm:$0xff]  ;;  %v2420_v11 = vld [vmem:[#allocation8 + $0x560] sm:$0xff]  ;;  %v4447_v10 = vpack.c.bf16 %v2441_v50, %v2440_v5  ;;  %v2446_v5 = vld [vmem:[#allocation8 + $0x630] sm:$0xff] }
 0x235   :  { %2806 = vmatmul.mubr.f32.gmra.mrb[22].mxu1 %v2238_v12  ;;  %v2421_v12 = vld [vmem:[#allocation8 + $0x568] sm:$0xff]  ;;  %v2479_v50 = vld [vmem:[#allocation8 + $0x738] sm:$0xff] }
 0x236   :  { %4388 = vmatpush3.bf16.msra.mxu0 %v4387_v32  ;;  %v4437_v32 = vpack.c.bf16 %v2437_v13, %v2436_v15 }
 0x237   :  { %4420 = vmatpush3.bf16.msra.mxu1 %v4419_v18  ;;  %4390 = vmatprep.subr.bf16.mxu0 %v4389_v19  ;;  %v2406_v18 = vld [vmem:[#allocation8 + $0x4f0] sm:$0xff]  ;;  %v2407_v19 = vld [vmem:[#allocation8 + $0x4f8] sm:$0xff] }
 0x238   :  { %4422 = vmatprep.subr.bf16.mxu1 %v4421_v26  ;;  %v4439_v26 = vpack.c.bf16 %v2421_v12, %v2420_v11  ;;  %v4409_v28 = vpack.c.bf16 %v2407_v19, %v2406_v18  ;;  %v2475_v18 = vld [vmem:[#allocation8 + $0x718] sm:$0xff]  ;;  %v2460_v19 = vld [vmem:[#allocation8 + $0x6a0] sm:$0xff] }
 0x23a   :  { %4392 = vmatpush3.bf16.msra.mxu0 %v4391_v36  ;;  %v2423_v36 = vld [vmem:[#allocation8 + $0x578] sm:$0xff] }
 0x23b   :  { %4424 = vmatpush3.bf16.msra.mxu1 %v4423_v17  ;;  %4394 = vmatprep.subr.bf16.mxu0 %v4393_v3  ;;  %v2456_v17 = vld [vmem:[#allocation8 + $0x680] sm:$0xff]  ;;  %v2457_v3 = vld [vmem:[#allocation8 + $0x688] sm:$0xff] }
 0x23c   :  { %4426 = vmatprep.subr.bf16.mxu1 %v4425_v41  ;;  %v4443_v41 = vpack.c.bf16 %v2423_v36, %v2422_v34  ;;  %v4445_v42 = vpack.c.bf16 %v2457_v3, %v2456_v17  ;;  %v4453_v36 = vpack.c.bf16 %v2461_v22, %v2460_v19  ;;  %v2444_v17 = vld [vmem:[#allocation8 + $0x620] sm:$0xff]  ;;  %v2445_v3 = vld [vmem:[#allocation8 + $0x628] sm:$0xff] }
 0x23e   :  { %4396 = vmatpush3.bf16.msra.mxu0 %v4395_v24  ;;  %v936_v24 = vrot.slane %v5049_v46, %v903_v21  ;;  %v2491_v21 = vld [vmem:[#allocation8 + $0x798] sm:$0xff] }
 0x23f   :  { %4428 = vmatpush3.bf16.msra.mxu1 %v4427_v56  ;;  %4398 = vmatprep.subr.bf16.mxu0 %v4397_v47  ;;  %v944_v56 = vrot.slane %v5049_v46, %v911_v57  ;;  %v4479_v57 = vpack.c.bf16 %v2473_v39, %v2472_v52  ;;  %v2464_v52 = vld [vmem:[#allocation8 + $0x6c0] sm:$0xff]  ;;  %v2465_v39 = vld [vmem:[#allocation8 + $0x6c8] sm:$0xff] }
 0x240   :  { %4430 = vmatprep.subr.bf16.mxu1 %v4429_v9 }
 0x242   :  { %4400 = vmatpush3.bf16.msra.mxu0 %v4399_v54  ;;  %v2459_v54 = vld [vmem:[#allocation8 + $0x698] sm:$0xff] }
 0x243   :  { %4432 = vmatpush3.bf16.msra.mxu1 %v4431_v8  ;;  %4402 = vmatprep.subr.bf16.mxu0 %v4401_v0  ;;  %v2490_v0 = vld [vmem:[#allocation8 + $0x790] sm:$0xff] }
 0x244   :  { %4434 = vmatprep.subr.bf16.mxu1 %v4433_v58  ;;  %v2442_v58 = vld [vmem:[#allocation8 + $0x610] sm:$0xff]  ;;  %v4481_v12 = vpack.c.bf16 %v2491_v21, %v2490_v0  ;;  %v2449_v0 = vld [vmem:[#allocation8 + $0x648] sm:$0xff]  ;;  %v2480_v21 = vld [vmem:[#allocation8 + $0x740] sm:$0xff] }
 0x246   :  { %4404 = vmatpush3.bf16.msra.mxu0 %v4403_v16  ;;  %v4449_v16 = vpack.c.bf16 %v2459_v54, %v2458_v45  ;;  %v4461_v54 = vpack.c.bf16 %v2465_v39, %v2464_v52 }
 0x247   :  { %4436 = vmatpush3.bf16.msra.mxu1 %v4435_v62  ;;  %4406 = vmatprep.subr.bf16.mxu0 %v4405_v2  ;;  %v2443_v62 = vld [vmem:[#allocation8 + $0x618] sm:$0xff]  ;;  %v2474_v2 = vld [vmem:[#allocation8 + $0x710] sm:$0xff] }
 0x248   :  { %4438 = vmatprep.subr.bf16.mxu1 %v4437_v32  ;;  %v4451_v33 = vpack.c.bf16 %v2443_v62, %v2442_v58  ;;  %v2498_v58 = vld [vmem:[#allocation8 + $0x7d0] sm:$0xff] }
 0x249   :  { %v2482_v62 = vld [vmem:[#allocation8 + $0x750] sm:$0xff] }
 0x24a   :  { %4408 = vmatpush3.bf16.msra.mxu0 %v4407_v25  ;;  %v2492_v25 = vld [vmem:[#allocation8 + $0x7a0] sm:$0xff] }
 0x24b   :  { %4440 = vmatpush3.bf16.msra.mxu1 %v4439_v26  ;;  %4410 = vmatprep.subr.bf16.mxu0 %v4409_v28  ;;  %v2493_v26 = vld [vmem:[#allocation8 + $0x7a8] sm:$0xff] }
 0x24c   :  { %4442 = vmatprep.subr.bf16.mxu1 %v4441_v35  ;;  %v4483_v35 = vpack.c.bf16 %v2475_v18, %v2474_v2 }
 0x24e   :  { %4412 = vmatpush3.bf16.msra.mxu0 %v4411_v40  ;;  %v4485_v40 = vpack.c.bf16 %v2493_v26, %v2492_v25  ;;  %v2453_v25 = vld [vmem:[#allocation8 + $0x668] sm:$0xff]  ;;  %v2484_v26 = vld [vmem:[#allocation8 + $0x760] sm:$0xff] }
 0x24f   :  { %4444 = vmatpush3.bf16.msra.mxu1 %v4443_v41  ;;  %4446 = vmatprep.subr.bf16.mxu0 %v4445_v42  ;;  %v2477_v41 = vld [vmem:[#allocation8 + $0x728] sm:$0xff]  ;;  %v2462_v42 = vld [vmem:[#allocation8 + $0x6b0] sm:$0xff] }
 0x250   :  { %4478 = vmatprep.subr.bf16.mxu1 %v4477_v44  ;;  %v2463_v44 = vld [vmem:[#allocation8 + $0x6b8] sm:$0xff] }
 0x25e   :  { %v1743_v47 = vpop.f32.mrb[8].mxu0 }
 0x25f   :  { %v4525_v48 = vadd.f32 %v1743_v47, %v932_v20  ;;  %v1897_v49 = vpop.f32.mrb[8].mxu1  ;;  %v1745_v9 = vpop.f32.mrb[9].mxu0  ;;  %v4457_v47 = vpack.c.bf16 %v2463_v44, %v2462_v42  ;;  %v2486_v42 = vld [vmem:[#allocation8 + $0x770] sm:$0xff]  ;;  %v2487_v44 = vld [vmem:[#allocation8 + $0x778] sm:$0xff] }
 0x260   :  { %v4529_v51 = vadd.f32 %v1897_v49, %v940_v6  ;;  %v4526_v53 = vadd.f32 %v1745_v9, %v936_v24  ;;  %v1899_v14 = vpop.f32.mrb[9].mxu1  ;;  %v2478_v49 = vld [vmem:[#allocation8 + $0x730] sm:$0xff] }
 0x261   :  { %v4530_v8 = vadd.f32 %v1899_v14, %v944_v56  ;;  %v2224_v37 = vmax.f32 %v4525_v48, 0.0  ;;  %v2447_v48 = vld [vmem:[#allocation8 + $0x638] sm:$0xff]  ;;  %v4491_v45 = vpack.c.bf16 %v2479_v50, %v2478_v49 }
 0x262   :  { %v2225_v30 = vmax.f32 %v4526_v53, 0.0  ;;  %v1749_v55 = vpop.f32.mrb[10].mxu0  ;;  %v2226_v27 = vmax.f32 %v4529_v51, 0.0  ;;  %v2496_v51 = vld [vmem:[#allocation8 + $0x7c0] sm:$0xff]  ;;  %v2497_v53 = vld [vmem:[#allocation8 + $0x7c8] sm:$0xff]  ;;  %v4459_v14 = vpack.c.bf16 %v2447_v48, %v2446_v5  ;;  %v960_v5 = vrot.slane %v5049_v46, %v927_v31 }
 0x263   :  { %v2227_v38 = vmax.f32 %v4530_v8, 0.0  ;;  %v4527_v63 = vadd.f32 %v1749_v55, %v932_v20  ;;  %v1903_v15 = vpop.f32.mrb[10].mxu1  ;;  %v1751_v13 = vpop.f32.mrb[11].mxu0  ;;  %v2494_v20 = vld [vmem:[#allocation8 + $0x7b0] sm:$0xff]  ;;  %v2448_v8 = vld [vmem:[#allocation8 + $0x640] sm:$0xff]  ;;  %v2481_v55 = vld [vmem:[#allocation8 + $0x748] sm:$0xff] }
 0x264   :  { %v4531_v4 = vadd.f32 %v1903_v15, %v940_v6  ;;  %v4528_v11 = vadd.f32 %v1751_v13, %v936_v24  ;;  %v1905_v32 = vpop.f32.mrb[11].mxu1  ;;  %2875 = vmatprep.mubr.f32.mxu0 %v2225_v30  ;;  %v2495_v6 = vld [vmem:[#allocation8 + $0x7b8] sm:$0xff]  ;;  %v4455_v24 = vpack.c.bf16 %v2445_v3, %v2444_v17  ;;  %v4493_v30 = vpack.c.bf16 %v2497_v53, %v2496_v51  ;;  %v2450_v13 = vld [vmem:[#allocation8 + $0x650] sm:$0xff] }
 0x265   :  { %v4532_v23 = vadd.f32 %v1905_v32, %v944_v56  ;;  %2950 = vmatprep.mubr.f32.mxu1 %v2227_v38  ;;  %2876 = vmatmul.mubr.f32.vlgmr.msra.gmra.mrb[24].mxu0 %v2224_v37  ;;  %v2240_v59 = vmax.f32 %v4527_v63, 0.0  ;;  %v4487_v56 = vpack.c.bf16 %v2477_v41, %v2476_v29  ;;  %v4489_v9 = vpack.c.bf16 %v2495_v6, %v2494_v20  ;;  %v2499_v37 = vld [vmem:[#allocation8 + $0x7d8] sm:$0xff]  ;;  %v2500_v32 = vld [vmem:[#allocation8 + $0x7e0] sm:$0xff] }
 0x266   :  { %v2241_v28 = vmax.f32 %v4528_v11, 0.0  ;;  %2951 = vmatmul.mubr.f32.vlgmr.msra.gmra.mrb[24].mxu1 %v2226_v27  ;;  %4448 = vmatpush3.bf16.msra.mxu0 %v4447_v10  ;;  %v2242_v43 = vmax.f32 %v4531_v4, 0.0  ;;  %v2466_v10 = vld [vmem:[#allocation8 + $0x6d0] sm:$0xff]  ;;  %v4463_v38 = vpack.c.bf16 %v2449_v0, %v2448_v8  ;;  %v4495_v63 = vpack.c.bf16 %v2481_v55, %v2480_v21  ;;  %v2483_v27 = vld [vmem:[#allocation8 + $0x758] sm:$0xff]  ;;  %v2468_v4 = vld [vmem:[#allocation8 + $0x6e0] sm:$0xff] }
 0x267   :  { %v2243_v34 = vmax.f32 %v4532_v23, 0.0  ;;  %4480 = vmatpush3.bf16.msra.mxu1 %v4479_v57  ;;  %4450 = vmatprep.subr.bf16.mxu0 %v4449_v16  ;;  %v2467_v57 = vld [vmem:[#allocation8 + $0x6d8] sm:$0xff]  ;;  %v4497_v2 = vpack.c.bf16 %v2499_v37, %v2498_v58  ;;  %v2469_v11 = vld [vmem:[#allocation8 + $0x6e8] sm:$0xff]  ;;  %v4499_v19 = vpack.c.bf16 %v2483_v27, %v2482_v62  ;;  %v2452_v23 = vld [vmem:[#allocation8 + $0x660] sm:$0xff]  ;;  %v4507_v6 = vpack.c.bf16 %v2487_v44, %v2486_v42 }
 0x268   :  { %2880 = vmatprep.mubr.f32.mxu0 %v2241_v28  ;;  %4482 = vmatprep.subr.bf16.mxu1 %v4481_v12  ;;  %v4465_v15 = vpack.c.bf16 %v2467_v57, %v2466_v10  ;;  %v2451_v16 = vld [vmem:[#allocation8 + $0x658] sm:$0xff]  ;;  %v2501_v12 = vld [vmem:[#allocation8 + $0x7e8] sm:$0xff]  ;;  %v4469_v22 = vpack.c.bf16 %v2469_v11, %v2468_v4  ;;  %v4471_v17 = vpack.c.bf16 %v2453_v25, %v2452_v23 }
 0x269   :  { %2955 = vmatprep.mubr.f32.mxu1 %v2243_v34  ;;  %2881 = vmatmul.mubr.f32.gmra.mrb[26].mxu0 %v2240_v59  ;;  %v4467_v18 = vpack.c.bf16 %v2451_v16, %v2450_v13  ;;  %v4501_v28 = vpack.c.bf16 %v2501_v12, %v2500_v32  ;;  %v2470_v59 = vld [vmem:[#allocation8 + $0x6f0] sm:$0xff]  ;;  %v2471_v34 = vld [vmem:[#allocation8 + $0x6f8] sm:$0xff] }
 0x26a   :  { %2956 = vmatmul.mubr.f32.gmra.mrb[26].mxu1 %v2242_v43  ;;  %4452 = vmatpush3.bf16.msra.mxu0 %v4451_v33  ;;  %v2485_v33 = vld [vmem:[#allocation8 + $0x768] sm:$0xff]  ;;  %v4473_v29 = vpack.c.bf16 %v2471_v34, %v2470_v59  ;;  %v2454_v43 = vld [vmem:[#allocation8 + $0x670] sm:$0xff] }
 0x26b   :  { %4484 = vmatpush3.bf16.msra.mxu1 %v4483_v35  ;;  %4454 = vmatprep.subr.bf16.mxu0 %v4453_v36  ;;  %v2502_v35 = vld [vmem:[#allocation8 + $0x7f0] sm:$0xff]  ;;  %v2503_v36 = vld [vmem:[#allocation8 + $0x7f8] sm:$0xff]  ;;  %v4503_v3 = vpack.c.bf16 %v2485_v33, %v2484_v26 }
 0x26c   :  { %4486 = vmatprep.subr.bf16.mxu1 %v4485_v40  ;;  %v2455_v40 = vld [vmem:[#allocation8 + $0x678] sm:$0xff]  ;;  %v4505_v41 = vpack.c.bf16 %v2503_v36, %v2502_v35 }
 0x26d   :  { %v4475_v20 = vpack.c.bf16 %v2455_v40, %v2454_v43 }
 0x26e   :  { %4456 = vmatpush3.bf16.msra.mxu0 %v4455_v24  ;;  %v948_v24 = vrot.slane %v5049_v46, %v915_v61 }
 0x26f   :  { %4488 = vmatpush3.bf16.msra.mxu1 %v4487_v56  ;;  %4458 = vmatprep.subr.bf16.mxu0 %v4457_v47  ;;  %v956_v56 = vrot.slane %v5049_v46, %v923_v7  ;;  %v952_v47 = vrot.slane %v5049_v46, %v919_v60 }
 0x270   :  { %4490 = vmatprep.subr.bf16.mxu1 %v4489_v9 }
 0x272   :  { %4460 = vmatpush3.bf16.msra.mxu0 %v4459_v14 }
 0x273   :  { %4492 = vmatpush3.bf16.msra.mxu1 %v4491_v45  ;;  %4462 = vmatprep.subr.bf16.mxu0 %v4461_v54 }
 0x274   :  { %4494 = vmatprep.subr.bf16.mxu1 %v4493_v30 }
 0x276   :  { %4464 = vmatpush3.bf16.msra.mxu0 %v4463_v38  ;;  %v3148_v38 = vld [vmem:[#allocation10] ss:$0 sm:$0xff] }
 0x277   :  { %4496 = vmatpush3.bf16.msra.mxu1 %v4495_v63  ;;  %4466 = vmatprep.subr.bf16.mxu0 %v4465_v15 }
 0x278   :  { %4498 = vmatprep.subr.bf16.mxu1 %v4497_v2 }
 0x27a   :  { %4468 = vmatpush3.bf16.msra.mxu0 %v4467_v18 }
 0x27b   :  { %4500 = vmatpush3.bf16.msra.mxu1 %v4499_v19  ;;  %4470 = vmatprep.subr.bf16.mxu0 %v4469_v22 }
 0x27c   :  { %4502 = vmatprep.subr.bf16.mxu1 %v4501_v28 }
 0x27e   :  { %4472 = vmatpush3.bf16.msra.mxu0 %v4471_v17 }
 0x27f   :  { %4504 = vmatpush3.bf16.msra.mxu1 %v4503_v3  ;;  %4474 = vmatprep.subr.bf16.mxu0 %v4473_v29 }
 0x280   :  { %4506 = vmatprep.subr.bf16.mxu1 %v4505_v41 }
 0x282   :  { %4476 = vmatpush3.bf16.msra.mxu0 %v4475_v20 }
 0x283   :  { %4508 = vmatpush3.bf16.msra.mxu1 %v4507_v6 }
 0x2c2   :  { %v2051_v48 = vpop.f32.mrb[12].mxu0 }
 0x2c3   :  { %v4533_v49 = vadd.f32 %v2051_v48, %v948_v24  ;;  %v2205_v9 = vpop.f32.mrb[12].mxu1  ;;  %v2053_v50 = vpop.f32.mrb[13].mxu0 }
 0x2c4   :  { %v4537_v52 = vadd.f32 %v2205_v9, %v956_v56  ;;  %v4534_v39 = vadd.f32 %v2053_v50, %v952_v47  ;;  %v2207_v51 = vpop.f32.mrb[13].mxu1 }
 0x2c5   :  { %v4538_v61 = vadd.f32 %v2207_v51, %v960_v5  ;;  %v2228_v45 = vmax.f32 %v4533_v49, 0.0 }
 0x2c6   :  { %v2229_v53 = vmax.f32 %v4534_v39, 0.0  ;;  %v2057_v14 = vpop.f32.mrb[14].mxu0  ;;  %v2230_v60 = vmax.f32 %v4537_v52, 0.0 }
 0x2c7   :  { %v2231_v7 = vmax.f32 %v4538_v61, 0.0  ;;  %v4535_v54 = vadd.f32 %v2057_v14, %v948_v24  ;;  %v2211_v8 = vpop.f32.mrb[14].mxu1  ;;  %v2059_v0 = vpop.f32.mrb[15].mxu0 }
 0x2c8   :  { %v4539_v21 = vadd.f32 %v2211_v8, %v956_v56  ;;  %v4536_v1 = vadd.f32 %v2059_v0, %v952_v47  ;;  %v2213_v30 = vpop.f32.mrb[15].mxu1  ;;  %3025 = vmatprep.mubr.f32.mxu0 %v2229_v53 }
 0x2c9   :  { %v4540_v31 = vadd.f32 %v2213_v30, %v960_v5  ;;  %3100 = vmatprep.mubr.f32.mxu1 %v2231_v7  ;;  %3026 = vmatmul.mubr.f32.vlgmr.msra.gmra.mrb[28].mxu0 %v2228_v45  ;;  %v2244_v55 = vmax.f32 %v4535_v54, 0.0 }
 0x2ca   :  { %v2245_v46 = vmax.f32 %v4536_v1, 0.0  ;;  %3101 = vmatmul.mubr.f32.vlgmr.msra.gmra.mrb[28].mxu1 %v2230_v60  ;;  %v2246_v57 = vmax.f32 %v4539_v21, 0.0 }
 0x2cb   :  { %v2247_v10 = vmax.f32 %v4540_v31, 0.0 }
 0x2cc   :  { %3030 = vmatprep.mubr.f32.mxu0 %v2245_v46 }
 0x2cd   :  { %3105 = vmatprep.mubr.f32.mxu1 %v2247_v10  ;;  %3031 = vmatmul.mubr.f32.gmra.mrb[30].mxu0 %v2244_v55 }
 0x2ce   :  { %3106 = vmatmul.mubr.f32.gmra.mrb[30].mxu1 %v2246_v57 }
 0x2e2   :  { %v3181_v58 = vpop.f32.mrb[16].mxu0 }
 0x2e3   :  { %v3219_v37 = vpop.f32.mrb[16].mxu1  ;;  %v3182_v63 = vpop.f32.mrb[17].mxu0 }
 0x2e4   :  { %v3183_v15 = vadd.f32 %v3182_v63, %v3181_v58  ;;  %v3220_v13 = vpop.f32.mrb[17].mxu1 }
 0x2e5   :  { %v3221_v16 = vadd.f32 %v3220_v13, %v3219_v37 }
 0x2e6   :  { %v2578_v62 = vadd.f32 %v3183_v15, %v3148_v38  ;;  %v3184_v2 = vpop.f32.mrb[18].mxu0 }
 0x2e7   :  { %v3222_v27 = vpop.f32.mrb[18].mxu1  ;;  %v3185_v4 = vpop.f32.mrb[19].mxu0 }
 0x2e8   :  { %v2653_v11 = vadd.f32 %v3221_v16, %v2578_v62  ;;  %v3186_v32 = vadd.f32 %v3185_v4, %v3184_v2  ;;  %v3223_v12 = vpop.f32.mrb[19].mxu1 }
 0x2e9   :  { %v3224_v18 = vadd.f32 %v3223_v12, %v3222_v27 }
 0x2ea   :  { %v2583_v19 = vadd.f32 %v3186_v32, %v3148_v38 }
 0x2ec   :  { %v2658_v22 = vadd.f32 %v3224_v18, %v2583_v19 }
 0x303   :  { %v3257_v23 = vpop.f32.mrb[20].mxu0 }
 0x304   :  { %v3295_v25 = vpop.f32.mrb[20].mxu1  ;;  %v3258_v26 = vpop.f32.mrb[21].mxu0 }
 0x305   :  { %v3259_v28 = vadd.f32 %v3258_v26, %v3257_v23  ;;  %v3296_v33 = vpop.f32.mrb[21].mxu1 }
 0x306   :  { %v3297_v59 = vadd.f32 %v3296_v33, %v3295_v25 }
 0x307   :  { %v2728_v34 = vadd.f32 %v3259_v28, %v2653_v11  ;;  %v3260_v35 = vpop.f32.mrb[22].mxu0 }
 0x308   :  { %v3298_v36 = vpop.f32.mrb[22].mxu1  ;;  %v3261_v17 = vpop.f32.mrb[23].mxu0 }
 0x309   :  { %v2803_v3 = vadd.f32 %v3297_v59, %v2728_v34  ;;  %v3262_v29 = vadd.f32 %v3261_v17, %v3260_v35  ;;  %v3299_v43 = vpop.f32.mrb[23].mxu1 }
 0x30a   :  { %v3300_v40 = vadd.f32 %v3299_v43, %v3298_v36 }
 0x30b   :  { %v2733_v41 = vadd.f32 %v3262_v29, %v2658_v22 }
 0x30d   :  { %v2808_v42 = vadd.f32 %v3300_v40, %v2733_v41 }
 0x338   :  { %v3333_v44 = vpop.f32.mrb[24].mxu0 }
 0x339   :  { %v3371_v20 = vpop.f32.mrb[24].mxu1  ;;  %v3334_v6 = vpop.f32.mrb[25].mxu0 }
 0x33a   :  { %v3335_v24 = vadd.f32 %v3334_v6, %v3333_v44  ;;  %v3372_v56 = vpop.f32.mrb[25].mxu1 }
 0x33b   :  { %v3373_v47 = vadd.f32 %v3372_v56, %v3371_v20 }
 0x33c   :  { %v2878_v5 = vadd.f32 %v3335_v24, %v2803_v3  ;;  %v3336_v48 = vpop.f32.mrb[26].mxu0 }
 0x33d   :  { %v3374_v49 = vpop.f32.mrb[26].mxu1  ;;  %v3337_v9 = vpop.f32.mrb[27].mxu0 }
 0x33e   :  { %v2953_v50 = vadd.f32 %v3373_v47, %v2878_v5  ;;  %v3338_v52 = vadd.f32 %v3337_v9, %v3336_v48  ;;  %v3375_v39 = vpop.f32.mrb[27].mxu1 }
 0x33f   :  { %v3376_v51 = vadd.f32 %v3375_v39, %v3374_v49 }
 0x340   :  { %v2883_v61 = vadd.f32 %v3338_v52, %v2808_v42 }
 0x342   :  { %v2958_v53 = vadd.f32 %v3376_v51, %v2883_v61 }
 0x39c   :  { %v3409_v14 = vpop.f32.mrb[28].mxu0 }
 0x39d   :  { %v3447_v45 = vpop.f32.mrb[28].mxu1  ;;  %v3410_v7 = vpop.f32.mrb[29].mxu0 }
 0x39e   :  { %v3411_v54 = vadd.f32 %v3410_v7, %v3409_v14  ;;  %v3448_v8 = vpop.f32.mrb[29].mxu1 }
 0x39f   :  { %v3449_v0 = vadd.f32 %v3448_v8, %v3447_v45 }
 0x3a0   :  { %v3028_v60 = vadd.f32 %v3411_v54, %v2953_v50  ;;  %v3412_v21 = vpop.f32.mrb[30].mxu0 }
 0x3a1   :  { %v3450_v1 = vpop.f32.mrb[30].mxu1  ;;  %v3413_v30 = vpop.f32.mrb[31].mxu0 }
 0x3a2   :  { %v3103_v31 = vadd.f32 %v3449_v0, %v3028_v60  ;;  %v3414_v46 = vadd.f32 %v3413_v30, %v3412_v21  ;;  %v3451_v55 = vpop.f32.mrb[31].mxu1 }
 0x3a3   :  { %v3452_v10 = vadd.f32 %v3451_v55, %v3450_v1 }
 0x3a4   :  { %3111 = vst [vmem:[#allocation11] sm:$0xff] %v3103_v31  ;;  %v3033_v57 = vadd.f32 %v3414_v46, %v2958_v53 }
 0x3a6   :  { %v3108_v58 = vadd.f32 %v3452_v10, %v3033_v57 }
 0x3a8   :  { %3112 = vst [vmem:[#allocation11 + $0x8] sm:$0xff] %v3108_v58 }
 0x3a9   :  { %4713 = shalt.err (!%p4710_p2)
}
 0x3aa   :  { %s4714_s10 = scalar_lea.hbm %s5095_s5, 256 }
 0x3ab   :  { %p4715_p3 = scmp.ne.s32.totalorder %s5095_s5, %s4714_s10  ;;  %p4718_p4 = scmp.lt.u32.totalorder %s4714_s10, %s5095_s5 }
 0x3ad   :  { %p4720_p5 = pnand %p4718_p4, %p4715_p3 }
 0x3af   :  { %4723 = shalt.err (!%p4720_p5)
}
 0x3b0   :  { %3124 = dma.vmem_to_hbm [thread:$0]  %s3119_s6, 256, %s5095_s5, [#allocation4], %s4734_s29, %s4734_s29, %s4736_s1  }
 0x3b1   :  { %4730 = dma.done.wait [#allocation4], 256  }
 0x3b2   :  { %4731 = vsyncadd [#allocation4], 4294967040 }
 0x3b3   :  { %3128 = vsyncpa [#allocation3], 1 }
 0x3b4   :  { %3129 = vsyncpa [#allocation6], 1 }
 0x3b5   :  { %3130 = vsyncpa [#allocation9], 1 }
 0x3b6   :  { %3131 = vsyncpa [#allocation4], 1 }

</bundles_post_ra>
